<compile_context>
chip_gen: v5e
topology: v5e:2x2
jax: 0.10.0
libtpu: 0.0.40
codegen_flags: <defaults>
</compile_context>

<pallas_src>
import functools

import jax
import jax.numpy as jnp
from jax.experimental import pallas as pl
from jax.experimental.pallas import tpu as pltpu


# --------------------------------------------------------------------------
# In-kernel helpers
# --------------------------------------------------------------------------
def _conv3x3_from_padded(xp_ref, w_ref, b_ref, H, W, Cin):
    """3x3 conv + bias + ReLU from a zero-padded (H+2, W+2, Cin) VMEM scratch.

    im2col with K = 9*Cin (lane-axis concat of the 9 shifted patches) so the whole
    conv is a single MXU matmul; bf16 operands, f32 accumulation, f32 bias/ReLU.
    Returns the (H*W, Cout) f32 activation.
    """
    patches = [xp_ref[pl.ds(kh, H), pl.ds(kw, W), :]
               for kh in range(3) for kw in range(3)]
    im2col = jnp.concatenate(patches, axis=-1)                 # (H, W, 9*Cin)
    lhs = im2col.reshape(H * W, 9 * Cin).astype(jnp.bfloat16)  # bf16 MXU operand
    acc = jnp.dot(lhs, w_ref[...], preferred_element_type=jnp.float32)
    acc = acc + b_ref[0]                                       # f32 bias
    return jnp.maximum(acc, 0.0)                               # f32 ReLU


def _double_conv_body(w1_ref, b1_ref, w2_ref, b2_ref, o_ref,
                      xp_ref, mid_ref, x_in, H, W, Cin, Cmid, Cout):
    """conv1(+bias+ReLU) -> padded VMEM scratch -> conv2(+bias+ReLU) -> output."""
    xp_ref[...] = jnp.zeros_like(xp_ref)                       # halo padding in VMEM
    xp_ref[pl.ds(1, H), pl.ds(1, W), :] = x_in
    r1 = _conv3x3_from_padded(xp_ref, w1_ref, b1_ref, H, W, Cin)

    mid_ref[...] = jnp.zeros_like(mid_ref)
    mid_ref[pl.ds(1, H), pl.ds(1, W), :] = r1.reshape(H, W, Cmid)
    r2 = _conv3x3_from_padded(mid_ref, w2_ref, b2_ref, H, W, Cmid)

    # TODO(synk): make this store lane-dense (last dim W*Cout) once the
    # (H*W, Cout)->(H, W*Cout) minor-dim-merging reshape is verified on Mosaic.
    o_ref[0] = r2.reshape(H, W, Cout)


def _block_kernel(x_ref, w1_ref, b1_ref, w2_ref, b2_ref, o_ref,
                  xp_ref, mid_ref, *, H, W, Cin, Cmid, Cout):
    """Block 0: DoubleConv only (no downsample). x_ref: (1, H, W, Cin)."""
    _double_conv_body(w1_ref, b1_ref, w2_ref, b2_ref, o_ref,
                      xp_ref, mid_ref, x_ref[0], H, W, Cin, Cmid, Cout)


def _pool_block_kernel(x_ref, w1_ref, b1_ref, w2_ref, b2_ref, o_ref,
                       hx_ref, xp_ref, mid_ref, *, H, W, Cin, Cmid, Cout):
    """Blocks 1..: fused MaxPool2d(2) + DoubleConv.

    x_ref: (1, H, 2, 2*W, Cin) -- the H-direction pooling pairs were exposed by a
    free XLA reshape of the (B, 2H, 2W, Cin) activation (leading-dim split only).
    """
    # H-direction max: static indexing of the split axis.
    hx_ref[...] = jnp.maximum(x_ref[0, :, 0, :, :], x_ref[0, :, 1, :, :])  # (H, 2W, Cin)
    # W-direction max: stride-2 sublane reads from the VMEM staging buffer.
    pooled = jnp.maximum(hx_ref[:, pl.ds(0, W, stride=2), :],
                         hx_ref[:, pl.ds(1, W, stride=2), :])              # (H, W, Cin)
    _double_conv_body(w1_ref, b1_ref, w2_ref, b2_ref, o_ref,
                      xp_ref, mid_ref, pooled, H, W, Cin, Cmid, Cout)


# --------------------------------------------------------------------------
# Pallas wrapper: one fused call per encoder block (NHWC)
# --------------------------------------------------------------------------
def encoder_block(x_nhwc, block_params, pool):
    (w1, b1), (w2, b2) = block_params
    Cin, Cmid = w1.shape[2], w1.shape[3]
    Cout = w2.shape[3]
    B, Hin, Win, _ = x_nhwc.shape

    if pool:
        H, W = Hin // 2, Win // 2
        # Free row-major split of the H axis (last two dims untouched).
        x_in = x_nhwc.reshape(B, H, 2, 2 * W, Cin)
        x_spec = pl.BlockSpec((1, H, 2, 2 * W, Cin), lambda b: (b, 0, 0, 0, 0))
        kernel = functools.partial(_pool_block_kernel, H=H, W=W,
                                   Cin=Cin, Cmid=Cmid, Cout=Cout)
        scratch = [pltpu.VMEM((H, 2 * W, Cin), jnp.float32),       # H-pooled staging
                   pltpu.VMEM((H + 2, W + 2, Cin), jnp.float32),   # padded conv1 input
                   pltpu.VMEM((H + 2, W + 2, Cmid), jnp.float32)]  # padded conv2 input
    else:
        H, W = Hin, Win
        x_in = x_nhwc
        x_spec = pl.BlockSpec((1, H, W, Cin), lambda b: (b, 0, 0, 0))
        kernel = functools.partial(_block_kernel, H=H, W=W,
                                   Cin=Cin, Cmid=Cmid, Cout=Cout)
        scratch = [pltpu.VMEM((H + 2, W + 2, Cin), jnp.float32),
                   pltpu.VMEM((H + 2, W + 2, Cmid), jnp.float32)]

    # Weights pre-packed for the K = 9*Cin im2col matmul and pre-cast to bf16;
    # biases stay f32 (element-wise path stays f32 on all generations).
    w1m = w1.reshape(9 * Cin, Cmid).astype(jnp.bfloat16)
    w2m = w2.reshape(9 * Cmid, Cout).astype(jnp.bfloat16)

    return pl.pallas_call(
        kernel,
        out_shape=jax.ShapeDtypeStruct((B, H, W, Cout), jnp.float32),
        grid=(B,),
        in_specs=[x_spec,
                  pl.BlockSpec((9 * Cin, Cmid), lambda b: (0, 0)),
                  pl.BlockSpec((1, Cmid), lambda b: (0, 0)),
                  pl.BlockSpec((9 * Cmid, Cout), lambda b: (0, 0)),
                  pl.BlockSpec((1, Cout), lambda b: (0, 0))],
        out_specs=pl.BlockSpec((1, H, W, Cout), lambda b: (b, 0, 0, 0)),
        scratch_shapes=scratch,
        compiler_params=pltpu.CompilerParams(
            dimension_semantics=("parallel",),          # batch shards across cores
            vmem_limit_bytes=48 * 1024 * 1024),         # safe on v5e/v6e and v7x
    )(x_in, w1m, b1.reshape(1, Cmid), w2m, b2.reshape(1, Cout))


# --------------------------------------------------------------------------
# Parameters & forward (UNetEncoder semantics)
# --------------------------------------------------------------------------
def init_conv_params(key, cin, cout):
    k1, k2 = jax.random.split(key)
    w = jax.random.normal(k1, (3, 3, cin, cout), jnp.float32) / jnp.sqrt(9.0 * cin)
    b = jax.random.normal(k2, (cout,), jnp.float32) * 0.01
    return w, b


def make_encoder_params(key, channels):
    params = []
    for i in range(len(channels) - 1):
        cin, cout = channels[i], channels[i + 1]
        key, k1, k2 = jax.random.split(key, 3)
        params.append((init_conv_params(k1, cin, cout),
                       init_conv_params(k2, cout, cout)))
    return params


@jax.jit
def unet_encoder_forward(x_nchw, params):
    """Mirrors UNetEncoder.forward: returns [blocks[-1](x), skip0, skip1, ...]."""
    x = jnp.transpose(x_nchw, (0, 2, 3, 1))               # NCHW -> NHWC
    n = len(params)
    skips = []
    for i in range(n - 1):
        x = encoder_block(x, params[i], pool=(i > 0))     # blocks 1.. start w/ downsample
        skips.append(x)
    x_last = encoder_block(x, params[n - 1], pool=True)
    res = [x_last] + skips
    return [jnp.transpose(t, (0, 3, 1, 2)) for t in res]  # back to NCHW


# --------------------------------------------------------------------------
# Pure-JAX references (for validation)
# --------------------------------------------------------------------------
def _ref_conv3x3_relu(x_nhwc, w, b, op_dtype):
    y = jax.lax.conv_general_dilated(
        x_nhwc.astype(op_dtype), w.astype(op_dtype),
        window_strides=(1, 1), padding=((1, 1), (1, 1)),
        dimension_numbers=("NHWC", "HWIO", "NHWC"),
        preferred_element_type=jnp.float32)
    return jnp.maximum(y + b, 0.0)


def _ref_maxpool(x_nhwc):
    return jax.lax.reduce_window(x_nhwc, -jnp.inf, jax.lax.max,
                                 (1, 2, 2, 1), (1, 2, 2, 1), "VALID")


def _ref_forward(x_nchw, params, op_dtype):
    x = jnp.transpose(x_nchw, (0, 2, 3, 1))
    n = len(params)
    skips = []
    for i in range(n - 1):
        if i > 0:
            x = _ref_maxpool(x)
        (w1, b1), (w2, b2) = params[i]
        x = _ref_conv3x3_relu(_ref_conv3x3_relu(x, w1, b1, op_dtype), w2, b2, op_dtype)
        skips.append(x)
    (w1, b1), (w2, b2) = params[n - 1]
    xl = _ref_conv3x3_relu(_ref_conv3x3_relu(_ref_maxpool(x), w1, b1, op_dtype),
                           w2, b2, op_dtype)
    return [jnp.transpose(t, (0, 3, 1, 2)) for t in [xl] + skips]


# --------------------------------------------------------------------------
if __name__ == "__main__":
    key = jax.random.PRNGKey(0)
    kx, kp = jax.random.split(key)

    B, C, H, W = 2, 4, 16, 16                          # small NCHW input
    x = jax.random.normal(kx, (B, C, H, W), jnp.float32)

    channels = [4, 8, 16, 32]                          # 3 encoder blocks
    params = make_encoder_params(kp, channels)

    outs = jax.block_until_ready(unet_encoder_forward(x, params))

    # Primary check: reference using the same bf16 matmul operands / f32 accumulation.
    ref_bf16 = _ref_forward(x, params, jnp.bfloat16)
    # Sanity check: full-f32 reference bounds the (intended) bf16 quantization error.
    ref_f32 = _ref_forward(x, params, jnp.float32)

    for o, r16, r32 in zip(outs, ref_bf16, ref_f32):
        assert o.shape == r16.shape, (o.shape, r16.shape)
        assert jnp.allclose(o, r16, rtol=1e-3, atol=1e-3), float(jnp.abs(o - r16).max())
        assert float(jnp.abs(o - r32).max()) < 0.25, float(jnp.abs(o - r32).max())

    # Expected shapes (NCHW): [(2,32,4,4), (2,8,16,16), (2,16,8,8)]
    print("KERNEL_OK")
</pallas_src>

<mosaic_0001>
module attributes {stable_mosaic.version = 11 : i64} {
  func.func @_block_kernel(%arg0: i32, %arg1: memref<1x16x16x4xf32, #tpu.memory_space<vmem>>, %arg2: memref<36x8xbf16, #tpu.memory_space<vmem>>, %arg3: memref<1x8xf32, #tpu.memory_space<vmem>>, %arg4: memref<72x8xbf16, #tpu.memory_space<vmem>>, %arg5: memref<1x8xf32, #tpu.memory_space<vmem>>, %arg6: memref<1x16x16x8xf32, #tpu.memory_space<vmem>>, %arg7: memref<18x18x4xf32, #tpu.memory_space<vmem>>, %arg8: memref<18x18x8xf32, #tpu.memory_space<vmem>>) attributes {dimension_semantics = [#tpu.dimension_semantics<parallel>], iteration_bounds = array<i64: 2>, scalar_prefetch = 0 : i64, scratch_operands = 2 : i64, tpu.core_type = #tpu.core_type<tc>, window_params = [{transform_indices = @transform_0, window_bounds = array<i64: 1, 16, 16, 4>}, {pipeline_mode = #tpu.pipeline_mode<synchronous>, transform_indices = @transform_1, window_bounds = array<i64: 36, 8>}, {pipeline_mode = #tpu.pipeline_mode<synchronous>, transform_indices = @transform_2, window_bounds = array<i64: 1, 8>}, {pipeline_mode = #tpu.pipeline_mode<synchronous>, transform_indices = @transform_3, window_bounds = array<i64: 72, 8>}, {pipeline_mode = #tpu.pipeline_mode<synchronous>, transform_indices = @transform_4, window_bounds = array<i64: 1, 8>}, {transform_indices = @transform_5, window_bounds = array<i64: 1, 16, 16, 8>}]} {
    %c0 = arith.constant 0 : index
    %c0_0 = arith.constant 0 : index
    %c0_1 = arith.constant 0 : index
    %c0_2 = arith.constant 0 : index
    %0 = vector.load %arg1[%c0, %c0_0, %c0_1, %c0_2] : memref<1x16x16x4xf32, #tpu.memory_space<vmem>>, vector<1x16x16x4xf32>
    %1 = vector.shape_cast %0 : vector<1x16x16x4xf32> to vector<16x16x4xf32>
    %cst = arith.constant 0.000000e+00 : f32
    %2 = vector.broadcast %cst : f32 to vector<18x18x4xf32>
    %c0_3 = arith.constant 0 : index
    %c0_4 = arith.constant 0 : index
    %c0_5 = arith.constant 0 : index
    %3 = vector.load %arg7[%c0_3, %c0_4, %c0_5] : memref<18x18x4xf32, #tpu.memory_space<vmem>>, vector<18x18x4xf32>
    tpu.vector_store %arg7[%c0_3, %c0_4, %c0_5], %2 {strides = array<i32>} : memref<18x18x4xf32, #tpu.memory_space<vmem>>, vector<18x18x4xf32>,
    %c1 = arith.constant 1 : index
    %c1_6 = arith.constant 1 : index
    %c0_7 = arith.constant 0 : index
    %4 = vector.load %arg7[%c1, %c1_6, %c0_7] : memref<18x18x4xf32, #tpu.memory_space<vmem>>, vector<16x16x4xf32>
    tpu.vector_store %arg7[%c1, %c1_6, %c0_7], %1 {strides = array<i32>} : memref<18x18x4xf32, #tpu.memory_space<vmem>>, vector<16x16x4xf32>,
    %c0_8 = arith.constant 0 : index
    %c0_9 = arith.constant 0 : index
    %c0_10 = arith.constant 0 : index
    %5 = vector.load %arg7[%c0_8, %c0_9, %c0_10] : memref<18x18x4xf32, #tpu.memory_space<vmem>>, vector<16x16x4xf32>
    %c0_11 = arith.constant 0 : index
    %c1_12 = arith.constant 1 : index
    %c0_13 = arith.constant 0 : index
    %6 = vector.load %arg7[%c0_11, %c1_12, %c0_13] : memref<18x18x4xf32, #tpu.memory_space<vmem>>, vector<16x16x4xf32>
    %c0_14 = arith.constant 0 : index
    %c2 = arith.constant 2 : index
    %c0_15 = arith.constant 0 : index
    %7 = vector.load %arg7[%c0_14, %c2, %c0_15] : memref<18x18x4xf32, #tpu.memory_space<vmem>>, vector<16x16x4xf32>
    %c1_16 = arith.constant 1 : index
    %c0_17 = arith.constant 0 : index
    %c0_18 = arith.constant 0 : index
    %8 = vector.load %arg7[%c1_16, %c0_17, %c0_18] : memref<18x18x4xf32, #tpu.memory_space<vmem>>, vector<16x16x4xf32>
    %c1_19 = arith.constant 1 : index
    %c1_20 = arith.constant 1 : index
    %c0_21 = arith.constant 0 : index
    %9 = vector.load %arg7[%c1_19, %c1_20, %c0_21] : memref<18x18x4xf32, #tpu.memory_space<vmem>>, vector<16x16x4xf32>
    %c1_22 = arith.constant 1 : index
    %c2_23 = arith.constant 2 : index
    %c0_24 = arith.constant 0 : index
    %10 = vector.load %arg7[%c1_22, %c2_23, %c0_24] : memref<18x18x4xf32, #tpu.memory_space<vmem>>, vector<16x16x4xf32>
    %c2_25 = arith.constant 2 : index
    %c0_26 = arith.constant 0 : index
    %c0_27 = arith.constant 0 : index
    %11 = vector.load %arg7[%c2_25, %c0_26, %c0_27] : memref<18x18x4xf32, #tpu.memory_space<vmem>>, vector<16x16x4xf32>
    %c2_28 = arith.constant 2 : index
    %c1_29 = arith.constant 1 : index
    %c0_30 = arith.constant 0 : index
    %12 = vector.load %arg7[%c2_28, %c1_29, %c0_30] : memref<18x18x4xf32, #tpu.memory_space<vmem>>, vector<16x16x4xf32>
    %c2_31 = arith.constant 2 : index
    %c2_32 = arith.constant 2 : index
    %c0_33 = arith.constant 0 : index
    %13 = vector.load %arg7[%c2_31, %c2_32, %c0_33] : memref<18x18x4xf32, #tpu.memory_space<vmem>>, vector<16x16x4xf32>
    %14 = tpu.concatenate %5, %6, %7, %8, %9, %10, %11, %12, %13 in 2 : vector<16x16x4xf32>, vector<16x16x4xf32>, vector<16x16x4xf32>, vector<16x16x4xf32>, vector<16x16x4xf32>, vector<16x16x4xf32>, vector<16x16x4xf32>, vector<16x16x4xf32>, vector<16x16x4xf32> -> vector<16x16x36xf32>
    %15 = vector.shape_cast %14 : vector<16x16x36xf32> to vector<256x36xf32>
    %16 = arith.truncf %15 : vector<256x36xf32> to vector<256x36xbf16>
    %c0_34 = arith.constant 0 : index
    %c0_35 = arith.constant 0 : index
    %17 = vector.load %arg2[%c0_34, %c0_35] : memref<36x8xbf16, #tpu.memory_space<vmem>>, vector<36x8xbf16>
    %cst_36 = arith.constant dense<0.000000e+00> : vector<256x8xf32>
    %18 = tpu.matmul %16, %17, %cst_36 {dimension_numbers = #tpu.dot_dimension_numbers<[1], [0], [0], [1], [0, 0, 1, 1], [], []>} : vector<256x36xbf16>, vector<36x8xbf16>, vector<256x8xf32> -> vector<256x8xf32>
    %c0_37 = arith.constant 0 : index
    %c0_38 = arith.constant 0 : index
    %19 = vector.load %arg3[%c0_37, %c0_38] : memref<1x8xf32, #tpu.memory_space<vmem>>, vector<1x8xf32>
    %20 = vector.shape_cast %19 : vector<1x8xf32> to vector<8xf32>
    %21 = vector.shape_cast %20 : vector<8xf32> to vector<1x8xf32>
    %22 = vector.broadcast %21 : vector<1x8xf32> to vector<256x8xf32>
    %23 = arith.addf %18, %22 : vector<256x8xf32>
    %cst_39 = arith.constant 0.000000e+00 : f32
    %24 = vector.broadcast %cst_39 : f32 to vector<256x8xf32>
    %25 = arith.maximumf %23, %24 : vector<256x8xf32>
    %cst_40 = arith.constant 0.000000e+00 : f32
    %26 = vector.broadcast %cst_40 : f32 to vector<18x18x8xf32>
    %c0_41 = arith.constant 0 : index
    %c0_42 = arith.constant 0 : index
    %c0_43 = arith.constant 0 : index
    %27 = vector.load %arg8[%c0_41, %c0_42, %c0_43] : memref<18x18x8xf32, #tpu.memory_space<vmem>>, vector<18x18x8xf32>
    tpu.vector_store %arg8[%c0_41, %c0_42, %c0_43], %26 {strides = array<i32>} : memref<18x18x8xf32, #tpu.memory_space<vmem>>, vector<18x18x8xf32>,
    %28 = vector.shape_cast %25 : vector<256x8xf32> to vector<16x16x8xf32>
    %c1_44 = arith.constant 1 : index
    %c1_45 = arith.constant 1 : index
    %c0_46 = arith.constant 0 : index
    %29 = vector.load %arg8[%c1_44, %c1_45, %c0_46] : memref<18x18x8xf32, #tpu.memory_space<vmem>>, vector<16x16x8xf32>
    tpu.vector_store %arg8[%c1_44, %c1_45, %c0_46], %28 {strides = array<i32>} : memref<18x18x8xf32, #tpu.memory_space<vmem>>, vector<16x16x8xf32>,
    %c0_47 = arith.constant 0 : index
    %c0_48 = arith.constant 0 : index
    %c0_49 = arith.constant 0 : index
    %30 = vector.load %arg8[%c0_47, %c0_48, %c0_49] : memref<18x18x8xf32, #tpu.memory_space<vmem>>, vector<16x16x8xf32>
    %c0_50 = arith.constant 0 : index
    %c1_51 = arith.constant 1 : index
    %c0_52 = arith.constant 0 : index
    %31 = vector.load %arg8[%c0_50, %c1_51, %c0_52] : memref<18x18x8xf32, #tpu.memory_space<vmem>>, vector<16x16x8xf32>
    %c0_53 = arith.constant 0 : index
    %c2_54 = arith.constant 2 : index
    %c0_55 = arith.constant 0 : index
    %32 = vector.load %arg8[%c0_53, %c2_54, %c0_55] : memref<18x18x8xf32, #tpu.memory_space<vmem>>, vector<16x16x8xf32>
    %c1_56 = arith.constant 1 : index
    %c0_57 = arith.constant 0 : index
    %c0_58 = arith.constant 0 : index
    %33 = vector.load %arg8[%c1_56, %c0_57, %c0_58] : memref<18x18x8xf32, #tpu.memory_space<vmem>>, vector<16x16x8xf32>
    %c1_59 = arith.constant 1 : index
    %c1_60 = arith.constant 1 : index
    %c0_61 = arith.constant 0 : index
    %34 = vector.load %arg8[%c1_59, %c1_60, %c0_61] : memref<18x18x8xf32, #tpu.memory_space<vmem>>, vector<16x16x8xf32>
    %c1_62 = arith.constant 1 : index
    %c2_63 = arith.constant 2 : index
    %c0_64 = arith.constant 0 : index
    %35 = vector.load %arg8[%c1_62, %c2_63, %c0_64] : memref<18x18x8xf32, #tpu.memory_space<vmem>>, vector<16x16x8xf32>
    %c2_65 = arith.constant 2 : index
    %c0_66 = arith.constant 0 : index
    %c0_67 = arith.constant 0 : index
    %36 = vector.load %arg8[%c2_65, %c0_66, %c0_67] : memref<18x18x8xf32, #tpu.memory_space<vmem>>, vector<16x16x8xf32>
    %c2_68 = arith.constant 2 : index
    %c1_69 = arith.constant 1 : index
    %c0_70 = arith.constant 0 : index
    %37 = vector.load %arg8[%c2_68, %c1_69, %c0_70] : memref<18x18x8xf32, #tpu.memory_space<vmem>>, vector<16x16x8xf32>
    %c2_71 = arith.constant 2 : index
    %c2_72 = arith.constant 2 : index
    %c0_73 = arith.constant 0 : index
    %38 = vector.load %arg8[%c2_71, %c2_72, %c0_73] : memref<18x18x8xf32, #tpu.memory_space<vmem>>, vector<16x16x8xf32>
    %39 = tpu.concatenate %30, %31, %32, %33, %34, %35, %36, %37, %38 in 2 : vector<16x16x8xf32>, vector<16x16x8xf32>, vector<16x16x8xf32>, vector<16x16x8xf32>, vector<16x16x8xf32>, vector<16x16x8xf32>, vector<16x16x8xf32>, vector<16x16x8xf32>, vector<16x16x8xf32> -> vector<16x16x72xf32>
    %40 = vector.shape_cast %39 : vector<16x16x72xf32> to vector<256x72xf32>
    %41 = arith.truncf %40 : vector<256x72xf32> to vector<256x72xbf16>
    %c0_74 = arith.constant 0 : index
    %c0_75 = arith.constant 0 : index
    %42 = vector.load %arg4[%c0_74, %c0_75] : memref<72x8xbf16, #tpu.memory_space<vmem>>, vector<72x8xbf16>
    %cst_76 = arith.constant dense<0.000000e+00> : vector<256x8xf32>
    %43 = tpu.matmul %41, %42, %cst_76 {dimension_numbers = #tpu.dot_dimension_numbers<[1], [0], [0], [1], [0, 0, 1, 1], [], []>} : vector<256x72xbf16>, vector<72x8xbf16>, vector<256x8xf32> -> vector<256x8xf32>
    %c0_77 = arith.constant 0 : index
    %c0_78 = arith.constant 0 : index
    %44 = vector.load %arg5[%c0_77, %c0_78] : memref<1x8xf32, #tpu.memory_space<vmem>>, vector<1x8xf32>
    %45 = vector.shape_cast %44 : vector<1x8xf32> to vector<8xf32>
    %46 = vector.shape_cast %45 : vector<8xf32> to vector<1x8xf32>
    %47 = vector.broadcast %46 : vector<1x8xf32> to vector<256x8xf32>
    %48 = arith.addf %43, %47 : vector<256x8xf32>
    %cst_79 = arith.constant 0.000000e+00 : f32
    %49 = vector.broadcast %cst_79 : f32 to vector<256x8xf32>
    %50 = arith.maximumf %48, %49 : vector<256x8xf32>
    %51 = vector.shape_cast %50 : vector<256x8xf32> to vector<16x16x8xf32>
    %c0_80 = arith.constant 0 : index
    %c0_81 = arith.constant 0 : index
    %c0_82 = arith.constant 0 : index
    %c0_83 = arith.constant 0 : index
    %52 = vector.load %arg6[%c0_80, %c0_81, %c0_82, %c0_83] : memref<1x16x16x8xf32, #tpu.memory_space<vmem>>, vector<1x16x16x8xf32>
    %53 = vector.shape_cast %52 : vector<1x16x16x8xf32> to vector<16x16x8xf32>
    %54 = vector.shape_cast %51 : vector<16x16x8xf32> to vector<1x16x16x8xf32>
    tpu.vector_store %arg6[%c0_80, %c0_81, %c0_82, %c0_83], %54 {strides = array<i32>} : memref<1x16x16x8xf32, #tpu.memory_space<vmem>>, vector<1x16x16x8xf32>,
    return
  }
  func.func @transform_0(%arg0: i32) -> (i32, i32, i32, i32) {
    %c0_i32 = arith.constant 0 : i32
    %c0_i32_0 = arith.constant 0 : i32
    %c0_i32_1 = arith.constant 0 : i32
    %c0_i32_2 = arith.constant 0 : i32
    return %arg0, %c0_i32, %c0_i32_0, %c0_i32_1 : i32, i32, i32, i32
  }
  func.func @transform_1(%arg0: i32) -> (i32, i32) {
    %c0_i32 = arith.constant 0 : i32
    %c0_i32_0 = arith.constant 0 : i32
    %c0_i32_1 = arith.constant 0 : i32
    return %c0_i32, %c0_i32_0 : i32, i32
  }
  func.func @transform_2(%arg0: i32) -> (i32, i32) {
    %c0_i32 = arith.constant 0 : i32
    %c0_i32_0 = arith.constant 0 : i32
    %c0_i32_1 = arith.constant 0 : i32
    return %c0_i32, %c0_i32_0 : i32, i32
  }
  func.func @transform_3(%arg0: i32) -> (i32, i32) {
    %c0_i32 = arith.constant 0 : i32
    %c0_i32_0 = arith.constant 0 : i32
    %c0_i32_1 = arith.constant 0 : i32
    return %c0_i32, %c0_i32_0 : i32, i32
  }
  func.func @transform_4(%arg0: i32) -> (i32, i32) {
    %c0_i32 = arith.constant 0 : i32
    %c0_i32_0 = arith.constant 0 : i32
    %c0_i32_1 = arith.constant 0 : i32
    return %c0_i32, %c0_i32_0 : i32, i32
  }
  func.func @transform_5(%arg0: i32) -> (i32, i32, i32, i32) {
    %c0_i32 = arith.constant 0 : i32
    %c0_i32_0 = arith.constant 0 : i32
    %c0_i32_1 = arith.constant 0 : i32
    %c0_i32_2 = arith.constant 0 : i32
    return %arg0, %c0_i32, %c0_i32_0, %c0_i32_1 : i32, i32, i32, i32
  }
}

module attributes {stable_mosaic.version = 11 : i64} {
  func.func @_pool_block_kernel(%arg0: i32, %arg1: memref<1x8x2x16x8xf32, #tpu.memory_space<vmem>>, %arg2: memref<72x16xbf16, #tpu.memory_space<vmem>>, %arg3: memref<1x16xf32, #tpu.memory_space<vmem>>, %arg4: memref<144x16xbf16, #tpu.memory_space<vmem>>, %arg5: memref<1x16xf32, #tpu.memory_space<vmem>>, %arg6: memref<1x8x8x16xf32, #tpu.memory_space<vmem>>, %arg7: memref<8x16x8xf32, #tpu.memory_space<vmem>>, %arg8: memref<10x10x8xf32, #tpu.memory_space<vmem>>, %arg9: memref<10x10x16xf32, #tpu.memory_space<vmem>>) attributes {dimension_semantics = [#tpu.dimension_semantics<parallel>], iteration_bounds = array<i64: 2>, scalar_prefetch = 0 : i64, scratch_operands = 3 : i64, tpu.core_type = #tpu.core_type<tc>, window_params = [{transform_indices = @transform_0, window_bounds = array<i64: 1, 8, 2, 16, 8>}, {pipeline_mode = #tpu.pipeline_mode<synchronous>, transform_indices = @transform_1, window_bounds = array<i64: 72, 16>}, {pipeline_mode = #tpu.pipeline_mode<synchronous>, transform_indices = @transform_2, window_bounds = array<i64: 1, 16>}, {pipeline_mode = #tpu.pipeline_mode<synchronous>, transform_indices = @transform_3, window_bounds = array<i64: 144, 16>}, {pipeline_mode = #tpu.pipeline_mode<synchronous>, transform_indices = @transform_4, window_bounds = array<i64: 1, 16>}, {transform_indices = @transform_5, window_bounds = array<i64: 1, 8, 8, 16>}]} {
    %c0 = arith.constant 0 : index
    %c0_0 = arith.constant 0 : index
    %c0_1 = arith.constant 0 : index
    %c0_2 = arith.constant 0 : index
    %c0_3 = arith.constant 0 : index
    %0 = vector.load %arg1[%c0, %c0_0, %c0_1, %c0_2, %c0_3] : memref<1x8x2x16x8xf32, #tpu.memory_space<vmem>>, vector<1x8x1x16x8xf32>
    %1 = vector.shape_cast %0 : vector<1x8x1x16x8xf32> to vector<8x16x8xf32>
    %c0_4 = arith.constant 0 : index
    %c0_5 = arith.constant 0 : index
    %c1 = arith.constant 1 : index
    %c0_6 = arith.constant 0 : index
    %c0_7 = arith.constant 0 : index
    %2 = vector.load %arg1[%c0_4, %c0_5, %c1, %c0_6, %c0_7] : memref<1x8x2x16x8xf32, #tpu.memory_space<vmem>>, vector<1x8x1x16x8xf32>
    %3 = vector.shape_cast %2 : vector<1x8x1x16x8xf32> to vector<8x16x8xf32>
    %4 = arith.maximumf %1, %3 : vector<8x16x8xf32>
    %c0_8 = arith.constant 0 : index
    %c0_9 = arith.constant 0 : index
    %c0_10 = arith.constant 0 : index
    %5 = vector.load %arg7[%c0_8, %c0_9, %c0_10] : memref<8x16x8xf32, #tpu.memory_space<vmem>>, vector<8x16x8xf32>
    tpu.vector_store %arg7[%c0_8, %c0_9, %c0_10], %4 {strides = array<i32>} : memref<8x16x8xf32, #tpu.memory_space<vmem>>, vector<8x16x8xf32>,
    %c0_11 = arith.constant 0 : index
    %c0_12 = arith.constant 0 : index
    %c0_13 = arith.constant 0 : index
    %6 = tpu.strided_load %arg7[%c0_11, %c0_12, %c0_13] {strides = array<i32: 1, 2, 1>} : memref<8x16x8xf32, #tpu.memory_space<vmem>>, vector<8x8x8xf32>
    %c0_14 = arith.constant 0 : index
    %c1_15 = arith.constant 1 : index
    %c0_16 = arith.constant 0 : index
    %7 = tpu.strided_load %arg7[%c0_14, %c1_15, %c0_16] {strides = array<i32: 1, 2, 1>} : memref<8x16x8xf32, #tpu.memory_space<vmem>>, vector<8x8x8xf32>
    %8 = arith.maximumf %6, %7 : vector<8x8x8xf32>
    %cst = arith.constant 0.000000e+00 : f32
    %9 = vector.broadcast %cst : f32 to vector<10x10x8xf32>
    %c0_17 = arith.constant 0 : index
    %c0_18 = arith.constant 0 : index
    %c0_19 = arith.constant 0 : index
    %10 = vector.load %arg8[%c0_17, %c0_18, %c0_19] : memref<10x10x8xf32, #tpu.memory_space<vmem>>, vector<10x10x8xf32>
    tpu.vector_store %arg8[%c0_17, %c0_18, %c0_19], %9 {strides = array<i32>} : memref<10x10x8xf32, #tpu.memory_space<vmem>>, vector<10x10x8xf32>,
    %c1_20 = arith.constant 1 : index
    %c1_21 = arith.constant 1 : index
    %c0_22 = arith.constant 0 : index
    %11 = vector.load %arg8[%c1_20, %c1_21, %c0_22] : memref<10x10x8xf32, #tpu.memory_space<vmem>>, vector<8x8x8xf32>
    tpu.vector_store %arg8[%c1_20, %c1_21, %c0_22], %8 {strides = array<i32>} : memref<10x10x8xf32, #tpu.memory_space<vmem>>, vector<8x8x8xf32>,
    %c0_23 = arith.constant 0 : index
    %c0_24 = arith.constant 0 : index
    %c0_25 = arith.constant 0 : index
    %12 = vector.load %arg8[%c0_23, %c0_24, %c0_25] : memref<10x10x8xf32, #tpu.memory_space<vmem>>, vector<8x8x8xf32>
    %c0_26 = arith.constant 0 : index
    %c1_27 = arith.constant 1 : index
    %c0_28 = arith.constant 0 : index
    %13 = vector.load %arg8[%c0_26, %c1_27, %c0_28] : memref<10x10x8xf32, #tpu.memory_space<vmem>>, vector<8x8x8xf32>
    %c0_29 = arith.constant 0 : index
    %c2 = arith.constant 2 : index
    %c0_30 = arith.constant 0 : index
    %14 = vector.load %arg8[%c0_29, %c2, %c0_30] : memref<10x10x8xf32, #tpu.memory_space<vmem>>, vector<8x8x8xf32>
    %c1_31 = arith.constant 1 : index
    %c0_32 = arith.constant 0 : index
    %c0_33 = arith.constant 0 : index
    %15 = vector.load %arg8[%c1_31, %c0_32, %c0_33] : memref<10x10x8xf32, #tpu.memory_space<vmem>>, vector<8x8x8xf32>
    %c1_34 = arith.constant 1 : index
    %c1_35 = arith.constant 1 : index
    %c0_36 = arith.constant 0 : index
    %16 = vector.load %arg8[%c1_34, %c1_35, %c0_36] : memref<10x10x8xf32, #tpu.memory_space<vmem>>, vector<8x8x8xf32>
    %c1_37 = arith.constant 1 : index
    %c2_38 = arith.constant 2 : index
    %c0_39 = arith.constant 0 : index
    %17 = vector.load %arg8[%c1_37, %c2_38, %c0_39] : memref<10x10x8xf32, #tpu.memory_space<vmem>>, vector<8x8x8xf32>
    %c2_40 = arith.constant 2 : index
    %c0_41 = arith.constant 0 : index
    %c0_42 = arith.constant 0 : index
    %18 = vector.load %arg8[%c2_40, %c0_41, %c0_42] : memref<10x10x8xf32, #tpu.memory_space<vmem>>, vector<8x8x8xf32>
    %c2_43 = arith.constant 2 : index
    %c1_44 = arith.constant 1 : index
    %c0_45 = arith.constant 0 : index
    %19 = vector.load %arg8[%c2_43, %c1_44, %c0_45] : memref<10x10x8xf32, #tpu.memory_space<vmem>>, vector<8x8x8xf32>
    %c2_46 = arith.constant 2 : index
    %c2_47 = arith.constant 2 : index
    %c0_48 = arith.constant 0 : index
    %20 = vector.load %arg8[%c2_46, %c2_47, %c0_48] : memref<10x10x8xf32, #tpu.memory_space<vmem>>, vector<8x8x8xf32>
    %21 = tpu.concatenate %12, %13, %14, %15, %16, %17, %18, %19, %20 in 2 : vector<8x8x8xf32>, vector<8x8x8xf32>, vector<8x8x8xf32>, vector<8x8x8xf32>, vector<8x8x8xf32>, vector<8x8x8xf32>, vector<8x8x8xf32>, vector<8x8x8xf32>, vector<8x8x8xf32> -> vector<8x8x72xf32>
    %22 = vector.shape_cast %21 : vector<8x8x72xf32> to vector<64x72xf32>
    %23 = arith.truncf %22 : vector<64x72xf32> to vector<64x72xbf16>
    %c0_49 = arith.constant 0 : index
    %c0_50 = arith.constant 0 : index
    %24 = vector.load %arg2[%c0_49, %c0_50] : memref<72x16xbf16, #tpu.memory_space<vmem>>, vector<72x16xbf16>
    %cst_51 = arith.constant dense<0.000000e+00> : vector<64x16xf32>
    %25 = tpu.matmul %23, %24, %cst_51 {dimension_numbers = #tpu.dot_dimension_numbers<[1], [0], [0], [1], [0, 0, 1, 1], [], []>} : vector<64x72xbf16>, vector<72x16xbf16>, vector<64x16xf32> -> vector<64x16xf32>
    %c0_52 = arith.constant 0 : index
    %c0_53 = arith.constant 0 : index
    %26 = vector.load %arg3[%c0_52, %c0_53] : memref<1x16xf32, #tpu.memory_space<vmem>>, vector<1x16xf32>
    %27 = vector.shape_cast %26 : vector<1x16xf32> to vector<16xf32>
    %28 = vector.shape_cast %27 : vector<16xf32> to vector<1x16xf32>
    %29 = vector.broadcast %28 : vector<1x16xf32> to vector<64x16xf32>
    %30 = arith.addf %25, %29 : vector<64x16xf32>
    %cst_54 = arith.constant 0.000000e+00 : f32
    %31 = vector.broadcast %cst_54 : f32 to vector<64x16xf32>
    %32 = arith.maximumf %30, %31 : vector<64x16xf32>
    %cst_55 = arith.constant 0.000000e+00 : f32
    %33 = vector.broadcast %cst_55 : f32 to vector<10x10x16xf32>
    %c0_56 = arith.constant 0 : index
    %c0_57 = arith.constant 0 : index
    %c0_58 = arith.constant 0 : index
    %34 = vector.load %arg9[%c0_56, %c0_57, %c0_58] : memref<10x10x16xf32, #tpu.memory_space<vmem>>, vector<10x10x16xf32>
    tpu.vector_store %arg9[%c0_56, %c0_57, %c0_58], %33 {strides = array<i32>} : memref<10x10x16xf32, #tpu.memory_space<vmem>>, vector<10x10x16xf32>,
    %35 = vector.shape_cast %32 : vector<64x16xf32> to vector<8x8x16xf32>
    %c1_59 = arith.constant 1 : index
    %c1_60 = arith.constant 1 : index
    %c0_61 = arith.constant 0 : index
    %36 = vector.load %arg9[%c1_59, %c1_60, %c0_61] : memref<10x10x16xf32, #tpu.memory_space<vmem>>, vector<8x8x16xf32>
    tpu.vector_store %arg9[%c1_59, %c1_60, %c0_61], %35 {strides = array<i32>} : memref<10x10x16xf32, #tpu.memory_space<vmem>>, vector<8x8x16xf32>,
    %c0_62 = arith.constant 0 : index
    %c0_63 = arith.constant 0 : index
    %c0_64 = arith.constant 0 : index
    %37 = vector.load %arg9[%c0_62, %c0_63, %c0_64] : memref<10x10x16xf32, #tpu.memory_space<vmem>>, vector<8x8x16xf32>
    %c0_65 = arith.constant 0 : index
    %c1_66 = arith.constant 1 : index
    %c0_67 = arith.constant 0 : index
    %38 = vector.load %arg9[%c0_65, %c1_66, %c0_67] : memref<10x10x16xf32, #tpu.memory_space<vmem>>, vector<8x8x16xf32>
    %c0_68 = arith.constant 0 : index
    %c2_69 = arith.constant 2 : index
    %c0_70 = arith.constant 0 : index
    %39 = vector.load %arg9[%c0_68, %c2_69, %c0_70] : memref<10x10x16xf32, #tpu.memory_space<vmem>>, vector<8x8x16xf32>
    %c1_71 = arith.constant 1 : index
    %c0_72 = arith.constant 0 : index
    %c0_73 = arith.constant 0 : index
    %40 = vector.load %arg9[%c1_71, %c0_72, %c0_73] : memref<10x10x16xf32, #tpu.memory_space<vmem>>, vector<8x8x16xf32>
    %c1_74 = arith.constant 1 : index
    %c1_75 = arith.constant 1 : index
    %c0_76 = arith.constant 0 : index
    %41 = vector.load %arg9[%c1_74, %c1_75, %c0_76] : memref<10x10x16xf32, #tpu.memory_space<vmem>>, vector<8x8x16xf32>
    %c1_77 = arith.constant 1 : index
    %c2_78 = arith.constant 2 : index
    %c0_79 = arith.constant 0 : index
    %42 = vector.load %arg9[%c1_77, %c2_78, %c0_79] : memref<10x10x16xf32, #tpu.memory_space<vmem>>, vector<8x8x16xf32>
    %c2_80 = arith.constant 2 : index
    %c0_81 = arith.constant 0 : index
    %c0_82 = arith.constant 0 : index
    %43 = vector.load %arg9[%c2_80, %c0_81, %c0_82] : memref<10x10x16xf32, #tpu.memory_space<vmem>>, vector<8x8x16xf32>
    %c2_83 = arith.constant 2 : index
    %c1_84 = arith.constant 1 : index
    %c0_85 = arith.constant 0 : index
    %44 = vector.load %arg9[%c2_83, %c1_84, %c0_85] : memref<10x10x16xf32, #tpu.memory_space<vmem>>, vector<8x8x16xf32>
    %c2_86 = arith.constant 2 : index
    %c2_87 = arith.constant 2 : index
    %c0_88 = arith.constant 0 : index
    %45 = vector.load %arg9[%c2_86, %c2_87, %c0_88] : memref<10x10x16xf32, #tpu.memory_space<vmem>>, vector<8x8x16xf32>
    %46 = tpu.concatenate %37, %38, %39, %40, %41, %42, %43, %44, %45 in 2 : vector<8x8x16xf32>, vector<8x8x16xf32>, vector<8x8x16xf32>, vector<8x8x16xf32>, vector<8x8x16xf32>, vector<8x8x16xf32>, vector<8x8x16xf32>, vector<8x8x16xf32>, vector<8x8x16xf32> -> vector<8x8x144xf32>
    %47 = vector.shape_cast %46 : vector<8x8x144xf32> to vector<64x144xf32>
    %48 = arith.truncf %47 : vector<64x144xf32> to vector<64x144xbf16>
    %c0_89 = arith.constant 0 : index
    %c0_90 = arith.constant 0 : index
    %49 = vector.load %arg4[%c0_89, %c0_90] : memref<144x16xbf16, #tpu.memory_space<vmem>>, vector<144x16xbf16>
    %cst_91 = arith.constant dense<0.000000e+00> : vector<64x16xf32>
    %50 = tpu.matmul %48, %49, %cst_91 {dimension_numbers = #tpu.dot_dimension_numbers<[1], [0], [0], [1], [0, 0, 1, 1], [], []>} : vector<64x144xbf16>, vector<144x16xbf16>, vector<64x16xf32> -> vector<64x16xf32>
    %c0_92 = arith.constant 0 : index
    %c0_93 = arith.constant 0 : index
    %51 = vector.load %arg5[%c0_92, %c0_93] : memref<1x16xf32, #tpu.memory_space<vmem>>, vector<1x16xf32>
    %52 = vector.shape_cast %51 : vector<1x16xf32> to vector<16xf32>
    %53 = vector.shape_cast %52 : vector<16xf32> to vector<1x16xf32>
    %54 = vector.broadcast %53 : vector<1x16xf32> to vector<64x16xf32>
    %55 = arith.addf %50, %54 : vector<64x16xf32>
    %cst_94 = arith.constant 0.000000e+00 : f32
    %56 = vector.broadcast %cst_94 : f32 to vector<64x16xf32>
    %57 = arith.maximumf %55, %56 : vector<64x16xf32>
    %58 = vector.shape_cast %57 : vector<64x16xf32> to vector<8x8x16xf32>
    %c0_95 = arith.constant 0 : index
    %c0_96 = arith.constant 0 : index
    %c0_97 = arith.constant 0 : index
    %c0_98 = arith.constant 0 : index
    %59 = vector.load %arg6[%c0_95, %c0_96, %c0_97, %c0_98] : memref<1x8x8x16xf32, #tpu.memory_space<vmem>>, vector<1x8x8x16xf32>
    %60 = vector.shape_cast %59 : vector<1x8x8x16xf32> to vector<8x8x16xf32>
    %61 = vector.shape_cast %58 : vector<8x8x16xf32> to vector<1x8x8x16xf32>
    tpu.vector_store %arg6[%c0_95, %c0_96, %c0_97, %c0_98], %61 {strides = array<i32>} : memref<1x8x8x16xf32, #tpu.memory_space<vmem>>, vector<1x8x8x16xf32>,
    return
  }
  func.func @transform_0(%arg0: i32) -> (i32, i32, i32, i32, i32) {
    %c0_i32 = arith.constant 0 : i32
    %c0_i32_0 = arith.constant 0 : i32
    %c0_i32_1 = arith.constant 0 : i32
    %c0_i32_2 = arith.constant 0 : i32
    %c0_i32_3 = arith.constant 0 : i32
    return %arg0, %c0_i32, %c0_i32_0, %c0_i32_1, %c0_i32_2 : i32, i32, i32, i32, i32
  }
  func.func @transform_1(%arg0: i32) -> (i32, i32) {
    %c0_i32 = arith.constant 0 : i32
    %c0_i32_0 = arith.constant 0 : i32
    %c0_i32_1 = arith.constant 0 : i32
    return %c0_i32, %c0_i32_0 : i32, i32
  }
  func.func @transform_2(%arg0: i32) -> (i32, i32) {
    %c0_i32 = arith.constant 0 : i32
    %c0_i32_0 = arith.constant 0 : i32
    %c0_i32_1 = arith.constant 0 : i32
    return %c0_i32, %c0_i32_0 : i32, i32
  }
  func.func @transform_3(%arg0: i32) -> (i32, i32) {
    %c0_i32 = arith.constant 0 : i32
    %c0_i32_0 = arith.constant 0 : i32
    %c0_i32_1 = arith.constant 0 : i32
    return %c0_i32, %c0_i32_0 : i32, i32
  }
  func.func @transform_4(%arg0: i32) -> (i32, i32) {
    %c0_i32 = arith.constant 0 : i32
    %c0_i32_0 = arith.constant 0 : i32
    %c0_i32_1 = arith.constant 0 : i32
    return %c0_i32, %c0_i32_0 : i32, i32
  }
  func.func @transform_5(%arg0: i32) -> (i32, i32, i32, i32) {
    %c0_i32 = arith.constant 0 : i32
    %c0_i32_0 = arith.constant 0 : i32
    %c0_i32_1 = arith.constant 0 : i32
    %c0_i32_2 = arith.constant 0 : i32
    return %arg0, %c0_i32, %c0_i32_0, %c0_i32_1 : i32, i32, i32, i32
  }
}

module attributes {stable_mosaic.version = 11 : i64} {
  func.func @_pool_block_kernel(%arg0: i32, %arg1: memref<1x4x2x8x16xf32, #tpu.memory_space<vmem>>, %arg2: memref<144x32xbf16, #tpu.memory_space<vmem>>, %arg3: memref<1x32xf32, #tpu.memory_space<vmem>>, %arg4: memref<288x32xbf16, #tpu.memory_space<vmem>>, %arg5: memref<1x32xf32, #tpu.memory_space<vmem>>, %arg6: memref<1x4x4x32xf32, #tpu.memory_space<vmem>>, %arg7: memref<4x8x16xf32, #tpu.memory_space<vmem>>, %arg8: memref<6x6x16xf32, #tpu.memory_space<vmem>>, %arg9: memref<6x6x32xf32, #tpu.memory_space<vmem>>) attributes {dimension_semantics = [#tpu.dimension_semantics<parallel>], iteration_bounds = array<i64: 2>, scalar_prefetch = 0 : i64, scratch_operands = 3 : i64, tpu.core_type = #tpu.core_type<tc>, window_params = [{transform_indices = @transform_0, window_bounds = array<i64: 1, 4, 2, 8, 16>}, {pipeline_mode = #tpu.pipeline_mode<synchronous>, transform_indices = @transform_1, window_bounds = array<i64: 144, 32>}, {pipeline_mode = #tpu.pipeline_mode<synchronous>, transform_indices = @transform_2, window_bounds = array<i64: 1, 32>}, {pipeline_mode = #tpu.pipeline_mode<synchronous>, transform_indices = @transform_3, window_bounds = array<i64: 288, 32>}, {pipeline_mode = #tpu.pipeline_mode<synchronous>, transform_indices = @transform_4, window_bounds = array<i64: 1, 32>}, {transform_indices = @transform_5, window_bounds = array<i64: 1, 4, 4, 32>}]} {
    %c0 = arith.constant 0 : index
    %c0_0 = arith.constant 0 : index
    %c0_1 = arith.constant 0 : index
    %c0_2 = arith.constant 0 : index
    %c0_3 = arith.constant 0 : index
    %0 = vector.load %arg1[%c0, %c0_0, %c0_1, %c0_2, %c0_3] : memref<1x4x2x8x16xf32, #tpu.memory_space<vmem>>, vector<1x4x1x8x16xf32>
    %1 = vector.shape_cast %0 : vector<1x4x1x8x16xf32> to vector<4x8x16xf32>
    %c0_4 = arith.constant 0 : index
    %c0_5 = arith.constant 0 : index
    %c1 = arith.constant 1 : index
    %c0_6 = arith.constant 0 : index
    %c0_7 = arith.constant 0 : index
    %2 = vector.load %arg1[%c0_4, %c0_5, %c1, %c0_6, %c0_7] : memref<1x4x2x8x16xf32, #tpu.memory_space<vmem>>, vector<1x4x1x8x16xf32>
    %3 = vector.shape_cast %2 : vector<1x4x1x8x16xf32> to vector<4x8x16xf32>
    %4 = arith.maximumf %1, %3 : vector<4x8x16xf32>
    %c0_8 = arith.constant 0 : index
    %c0_9 = arith.constant 0 : index
    %c0_10 = arith.constant 0 : index
    %5 = vector.load %arg7[%c0_8, %c0_9, %c0_10] : memref<4x8x16xf32, #tpu.memory_space<vmem>>, vector<4x8x16xf32>
    tpu.vector_store %arg7[%c0_8, %c0_9, %c0_10], %4 {strides = array<i32>} : memref<4x8x16xf32, #tpu.memory_space<vmem>>, vector<4x8x16xf32>,
    %c0_11 = arith.constant 0 : index
    %c0_12 = arith.constant 0 : index
    %c0_13 = arith.constant 0 : index
    %6 = tpu.strided_load %arg7[%c0_11, %c0_12, %c0_13] {strides = array<i32: 1, 2, 1>} : memref<4x8x16xf32, #tpu.memory_space<vmem>>, vector<4x4x16xf32>
    %c0_14 = arith.constant 0 : index
    %c1_15 = arith.constant 1 : index
    %c0_16 = arith.constant 0 : index
    %7 = tpu.strided_load %arg7[%c0_14, %c1_15, %c0_16] {strides = array<i32: 1, 2, 1>} : memref<4x8x16xf32, #tpu.memory_space<vmem>>, vector<4x4x16xf32>
    %8 = arith.maximumf %6, %7 : vector<4x4x16xf32>
    %cst = arith.constant 0.000000e+00 : f32
    %9 = vector.broadcast %cst : f32 to vector<6x6x16xf32>
    %c0_17 = arith.constant 0 : index
    %c0_18 = arith.constant 0 : index
    %c0_19 = arith.constant 0 : index
    %10 = vector.load %arg8[%c0_17, %c0_18, %c0_19] : memref<6x6x16xf32, #tpu.memory_space<vmem>>, vector<6x6x16xf32>
    tpu.vector_store %arg8[%c0_17, %c0_18, %c0_19], %9 {strides = array<i32>} : memref<6x6x16xf32, #tpu.memory_space<vmem>>, vector<6x6x16xf32>,
    %c1_20 = arith.constant 1 : index
    %c1_21 = arith.constant 1 : index
    %c0_22 = arith.constant 0 : index
    %11 = vector.load %arg8[%c1_20, %c1_21, %c0_22] : memref<6x6x16xf32, #tpu.memory_space<vmem>>, vector<4x4x16xf32>
    tpu.vector_store %arg8[%c1_20, %c1_21, %c0_22], %8 {strides = array<i32>} : memref<6x6x16xf32, #tpu.memory_space<vmem>>, vector<4x4x16xf32>,
    %c0_23 = arith.constant 0 : index
    %c0_24 = arith.constant 0 : index
    %c0_25 = arith.constant 0 : index
    %12 = vector.load %arg8[%c0_23, %c0_24, %c0_25] : memref<6x6x16xf32, #tpu.memory_space<vmem>>, vector<4x4x16xf32>
    %c0_26 = arith.constant 0 : index
    %c1_27 = arith.constant 1 : index
    %c0_28 = arith.constant 0 : index
    %13 = vector.load %arg8[%c0_26, %c1_27, %c0_28] : memref<6x6x16xf32, #tpu.memory_space<vmem>>, vector<4x4x16xf32>
    %c0_29 = arith.constant 0 : index
    %c2 = arith.constant 2 : index
    %c0_30 = arith.constant 0 : index
    %14 = vector.load %arg8[%c0_29, %c2, %c0_30] : memref<6x6x16xf32, #tpu.memory_space<vmem>>, vector<4x4x16xf32>
    %c1_31 = arith.constant 1 : index
    %c0_32 = arith.constant 0 : index
    %c0_33 = arith.constant 0 : index
    %15 = vector.load %arg8[%c1_31, %c0_32, %c0_33] : memref<6x6x16xf32, #tpu.memory_space<vmem>>, vector<4x4x16xf32>
    %c1_34 = arith.constant 1 : index
    %c1_35 = arith.constant 1 : index
    %c0_36 = arith.constant 0 : index
    %16 = vector.load %arg8[%c1_34, %c1_35, %c0_36] : memref<6x6x16xf32, #tpu.memory_space<vmem>>, vector<4x4x16xf32>
    %c1_37 = arith.constant 1 : index
    %c2_38 = arith.constant 2 : index
    %c0_39 = arith.constant 0 : index
    %17 = vector.load %arg8[%c1_37, %c2_38, %c0_39] : memref<6x6x16xf32, #tpu.memory_space<vmem>>, vector<4x4x16xf32>
    %c2_40 = arith.constant 2 : index
    %c0_41 = arith.constant 0 : index
    %c0_42 = arith.constant 0 : index
    %18 = vector.load %arg8[%c2_40, %c0_41, %c0_42] : memref<6x6x16xf32, #tpu.memory_space<vmem>>, vector<4x4x16xf32>
    %c2_43 = arith.constant 2 : index
    %c1_44 = arith.constant 1 : index
    %c0_45 = arith.constant 0 : index
    %19 = vector.load %arg8[%c2_43, %c1_44, %c0_45] : memref<6x6x16xf32, #tpu.memory_space<vmem>>, vector<4x4x16xf32>
    %c2_46 = arith.constant 2 : index
    %c2_47 = arith.constant 2 : index
    %c0_48 = arith.constant 0 : index
    %20 = vector.load %arg8[%c2_46, %c2_47, %c0_48] : memref<6x6x16xf32, #tpu.memory_space<vmem>>, vector<4x4x16xf32>
    %21 = tpu.concatenate %12, %13, %14, %15, %16, %17, %18, %19, %20 in 2 : vector<4x4x16xf32>, vector<4x4x16xf32>, vector<4x4x16xf32>, vector<4x4x16xf32>, vector<4x4x16xf32>, vector<4x4x16xf32>, vector<4x4x16xf32>, vector<4x4x16xf32>, vector<4x4x16xf32> -> vector<4x4x144xf32>
    %22 = vector.shape_cast %21 : vector<4x4x144xf32> to vector<16x144xf32>
    %23 = arith.truncf %22 : vector<16x144xf32> to vector<16x144xbf16>
    %c0_49 = arith.constant 0 : index
    %c0_50 = arith.constant 0 : index
    %24 = vector.load %arg2[%c0_49, %c0_50] : memref<144x32xbf16, #tpu.memory_space<vmem>>, vector<144x32xbf16>
    %cst_51 = arith.constant dense<0.000000e+00> : vector<16x32xf32>
    %25 = tpu.matmul %23, %24, %cst_51 {dimension_numbers = #tpu.dot_dimension_numbers<[1], [0], [0], [1], [0, 0, 1, 1], [], []>} : vector<16x144xbf16>, vector<144x32xbf16>, vector<16x32xf32> -> vector<16x32xf32>
    %c0_52 = arith.constant 0 : index
    %c0_53 = arith.constant 0 : index
    %26 = vector.load %arg3[%c0_52, %c0_53] : memref<1x32xf32, #tpu.memory_space<vmem>>, vector<1x32xf32>
    %27 = vector.shape_cast %26 : vector<1x32xf32> to vector<32xf32>
    %28 = vector.shape_cast %27 : vector<32xf32> to vector<1x32xf32>
    %29 = vector.broadcast %28 : vector<1x32xf32> to vector<16x32xf32>
    %30 = arith.addf %25, %29 : vector<16x32xf32>
    %cst_54 = arith.constant 0.000000e+00 : f32
    %31 = vector.broadcast %cst_54 : f32 to vector<16x32xf32>
    %32 = arith.maximumf %30, %31 : vector<16x32xf32>
    %cst_55 = arith.constant 0.000000e+00 : f32
    %33 = vector.broadcast %cst_55 : f32 to vector<6x6x32xf32>
    %c0_56 = arith.constant 0 : index
    %c0_57 = arith.constant 0 : index
    %c0_58 = arith.constant 0 : index
    %34 = vector.load %arg9[%c0_56, %c0_57, %c0_58] : memref<6x6x32xf32, #tpu.memory_space<vmem>>, vector<6x6x32xf32>
    tpu.vector_store %arg9[%c0_56, %c0_57, %c0_58], %33 {strides = array<i32>} : memref<6x6x32xf32, #tpu.memory_space<vmem>>, vector<6x6x32xf32>,
    %35 = vector.shape_cast %32 : vector<16x32xf32> to vector<4x4x32xf32>
    %c1_59 = arith.constant 1 : index
    %c1_60 = arith.constant 1 : index
    %c0_61 = arith.constant 0 : index
    %36 = vector.load %arg9[%c1_59, %c1_60, %c0_61] : memref<6x6x32xf32, #tpu.memory_space<vmem>>, vector<4x4x32xf32>
    tpu.vector_store %arg9[%c1_59, %c1_60, %c0_61], %35 {strides = array<i32>} : memref<6x6x32xf32, #tpu.memory_space<vmem>>, vector<4x4x32xf32>,
    %c0_62 = arith.constant 0 : index
    %c0_63 = arith.constant 0 : index
    %c0_64 = arith.constant 0 : index
    %37 = vector.load %arg9[%c0_62, %c0_63, %c0_64] : memref<6x6x32xf32, #tpu.memory_space<vmem>>, vector<4x4x32xf32>
    %c0_65 = arith.constant 0 : index
    %c1_66 = arith.constant 1 : index
    %c0_67 = arith.constant 0 : index
    %38 = vector.load %arg9[%c0_65, %c1_66, %c0_67] : memref<6x6x32xf32, #tpu.memory_space<vmem>>, vector<4x4x32xf32>
    %c0_68 = arith.constant 0 : index
    %c2_69 = arith.constant 2 : index
    %c0_70 = arith.constant 0 : index
    %39 = vector.load %arg9[%c0_68, %c2_69, %c0_70] : memref<6x6x32xf32, #tpu.memory_space<vmem>>, vector<4x4x32xf32>
    %c1_71 = arith.constant 1 : index
    %c0_72 = arith.constant 0 : index
    %c0_73 = arith.constant 0 : index
    %40 = vector.load %arg9[%c1_71, %c0_72, %c0_73] : memref<6x6x32xf32, #tpu.memory_space<vmem>>, vector<4x4x32xf32>
    %c1_74 = arith.constant 1 : index
    %c1_75 = arith.constant 1 : index
    %c0_76 = arith.constant 0 : index
    %41 = vector.load %arg9[%c1_74, %c1_75, %c0_76] : memref<6x6x32xf32, #tpu.memory_space<vmem>>, vector<4x4x32xf32>
    %c1_77 = arith.constant 1 : index
    %c2_78 = arith.constant 2 : index
    %c0_79 = arith.constant 0 : index
    %42 = vector.load %arg9[%c1_77, %c2_78, %c0_79] : memref<6x6x32xf32, #tpu.memory_space<vmem>>, vector<4x4x32xf32>
    %c2_80 = arith.constant 2 : index
    %c0_81 = arith.constant 0 : index
    %c0_82 = arith.constant 0 : index
    %43 = vector.load %arg9[%c2_80, %c0_81, %c0_82] : memref<6x6x32xf32, #tpu.memory_space<vmem>>, vector<4x4x32xf32>
    %c2_83 = arith.constant 2 : index
    %c1_84 = arith.constant 1 : index
    %c0_85 = arith.constant 0 : index
    %44 = vector.load %arg9[%c2_83, %c1_84, %c0_85] : memref<6x6x32xf32, #tpu.memory_space<vmem>>, vector<4x4x32xf32>
    %c2_86 = arith.constant 2 : index
    %c2_87 = arith.constant 2 : index
    %c0_88 = arith.constant 0 : index
    %45 = vector.load %arg9[%c2_86, %c2_87, %c0_88] : memref<6x6x32xf32, #tpu.memory_space<vmem>>, vector<4x4x32xf32>
    %46 = tpu.concatenate %37, %38, %39, %40, %41, %42, %43, %44, %45 in 2 : vector<4x4x32xf32>, vector<4x4x32xf32>, vector<4x4x32xf32>, vector<4x4x32xf32>, vector<4x4x32xf32>, vector<4x4x32xf32>, vector<4x4x32xf32>, vector<4x4x32xf32>, vector<4x4x32xf32> -> vector<4x4x288xf32>
    %47 = vector.shape_cast %46 : vector<4x4x288xf32> to vector<16x288xf32>
    %48 = arith.truncf %47 : vector<16x288xf32> to vector<16x288xbf16>
    %c0_89 = arith.constant 0 : index
    %c0_90 = arith.constant 0 : index
    %49 = vector.load %arg4[%c0_89, %c0_90] : memref<288x32xbf16, #tpu.memory_space<vmem>>, vector<288x32xbf16>
    %cst_91 = arith.constant dense<0.000000e+00> : vector<16x32xf32>
    %50 = tpu.matmul %48, %49, %cst_91 {dimension_numbers = #tpu.dot_dimension_numbers<[1], [0], [0], [1], [0, 0, 1, 1], [], []>} : vector<16x288xbf16>, vector<288x32xbf16>, vector<16x32xf32> -> vector<16x32xf32>
    %c0_92 = arith.constant 0 : index
    %c0_93 = arith.constant 0 : index
    %51 = vector.load %arg5[%c0_92, %c0_93] : memref<1x32xf32, #tpu.memory_space<vmem>>, vector<1x32xf32>
    %52 = vector.shape_cast %51 : vector<1x32xf32> to vector<32xf32>
    %53 = vector.shape_cast %52 : vector<32xf32> to vector<1x32xf32>
    %54 = vector.broadcast %53 : vector<1x32xf32> to vector<16x32xf32>
    %55 = arith.addf %50, %54 : vector<16x32xf32>
    %cst_94 = arith.constant 0.000000e+00 : f32
    %56 = vector.broadcast %cst_94 : f32 to vector<16x32xf32>
    %57 = arith.maximumf %55, %56 : vector<16x32xf32>
    %58 = vector.shape_cast %57 : vector<16x32xf32> to vector<4x4x32xf32>
    %c0_95 = arith.constant 0 : index
    %c0_96 = arith.constant 0 : index
    %c0_97 = arith.constant 0 : index
    %c0_98 = arith.constant 0 : index
    %59 = vector.load %arg6[%c0_95, %c0_96, %c0_97, %c0_98] : memref<1x4x4x32xf32, #tpu.memory_space<vmem>>, vector<1x4x4x32xf32>
    %60 = vector.shape_cast %59 : vector<1x4x4x32xf32> to vector<4x4x32xf32>
    %61 = vector.shape_cast %58 : vector<4x4x32xf32> to vector<1x4x4x32xf32>
    tpu.vector_store %arg6[%c0_95, %c0_96, %c0_97, %c0_98], %61 {strides = array<i32>} : memref<1x4x4x32xf32, #tpu.memory_space<vmem>>, vector<1x4x4x32xf32>,
    return
  }
  func.func @transform_0(%arg0: i32) -> (i32, i32, i32, i32, i32) {
    %c0_i32 = arith.constant 0 : i32
    %c0_i32_0 = arith.constant 0 : i32
    %c0_i32_1 = arith.constant 0 : i32
    %c0_i32_2 = arith.constant 0 : i32
    %c0_i32_3 = arith.constant 0 : i32
    return %arg0, %c0_i32, %c0_i32_0, %c0_i32_1, %c0_i32_2 : i32, i32, i32, i32, i32
  }
  func.func @transform_1(%arg0: i32) -> (i32, i32) {
    %c0_i32 = arith.constant 0 : i32
    %c0_i32_0 = arith.constant 0 : i32
    %c0_i32_1 = arith.constant 0 : i32
    return %c0_i32, %c0_i32_0 : i32, i32
  }
  func.func @transform_2(%arg0: i32) -> (i32, i32) {
    %c0_i32 = arith.constant 0 : i32
    %c0_i32_0 = arith.constant 0 : i32
    %c0_i32_1 = arith.constant 0 : i32
    return %c0_i32, %c0_i32_0 : i32, i32
  }
  func.func @transform_3(%arg0: i32) -> (i32, i32) {
    %c0_i32 = arith.constant 0 : i32
    %c0_i32_0 = arith.constant 0 : i32
    %c0_i32_1 = arith.constant 0 : i32
    return %c0_i32, %c0_i32_0 : i32, i32
  }
  func.func @transform_4(%arg0: i32) -> (i32, i32) {
    %c0_i32 = arith.constant 0 : i32
    %c0_i32_0 = arith.constant 0 : i32
    %c0_i32_1 = arith.constant 0 : i32
    return %c0_i32, %c0_i32_0 : i32, i32
  }
  func.func @transform_5(%arg0: i32) -> (i32, i32, i32, i32) {
    %c0_i32 = arith.constant 0 : i32
    %c0_i32_0 = arith.constant 0 : i32
    %c0_i32_1 = arith.constant 0 : i32
    %c0_i32_2 = arith.constant 0 : i32
    return %arg0, %c0_i32, %c0_i32_0, %c0_i32_1 : i32, i32, i32, i32
  }
}

</mosaic_0001>

<bundles_post_ra>
// kernel: unet_encoder_forward.5
= control target key start
LH: loop header
LB: loop body
LE: loop exit
PB: predicated region body
PF: predicated region fallthrough
CT: control target
= control target key end

     0   :  { %10 = vsyncpa [#allocation6], 0  ;;  %s1748_s0 = inlined_call_operand.vmem [shape: f32[2,4,2,8,16], index: 0, kind: input, shape index: {}]   ;;  %s1749_s1 = inlined_call_operand.vmem [shape: bf16[144,32], index: 1, kind: input, shape index: {}]   ;;  %s1750_s2 = inlined_call_operand.vmem [shape: f32[1,32], index: 2, kind: input, shape index: {}]   ;;  %s1751_s3 = inlined_call_operand.vmem [shape: bf16[288,32], index: 3, kind: input, shape index: {}]   ;;  %s1752_s4 = inlined_call_operand.vmem [shape: f32[1,32], index: 4, kind: input, shape index: {}]   ;;  %s1753_s5 = inlined_call_operand.hbm [shape: f32[2,4,4,32], index: 5, kind: output, shape index: {}]  }
   0x1   :  { %12 = vsyncpa [#allocation6 + $0x1], 0  ;;  %s1417_s18 = smov 0   ;;  %s1419_s19 = smov 0  }
   0x2   :  { %s1421_s20 = smov 0   ;;  %s1423_s21 = smov 0  }
   0x3 LB: > { %s1438_s22 = sadd.s32 4294967295, %s1376_s21   ;;  %s1109_s23 = sadd.s32 4294967294, %s1376_s21   ;;  %s1376_s21 = sphi %s1423_s21, %s1759_s21   ;;  %s1372_s20 = sphi %s1421_s20, %s1758_s20   ;;  %s1368_s19 = sphi %s1419_s19, %s1757_s19   ;;  %s1364_s18 = sphi %s1417_s18, %s1756_s18  }
   0x4   : > { %s1442_s24 = sadd.s32 1, %s1376_s21   ;;  %s135_s25 = sadd.s32 1, %s1372_s20 }
   0x5   : > { %s132_s26 = ssub.s32 %s1376_s21, %s1442_s24  ;;  %p145_p0 = scmp.ne.s32.totalorder %s1372_s20, %s1368_s19 }
   0x6   : > { %p133_p1 = scmp.eq.s32.totalorder %s132_s26, 0  ;;  %p146_p2 = scmp.eq.s32.totalorder %s1438_s22, 1 }
   0x7   : > { %p151_p3 = scmp.ne.s32.totalorder %s1368_s19, %s1364_s18  ;;  %p152_p4 = scmp.eq.s32.totalorder %s1109_s23, 1 }
   0x8   : > { %s1453_s27 = scalar_select %p133_p1, %s1372_s20, %s135_s25  }
   0x9   : > { %p1455_p5 = por %p146_p2, %p145_p0  ;;  %p1459_p6 = por %p152_p4, %p151_p3 }
   0xa   : > { %p1112_p7 = scmp.ge.s32.totalorder %s1376_s21, 1  ;;  %p190_p8 = scmp.lt.s32.totalorder %s1376_s21, 3 }
   0xc   : > { %p191_p9 = pnand %p1112_p7, %p190_p8 }
   0xd   : > { %p218_p10 = scmp.lt.s32.totalorder (!%p191_p9), %s1438_s22, 1  ;;  %s1379_s10 = smov (!%p191_p9), 16  }
   0xe   : > { %194 = sbr.rel (%p191_p9) target bundleno = 706 (0x2c2), region = 40  ;;  %s1380_s11 = smov (!%p191_p9), 32  }
   0xf   : > { %s1381_s12 = smov (!%p191_p9), 48   ;;  %s1382_s13 = smov (!%p191_p9), 64  }
  0x10   : > { %s1383_s14 = smov (!%p191_p9), 80   ;;  %s1384_s15 = smov (!%p191_p9), 96  }
  0x11   : > { %s1385_s16 = smov (!%p191_p9), 112   ;;  %s1263_s25 = sshll.u32 (!%p191_p9), %s1438_s22, 4 }
  0x12   : > { %s1043_s7 = scalar_lea.hbm (!%p191_p9), %s1753_s5, %s1263_s25 }
  0x13   : > { %vm261_vm0 = vcmask 128000   ;;  %v1378_v0 = vmov 0.0   ;;  %s219_s30 = scalar_select %p218_p10, %s1438_s22, 1  ;;  %vm237_vm1 = vcmask 130048   ;;  %vm269_vm2 = vcmask 125952   ;;  %v1243_v62 = vld [vmem:[%s1749_s1 + $0x38] sm:$0xff] }
  0x14   : > { %262 = vst.msk [vmem:[#allocation3] sm:$0x3f] %vm261_vm0, %v1378_v0  ;;  %570 = vmatpush.bf16.msra.mxu0 %v1243_v62  ;;  %vm427_vm3 = vcmask 261120   ;;  %vm432_vm4 = vcmask 392192   ;;  %vm437_vm5 = vcmask 523264   ;;  %vm442_vm6 = vcmask 654336  }
  0x15   : > { %263 = vst.msk [vmem:[#allocation3 + $0x8] sm:$0x3f] %vm261_vm0, %v1378_v0  ;;  %s1235_s6 = sshll.u32 %s219_s30, 6  ;;  %vm447_vm7 = vcmask 785408   ;;  %vm452_vm8 = vcmask 916480   ;;  %vm469_vm9 = vcmask 1043456  }
  0x16   : > { %264 = vst.msk [vmem:[#allocation3 + $0x10] sm:$0x3f] %vm261_vm0, %v1378_v0  ;;  %s222_s9 = scalar_lea.vmem %s1748_s0, %s1235_s6  ;;  %vm600_vm10 = vcmask 259072   ;;  %vm614_vm11 = vcmask 257024  }
  0x17   : > { %265 = vst.msk [vmem:[#allocation3 + $0x18] sm:$0x3f] %vm261_vm0, %v1378_v0  ;;  %v225_v1 = vld [vmem:[%s222_s9 + $0x10] sm:$0xff]  ;;  %v1117_v2 = vld [vmem:[%s222_s9 + $0x18] sm:$0xff]  ;;  %v224_v3 = vld [vmem:[%s222_s9] sm:$0xff] }
  0x18   : > { %266 = vst.msk [vmem:[#allocation3 + $0x20] sm:$0x3f] %vm261_vm0, %v1378_v0  ;;  %v234_v4 = vmax.f32 %v225_v1, %v1117_v2  ;;  %v1116_v5 = vld [vmem:[%s222_s9 + $0x8] sm:$0xff]  ;;  %v226_v6 = vld [vmem:[%s222_s9 + $0x20] sm:$0xff]  ;;  %v227_v12 = vld [vmem:[%s222_s9 + $0x30] sm:$0xff] }
  0x19   : > { %267 = vst.msk [vmem:[#allocation3 + $0x28] sm:$0x3f] %vm261_vm0, %v1378_v0  ;;  %v1118_v7 = vld [vmem:[%s222_s9 + $0x28] sm:$0xff]  ;;  %v233_v9 = vmax.f32 %v224_v3, %v1116_v5  ;;  %v1119_v13 = vld [vmem:[%s222_s9 + $0x38] sm:$0xff]  ;;  %v1242_v3 = vld [vmem:[%s1749_s1 + $0x30] sm:$0xff]  ;;  %s1046_s9 = sshll.u32 %s1043_s7, 4  ;;  %s1047_s9 = int_to_ptr.hbm [resolvable:$true] %s1046_s9 }
  0x1a   : > { %v235_v11 = vmax.f32 %v226_v6, %v1118_v7  ;;  %239 = vst.msk [vmem:[#allocation2 + $0x8] sm:$0xff] %vm237_vm1, %v234_v4  ;;  %v236_v14 = vmax.f32 %v227_v12, %v1119_v13  ;;  %571 = vmatpush.bf16.msra.mxu0 %v1242_v3  ;;  %v1241_v4 = vld [vmem:[%s1749_s1 + $0x28] sm:$0xff]  ;;  %v1238_v12 = vld [vmem:[%s1749_s1 + $0x10] sm:$0xff] }
  0x1b   : > { %v278_v8 = vld [vmem:[#allocation3 + $0x1] sm:$0xf]  ;;  %238 = vst.msk [vmem:[#allocation2] sm:$0xff] %vm237_vm1, %v233_v9  ;;  %v1239_v9 = vld [vmem:[%s1749_s1 + $0x18] sm:$0xff] }
  0x1c   : > { %v282_v10 = vld [vmem:[#allocation3 + $0x2] sm:$0xf]  ;;  %315 = vrot.lane.b32.xlu0 %v278_v8, %s1379_s10  ;;  %240 = vst.msk [vmem:[#allocation2 + $0x10] sm:$0xff] %vm237_vm1, %v235_v11  ;;  %v1240_v8 = vld [vmem:[%s1749_s1 + $0x20] sm:$0xff] }
  0x1d   : > { %331 = vrot.lane.b32.xlu2 %v282_v10, %s1380_s11  ;;  %241 = vst.msk [vmem:[#allocation2 + $0x18] sm:$0xff] %vm237_vm1, %v236_v14  ;;  %v1237_v14 = vld [vmem:[%s1749_s1 + $0x8] sm:$0xff] }
  0x1e   : > { %572 = vmatpush.bf16.msra.mxu0 %v1241_v4  ;;  %601 = vst.msk [vmem:[#allocation4] sm:$0x3f] %vm600_vm10, %v1378_v0 }
  0x1f   : > { %602 = vst.msk [vmem:[#allocation4 + $0x8] sm:$0x3f] %vm600_vm10, %v1378_v0 }
  0x20   : > { %v302_v47 = vld [vmem:[#allocation3 + $0x28] sm:$0xf]  ;;  %603 = vst.msk [vmem:[#allocation4 + $0x10] sm:$0x3f] %vm600_vm10, %v1378_v0 }
  0x21   : > { %v244_v15 = vld [vmem:[#allocation2 + $0x8] ss:$2 sm:$0xf]  ;;  %v252_v16 = vld [vmem:[#allocation2 + $0x9] ss:$2 sm:$0xf] }
  0x22   : > { %v258_v17 = vmax.f32 %v244_v15, %v252_v16  ;;  %v242_v18 = vld [vmem:[#allocation2] ss:$2 sm:$0xf]  ;;  %v250_v19 = vld [vmem:[#allocation2 + $0x1] ss:$2 sm:$0xf]  ;;  %573 = vmatpush.bf16.msra.mxu0 %v1240_v8 }
  0x23   : > { %v257_v20 = vmax.f32 %v242_v18, %v250_v19  ;;  %v246_v21 = vld [vmem:[#allocation2 + $0x10] ss:$2 sm:$0xf]  ;;  %v254_v22 = vld [vmem:[#allocation2 + $0x11] ss:$2 sm:$0xf] }
  0x24   : > { %271 = vst.msk [vmem:[#allocation3 + $0x11] sm:$0xf] %vm269_vm2, %v258_v17  ;;  %v259_v23 = vmax.f32 %v246_v21, %v254_v22  ;;  %v248_v24 = vld [vmem:[#allocation2 + $0x18] ss:$2 sm:$0xf] }
  0x25   : > { %270 = vst.msk [vmem:[#allocation3 + $0x9] sm:$0xf] %vm269_vm2, %v257_v20  ;;  %v256_v25 = vld [vmem:[#allocation2 + $0x19] ss:$2 sm:$0xf] }
  0x26   : > { %272 = vst.msk [vmem:[#allocation3 + $0x19] sm:$0xf] %vm269_vm2, %v259_v23  ;;  %v260_v26 = vmax.f32 %v248_v24, %v256_v25  ;;  %v306_v52 = vld [vmem:[#allocation3 + $0x29] sm:$0xf]  ;;  %574 = vmatpush.bf16.msra.mxu0 %v1239_v9  ;;  %v1244_v15 = vld [vmem:[%s1749_s1 + $0x40] sm:$0xff] }
  0x27   : > { %591 = vmatpush.bf16.msra.mxu1 %v1244_v15  ;;  %v1236_v16 = vld [vmem:[%s1749_s1] sm:$0xff]  ;;  %v274_v19 = vld [vmem:[#allocation3] sm:$0xf]  ;;  %606 = vst.msk [vmem:[#allocation4 + $0x28] sm:$0x3f] %vm600_vm10, %v1378_v0 }
  0x28   : > { %273 = vst.msk [vmem:[#allocation3 + $0x21] sm:$0xf] %vm269_vm2, %v260_v26 }
  0x29   : > { %604 = vst.msk [vmem:[#allocation4 + $0x18] sm:$0x3f] %vm600_vm10, %v1378_v0 }
  0x2a   : > { %575 = vmatpush.bf16.msra.mxu0 %v1238_v12  ;;  %605 = vst.msk [vmem:[#allocation4 + $0x20] sm:$0x3f] %vm600_vm10, %v1378_v0  ;;  %v1312_v0 = vld [vmem:[%s1750_s2] ss:$0 sm:$0xff] }
  0x2b   : > { %v280_v27 = vld [vmem:[#allocation3 + $0x11] sm:$0xf] }
  0x2c   : > { %319 = vrot.lane.b32.xlu1 %v280_v27, %s1379_s10  ;;  %v279_v28 = vld [vmem:[#allocation3 + $0x9] sm:$0xf]  ;;  %v284_v31 = vld [vmem:[#allocation3 + $0x12] sm:$0xf] }
  0x2d   : > { %v283_v29 = vld [vmem:[#allocation3 + $0xa] sm:$0xf]  ;;  %317 = vrot.lane.b32.xlu0 %v279_v28, %s1379_s10  ;;  %v281_v30 = vld [vmem:[#allocation3 + $0x19] sm:$0xf]  ;;  %v287_v34 = vld [vmem:[#allocation3 + $0x10] sm:$0xf] }
  0x2e   : > { %333 = vrot.lane.b32.xlu2 %v283_v29, %s1380_s11  ;;  %v286_v32 = vld [vmem:[#allocation3 + $0x8] sm:$0xf]  ;;  %v285_v33 = vld [vmem:[#allocation3 + $0x1a] sm:$0xf]  ;;  %v291_v39 = vld [vmem:[#allocation3 + $0x11] sm:$0xf]  ;;  %576 = vmatpush.bf16.msra.mxu0 %v1237_v14 }
  0x2f   : > { %v289_v35 = vld [vmem:[#allocation3 + $0x20] sm:$0xf]  ;;  %v288_v36 = vld [vmem:[#allocation3 + $0x18] sm:$0xf]  ;;  %v290_v37 = vld [vmem:[#allocation3 + $0x9] sm:$0xf] }
  0x30   : > { %v292_v38 = vld [vmem:[#allocation3 + $0x19] sm:$0xf]  ;;  %v293_v40 = vld [vmem:[#allocation3 + $0x21] sm:$0xf]  ;;  %v295_v41 = vld [vmem:[#allocation3 + $0x12] sm:$0xf] }
  0x31   : > { %v294_v42 = vld [vmem:[#allocation3 + $0xa] sm:$0xf]  ;;  %v296_v43 = vld [vmem:[#allocation3 + $0x1a] sm:$0xf]  ;;  %v299_v44 = vld [vmem:[#allocation3 + $0x10] sm:$0xf] }
  0x32   : > { %v297_v45 = vld [vmem:[#allocation3 + $0x22] sm:$0xf]  ;;  %v300_v46 = vld [vmem:[#allocation3 + $0x18] sm:$0xf]  ;;  %v303_v49 = vld [vmem:[#allocation3 + $0x11] sm:$0xf]  ;;  %577 = vmatpush.bf16.msra.mxu0 %v1236_v16 }
  0x33   : > { %v301_v48 = vld [vmem:[#allocation3 + $0x20] sm:$0xf]  ;;  %v304_v51 = vld [vmem:[#allocation3 + $0x19] sm:$0xf]  ;;  %v276_v22 = vld [vmem:[#allocation3 + $0x10] sm:$0xf] }
  0x34   : > { %321 = vrot.lane.b32.xlu1 %v281_v30, %s1379_s10  ;;  %v305_v50 = vld [vmem:[#allocation3 + $0x21] sm:$0xf]  ;;  %v275_v27 = vld [vmem:[#allocation3 + $0x8] sm:$0xf]  ;;  %v647_v14 = vld [vmem:[#allocation4 + $0x28] sm:$0xf] }
  0x35   : > { %335 = vrot.lane.b32.xlu0 %v284_v31, %s1380_s11  ;;  %v307_v31 = vld [vmem:[#allocation3 + $0x12] sm:$0xf]  ;;  %v651_v15 = vld [vmem:[#allocation4 + $0x29] sm:$0xf]  ;;  %s1328_s10 = sshra.s32 %s1047_s9, 4  ;;  %s1329_s10 = int_to_ptr.hbm [resolvable:$true] %s1328_s10 }
  0x36   : > { %347 = vrot.lane.b32.xlu2 %v286_v32, %s1381_s12  ;;  %v309_v32 = vld [vmem:[#allocation3 + $0x22] sm:$0xf]  ;;  %v623_v16 = vld [vmem:[#allocation4 + $0x1] sm:$0xf]  ;;  %p1335_p0 = scmp.lt.s32.totalorder %s1329_s10, %s1753_s5 }
  0x3c   : > { %337 = vrot.lane.b32.xlu1 %v285_v33, %s1380_s11  ;;  %v277_v33 = vld [vmem:[#allocation3 + $0x18] sm:$0xf] }
  0x3d   : > { %349 = vrot.lane.b32.xlu0 %v287_v34, %s1381_s12 }
  0x3e   : > { %353 = vrot.lane.b32.xlu2 %v289_v35, %s1381_s12 }
  0x44   : > { %351 = vrot.lane.b32.xlu1 %v288_v36, %s1381_s12  ;;  %s1330_s12 = scalar_lea.hbm %s1329_s10, 16 }
  0x45   : > { %363 = vrot.lane.b32.xlu0 %v290_v37, %s1382_s13  ;;  %p1331_p11 = scmp.ne.s32.totalorder %s1329_s10, %s1330_s12 }
  0x46   : > { %367 = vrot.lane.b32.xlu2 %v292_v38, %s1382_s13  ;;  %v465_v38 = vrot.slane %v307_v31, 4 }
  0x47   : > { %p1332_p12 = pnand %p1331_p11, %p1455_p5 }
  0x49   : > { %p1333_p13 = pneg %p1332_p12 }
  0x4c   : > { %365 = vrot.lane.b32.xlu1 %v291_v39, %s1382_s13  ;;  %v467_v39 = vrot.slane %v309_v32, 4 }
  0x4d   : > { %369 = vrot.lane.b32.xlu0 %v293_v40, %s1382_s13 }
  0x4e   : > { %381 = vrot.lane.b32.xlu2 %v295_v41, %s1383_s14 }
  0x54   : > { %379 = vrot.lane.b32.xlu1 %v294_v42, %s1383_s14 }
  0x55   : > { %383 = vrot.lane.b32.xlu0 %v296_v43, %s1383_s14 }
  0x56   : > { %395 = vrot.lane.b32.xlu2 %v299_v44, %s1384_s15 }
  0x5c   : > { %385 = vrot.lane.b32.xlu1 %v297_v45, %s1383_s14 }
  0x5d   : > { %397 = vrot.lane.b32.xlu0 %v300_v46, %s1384_s15 }
  0x5e   : > { %401 = vrot.lane.b32.xlu2 %v302_v47, %s1384_s15 }
  0x64   : > { %399 = vrot.lane.b32.xlu1 %v301_v48, %s1384_s15 }
  0x65   : > { %411 = vrot.lane.b32.xlu0 %v303_v49, %s1385_s16 }
  0x66   : > { %415 = vrot.lane.b32.xlu2 %v305_v50, %s1385_s16 }
  0x6c   : > { %413 = vrot.lane.b32.xlu1 %v304_v51, %s1385_s16 }
  0x6d   : > { %417 = vrot.lane.b32.xlu0 %v306_v52, %s1385_s16  ;;  %s1334_s16 = scalar_lea.hbm %s1753_s5, 32 }
  0x6e   : > { %730 = vrot.lane.b32.xlu2 %v647_v14, %s1382_s13  ;;  %p1336_p1 = scmp.lt.s32.totalorder %s1334_s16, %s1330_s12 }
  0x70   : > { %p1337_p2 = por %p1336_p1, %p1335_p0 }
  0x72   : > { %p1338_p3 = pnand %p1337_p2, %p1333_p13 }
  0x74   : > { %746 = vrot.lane.b32.xlu1 %v651_v15, %s1384_s15 }
  0x75   : > { %660 = vrot.lane.b32.xlu0 %v623_v16, %s1380_s11  ;;  %v1249_v16 = vld [vmem:[%s1751_s3 + $0x20] sm:$0xff] }
  0x77   : > { %v332_v53 = vpop.permute.xlu2 %331 }
  0x88   : > { %v1500_v54 = vpop.permute.xlu2 %333 }
  0x8e   : > { %v316_v55 = vpop.permute.xlu0 %315 }
  0x8f   : > { %v423_v21 = vsel %vm237_vm1, %v274_v19, %v316_v55  ;;  %v308_v55 = vld [vmem:[#allocation3 + $0x1a] sm:$0xf]  ;;  %v1262_v19 = vld [vmem:[%s1751_s3 + $0x88] sm:$0xff] }
  0x90   : > { %v348_v56 = vpop.permute.xlu2 %347  ;;  %v428_v24 = vsel %vm427_vm3, %v423_v21, %v332_v53  ;;  %1011 = vmatpush.bf16.msrb.mxu1 %v1262_v19 }
  0x91   : > { %v433_v29 = vsel %vm432_vm4, %v428_v24, %v348_v56 }
  0x98   : > { %v1502_v59 = vpop.permute.xlu2 %353 }
  0x9e   : > { %v320_v57 = vpop.permute.xlu1 %319 }
  0x9f   : > { %v318_v58 = vpop.permute.xlu0 %317  ;;  %v425_v26 = vsel %vm237_vm1, %v276_v22, %v320_v57 }
  0xa0   : > { %v368_v63 = vpop.permute.xlu2 %367  ;;  %v424_v35 = vsel %vm237_vm1, %v275_v27, %v318_v58  ;;  %v310_v58 = vld [vmem:[#allocation3 + $0x2a] sm:$0xf] }
  0xa1   : > { %v429_v48 = vsel %vm427_vm3, %v424_v35, %v1500_v54 }
  0xa6   : > { %v322_v60 = vpop.permute.xlu1 %321 }
  0xa7   : > { %v336_v61 = vpop.permute.xlu0 %335  ;;  %v426_v41 = vsel %vm237_vm1, %v277_v33, %v322_v60 }
  0xa8   : > { %v1515_v7 = vpop.permute.xlu2 %381  ;;  %v430_v28 = vsel %vm427_vm3, %v425_v26, %v336_v61  ;;  %v466_v61 = vrot.slane %v308_v55, 4 }
  0xae   : > { %v338_v1 = vpop.permute.xlu1 %337 }
  0xaf   : > { %v1507_v2 = vpop.permute.xlu0 %349  ;;  %v431_v44 = vsel %vm427_vm3, %v426_v41, %v338_v1 }
  0xb0   : > { %v396_v13 = vpop.permute.xlu2 %395  ;;  %v434_v51 = vsel %vm432_vm4, %v429_v48, %v1507_v2  ;;  %v436_v56 = vsel %vm432_vm4, %v431_v44, %v1502_v59 }
  0xb6   : > { %v352_v5 = vpop.permute.xlu1 %351 }
  0xb7   : > { %v364_v6 = vpop.permute.xlu0 %363  ;;  %v435_v30 = vsel %vm432_vm4, %v430_v28, %v352_v5 }
  0xb8   : > { %v402_v20 = vpop.permute.xlu2 %401  ;;  %v438_v34 = vsel %vm437_vm5, %v433_v29, %v364_v6  ;;  %v440_v37 = vsel %vm437_vm5, %v435_v30, %v368_v63  ;;  %v468_v63 = vrot.slane %v310_v58, 4 }
  0xbe   : > { %v366_v10 = vpop.permute.xlu1 %365 }
  0xbf   : > { %v370_v11 = vpop.permute.xlu0 %369  ;;  %v439_v57 = vsel %vm437_vm5, %v434_v51, %v366_v10 }
  0xc0   : > { %v416_v40 = vpop.permute.xlu2 %415  ;;  %v441_v54 = vsel %vm437_vm5, %v436_v56, %v370_v11  ;;  %v444_v62 = vsel %vm442_vm6, %v439_v57, %v1515_v7 }
  0xc6   : > { %v380_v17 = vpop.permute.xlu1 %379 }
  0xc7   : > { %v384_v18 = vpop.permute.xlu0 %383  ;;  %v443_v36 = vsel %vm442_vm6, %v438_v34, %v380_v17  ;;  %v627_v17 = vld [vmem:[#allocation4 + $0x2] sm:$0xf] }
  0xc8   : > { %v445_v42 = vsel %vm442_vm6, %v440_v37, %v384_v18  ;;  %v448_v45 = vsel %vm447_vm7, %v443_v36, %v396_v13  ;;  %676 = vrot.lane.b32.xlu2 %v627_v17, %s1382_s13  ;;  %v655_v18 = vld [vmem:[#allocation4 + $0x2a] sm:$0xf] }
  0xc9   : > { %810 = vst [vmem:[#allocation1 + $0x31] ss:$2 sm:$0xff] %v655_v18  ;;  %v1257_v17 = vld [vmem:[%s1751_s3 + $0x60] sm:$0xff] }
  0xce   : > { %v386_v23 = vpop.permute.xlu1 %385 }
  0xcf   : > { %v398_v25 = vpop.permute.xlu0 %397  ;;  %v446_v60 = vsel %vm442_vm6, %v441_v54, %v386_v23 }
  0xd0   : > { %v449_v1 = vsel %vm447_vm7, %v444_v62, %v398_v25  ;;  %v451_v3 = vsel %vm447_vm7, %v446_v60, %v402_v20  ;;  %v1261_v20 = vld [vmem:[%s1751_s3 + $0x80] sm:$0xff]  ;;  %v1616_v60 = vpop.permute.xlu2 %730 }
  0xd1   : > { %1012 = vmatpush.bf16.msrb.mxu1 %v1261_v20 }
  0xd6   : > { %v400_v43 = vpop.permute.xlu1 %399 }
  0xd7   : > { %v450_v46 = vsel %vm447_vm7, %v445_v42, %v400_v43  ;;  %v412_v47 = vpop.permute.xlu0 %411 }
  0xd8   : > { %v453_v49 = vsel %vm452_vm8, %v448_v45, %v412_v47  ;;  %v455_v50 = vsel %vm452_vm8, %v450_v46, %v416_v40 }
  0xd9   : > { %v470_v52 = vsel %vm469_vm9, %v453_v49, %v465_v38  ;;  %v472_v53 = vsel %vm469_vm9, %v455_v50, %v467_v39 }
  0xda   : > { %474 = vst [vmem:[#allocation1] ss:$2 sm:$0xff] %v470_v52 }
  0xdb   : > { %478 = vst [vmem:[#allocation1 + $0x10] ss:$2 sm:$0xff] %v472_v53 }
  0xde   : > { %v414_v2 = vpop.permute.xlu1 %413 }
  0xdf   : > { %v454_v59 = vsel %vm452_vm8, %v449_v1, %v414_v2  ;;  %v418_v4 = vpop.permute.xlu0 %417  ;;  %v1252_v2 = vld [vmem:[%s1751_s3 + $0x38] sm:$0xff] }
  0xe0   : > { %v471_v5 = vsel %vm469_vm9, %v454_v59, %v466_v61  ;;  %v456_v6 = vsel %vm452_vm8, %v451_v3, %v418_v4  ;;  %v1260_v3 = vld [vmem:[%s1751_s3 + $0x78] sm:$0xff]  ;;  %977 = vmatpush.bf16.msra.mxu2 %v1252_v2 }
  0xe1   : > { %476 = vst [vmem:[#allocation1 + $0x1] ss:$2 sm:$0xff] %v471_v5  ;;  %v473_v8 = vsel %vm469_vm9, %v456_v6, %v468_v63  ;;  %991 = vmatpush.bf16.msra.mxu3 %v1260_v3  ;;  %v1251_v6 = vld [vmem:[%s1751_s3 + $0x30] sm:$0xff] }
  0xe2   : > { %480 = vst [vmem:[#allocation1 + $0x11] ss:$2 sm:$0xff] %v473_v8  ;;  %v1259_v8 = vld [vmem:[%s1751_s3 + $0x70] sm:$0xff] }
  0xe4   : > { %978 = vmatpush.bf16.msra.mxu2 %v1251_v6 }
  0xe5   : > { %992 = vmatpush.bf16.msra.mxu3 %v1259_v8 }
  0xe6   : > { %v1618_v62 = vpop.permute.xlu1 %746 }
  0xe7   : > { %v661_v63 = vpop.permute.xlu0 %660 }
  0xe8   : > { %v481_v9 = vld.sshfl [vmem:[#allocation1] sm:$0xff pattern:$0x75316420]  ;;  %v482_v10 = vld.sshfl [vmem:[#allocation1 + $0x8] sm:$0xff pattern:$0x75316420] }
  0xe9   : > { %v483_v7 = vld.sshfl [vmem:[#allocation1 + $0x10] sm:$0xff pattern:$0x75316420]  ;;  %v484_v11 = vld.sshfl [vmem:[#allocation1 + $0x18] sm:$0xff pattern:$0x75316420] }
  0xea   : > { %v489_v12 = vpack.c.bf16 %v483_v7, %v481_v9  ;;  %v490_v13 = vpack.c.bf16 %v484_v11, %v482_v10  ;;  %v1250_v9 = vld [vmem:[%s1751_s3 + $0x28] sm:$0xff] }
  0xeb   : > { %v1258_v10 = vld [vmem:[%s1751_s3 + $0x68] sm:$0xff]  ;;  %979 = vmatpush.bf16.msra.mxu2 %v1250_v9 }
  0xec   : > { %578 = vmatmul.bf16.vlgmr.msra.gmra.mxu0 %v489_v12  ;;  %1156 = vmatmul.msk.bf16.vlgmr.msra.gmra.mxu1 %vm237_vm1, %v490_v13  ;;  %v619_v12 = vld [vmem:[#allocation4] sm:$0xf] }
  0xed   : > { %993 = vmatpush.bf16.msra.mxu3 %v1258_v10  ;;  %v752_v18 = vsel %vm427_vm3, %v619_v12, %v661_v63 }
  0xef   : > { %980 = vmatpush.bf16.msra.mxu2 %v1249_v16 }
  0xf1   : > { %994 = vmatpush.bf16.msra.mxu3 %v1257_v17 }
 0x122   : > { %v677_v61 = vpop.permute.xlu2 %676 }
 0x169   : > { %v579_v21 = vpop.f32.mrf.mxu0  ;;  %v593_v22 = vpop.f32.mrf.mxu1 }
 0x16a   : > { %v580_v23 = vadd.f32 %v1312_v0, %v579_v21  ;;  %v1248_v21 = vld [vmem:[%s1751_s3 + $0x18] sm:$0xff] }
 0x16b   : > { %981 = vmatpush.bf16.msra.mxu2 %v1248_v21 }
 0x16c   : > { %v594_v24 = vadd.f32 %v593_v22, %v580_v23  ;;  %v1256_v22 = vld [vmem:[%s1751_s3 + $0x58] sm:$0xff] }
 0x16d   : > { %995 = vmatpush.bf16.msra.mxu3 %v1256_v22 }
 0x16e   : > { %v598_v25 = vmax.f32 %v594_v24, 0.0  ;;  %v756_v24 = vsel %vm437_vm5, %v752_v18, %v677_v61 }
 0x170   : > { %v609_v26 = vrot.slane %v598_v25, 4  ;;  %615 = vst.msk [vmem:[#allocation4 + $0x9] sm:$0xf] %vm614_vm11, %v598_v25 }
 0x171   : > { %v581_v27 = vpop.f32.mrf.mxu0  ;;  %v595_v29 = vpop.f32.mrf.mxu1 }
 0x172   : > { %616 = vst.msk [vmem:[#allocation4 + $0x11] sm:$0xf] %vm614_vm11, %v609_v26  ;;  %v582_v28 = vadd.f32 %v1312_v0, %v581_v27 }
 0x174   : > { %v596_v30 = vadd.f32 %v595_v29, %v582_v28  ;;  %v1247_v28 = vld [vmem:[%s1751_s3 + $0x10] sm:$0xff] }
 0x175   : > { %v1255_v29 = vld [vmem:[%s1751_s3 + $0x50] sm:$0xff]  ;;  %982 = vmatpush.bf16.msra.mxu2 %v1247_v28 }
 0x176   : > { %v599_v31 = vmax.f32 %v596_v30, 0.0  ;;  %996 = vmatpush.bf16.msra.mxu3 %v1255_v29 }
 0x177   : > { %v639_v32 = vld [vmem:[#allocation4 + $0xa] sm:$0xf] }
 0x178   : > { %v628_v33 = vld [vmem:[#allocation4 + $0xa] sm:$0xf]  ;;  %v610_v34 = vrot.slane %v599_v31, 4  ;;  %617 = vst.msk [vmem:[#allocation4 + $0x19] sm:$0xf] %vm614_vm11, %v599_v31  ;;  %708 = vrot.lane.b32.xlu1 %v639_v32, %s1380_s11 }
 0x179   : > { %678 = vrot.lane.b32.xlu0 %v628_v33, %s1382_s13  ;;  %v652_v35 = vld [vmem:[#allocation4 + $0x12] sm:$0xf]  ;;  %v631_v38 = vld [vmem:[#allocation4 + $0x8] sm:$0xf] }
 0x17a   : > { %v640_v36 = vld [vmem:[#allocation4 + $0x12] sm:$0xf]  ;;  %800 = vst [vmem:[#allocation1 + $0x10] ss:$2 sm:$0xff] %v652_v35  ;;  %v624_v39 = vld [vmem:[#allocation4 + $0x9] sm:$0xf] }
 0x17b   : > { %710 = vrot.lane.b32.xlu2 %v640_v36, %s1380_s11  ;;  %618 = vst.msk [vmem:[#allocation4 + $0x21] sm:$0xf] %vm614_vm11, %v610_v34  ;;  %v644_v40 = vld [vmem:[#allocation4 + $0x10] sm:$0xf]  ;;  %v635_v13 = vld [vmem:[#allocation4 + $0x9] sm:$0xf] }
 0x17c   : > { %v648_v43 = vld [vmem:[#allocation4 + $0x11] sm:$0xf]  ;;  %v1245_v35 = vld [vmem:[%s1751_s3] sm:$0xff] }
 0x17d   : > { %v625_v44 = vld [vmem:[#allocation4 + $0x11] sm:$0xf]  ;;  %v1253_v36 = vld [vmem:[%s1751_s3 + $0x40] sm:$0xff] }
 0x17e   : > { %v629_v49 = vld [vmem:[#allocation4 + $0x12] sm:$0xf] }
 0x17f   : > { %v653_v37 = vld [vmem:[#allocation4 + $0x1a] sm:$0xf]  ;;  %v632_v54 = vld [vmem:[#allocation4 + $0x10] sm:$0xf] }
 0x180   : > { %802 = vst [vmem:[#allocation1 + $0x11] ss:$2 sm:$0xff] %v653_v37  ;;  %662 = vrot.lane.b32.xlu1 %v624_v39, %s1380_s11  ;;  %v641_v42 = vld [vmem:[#allocation4 + $0x1a] sm:$0xf]  ;;  %v1246_v33 = vld [vmem:[%s1751_s3 + $0x8] sm:$0xff] }
 0x181   : > { %692 = vrot.lane.b32.xlu0 %v631_v38, %s1384_s15  ;;  %v645_v48 = vld [vmem:[#allocation4 + $0x18] sm:$0xf]  ;;  %v1254_v34 = vld [vmem:[%s1751_s3 + $0x48] sm:$0xff]  ;;  %983 = vmatpush.bf16.msra.mxu2 %v1246_v33 }
 0x182   : > { %v654_v41 = vld [vmem:[#allocation4 + $0x22] sm:$0xf]  ;;  %v649_v50 = vld [vmem:[#allocation4 + $0x19] sm:$0xf]  ;;  %997 = vmatpush.bf16.msra.mxu3 %v1254_v34 }
 0x183   : > { %724 = vrot.lane.b32.xlu2 %v644_v40, %s1382_s13  ;;  %808 = vst [vmem:[#allocation1 + $0x30] ss:$2 sm:$0xff] %v654_v41  ;;  %v626_v51 = vld [vmem:[#allocation4 + $0x19] sm:$0xf]  ;;  %v642_v52 = vld [vmem:[#allocation4 + $0x22] sm:$0xf] }
 0x184   : > { %v630_v53 = vld [vmem:[#allocation4 + $0x1a] sm:$0xf]  ;;  %v650_v55 = vld [vmem:[#allocation4 + $0x21] sm:$0xf] }
 0x185   : > { %v646_v56 = vld [vmem:[#allocation4 + $0x20] sm:$0xf]  ;;  %v633_v57 = vld [vmem:[#allocation4 + $0x18] sm:$0xf]  ;;  %984 = vmatpush.bf16.msra.mxu2 %v1245_v35 }
 0x186   : > { %v634_v58 = vld [vmem:[#allocation4 + $0x20] sm:$0xf]  ;;  %998 = vmatpush.bf16.msra.mxu3 %v1253_v36 }
 0x187   : > { %v813_v45 = vld.sshfl [vmem:[#allocation1 + $0x10] sm:$0xff pattern:$0x75316420]  ;;  %v638_v40 = vld [vmem:[#allocation4 + $0x21] sm:$0xf] }
 0x188   : > { %740 = vrot.lane.b32.xlu1 %v648_v43, %s1384_s15  ;;  %v637_v43 = vld [vmem:[#allocation4 + $0x19] sm:$0xf] }
 0x189   : > { %712 = vrot.lane.b32.xlu0 %v641_v42, %s1380_s11  ;;  %v621_v42 = vld [vmem:[#allocation4 + $0x10] sm:$0xf] }
 0x18a   : > { %v816_v46 = vld.sshfl [vmem:[#allocation1 + $0x30] sm:$0xff pattern:$0x75316420] }
 0x18b   : > { %664 = vrot.lane.b32.xlu2 %v625_v44, %s1380_s11  ;;  %v825_v47 = vpack.c.bf16 %v816_v46, %v813_v45  ;;  %v636_v45 = vld [vmem:[#allocation4 + $0x11] sm:$0xf] }
 0x18d   : > { %1229 = vmatmul.msk.bf16.vlgmr.msrb.gmra.mxu1 %vm427_vm3, %v825_v47 }
 0x190   : > { %680 = vrot.lane.b32.xlu1 %v629_v49, %s1382_s13 }
 0x191   : > { %726 = vrot.lane.b32.xlu0 %v645_v48, %s1382_s13 }
 0x193   : > { %742 = vrot.lane.b32.xlu2 %v649_v50, %s1384_s15 }
 0x198   : > { %714 = vrot.lane.b32.xlu1 %v642_v52, %s1380_s11 }
 0x199   : > { %666 = vrot.lane.b32.xlu0 %v626_v51, %s1380_s11 }
 0x19b   : > { %682 = vrot.lane.b32.xlu2 %v630_v53, %s1382_s13 }
 0x1a0   : > { %728 = vrot.lane.b32.xlu1 %v646_v56, %s1382_s13 }
 0x1a1   : > { %744 = vrot.lane.b32.xlu0 %v650_v55, %s1384_s15 }
 0x1a3   : > { %696 = vrot.lane.b32.xlu2 %v633_v57, %s1384_s15  ;;  %v622_v57 = vld [vmem:[#allocation4 + $0x18] sm:$0xf] }
 0x1a8   : > { %694 = vrot.lane.b32.xlu1 %v632_v54, %s1384_s15  ;;  %v620_v54 = vld [vmem:[#allocation4 + $0x8] sm:$0xf] }
 0x1a9   : > { %698 = vrot.lane.b32.xlu0 %v634_v58, %s1384_s15  ;;  %s215_s15 = sand.u32 1, %s1368_s19  }
 0x1aa   : > { %s1113_s23 = sshll.u32 %s215_s15, 4  ;;  %s1032_s22 = scalar_lea.sflag [#allocation6], %s215_s15 }
 0x1ab   : > { %s217_s26 = scalar_lea.vmem [#allocation5], %s1113_s23 }
 0x1ac   : > { %s1044_s8 = sshll.u32 %s217_s26, 4  ;;  %s1045_s8 = int_to_ptr.vmem [resolvable:$true] %s1044_s8 }
 0x1d5   : > { %v1620_v1 = vpop.permute.xlu2 %710 }
 0x1d6   : > { %v765_v49 = vsel %vm427_vm3, %v636_v45, %v1620_v1 }
 0x1dd   : > { %v725_v5 = vpop.permute.xlu2 %724 }
 0x1e5   : > { %v665_v14 = vpop.permute.xlu2 %664 }
 0x1e6   : > { %v754_v46 = vsel %vm427_vm3, %v621_v42, %v665_v14 }
 0x1ea   : > { %v709_v59 = vpop.permute.xlu1 %708 }
 0x1eb   : > { %v1628_v4 = vpop.permute.xlu0 %678  ;;  %v764_v15 = vsel %vm427_vm3, %v635_v13, %v709_v59 }
 0x1ec   : > { %v768_v20 = vsel %vm437_vm5, %v764_v15, %v725_v5 }
 0x1ed   : > { %v743_v30 = vpop.permute.xlu2 %742 }
 0x1f2   : > { %v1642_v11 = vpop.permute.xlu1 %662 }
 0x1f3   : > { %v693_v7 = vpop.permute.xlu0 %692 }
 0x1f4   : > { %v760_v26 = vsel %vm447_vm7, %v756_v24, %v693_v7 }
 0x1f5   : > { %v683_v39 = vpop.permute.xlu2 %682 }
 0x1fa   : > { %v741_v0 = vpop.permute.xlu1 %740 }
 0x1fb   : > { %v713_v19 = vpop.permute.xlu0 %712  ;;  %v772_v23 = vsel %vm447_vm7, %v768_v20, %v741_v0 }
 0x1fc   : > { %v788_v25 = vrot.slane %v772_v23, 4  ;;  %v766_v47 = vsel %vm427_vm3, %v637_v43, %v713_v19 }
 0x1fd   : > { %v697_v56 = vpop.permute.xlu2 %696 }
 0x1fe   : > { %v792_v27 = vsel %vm469_vm9, %v760_v26, %v788_v25 }
 0x1ff   : > { %796 = vst [vmem:[#allocation1] ss:$2 sm:$0xff] %v792_v27 }
 0x202   : > { %v681_v32 = vpop.permute.xlu1 %680 }
 0x203   : > { %v727_v31 = vpop.permute.xlu0 %726  ;;  %v758_v50 = vsel %vm437_vm5, %v754_v46, %v681_v32 }
 0x204   : > { %v769_v53 = vsel %vm437_vm5, %v765_v49, %v727_v31  ;;  %v762_v61 = vsel %vm447_vm7, %v758_v50, %v697_v56 }
 0x205   : > { %v773_v2 = vsel %vm447_vm7, %v769_v53, %v743_v30 }
 0x206   : > { %v789_v8 = vrot.slane %v773_v2, 4 }
 0x20a   : > { %v715_v38 = vpop.permute.xlu1 %714  ;;  %v1014_v21 = vpop.f32.mrf.mxu1 }
 0x20b   : > { %v667_v37 = vpop.permute.xlu0 %666  ;;  %v767_v41 = vsel %vm427_vm3, %v638_v40, %v715_v38 }
 0x20c   : > { %v771_v51 = vsel %vm437_vm5, %v767_v41, %v1616_v60  ;;  %v755_v63 = vsel %vm427_vm3, %v622_v57, %v667_v37  ;;  %v753_v60 = vsel %vm427_vm3, %v620_v54, %v1642_v11 }
 0x20d   : > { %v775_v1 = vsel %vm447_vm7, %v771_v51, %v1618_v62  ;;  %v759_v6 = vsel %vm437_vm5, %v755_v63, %v683_v39  ;;  %v757_v10 = vsel %vm437_vm5, %v753_v60, %v1628_v4  ;;  %v1313_v4 = vld [vmem:[%s1752_s4] ss:$0 sm:$0xff] }
 0x20e   : > { %v791_v59 = vrot.slane %v775_v1, 4 }
 0x212   : > { %v729_v48 = vpop.permute.xlu1 %728  ;;  %v1016_v30 = vpop.f32.mrf.mxu1 }
 0x213   : > { %v745_v44 = vpop.permute.xlu0 %744  ;;  %v770_v52 = vsel %vm437_vm5, %v766_v47, %v729_v48 }
 0x214   : > { %v774_v55 = vsel %vm447_vm7, %v770_v52, %v745_v44 }
 0x215   : > { %v790_v58 = vrot.slane %v774_v55, 4 }
 0x217   : > { %v794_v3 = vsel %vm469_vm9, %v762_v61, %v790_v58 }
 0x218   : > { %804 = vst [vmem:[#allocation1 + $0x20] ss:$2 sm:$0xff] %v794_v3 }
 0x21a   : > { %v695_v7 = vpop.permute.xlu1 %694 }
 0x21b   : > { %v699_v5 = vpop.permute.xlu0 %698  ;;  %v761_v11 = vsel %vm447_vm7, %v757_v10, %v695_v7 }
 0x21c   : > { %v763_v9 = vsel %vm447_vm7, %v759_v6, %v699_v5  ;;  %v793_v12 = vsel %vm469_vm9, %v761_v11, %v789_v8 }
 0x21d   : > { %v795_v62 = vsel %vm469_vm9, %v763_v9, %v791_v59  ;;  %798 = vst [vmem:[#allocation1 + $0x1] ss:$2 sm:$0xff] %v793_v12 }
 0x21e   : > { %806 = vst [vmem:[#allocation1 + $0x21] ss:$2 sm:$0xff] %v795_v62 }
 0x224   : > { %v811_v15 = vld.sshfl [vmem:[#allocation1] sm:$0xff pattern:$0x75316420]  ;;  %v812_v16 = vld.sshfl [vmem:[#allocation1 + $0x8] sm:$0xff pattern:$0x75316420] }
 0x225   : > { %v814_v13 = vld.sshfl [vmem:[#allocation1 + $0x20] sm:$0xff pattern:$0x75316420]  ;;  %v815_v14 = vld.sshfl [vmem:[#allocation1 + $0x28] sm:$0xff pattern:$0x75316420] }
 0x226   : > { %v823_v17 = vpack.c.bf16 %v814_v13, %v811_v15  ;;  %v824_v18 = vpack.c.bf16 %v815_v14, %v812_v16 }
 0x228   : > { %985 = vmatmul.bf16.vlgmr.msra.gmra.mxu2 %v823_v17  ;;  %999 = vmatmul.bf16.vlgmr.msra.gmra.mxu3 %v824_v18 }
 0x2ab   : > { %v986_v19 = vpop.f32.mrf.mxu2  ;;  %v1000_v0 = vpop.f32.mrf.mxu3 }
 0x2ac   : > { %v987_v20 = vadd.f32 %v1313_v4, %v986_v19 }
 0x2ae   : > { %v1001_v22 = vadd.f32 %v1000_v0, %v987_v20 }
 0x2b0   : > { %v1015_v23 = vadd.f32 %v1014_v21, %v1001_v22 }
 0x2b2   : > { %v1019_v24 = vmax.f32 %v1015_v23, 0.0 }
 0x2b3   : > { %v988_v25 = vpop.f32.mrf.mxu2  ;;  %v1002_v28 = vpop.f32.mrf.mxu3 }
 0x2b4   : > { %v1023_v26 = vrot.slane %v1019_v24, 4  ;;  %1027 = vst.msk [vmem:[%s217_s26] sm:$0xf] %vm614_vm11, %v1019_v24  ;;  %v989_v27 = vadd.f32 %v1313_v4, %v988_v25 }
 0x2b6   : > { %1028 = vst.msk [vmem:[%s217_s26 + $0x4] sm:$0xf] %vm614_vm11, %v1023_v26  ;;  %v1003_v29 = vadd.f32 %v1002_v28, %v989_v27 }
 0x2b8   : > { %v1017_v31 = vadd.f32 %v1016_v30, %v1003_v29 }
 0x2ba   : > { %v1020_v32 = vmax.f32 %v1017_v31, 0.0 }
 0x2bc   : > { %v1024_v33 = vrot.slane %v1020_v32, 4  ;;  %1029 = vst.msk [vmem:[%s217_s26 + $0x8] sm:$0xf] %vm614_vm11, %v1020_v32 }
 0x2be   : > { %1030 = vst.msk [vmem:[%s217_s26 + $0xc] sm:$0xf] %vm614_vm11, %v1024_v33 }
 0x2bf   : > { %1341 = shalt.err (!%p1338_p3)
}
 0x2c0   : > { %s1386_s15 = smov 4  }
 0x2c1   : > { %1264 = dma.vmem_to_hbm [thread:$0]  (%p1455_p5), %s1045_s8, 256, %s1047_s9, %s1032_s22, %s1382_s13, %s1382_s13, %s1386_s15  }
 0x2c2 PF: > { %p1270_p4 = scmp.ge.s32.totalorder %s1376_s21, 2  ;;  %s1061_s25 = sand.u32 1, %s1364_s18  }
 0x2c3   : > { %s1062_s26 = scalar_lea.sflag [#allocation6], %s1061_s25 }
 0x2c4   : > { %p1267_p7 = pnand %p1270_p4, %p1459_p6 }
 0x2c6   : > { %p1268_p8 = pneg %p1267_p7 }
 0x2c8   : > { %1359 = dma.done.wait (%p1268_p8), %s1062_s26, 256  }
 0x2c9   : > { %1361 = vsyncadd (%p1268_p8), %s1062_s26, 4294967040  ;;  %p15_p9 = scmp.ge.s32.totalorder %s1442_s24, 4   ;;  %s1756_s18 = smov %s1368_s19 }
 0x2ca   : > { %s1757_s19 = smov %s1372_s20  ;;  %s1758_s20 = smov %s1453_s27 }
 0x2cb   : > { %s1759_s21 = smov %s1442_s24  ;;  %17 = sbr.rel (!%p15_p9) target bundleno = 3 (0x3), region = 97 }
 0x2d0   :  { %1068 = vsyncpa [#allocation6], 1 }
 0x2d1   :  { %1070 = vsyncpa [#allocation6 + $0x1], 1 }

// kernel: unet_encoder_forward.4
= control target key start
LH: loop header
LB: loop body
LE: loop exit
PB: predicated region body
PF: predicated region fallthrough
CT: control target
= control target key end

     0   :  { %s1952_s18 = smov 0   ;;  %s2467_s0 = inlined_call_operand.vmem [shape: f32[2,8,2,16,8], index: 0, kind: input, shape index: {}]   ;;  %s2468_s1 = inlined_call_operand.vmem [shape: bf16[72,16], index: 1, kind: input, shape index: {}]   ;;  %s2469_s2 = inlined_call_operand.vmem [shape: f32[1,16], index: 2, kind: input, shape index: {}]   ;;  %s2470_s3 = inlined_call_operand.vmem [shape: bf16[144,16], index: 3, kind: input, shape index: {}]   ;;  %s2471_s4 = inlined_call_operand.vmem [shape: f32[1,16], index: 4, kind: input, shape index: {}]   ;;  %s2472_s5 = inlined_call_operand.vmem [shape: f32[2,8,8,16], index: 5, kind: output, shape index: {}]  }
   0x1 LB: > { %s1470_s19 = sadd.s32 4294967295, %s1908_s18   ;;  %p1474_p0 = scmp.ge.s32.totalorder %s1908_s18, 1  ;;  %s1908_s18 = sphi %s1952_s18, %s15_s18  }
   0x2   : > { %p187_p1 = scmp.lt.s32.totalorder %s1908_s18, 3 }
   0x4   : > { %p188_p2 = pnand %p1474_p0, %p187_p1 }
   0x5   : > { %p215_p3 = scmp.lt.s32.totalorder (!%p188_p2), %s1470_s19, 1  ;;  %s1911_s24 = smov (!%p188_p2), 8  }
   0x6   : > { %191 = sbr.rel (%p188_p2) target bundleno = 685 (0x2ad), region = 40  ;;  %s1912_s25 = smov (!%p188_p2), 16  }
   0x7   : > { %s1913_s26 = smov (!%p188_p2), 24   ;;  %s1914_s27 = smov (!%p188_p2), 40  }
   0x8   : > { %s1915_s28 = smov (!%p188_p2), 56   ;;  %s1916_s29 = smov (!%p188_p2), 32  }
   0x9   : > { %s1917_s30 = smov (!%p188_p2), 48   ;;  %s1918_s6 = smov (!%p188_p2), 64  }
   0xb   : > { %vm275_vm0 = vcmask 64512   ;;  %vm332_vm1 = vcmask 58368   ;;  %v1910_v0 = vmov 0.0   ;;  %s2474_s19 = smov (!%p215_p3, %s1470_s19), 1  ;;  %vm818_vm2 = vcmask 1043456  }
   0xc   : > { %331 = vst.msk [vmem:[#allocation3] sm:$0xff] %vm275_vm0, %v1910_v0  ;;  %s1557_s20 = sshll.u32 %s2474_s19, 8  ;;  %vm698_vm3 = vcmask 130048   ;;  %vm707_vm4 = vcmask 195584   ;;  %vm716_vm5 = vcmask 261120   ;;  %vm725_vm6 = vcmask 326656  }
   0xd   : > { %333 = vst.msk [vmem:[#allocation3 + $0x8] sm:$0x3] %vm332_vm1, %v1910_v0  ;;  %s1974_s23 = scalar_lea.vmem %s2467_s0, %s1557_s20  ;;  %vm734_vm7 = vcmask 392192   ;;  %vm743_vm8 = vcmask 457728   ;;  %vm752_vm9 = vcmask 523264   ;;  %vm805_vm10 = vcmask 588800  }
   0xe   : > { %334 = vst.msk [vmem:[#allocation3 + $0x10] sm:$0xff] %vm275_vm0, %v1910_v0  ;;  %v226_v1 = vld [vmem:[%s1974_s23] sm:$0xff]  ;;  %v227_v2 = vld [vmem:[%s1974_s23 + $0x8] sm:$0xff]  ;;  %v1479_v3 = vld [vmem:[%s1974_s23 + $0x10] sm:$0xff]  ;;  %vm860_vm11 = vcmask 123904   ;;  %vm1218_vm12 = vcmask 654336  }
   0xf   : > { %335 = vst.msk [vmem:[#allocation3 + $0x18] sm:$0x3] %vm332_vm1, %v1910_v0  ;;  %v1480_v4 = vld [vmem:[%s1974_s23 + $0x18] sm:$0xff]  ;;  %v259_v5 = vmax.f32 %v226_v1, %v1479_v3  ;;  %v228_v7 = vld [vmem:[%s1974_s23 + $0x20] sm:$0xff]  ;;  %v1481_v10 = vld [vmem:[%s1974_s23 + $0x30] sm:$0xff]  ;;  %vm1227_vm13 = vcmask 785408  }
  0x10   : > { %336 = vst.msk [vmem:[#allocation3 + $0x20] sm:$0xff] %vm275_vm0, %v1910_v0  ;;  %v260_v6 = vmax.f32 %v227_v2, %v1480_v4  ;;  %v229_v12 = vld [vmem:[%s1974_s23 + $0x28] sm:$0xff]  ;;  %v1482_v13 = vld [vmem:[%s1974_s23 + $0x38] sm:$0xff]  ;;  %v230_v14 = vld [vmem:[%s1974_s23 + $0x40] sm:$0xff]  ;;  %v261_v16 = vmax.f32 %v228_v7, %v1481_v10  ;;  %vm1236_vm14 = vcmask 916480   ;;  %s1558_s21 = sshll.u32 %s2474_s19, 6 }
  0x11   : > { %337 = vst.msk [vmem:[#allocation3 + $0x28] sm:$0x3] %vm332_vm1, %v1910_v0  ;;  %v1483_v15 = vld [vmem:[%s1974_s23 + $0x50] sm:$0xff]  ;;  %v231_v17 = vld [vmem:[%s1974_s23 + $0x48] sm:$0xff]  ;;  %v1484_v18 = vld [vmem:[%s1974_s23 + $0x58] sm:$0xff]  ;;  %v262_v19 = vmax.f32 %v229_v12, %v1482_v13 }
  0x12   : > { %338 = vst.msk [vmem:[#allocation3 + $0x30] sm:$0xff] %vm275_vm0, %v1910_v0  ;;  %v232_v20 = vld [vmem:[%s1974_s23 + $0x60] sm:$0xff]  ;;  %v1485_v21 = vld [vmem:[%s1974_s23 + $0x70] sm:$0xff]  ;;  %v263_v22 = vmax.f32 %v230_v14, %v1483_v15  ;;  %v233_v23 = vld [vmem:[%s1974_s23 + $0x68] sm:$0xff]  ;;  %v264_v25 = vmax.f32 %v231_v17, %v1484_v18 }
  0x13   : > { %339 = vst.msk [vmem:[#allocation3 + $0x38] sm:$0x3] %vm332_vm1, %v1910_v0  ;;  %v1486_v24 = vld [vmem:[%s1974_s23 + $0x78] sm:$0xff]  ;;  %v234_v26 = vld [vmem:[%s1974_s23 + $0x80] sm:$0xff]  ;;  %v1487_v27 = vld [vmem:[%s1974_s23 + $0x90] sm:$0xff]  ;;  %v265_v28 = vmax.f32 %v232_v20, %v1485_v21 }
  0x14   : > { %276 = vst.msk [vmem:[#allocation2] sm:$0xff] %vm275_vm0, %v259_v5  ;;  %v235_v29 = vld [vmem:[%s1974_s23 + $0x88] sm:$0xff]  ;;  %v1488_v30 = vld [vmem:[%s1974_s23 + $0x98] sm:$0xff]  ;;  %v266_v32 = vmax.f32 %v233_v23, %v1486_v24  ;;  %v267_v33 = vmax.f32 %v234_v26, %v1487_v27  ;;  %v236_v49 = vld [vmem:[%s1974_s23 + $0xa0] sm:$0xff] }
  0x15   : > { %277 = vst.msk [vmem:[#allocation2 + $0x8] sm:$0xff] %vm275_vm0, %v260_v6  ;;  %v369_v31 = vld [vmem:[#allocation3 + $0x1] sm:$0xff]  ;;  %v268_v35 = vmax.f32 %v235_v29, %v1488_v30  ;;  %v1489_v51 = vld [vmem:[%s1974_s23 + $0xb0] sm:$0xff]  ;;  %v1490_v54 = vld [vmem:[%s1974_s23 + $0xb8] sm:$0xff] }
  0x16   : > { %340 = vst.msk [vmem:[#allocation3 + $0x40] sm:$0xff] %vm275_vm0, %v1910_v0  ;;  %v377_v37 = vld [vmem:[#allocation3 + $0x2] sm:$0xff]  ;;  %v269_v55 = vmax.f32 %v236_v49, %v1489_v51  ;;  %v1491_v5 = vld [vmem:[%s1974_s23 + $0xd0] sm:$0xff]  ;;  %v1492_v6 = vld [vmem:[%s1974_s23 + $0xd8] sm:$0xff] }
  0x17   : > { %341 = vst.msk [vmem:[#allocation3 + $0x48] sm:$0x3] %vm332_vm1, %v1910_v0  ;;  %v237_v50 = vld [vmem:[%s1974_s23 + $0xa8] sm:$0xff]  ;;  %v238_v3 = vld [vmem:[%s1974_s23 + $0xc0] sm:$0xff]  ;;  %v1494_v26 = vld [vmem:[%s1974_s23 + $0xf8] sm:$0xff] }
  0x18   : > { %342 = vst.msk [vmem:[#allocation3 + $0x50] sm:$0xff] %vm275_vm0, %v1910_v0  ;;  %v270_v57 = vmax.f32 %v237_v50, %v1490_v54  ;;  %v239_v4 = vld [vmem:[%s1974_s23 + $0xc8] sm:$0xff] }
  0x19   : > { %343 = vst.msk [vmem:[#allocation3 + $0x58] sm:$0x3] %vm332_vm1, %v1910_v0  ;;  %v241_v23 = vld [vmem:[%s1974_s23 + $0xe8] sm:$0xff] }
  0x1a   : > { %344 = vst.msk [vmem:[#allocation3 + $0x60] sm:$0xff] %vm275_vm0, %v1910_v0 }
  0x1b   : > { %345 = vst.msk [vmem:[#allocation3 + $0x68] sm:$0x3] %vm332_vm1, %v1910_v0 }
  0x1c   : > { %v292_v8 = vld [vmem:[#allocation2] ss:$2 sm:$0xff]  ;;  %v308_v9 = vld [vmem:[#allocation2 + $0x1] ss:$2 sm:$0xff]  ;;  %346 = vst.msk [vmem:[#allocation3 + $0x70] sm:$0xff] %vm275_vm0, %v1910_v0 }
  0x1d   : > { %v323_v11 = vmax.f32 %v292_v8, %v308_v9  ;;  %347 = vst.msk [vmem:[#allocation3 + $0x78] sm:$0x3] %vm332_vm1, %v1910_v0  ;;  %v271_v8 = vmax.f32 %v238_v3, %v1491_v5  ;;  %v272_v9 = vmax.f32 %v239_v4, %v1492_v6  ;;  %v773_v4 = vld [vmem:[%s2468_s1 + $0x20] sm:$0xf] }
  0x1e   : > { %348 = vst.msk [vmem:[#allocation3 + $0x80] sm:$0xff] %vm275_vm0, %v1910_v0  ;;  %v795_v5 = vunpack.c.l.b16 %v773_v4 }
  0x1f   : > { %353 = vst.msk [vmem:[#allocation3 + $0x11] sm:$0xff] %vm275_vm0, %v323_v11 }
  0x20   : > { %349 = vst.msk [vmem:[#allocation3 + $0x88] sm:$0x3] %vm332_vm1, %v1910_v0  ;;  %v800_v6 = vpack.c.b16 %v795_v5, %v795_v5 }
  0x21   : > { %350 = vst.msk [vmem:[#allocation3 + $0x90] sm:$0xff] %vm275_vm0, %v1910_v0 }
  0x22   : > { %351 = vst.msk [vmem:[#allocation3 + $0x98] sm:$0x3] %vm332_vm1, %v1910_v0 }
  0x23   : > { %278 = vst.msk [vmem:[#allocation2 + $0x10] sm:$0xff] %vm275_vm0, %v261_v16 }
  0x24   : > { %279 = vst.msk [vmem:[#allocation2 + $0x18] sm:$0xff] %vm275_vm0, %v262_v19 }
  0x25   : > { %280 = vst.msk [vmem:[#allocation2 + $0x20] sm:$0xff] %vm275_vm0, %v263_v22  ;;  %v240_v22 = vld [vmem:[%s1974_s23 + $0xe0] sm:$0xff] }
  0x26   : > { %v2034_v34 = vld [vmem:[#allocation3 + $0x11] sm:$0xff]  ;;  %281 = vst.msk [vmem:[#allocation2 + $0x28] sm:$0xff] %vm275_vm0, %v264_v25 }
  0x27   : > { %v1600_v36 = vpack.i.bf16 %v2034_v34, %v369_v31  ;;  %282 = vst.msk [vmem:[#allocation2 + $0x30] sm:$0xff] %vm275_vm0, %v265_v28  ;;  %v378_v38 = vld [vmem:[#allocation3 + $0x12] sm:$0xff]  ;;  %v274_v28 = vmax.f32 %v241_v23, %v1494_v26 }
  0x28   : > { %283 = vst.msk [vmem:[#allocation2 + $0x38] sm:$0xff] %vm275_vm0, %v266_v32  ;;  %v1605_v42 = vpack.i.bf16 %v378_v38, %v377_v37  ;;  %v2051_v58 = vld [vmem:[#allocation3 + $0x10] sm:$0xff] }
  0x29   : > { %1601 = vrot.lane.b32.xlu0 %v1600_v36, %s1911_s24  ;;  %284 = vst.msk [vmem:[#allocation2 + $0x40] sm:$0xff] %vm275_vm0, %v267_v33  ;;  %v1493_v25 = vld [vmem:[%s1974_s23 + $0xf0] sm:$0xff]  ;;  %s1919_s23 = smov 80  }
  0x2a   : > { %285 = vst.msk [vmem:[#allocation2 + $0x48] sm:$0xff] %vm275_vm0, %v268_v35  ;;  %v273_v27 = vmax.f32 %v240_v22, %v1493_v25 }
  0x2b   : > { %v294_v39 = vld [vmem:[#allocation2 + $0x10] ss:$2 sm:$0xff]  ;;  %v310_v40 = vld [vmem:[#allocation2 + $0x11] ss:$2 sm:$0xff]  ;;  %286 = vst.msk [vmem:[#allocation2 + $0x50] sm:$0xff] %vm275_vm0, %v269_v55 }
  0x2c   : > { %v324_v41 = vmax.f32 %v294_v39, %v310_v40  ;;  %287 = vst.msk [vmem:[#allocation2 + $0x58] sm:$0xff] %vm275_vm0, %v270_v57 }
  0x2d   : > { %v296_v43 = vld [vmem:[#allocation2 + $0x20] ss:$2 sm:$0xff]  ;;  %v312_v44 = vld [vmem:[#allocation2 + $0x21] ss:$2 sm:$0xff]  ;;  %288 = vst.msk [vmem:[#allocation2 + $0x60] sm:$0xff] %vm275_vm0, %v271_v8  ;;  %v820_v8 = vsel %vm818_vm2, %v800_v6, 0 }
  0x2e   : > { %354 = vst.msk [vmem:[#allocation3 + $0x21] sm:$0xff] %vm275_vm0, %v324_v41  ;;  %v325_v45 = vmax.f32 %v296_v43, %v312_v44  ;;  %825 = vmatpush.bf16.msra.mxu0 %v820_v8 }
  0x2f   : > { %v298_v46 = vld [vmem:[#allocation2 + $0x30] ss:$2 sm:$0xff]  ;;  %v314_v47 = vld [vmem:[#allocation2 + $0x31] ss:$2 sm:$0xff]  ;;  %289 = vst.msk [vmem:[#allocation2 + $0x68] sm:$0xff] %vm275_vm0, %v272_v9 }
  0x30   : > { %355 = vst.msk [vmem:[#allocation3 + $0x31] sm:$0xff] %vm275_vm0, %v325_v45  ;;  %v326_v48 = vmax.f32 %v298_v46, %v314_v47  ;;  %v1562_v9 = vld [vmem:[%s2468_s1 + $0x18] sm:$0xff] }
  0x31   : > { %1606 = vrot.lane.b32.xlu0 %v1605_v42, %s1912_s25  ;;  %v300_v52 = vld [vmem:[#allocation2 + $0x40] ss:$2 sm:$0xff]  ;;  %v316_v53 = vld [vmem:[#allocation2 + $0x41] ss:$2 sm:$0xff]  ;;  %290 = vst.msk [vmem:[#allocation2 + $0x70] sm:$0xff] %vm275_vm0, %v273_v27 }
  0x32   : > { %356 = vst.msk [vmem:[#allocation3 + $0x41] sm:$0xff] %vm275_vm0, %v326_v48  ;;  %v327_v56 = vmax.f32 %v300_v52, %v316_v53  ;;  %826 = vmatpush.bf16.msra.mxu0 %v1562_v9 }
  0x33   : > { %v302_v12 = vld [vmem:[#allocation2 + $0x50] ss:$2 sm:$0xff]  ;;  %v318_v13 = vld [vmem:[#allocation2 + $0x51] ss:$2 sm:$0xff]  ;;  %291 = vst.msk [vmem:[#allocation2 + $0x78] sm:$0xff] %vm275_vm0, %v274_v28 }
  0x34   : > { %357 = vst.msk [vmem:[#allocation3 + $0x51] sm:$0xff] %vm275_vm0, %v327_v56  ;;  %v328_v15 = vmax.f32 %v302_v12, %v318_v13  ;;  %v425_v56 = vld [vmem:[#allocation3 + $0x91] sm:$0xff]  ;;  %v1560_v12 = vld [vmem:[%s2468_s1 + $0x8] sm:$0xff] }
  0x35   : > { %v2055_v59 = vld [vmem:[#allocation3 + $0x20] sm:$0xff]  ;;  %859 = vst.msk [vmem:[#allocation4] sm:$0xff] %vm698_vm3, %v1910_v0 }
  0x36   : > { %v426_v60 = vld [vmem:[#allocation3 + $0x22] sm:$0xff]  ;;  %v1610_v61 = vpack.i.bf16 %v2055_v59, %v2051_v58  ;;  %358 = vst.msk [vmem:[#allocation3 + $0x61] sm:$0xff] %vm275_vm0, %v328_v15 }
  0x37   : > { %v1620_v62 = vpack.i.bf16 %v426_v60, %v378_v38  ;;  %v394_v63 = vld [vmem:[#allocation3 + $0x21] sm:$0xff]  ;;  %v419_v1 = vld [vmem:[#allocation3 + $0x31] sm:$0xff]  ;;  %862 = vst.msk [vmem:[#allocation4 + $0x10] sm:$0xff] %vm698_vm3, %v1910_v0 }
  0x38   : > { %1611 = vrot.lane.b32.xlu1 %v1610_v61, %s1913_s26  ;;  %v1630_v2 = vpack.i.bf16 %v419_v1, %v394_v63  ;;  %v2067_v7 = vld [vmem:[#allocation3 + $0x30] sm:$0xff]  ;;  %v1615_v10 = vpack.i.bf16 %v394_v63, %v2034_v34  ;;  %v304_v18 = vld [vmem:[#allocation2 + $0x60] ss:$2 sm:$0xff]  ;;  %v320_v19 = vld [vmem:[#allocation2 + $0x61] ss:$2 sm:$0xff]  ;;  %864 = vst.msk [vmem:[#allocation4 + $0x20] sm:$0xff] %vm698_vm3, %v1910_v0 }
  0x39   : > { %1621 = vrot.lane.b32.xlu2 %v1620_v62, %s1914_s27  ;;  %v1625_v11 = vpack.i.bf16 %v2067_v7, %v2055_v59  ;;  %v427_v14 = vld [vmem:[#allocation3 + $0x32] sm:$0xff]  ;;  %v404_v17 = vld [vmem:[#allocation3 + $0x42] sm:$0xff]  ;;  %v329_v21 = vmax.f32 %v304_v18, %v320_v19  ;;  %866 = vst.msk [vmem:[#allocation4 + $0x30] sm:$0xff] %vm698_vm3, %v1910_v0 }
  0x3a   : > { %1631 = vrot.lane.b32.xlu0 %v1630_v2, %s1915_s28  ;;  %v1635_v16 = vpack.i.bf16 %v427_v14, %v426_v60  ;;  %v1660_v20 = vpack.i.bf16 %v404_v17, %v427_v14  ;;  %v2083_v24 = vld [vmem:[#allocation3 + $0x40] sm:$0xff]  ;;  %v306_v38 = vld [vmem:[#allocation2 + $0x70] ss:$2 sm:$0xff]  ;;  %v322_v39 = vld [vmem:[#allocation2 + $0x71] ss:$2 sm:$0xff]  ;;  %868 = vst.msk [vmem:[#allocation4 + $0x40] sm:$0xff] %vm698_vm3, %v1910_v0 }
  0x3b   : > { %359 = vst.msk [vmem:[#allocation3 + $0x71] sm:$0xff] %vm275_vm0, %v329_v21  ;;  %v429_v29 = vld [vmem:[#allocation3 + $0x52] sm:$0xff]  ;;  %v373_v30 = vld [vmem:[#allocation3 + $0x41] sm:$0xff]  ;;  %v1650_v31 = vpack.i.bf16 %v2083_v24, %v2067_v7  ;;  %v330_v40 = vmax.f32 %v306_v38, %v322_v39 }
  0x3c   : > { %v1655_v32 = vpack.i.bf16 %v373_v30, %v419_v1  ;;  %v1675_v33 = vpack.i.bf16 %v429_v29, %v404_v17  ;;  %v2094_v34 = vld [vmem:[#allocation3 + $0x50] sm:$0xff]  ;;  %870 = vst.msk [vmem:[#allocation4 + $0x50] sm:$0xff] %vm698_vm3, %v1910_v0  ;;  %v1559_v14 = vld [vmem:[%s2468_s1] sm:$0xff] }
  0x3d   : > { %v374_v35 = vld [vmem:[#allocation3 + $0x51] sm:$0xff]  ;;  %v2097_v36 = vld [vmem:[#allocation3 + $0x60] sm:$0xff]  ;;  %v1665_v37 = vpack.i.bf16 %v2094_v34, %v2083_v24  ;;  %360 = vst.msk [vmem:[#allocation3 + $0x81] sm:$0xff] %vm275_vm0, %v330_v40 }
  0x3e   : > { %v1680_v41 = vpack.i.bf16 %v374_v35, %v373_v30  ;;  %v1690_v42 = vpack.i.bf16 %v2097_v36, %v2094_v34  ;;  %v398_v45 = vld [vmem:[#allocation3 + $0x61] sm:$0xff]  ;;  %v417_v62 = vld [vmem:[#allocation3 + $0x90] sm:$0xff]  ;;  %872 = vst.msk [vmem:[#allocation4 + $0x60] sm:$0xff] %vm698_vm3, %v1910_v0 }
  0x3f   : > { %v383_v46 = vld [vmem:[#allocation3 + $0x62] sm:$0xff]  ;;  %v1695_v47 = vpack.i.bf16 %v398_v45, %v374_v35  ;;  %874 = vst.msk [vmem:[#allocation4 + $0x70] sm:$0xff] %vm698_vm3, %v1910_v0 }
  0x40   : > { %1616 = vrot.lane.b32.xlu1 %v1615_v10, %s1916_s29  ;;  %v1700_v48 = vpack.i.bf16 %v383_v46, %v429_v29  ;;  %v1561_v10 = vld [vmem:[%s2468_s1 + $0x10] sm:$0xff]  ;;  %876 = vst.msk [vmem:[#allocation4 + $0x80] sm:$0xff] %vm698_vm3, %v1910_v0  ;;  %v361_v21 = vld [vmem:[#allocation3] sm:$0xff] }
  0x41   : > { %1626 = vrot.lane.b32.xlu2 %v1625_v11, %s1917_s30  ;;  %878 = vst.msk [vmem:[#allocation4 + $0x90] sm:$0xff] %vm698_vm3, %v1910_v0  ;;  %827 = vmatpush.bf16.msra.mxu0 %v1561_v10 }
  0x42   : > { %1646 = vrot.lane.b32.xlu0 %v1635_v16, %s1912_s25  ;;  %v2107_v43 = vld [vmem:[#allocation3 + $0x70] sm:$0xff]  ;;  %863 = vst.msk [vmem:[#allocation4 + $0x18] sm:$0x3] %vm860_vm11, %v1910_v0 }
  0x43   : > { %v1705_v44 = vpack.i.bf16 %v2107_v43, %v2097_v36  ;;  %v423_v49 = vld [vmem:[#allocation3 + $0x71] sm:$0xff]  ;;  %861 = vst.msk [vmem:[#allocation4 + $0x8] sm:$0x3] %vm860_vm11, %v1910_v0 }
  0x44   : > { %v1710_v50 = vpack.i.bf16 %v423_v49, %v398_v45  ;;  %v384_v51 = vld [vmem:[#allocation3 + $0x72] sm:$0xff]  ;;  %v400_v52 = vld [vmem:[#allocation3 + $0x81] sm:$0xff]  ;;  %865 = vst.msk [vmem:[#allocation4 + $0x28] sm:$0x3] %vm860_vm11, %v1910_v0 }
  0x45   : > { %v1725_v53 = vpack.i.bf16 %v384_v51, %v383_v46  ;;  %v1735_v54 = vpack.i.bf16 %v400_v52, %v423_v49  ;;  %v392_v55 = vld [vmem:[#allocation3 + $0x80] sm:$0xff]  ;;  %v1750_v60 = vpack.i.bf16 %v425_v56, %v400_v52  ;;  %828 = vmatpush.bf16.msra.mxu0 %v1560_v12  ;;  %867 = vst.msk [vmem:[#allocation4 + $0x38] sm:$0x3] %vm860_vm11, %v1910_v0 }
  0x46   : > { %v1730_v57 = vpack.i.bf16 %v392_v55, %v2107_v43  ;;  %v408_v61 = vld [vmem:[#allocation3 + $0x82] sm:$0xff]  ;;  %v1745_v1 = vpack.i.bf16 %v417_v62, %v392_v55  ;;  %869 = vst.msk [vmem:[#allocation4 + $0x48] sm:$0x3] %vm860_vm11, %v1910_v0 }
  0x47   : > { %v1740_v63 = vpack.i.bf16 %v408_v61, %v384_v51  ;;  %871 = vst.msk [vmem:[#allocation4 + $0x58] sm:$0x3] %vm860_vm11, %v1910_v0 }
  0x48   : > { %1636 = vrot.lane.b32.xlu1 %v1635_v16, %s1918_s6  ;;  %873 = vst.msk [vmem:[#allocation4 + $0x68] sm:$0x3] %vm860_vm11, %v1910_v0 }
  0x49   : > { %1641 = vrot.lane.b32.xlu2 %v1630_v2, %s1911_s24  ;;  %v433_v2 = vld [vmem:[#allocation3 + $0x92] sm:$0xff]  ;;  %829 = vmatpush.bf16.msra.mxu0 %v1559_v14  ;;  %875 = vst.msk [vmem:[#allocation4 + $0x78] sm:$0x3] %vm860_vm11, %v1910_v0 }
  0x4a   : > { %1661 = vrot.lane.b32.xlu0 %v1660_v20, %s1914_s27  ;;  %v1755_v3 = vpack.i.bf16 %v433_v2, %v408_v61  ;;  %877 = vst.msk [vmem:[#allocation4 + $0x88] sm:$0x3] %vm860_vm11, %v1910_v0 }
  0x4b   : > { %879 = vst.msk [vmem:[#allocation4 + $0x98] sm:$0x3] %vm860_vm11, %v1910_v0  ;;  %v905_v0 = vld [vmem:[#allocation4 + $0x2] sm:$0xff] }
  0x50   : > { %1651 = vrot.lane.b32.xlu1 %v1650_v31, %s1913_s26 }
  0x51   : > { %1656 = vrot.lane.b32.xlu2 %v1655_v32, %s1916_s29 }
  0x52   : > { %1676 = vrot.lane.b32.xlu0 %v1675_v33, %s1918_s6 }
  0x58   : > { %1666 = vrot.lane.b32.xlu1 %v1665_v37, %s1917_s30 }
  0x59   : > { %1671 = vrot.lane.b32.xlu2 %v1680_v41, %s1915_s28 }
  0x5a   : > { %1691 = vrot.lane.b32.xlu0 %v1690_v42, %s1913_s26 }
  0x60   : > { %1681 = vrot.lane.b32.xlu1 %v1680_v41, %s1911_s24 }
  0x61   : > { %1686 = vrot.lane.b32.xlu2 %v1675_v33, %s1912_s25 }
  0x62   : > { %1706 = vrot.lane.b32.xlu0 %v1705_v44, %s1917_s30 }
  0x68   : > { %1696 = vrot.lane.b32.xlu1 %v1695_v47, %s1916_s29 }
  0x69   : > { %1701 = vrot.lane.b32.xlu2 %v1700_v48, %s1914_s27 }
  0x6a   : > { %1721 = vrot.lane.b32.xlu0 %v1710_v50, %s1911_s24  ;;  %s1920_s24 = smov 112  }
  0x70   : > { %1711 = vrot.lane.b32.xlu1 %v1710_v50, %s1915_s28 }
  0x71   : > { %1716 = vrot.lane.b32.xlu2 %v1725_v53, %s1918_s6 }
  0x72   : > { %1736 = vrot.lane.b32.xlu0 %v1735_v54, %s1916_s29 }
  0x78   : > { %1726 = vrot.lane.b32.xlu1 %v1725_v53, %s1912_s25 }
  0x79   : > { %1731 = vrot.lane.b32.xlu2 %v1730_v57, %s1913_s26  ;;  %s1921_s26 = smov 96  }
  0x7a   : > { %1751 = vrot.lane.b32.xlu0 %v1750_v60, %s1915_s28 }
  0x80   : > { %1741 = vrot.lane.b32.xlu1 %v1740_v63, %s1914_s27 }
  0x81   : > { %1746 = vrot.lane.b32.xlu2 %v1745_v1, %s1917_s30 }
  0x88   : > { %1756 = vrot.lane.b32.xlu1 %v1755_v3, %s1918_s6 }
  0x93   : > { %v1622_v11 = vpop.permute.xlu2 %1621 }
  0x94   : > { %v1624_v40 = vunpack.i.h.bf16 %v1622_v11  ;;  %v1623_v41 = vunpack.i.l.bf16 %v1622_v11 }
  0x9b   : > { %v1602_v13 = vpop.permute.xlu0 %1601  ;;  %v1627_v15 = vpop.permute.xlu2 %1626 }
  0x9c   : > { %v1604_v18 = vunpack.i.h.bf16 %v1602_v13  ;;  %v1603_v19 = vunpack.i.l.bf16 %v1602_v13  ;;  %v1629_v45 = vunpack.i.h.bf16 %v1627_v15  ;;  %v1628_v46 = vunpack.i.l.bf16 %v1627_v15 }
  0x9e   : > { %v690_v26 = vsel %vm275_vm0, %v361_v21, %v1603_v19  ;;  %v691_v27 = vsel %vm275_vm0, %v2051_v58, %v1604_v18 }
  0xa3   : > { %v1607_v16 = vpop.permute.xlu0 %1606  ;;  %v1642_v17 = vpop.permute.xlu2 %1641 }
  0xa4   : > { %v1609_v22 = vunpack.i.h.bf16 %v1607_v16  ;;  %v1608_v23 = vunpack.i.l.bf16 %v1607_v16  ;;  %v1644_v60 = vunpack.i.h.bf16 %v1642_v17  ;;  %v1643_v61 = vunpack.i.l.bf16 %v1642_v17 }
  0xa6   : > { %v699_v28 = vsel %vm698_vm3, %v690_v26, %v1608_v23  ;;  %v700_v29 = vsel %vm698_vm3, %v691_v27, %v1609_v22  ;;  %v693_v6 = vsel %vm275_vm0, %v2067_v7, %v1644_v60  ;;  %v692_v8 = vsel %vm275_vm0, %v2055_v59, %v1643_v61 }
  0xaa   : > { %v1612_v20 = vpop.permute.xlu1 %1611 }
  0xab   : > { %v1614_v30 = vunpack.i.h.bf16 %v1612_v20  ;;  %v1613_v31 = vunpack.i.l.bf16 %v1612_v20  ;;  %v1657_v39 = vpop.permute.xlu2 %1656 }
  0xac   : > { %v1632_v25 = vpop.permute.xlu0 %1631  ;;  %v1659_v15 = vunpack.i.h.bf16 %v1657_v39  ;;  %v1658_v16 = vunpack.i.l.bf16 %v1657_v39 }
  0xad   : > { %v708_v33 = vsel %vm707_vm4, %v699_v28, %v1613_v31  ;;  %v709_v35 = vsel %vm707_vm4, %v700_v29, %v1614_v30  ;;  %v1634_v49 = vunpack.i.h.bf16 %v1632_v25  ;;  %v1633_v50 = vunpack.i.l.bf16 %v1632_v25 }
  0xb2   : > { %v1617_v32 = vpop.permute.xlu1 %1616 }
  0xb3   : > { %v1619_v37 = vunpack.i.h.bf16 %v1617_v32  ;;  %v1618_v38 = vunpack.i.l.bf16 %v1617_v32  ;;  %v1672_v2 = vpop.permute.xlu2 %1671 }
  0xb4   : > { %v1647_v58 = vpop.permute.xlu0 %1646  ;;  %v1674_v26 = vunpack.i.h.bf16 %v1672_v2  ;;  %v1673_v27 = vunpack.i.l.bf16 %v1672_v2 }
  0xb5   : > { %v717_v42 = vsel %vm716_vm5, %v708_v33, %v1618_v38  ;;  %v718_v44 = vsel %vm716_vm5, %v709_v35, %v1619_v37  ;;  %v1649_v4 = vunpack.i.h.bf16 %v1647_v58  ;;  %v1648_v5 = vunpack.i.l.bf16 %v1647_v58 }
  0xb6   : > { %v726_v47 = vsel %vm725_vm6, %v717_v42, %v1623_v41  ;;  %v727_v48 = vsel %vm725_vm6, %v718_v44, %v1624_v40 }
  0xb7   : > { %v735_v51 = vsel %vm734_vm7, %v726_v47, %v1628_v46  ;;  %v736_v52 = vsel %vm734_vm7, %v727_v48, %v1629_v45  ;;  %v702_v10 = vsel %vm698_vm3, %v693_v6, %v1649_v4  ;;  %v701_v11 = vsel %vm698_vm3, %v692_v8, %v1648_v5 }
  0xb8   : > { %v744_v53 = vsel %vm743_vm8, %v735_v51, %v1633_v50  ;;  %v745_v54 = vsel %vm743_vm8, %v736_v52, %v1634_v49 }
  0xba   : > { %v1637_v55 = vpop.permute.xlu1 %1636 }
  0xbb   : > { %v1639_v56 = vunpack.i.h.bf16 %v1637_v55  ;;  %v1638_v57 = vunpack.i.l.bf16 %v1637_v55  ;;  %v1687_v20 = vpop.permute.xlu2 %1686 }
  0xbc   : > { %v1662_v62 = vpop.permute.xlu0 %1661  ;;  %v1689_v47 = vunpack.i.h.bf16 %v1687_v20  ;;  %v1688_v48 = vunpack.i.l.bf16 %v1687_v20 }
  0xbd   : > { %v753_v63 = vsel %vm752_vm9, %v744_v53, %v1638_v57  ;;  %v754_v1 = vsel %vm752_vm9, %v745_v54, %v1639_v56  ;;  %v1664_v7 = vunpack.i.h.bf16 %v1662_v62  ;;  %v1663_v19 = vunpack.i.l.bf16 %v1662_v62 }
  0xbe   : > { %v761_v3 = vpack.c.bf16 %v754_v1, %v753_v63 }
  0xc0   : > { %1511 = vmatmul.msk.bf16.vlgmr.msra.gmra.mxu0 %vm805_vm10, %v761_v3 }
  0xc2   : > { %v1652_v9 = vpop.permute.xlu1 %1651 }
  0xc3   : > { %v1654_v12 = vunpack.i.h.bf16 %v1652_v9  ;;  %v1653_v13 = vunpack.i.l.bf16 %v1652_v9  ;;  %v1702_v58 = vpop.permute.xlu2 %1701 }
  0xc4   : > { %v1677_v14 = vpop.permute.xlu0 %1676  ;;  %v1704_v1 = vunpack.i.h.bf16 %v1702_v58 }
  0xc5   : > { %v710_v17 = vsel %vm707_vm4, %v701_v11, %v1653_v13  ;;  %v711_v18 = vsel %vm707_vm4, %v702_v10, %v1654_v12  ;;  %v1679_v30 = vunpack.i.h.bf16 %v1677_v14  ;;  %v1678_v31 = vunpack.i.l.bf16 %v1677_v14 }
  0xc6   : > { %v719_v59 = vsel %vm716_vm5, %v710_v17, %v1658_v16  ;;  %v720_v21 = vsel %vm716_vm5, %v711_v18, %v1659_v15 }
  0xc7   : > { %v728_v22 = vsel %vm725_vm6, %v719_v59, %v1663_v19  ;;  %v729_v23 = vsel %vm725_vm6, %v720_v21, %v1664_v7 }
  0xca   : > { %v1667_v25 = vpop.permute.xlu1 %1666 }
  0xcb   : > { %v1669_v28 = vunpack.i.h.bf16 %v1667_v25  ;;  %v1668_v29 = vunpack.i.l.bf16 %v1667_v25  ;;  %v1717_v62 = vpop.permute.xlu2 %1716 }
  0xcc   : > { %v1692_v32 = vpop.permute.xlu0 %1691  ;;  %v1719_v11 = vunpack.i.h.bf16 %v1717_v62  ;;  %v1718_v12 = vunpack.i.l.bf16 %v1717_v62  ;;  %v1571_v62 = vld [vmem:[%s2470_s3 + $0x40] sm:$0xff] }
  0xcd   : > { %v737_v33 = vsel %vm734_vm7, %v728_v22, %v1668_v29  ;;  %v738_v35 = vsel %vm734_vm7, %v729_v23, %v1669_v28  ;;  %v1694_v51 = vunpack.i.h.bf16 %v1692_v32  ;;  %v1693_v52 = vunpack.i.l.bf16 %v1692_v32  ;;  %1377 = vmatpush.bf16.msra.mxu2 %v1571_v62 }
  0xce   : > { %v746_v37 = vsel %vm743_vm8, %v737_v33, %v1673_v27  ;;  %v747_v38 = vsel %vm743_vm8, %v738_v35, %v1674_v26 }
  0xcf   : > { %v755_v39 = vsel %vm752_vm9, %v746_v37, %v1678_v31  ;;  %v756_v40 = vsel %vm752_vm9, %v747_v38, %v1679_v30 }
  0xd0   : > { %v762_v41 = vpack.c.bf16 %v756_v40, %v755_v39 }
  0xd2   : > { %v1682_v42 = vpop.permute.xlu1 %1681  ;;  %1512 = vmatmul.msk.bf16.gmra.mxu0 %vm805_vm10, %v762_v41 }
  0xd3   : > { %v1684_v44 = vunpack.i.h.bf16 %v1682_v42  ;;  %v1683_v45 = vunpack.i.l.bf16 %v1682_v42  ;;  %v1732_v17 = vpop.permute.xlu2 %1731 }
  0xd4   : > { %v1707_v46 = vpop.permute.xlu0 %1706  ;;  %v1734_v28 = vunpack.i.h.bf16 %v1732_v17  ;;  %v1733_v29 = vunpack.i.l.bf16 %v1732_v17 }
  0xd5   : > { %v695_v49 = vsel %vm275_vm0, %v2094_v34, %v1684_v44  ;;  %v694_v50 = vsel %vm275_vm0, %v2083_v24, %v1683_v45  ;;  %v1703_v34 = vunpack.i.l.bf16 %v1702_v58  ;;  %v1709_v3 = vunpack.i.h.bf16 %v1707_v46 }
  0xd6   : > { %v703_v53 = vsel %vm698_vm3, %v694_v50, %v1688_v48  ;;  %v704_v54 = vsel %vm698_vm3, %v695_v49, %v1689_v47  ;;  %v1708_v4 = vunpack.i.l.bf16 %v1707_v46 }
  0xd7   : > { %v713_v56 = vsel %vm707_vm4, %v704_v54, %v1694_v51  ;;  %v712_v57 = vsel %vm707_vm4, %v703_v53, %v1693_v52 }
  0xda   : > { %v1697_v55 = vpop.permute.xlu1 %1696 }
  0xdb   : > { %v1699_v60 = vunpack.i.h.bf16 %v1697_v55  ;;  %v1698_v61 = vunpack.i.l.bf16 %v1697_v55  ;;  %v1747_v35 = vpop.permute.xlu2 %1746 }
  0xdc   : > { %v1722_v63 = vpop.permute.xlu0 %1721  ;;  %v1749_v41 = vunpack.i.h.bf16 %v1747_v35  ;;  %v1748_v58 = vunpack.i.l.bf16 %v1747_v35 }
  0xdd   : > { %v721_v2 = vsel %vm716_vm5, %v712_v57, %v1698_v61  ;;  %v722_v24 = vsel %vm716_vm5, %v713_v56, %v1699_v60  ;;  %v1724_v20 = vunpack.i.h.bf16 %v1722_v63  ;;  %v1723_v59 = vunpack.i.l.bf16 %v1722_v63  ;;  %v2250_v61 = vld [vmem:[%s2469_s2] ss:$0 sm:$0xff] }
  0xde   : > { %v730_v5 = vsel %vm725_vm6, %v721_v2, %v1703_v34  ;;  %v731_v6 = vsel %vm725_vm6, %v722_v24, %v1704_v1 }
  0xdf   : > { %v739_v8 = vsel %vm734_vm7, %v730_v5, %v1708_v4  ;;  %v740_v9 = vsel %vm734_vm7, %v731_v6, %v1709_v3  ;;  %v697_v23 = vsel %vm275_vm0, %v2107_v43, %v1724_v20  ;;  %v696_v25 = vsel %vm275_vm0, %v2097_v36, %v1723_v59  ;;  %v897_v3 = vld [vmem:[#allocation4 + $0x1] sm:$0xff] }
  0xe2   : > { %v1712_v10 = vpop.permute.xlu1 %1711 }
  0xe3   : > { %v1714_v13 = vunpack.i.h.bf16 %v1712_v10  ;;  %v1713_v14 = vunpack.i.l.bf16 %v1712_v10 }
  0xe4   : > { %v1737_v19 = vpop.permute.xlu0 %1736 }
  0xe5   : > { %v748_v15 = vsel %vm743_vm8, %v739_v8, %v1713_v14  ;;  %v749_v16 = vsel %vm743_vm8, %v740_v9, %v1714_v13  ;;  %v1739_v32 = vunpack.i.h.bf16 %v1737_v19  ;;  %v1738_v33 = vunpack.i.l.bf16 %v1737_v19 }
  0xe6   : > { %v757_v18 = vsel %vm752_vm9, %v748_v15, %v1718_v12  ;;  %v758_v7 = vsel %vm752_vm9, %v749_v16, %v1719_v11 }
  0xe7   : > { %v763_v21 = vpack.c.bf16 %v758_v7, %v757_v18 }
  0xe9   : > { %1513 = vmatmul.msk.bf16.gmra.mxu0 %vm805_vm10, %v763_v21 }
  0xea   : > { %v1727_v22 = vpop.permute.xlu1 %1726 }
  0xeb   : > { %v1729_v26 = vunpack.i.h.bf16 %v1727_v22  ;;  %v1728_v27 = vunpack.i.l.bf16 %v1727_v22 }
  0xec   : > { %v1752_v37 = vpop.permute.xlu0 %1751 }
  0xed   : > { %v705_v30 = vsel %vm698_vm3, %v696_v25, %v1728_v27  ;;  %v706_v31 = vsel %vm698_vm3, %v697_v23, %v1729_v26  ;;  %v1754_v45 = vunpack.i.h.bf16 %v1752_v37  ;;  %v1753_v46 = vunpack.i.l.bf16 %v1752_v37 }
  0xee   : > { %v714_v38 = vsel %vm707_vm4, %v705_v30, %v1733_v29  ;;  %v715_v39 = vsel %vm707_vm4, %v706_v31, %v1734_v28 }
  0xef   : > { %v723_v43 = vsel %vm716_vm5, %v714_v38, %v1738_v33  ;;  %v724_v36 = vsel %vm716_vm5, %v715_v39, %v1739_v32 }
  0xf2   : > { %v1742_v40 = vpop.permute.xlu1 %1741 }
  0xf3   : > { %v1744_v42 = vunpack.i.h.bf16 %v1742_v40  ;;  %v1743_v44 = vunpack.i.l.bf16 %v1742_v40 }
  0xf5   : > { %v732_v47 = vsel %vm725_vm6, %v723_v43, %v1743_v44  ;;  %v733_v48 = vsel %vm725_vm6, %v724_v36, %v1744_v42 }
  0xf6   : > { %v741_v49 = vsel %vm734_vm7, %v732_v47, %v1748_v58  ;;  %v742_v50 = vsel %vm734_vm7, %v733_v48, %v1749_v41 }
  0xf7   : > { %v750_v51 = vsel %vm743_vm8, %v741_v49, %v1753_v46  ;;  %v751_v52 = vsel %vm743_vm8, %v742_v50, %v1754_v45 }
  0xfa   : > { %v1757_v53 = vpop.permute.xlu1 %1756 }
  0xfb   : > { %v1759_v54 = vunpack.i.h.bf16 %v1757_v53  ;;  %v1758_v55 = vunpack.i.l.bf16 %v1757_v53 }
  0xfd   : > { %v759_v56 = vsel %vm752_vm9, %v750_v51, %v1758_v55  ;;  %v760_v57 = vsel %vm752_vm9, %v751_v52, %v1759_v54 }
  0xfe   : > { %v764_v60 = vpack.c.bf16 %v760_v57, %v759_v56 }
 0x100   : > { %1514 = vmatmul.msk.bf16.gmra.mxu0 %vm805_vm10, %v764_v60 }
 0x13d   : > { %v831_v63 = vpop.f32.mrf.mxu0 }
 0x13e   : > { %v832_v1 = vadd.f32 %v2250_v61, %v831_v63 }
 0x140   : > { %v851_v34 = vmax.f32 %v832_v1, 0.0 }
 0x142   : > { %881 = vst.msk [vmem:[#allocation4 + $0x11] sm:$0xff] %vm698_vm3, %v851_v34 }
 0x145   : > { %v833_v2 = vpop.f32.mrf.mxu0 }
 0x146   : > { %v834_v24 = vadd.f32 %v2250_v61, %v833_v2 }
 0x148   : > { %v852_v4 = vmax.f32 %v834_v24, 0.0 }
 0x149   : > { %v2258_v5 = vld [vmem:[#allocation4 + $0x12] sm:$0xff] }
 0x14a   : > { %v898_v6 = vld [vmem:[#allocation4 + $0x11] sm:$0xff]  ;;  %882 = vst.msk [vmem:[#allocation4 + $0x21] sm:$0xff] %vm698_vm3, %v852_v4  ;;  %v1765_v8 = vpack.i.bf16 %v2258_v5, %v905_v0 }
 0x14b   : > { %v1760_v9 = vpack.i.bf16 %v898_v6, %v897_v3  ;;  %v2265_v12 = vld [vmem:[#allocation4 + $0x10] sm:$0xff] }
 0x14c   : > { %1766 = vrot.lane.b32.xlu0 %v1765_v8, %s1916_s29 }
 0x14d   : > { %1761 = vrot.lane.b32.xlu1 %v1760_v9, %s1912_s25  ;;  %v961_v9 = vld [vmem:[#allocation4 + $0x92] sm:$0xff] }
 0x14f   : > { %v836_v10 = vpop.f32.mrf.mxu0 }
 0x150   : > { %v837_v11 = vadd.f32 %v2250_v61, %v836_v10  ;;  %v945_v10 = vld [vmem:[#allocation4 + $0x90] sm:$0xff] }
 0x151   : > { %v922_v13 = vld [vmem:[#allocation4 + $0x21] sm:$0xff] }
 0x152   : > { %v2267_v14 = vld [vmem:[#allocation4 + $0x20] sm:$0xff]  ;;  %v853_v16 = vmax.f32 %v837_v11, 0.0  ;;  %v1775_v17 = vpack.i.bf16 %v922_v13, %v898_v6 }
 0x153   : > { %v2269_v15 = vld [vmem:[#allocation4 + $0x22] sm:$0xff]  ;;  %v1770_v18 = vpack.i.bf16 %v2267_v14, %v2265_v12 }
 0x154   : > { %v1885_v7 = vpack.i.bf16 %v2269_v15, %v2258_v5  ;;  %883 = vst.msk [vmem:[#allocation4 + $0x31] sm:$0xff] %vm698_vm3, %v853_v16  ;;  %1776 = vrot.lane.b32.xlu2 %v1775_v17, %s1918_s6  ;;  %v1568_v5 = vld [vmem:[%s2470_s3 + $0x28] sm:$0xff] }
 0x155   : > { %1771 = vrot.lane.b32.xlu1 %v1770_v18, %s1917_s30  ;;  %v953_v18 = vld [vmem:[#allocation4 + $0x91] sm:$0xff] }
 0x157   : > { %v838_v19 = vpop.f32.mrf.mxu0 }
 0x158   : > { %v839_v20 = vadd.f32 %v2250_v61, %v838_v19 }
 0x15a   : > { %v854_v59 = vmax.f32 %v839_v20, 0.0  ;;  %v1570_v20 = vld [vmem:[%s2470_s3 + $0x38] sm:$0xff] }
 0x15b   : > { %v955_v21 = vld [vmem:[#allocation4 + $0x32] sm:$0xff]  ;;  %1572 = vmatpush.bf16.msra.mxu3 %v1570_v20  ;;  %1341 = vmatpush.bf16.msra.mxu1 %v1570_v20 }
 0x15c   : > { %v900_v22 = vld [vmem:[#allocation4 + $0x31] sm:$0xff]  ;;  %884 = vst.msk [vmem:[#allocation4 + $0x41] sm:$0xff] %vm698_vm3, %v854_v59  ;;  %v1246_v23 = vpack.c.bf16 %v955_v21, %v2269_v15  ;;  %v1785_v26 = vpack.i.bf16 %v955_v21, %v2269_v15  ;;  %v1567_v15 = vld [vmem:[%s2470_s3 + $0x20] sm:$0xff] }
 0x15d   : > { %v2281_v25 = vpack.i.bf16 %v900_v22, %v922_v13  ;;  %v2288_v27 = vld [vmem:[#allocation4 + $0x30] sm:$0xff] }
 0x15e   : > { %1551 = vmatmul.msk.bf16.vlgmr.msra.gmra.mxu2 %vm698_vm3, %v1246_v23  ;;  %1786 = vrot.lane.b32.xlu0 %v1785_v26, %s1916_s29  ;;  %v1890_v17 = vpack.i.bf16 %v2288_v27, %v2267_v14  ;;  %v1569_v59 = vld [vmem:[%s2470_s3 + $0x30] sm:$0xff] }
 0x15f   : > { %1781 = vrot.lane.b32.xlu2 %v2281_v25, %s1912_s25  ;;  %1573 = vmatpush.bf16.msra.mxu3 %v1569_v59 }
 0x160   : > { %1342 = vmatpush.bf16.msra.mxu1 %v1569_v59 }
 0x163   : > { %v924_v28 = vld [vmem:[#allocation4 + $0x41] sm:$0xff]  ;;  %1574 = vmatpush.bf16.msra.mxu3 %v1568_v5 }
 0x164   : > { %v932_v29 = vld [vmem:[#allocation4 + $0x42] sm:$0xff]  ;;  %v1795_v31 = vpack.i.bf16 %v924_v28, %v900_v22  ;;  %1343 = vmatpush.bf16.msra.mxu1 %v1568_v5  ;;  %v1565_v22 = vld [vmem:[%s2470_s3 + $0x10] sm:$0xff] }
 0x165   : > { %v2290_v30 = vld [vmem:[#allocation4 + $0x40] sm:$0xff]  ;;  %v1800_v32 = vpack.i.bf16 %v932_v29, %v955_v21 }
 0x166   : > { %v1790_v33 = vpack.i.bf16 %v2290_v30, %v2288_v27  ;;  %v841_v35 = vpop.f32.mrf.mxu0 }
 0x167   : > { %1796 = vrot.lane.b32.xlu2 %v1795_v31, %s1918_s6  ;;  %v842_v37 = vadd.f32 %v2250_v61, %v841_v35  ;;  %1801 = vrot.lane.b32.xlu0 %v1800_v32, %s1919_s23 }
 0x168   : > { %1791 = vrot.lane.b32.xlu1 %v1790_v33, %s1917_s30  ;;  %1575 = vmatpush.bf16.msra.mxu3 %v1567_v15 }
 0x169   : > { %v855_v38 = vmax.f32 %v842_v37, 0.0  ;;  %1344 = vmatpush.bf16.msra.mxu1 %v1567_v15 }
 0x16b   : > { %885 = vst.msk [vmem:[#allocation4 + $0x51] sm:$0xff] %vm698_vm3, %v855_v38  ;;  %v1564_v38 = vld [vmem:[%s2470_s3 + $0x8] sm:$0xff] }
 0x16e   : > { %v843_v39 = vpop.f32.mrf.mxu0 }
 0x16f   : > { %v844_v43 = vadd.f32 %v2250_v61, %v843_v39 }
 0x171   : > { %v856_v36 = vmax.f32 %v844_v43, 0.0 }
 0x172   : > { %v957_v40 = vld [vmem:[#allocation4 + $0x52] sm:$0xff] }
 0x173   : > { %v949_v41 = vld [vmem:[#allocation4 + $0x51] sm:$0xff]  ;;  %886 = vst.msk [vmem:[#allocation4 + $0x61] sm:$0xff] %vm698_vm3, %v856_v36  ;;  %v1248_v42 = vpack.c.bf16 %v957_v40, %v932_v29  ;;  %v1820_v50 = vpack.i.bf16 %v957_v40, %v932_v29 }
 0x174   : > { %v2300_v58 = vld [vmem:[#allocation4 + $0x50] sm:$0xff]  ;;  %v1810_v44 = vpack.i.bf16 %v949_v41, %v924_v28  ;;  %v889_v28 = vld [vmem:[#allocation4] sm:$0xff] }
 0x175   : > { %v1805_v45 = vpack.i.bf16 %v2300_v58, %v2290_v30  ;;  %1552 = vmatmul.msk.bf16.gmra.mxu2 %vm698_vm3, %v1248_v42 }
 0x176   : > { %1811 = vrot.lane.b32.xlu2 %v1810_v44, %s1920_s24  ;;  %1816 = vrot.lane.b32.xlu0 %v1810_v44, %s1912_s25 }
 0x177   : > { %1806 = vrot.lane.b32.xlu1 %v1805_v45, %s1921_s26 }
 0x17a   : > { %v2309_v46 = vld [vmem:[#allocation4 + $0x60] sm:$0xff] }
 0x17b   : > { %v926_v47 = vld [vmem:[#allocation4 + $0x61] sm:$0xff]  ;;  %v1825_v48 = vpack.i.bf16 %v2309_v46, %v2300_v58 }
 0x17c   : > { %v1830_v49 = vpack.i.bf16 %v926_v47, %v949_v41  ;;  %v934_v54 = vld [vmem:[#allocation4 + $0x62] sm:$0xff] }
 0x17d   : > { %v846_v51 = vpop.f32.mrf.mxu0  ;;  %v1835_v55 = vpack.i.bf16 %v934_v54, %v957_v40 }
 0x17e   : > { %1826 = vrot.lane.b32.xlu2 %v1825_v48, %s1917_s30  ;;  %v847_v52 = vadd.f32 %v2250_v61, %v846_v51  ;;  %1831 = vrot.lane.b32.xlu0 %v1830_v49, %s1918_s6 }
 0x17f   : > { %1821 = vrot.lane.b32.xlu1 %v1820_v50, %s1916_s29 }
 0x180   : > { %v857_v53 = vmax.f32 %v847_v52, 0.0 }
 0x182   : > { %887 = vst.msk [vmem:[#allocation4 + $0x71] sm:$0xff] %vm698_vm3, %v857_v53 }
 0x185   : > { %v848_v56 = vpop.f32.mrf.mxu0 }
 0x186   : > { %v849_v57 = vadd.f32 %v2250_v61, %v848_v56 }
 0x187   : > { %1836 = vrot.lane.b32.xlu1 %v1835_v55, %s1919_s23 }
 0x188   : > { %v858_v60 = vmax.f32 %v849_v57, 0.0 }
 0x189   : > { %v959_v62 = vld [vmem:[#allocation4 + $0x72] sm:$0xff] }
 0x18a   : > { %v2320_v63 = vld [vmem:[#allocation4 + $0x70] sm:$0xff]  ;;  %888 = vst.msk [vmem:[#allocation4 + $0x81] sm:$0xff] %vm698_vm3, %v858_v60  ;;  %v1250_v34 = vpack.c.bf16 %v959_v62, %v934_v54  ;;  %v1855_v3 = vpack.i.bf16 %v959_v62, %v934_v54 }
 0x18b   : > { %v951_v1 = vld [vmem:[#allocation4 + $0x71] sm:$0xff]  ;;  %v1840_v2 = vpack.i.bf16 %v2320_v63, %v2309_v46 }
 0x18c   : > { %v1845_v24 = vpack.i.bf16 %v951_v1, %v926_v47  ;;  %1553 = vmatmul.msk.bf16.gmra.mxu2 %vm698_vm3, %v1250_v34 }
 0x18d   : > { %1841 = vrot.lane.b32.xlu2 %v1840_v2, %s1921_s26 }
 0x18e   : > { %1846 = vrot.lane.b32.xlu0 %v1845_v24, %s1920_s24 }
 0x18f   : > { %1851 = vrot.lane.b32.xlu1 %v1845_v24, %s1912_s25 }
 0x191   : > { %v920_v61 = vld [vmem:[#allocation4 + $0x80] sm:$0xff] }
 0x192   : > { %v928_v0 = vld [vmem:[#allocation4 + $0x81] sm:$0xff]  ;;  %v1860_v4 = vpack.i.bf16 %v920_v61, %v2320_v63  ;;  %v1875_v16 = vpack.i.bf16 %v945_v10, %v920_v61 }
 0x193   : > { %v1865_v6 = vpack.i.bf16 %v928_v0, %v951_v1  ;;  %v960_v8 = vld [vmem:[#allocation4 + $0x82] sm:$0xff]  ;;  %v1880_v19 = vpack.i.bf16 %v953_v18, %v928_v0 }
 0x194   : > { %v1252_v11 = vpack.c.bf16 %v961_v9, %v960_v8  ;;  %v1870_v13 = vpack.i.bf16 %v960_v8, %v959_v62 }
 0x195   : > { %1856 = vrot.lane.b32.xlu2 %v1855_v3, %s1916_s29 }
 0x196   : > { %1861 = vrot.lane.b32.xlu0 %v1860_v4, %s1917_s30 }
 0x197   : > { %1866 = vrot.lane.b32.xlu1 %v1865_v6, %s1918_s6 }
 0x19c   : > { %1554 = vmatmul.msk.bf16.gmra.mxu2 %vm698_vm3, %v1252_v11 }
 0x19d   : > { %1871 = vrot.lane.b32.xlu2 %v1870_v13, %s1919_s23 }
 0x19e   : > { %1876 = vrot.lane.b32.xlu0 %v1875_v16, %s1921_s26 }
 0x19f   : > { %1891 = vrot.lane.b32.xlu1 %v1890_v17, %s1921_s26 }
 0x1a5   : > { %1881 = vrot.lane.b32.xlu2 %v1880_v19, %s1920_s24 }
 0x1a6   : > { %1886 = vrot.lane.b32.xlu0 %v1885_v7, %s1919_s23  ;;  %v1566_v7 = vld [vmem:[%s2470_s3 + $0x18] sm:$0xff] }
 0x1a7   : > { %1576 = vmatpush.bf16.msra.mxu3 %v1566_v7  ;;  %1345 = vmatpush.bf16.msra.mxu1 %v1566_v7 }
 0x1ab   : > { %1577 = vmatpush.bf16.msra.mxu3 %v1565_v22  ;;  %1346 = vmatpush.bf16.msra.mxu1 %v1565_v22 }
 0x1ad   : > { %1896 = vrot.lane.b32.xlu2 %v2281_v25, %s1920_s24  ;;  %s2446_s24 = scalar_lea.vmem %s2472_s5, %s1558_s21 }
 0x1ae   : > { %v1777_v29 = vpop.permute.xlu2 %1776 }
 0x1af   : > { %v1779_v36 = vunpack.i.h.bf16 %v1777_v29  ;;  %v1778_v40 = vunpack.i.l.bf16 %v1777_v29  ;;  %1578 = vmatpush.bf16.msra.mxu3 %v1564_v38  ;;  %1347 = vmatpush.bf16.msra.mxu1 %v1564_v38 }
 0x1b9   : > { %v1782_v49 = vpop.permute.xlu2 %1781 }
 0x1ba   : > { %v1784_v54 = vunpack.i.h.bf16 %v1782_v49  ;;  %v1783_v55 = vunpack.i.l.bf16 %v1782_v49 }
 0x1bc   : > { %v1189_v1 = vsel %vm698_vm3, %v2288_v27, %v1784_v54  ;;  %v1188_v34 = vsel %vm698_vm3, %v2267_v14, %v1783_v55 }
 0x1be   : > { %v1767_v23 = vpop.permute.xlu0 %1766 }
 0x1bf   : > { %v1762_v21 = vpop.permute.xlu1 %1761  ;;  %v1769_v31 = vunpack.i.h.bf16 %v1767_v23  ;;  %v1768_v32 = vunpack.i.l.bf16 %v1767_v23 }
 0x1c0   : > { %v1764_v25 = vunpack.i.h.bf16 %v1762_v21  ;;  %v1763_v26 = vunpack.i.l.bf16 %v1762_v21 }
 0x1c1   : > { %v1797_v50 = vpop.permute.xlu2 %1796 }
 0x1c2   : > { %v1186_v33 = vsel %vm698_vm3, %v889_v28, %v1763_v26  ;;  %v1187_v35 = vsel %vm698_vm3, %v2265_v12, %v1764_v25  ;;  %v1563_v12 = vld [vmem:[%s2470_s3] sm:$0xff]  ;;  %v1799_v3 = vunpack.i.h.bf16 %v1797_v50  ;;  %v1798_v4 = vunpack.i.l.bf16 %v1797_v50 }
 0x1c3   : > { %v1194_v41 = vsel %vm716_vm5, %v1186_v33, %v1768_v32  ;;  %v1195_v42 = vsel %vm716_vm5, %v1187_v35, %v1769_v31  ;;  %1579 = vmatpush.bf16.msra.mxu3 %v1563_v12  ;;  %1348 = vmatpush.bf16.msra.mxu1 %v1563_v12 }
 0x1c7   : > { %v1772_v37 = vpop.permute.xlu1 %1771 }
 0x1c8   : > { %v1774_v39 = vunpack.i.h.bf16 %v1772_v37  ;;  %v1773_v43 = vunpack.i.l.bf16 %v1772_v37 }
 0x1ca   : > { %v1202_v44 = vsel %vm734_vm7, %v1194_v41, %v1773_v43  ;;  %v1203_v45 = vsel %vm734_vm7, %v1195_v42, %v1774_v39 }
 0x1cb   : > { %v2378_v47 = vsel %vm752_vm9, %v1202_v44, %v1778_v40  ;;  %v2381_v48 = vsel %vm752_vm9, %v1203_v45, %v1779_v36 }
 0x1d0   : > { %v1787_v51 = vpop.permute.xlu0 %1786  ;;  %v1812_v52 = vpop.permute.xlu2 %1811 }
 0x1d1   : > { %v1789_v56 = vunpack.i.h.bf16 %v1787_v51  ;;  %v1788_v57 = vunpack.i.l.bf16 %v1787_v51  ;;  %v1814_v17 = vunpack.i.h.bf16 %v1812_v52  ;;  %v1813_v18 = vunpack.i.l.bf16 %v1812_v52 }
 0x1d3   : > { %v1197_v2 = vsel %vm716_vm5, %v1189_v1, %v1789_v56  ;;  %v1196_v24 = vsel %vm716_vm5, %v1188_v34, %v1788_v57 }
 0x1d8   : > { %v1827_v8 = vpop.permute.xlu2 %1826 }
 0x1d9   : > { %v1802_v6 = vpop.permute.xlu0 %1801  ;;  %v1829_v39 = vunpack.i.h.bf16 %v1827_v8  ;;  %v1828_v43 = vunpack.i.l.bf16 %v1827_v8 }
 0x1da   : > { %v1792_v53 = vpop.permute.xlu1 %1791  ;;  %v1804_v27 = vunpack.i.h.bf16 %v1802_v6  ;;  %v1803_v11 = vunpack.i.l.bf16 %v1802_v6 }
 0x1db   : > { %v1794_v60 = vunpack.i.h.bf16 %v1792_v53  ;;  %v1793_v62 = vunpack.i.l.bf16 %v1792_v53 }
 0x1dd   : > { %v1205_v61 = vsel %vm734_vm7, %v1197_v2, %v1794_v60  ;;  %v1204_v0 = vsel %vm734_vm7, %v1196_v24, %v1793_v62 }
 0x1de   : > { %v1213_v9 = vsel %vm752_vm9, %v1205_v61, %v1799_v3  ;;  %v1212_v10 = vsel %vm752_vm9, %v1204_v0, %v1798_v4 }
 0x1df   : > { %v1221_v19 = vsel %vm1218_vm12, %v1212_v10, %v1803_v11  ;;  %v1222_v20 = vsel %vm1218_vm12, %v1213_v9, %v1804_v27 }
 0x1e7   : > { %v1842_v23 = vpop.permute.xlu2 %1841 }
 0x1e8   : > { %v1817_v21 = vpop.permute.xlu0 %1816  ;;  %v1844_v52 = vunpack.i.h.bf16 %v1842_v23  ;;  %v1843_v53 = vunpack.i.l.bf16 %v1842_v23 }
 0x1e9   : > { %v1807_v14 = vpop.permute.xlu1 %1806  ;;  %v1819_v26 = vunpack.i.h.bf16 %v1817_v21  ;;  %v1818_v28 = vunpack.i.l.bf16 %v1817_v21 }
 0x1ea   : > { %v1809_v13 = vunpack.i.h.bf16 %v1807_v14  ;;  %v1808_v16 = vunpack.i.l.bf16 %v1807_v14 }
 0x1eb   : > { %v1191_v32 = vsel %vm698_vm3, %v2300_v58, %v1819_v26  ;;  %v1190_v33 = vsel %vm698_vm3, %v2290_v30, %v1818_v28 }
 0x1ec   : > { %v1230_v59 = vsel %vm1227_vm13, %v1221_v19, %v1808_v16  ;;  %v1231_v5 = vsel %vm1227_vm13, %v1222_v20, %v1809_v13 }
 0x1ed   : > { %v1239_v15 = vsel %vm1236_vm14, %v1230_v59, %v1813_v18  ;;  %v1240_v7 = vsel %vm1236_vm14, %v1231_v5, %v1814_v17 }
 0x1ee   : > { %v1247_v22 = vpack.c.bf16 %v1240_v7, %v1239_v15 }
 0x1ef   : > { %v1857_v40 = vpop.permute.xlu2 %1856 }
 0x1f0   : > { %1354 = vmatmul.bf16.vlgmr.msra.gmra.mxu3 %v1247_v22  ;;  %v1832_v35 = vpop.permute.xlu0 %1831  ;;  %v1859_v8 = vunpack.i.h.bf16 %v1857_v40  ;;  %v1858_v9 = vunpack.i.l.bf16 %v1857_v40 }
 0x1f1   : > { %v1822_v25 = vpop.permute.xlu1 %1821  ;;  %v1834_v12 = vunpack.i.h.bf16 %v1832_v35  ;;  %v1833_v58 = vunpack.i.l.bf16 %v1832_v35 }
 0x1f2   : > { %v1824_v29 = vunpack.i.h.bf16 %v1822_v25  ;;  %v1823_v31 = vunpack.i.l.bf16 %v1822_v25 }
 0x1f4   : > { %v1199_v37 = vsel %vm716_vm5, %v1191_v32, %v1824_v29  ;;  %v1198_v38 = vsel %vm716_vm5, %v1190_v33, %v1823_v31 }
 0x1f5   : > { %v1207_v41 = vsel %vm734_vm7, %v1199_v37, %v1829_v39  ;;  %v1206_v42 = vsel %vm734_vm7, %v1198_v38, %v1828_v43 }
 0x1f6   : > { %v1214_v49 = vsel %vm752_vm9, %v1206_v42, %v1833_v58  ;;  %v1215_v30 = vsel %vm752_vm9, %v1207_v41, %v1834_v12 }
 0x1f7   : > { %v1872_v2 = vpop.permute.xlu2 %1871 }
 0x1f8   : > { %v1874_v59 = vunpack.i.h.bf16 %v1872_v2  ;;  %v1873_v5 = vunpack.i.l.bf16 %v1872_v2 }
 0x1f9   : > { %v1837_v36 = vpop.permute.xlu1 %1836 }
 0x1fa   : > { %v1839_v44 = vunpack.i.h.bf16 %v1837_v36  ;;  %v1838_v45 = vunpack.i.l.bf16 %v1837_v36 }
 0x1fc   : > { %v1223_v50 = vsel %vm1218_vm12, %v1214_v49, %v1838_v45  ;;  %v1224_v51 = vsel %vm1218_vm12, %v1215_v30, %v1839_v44 }
 0x1fd   : > { %v1232_v60 = vsel %vm1227_vm13, %v1223_v50, %v1843_v53  ;;  %v1233_v62 = vsel %vm1227_vm13, %v1224_v51, %v1844_v52  ;;  %v1379_v51 = vpop.f32.mrf.mxu2  ;;  %v1901_v53 = vld [vmem:[%s2471_s4] ss:$0 sm:$0xff] }
 0x200   : > { %v1847_v54 = vpop.permute.xlu0 %1846 }
 0x201   : > { %v1849_v55 = vunpack.i.h.bf16 %v1847_v54  ;;  %v1848_v56 = vunpack.i.l.bf16 %v1847_v54  ;;  %v1852_v57 = vpop.permute.xlu1 %1851 }
 0x202   : > { %v1854_v24 = vunpack.i.h.bf16 %v1852_v57  ;;  %v1853_v61 = vunpack.i.l.bf16 %v1852_v57 }
 0x203   : > { %v1241_v1 = vsel %vm1236_vm14, %v1232_v60, %v1848_v56  ;;  %v1242_v34 = vsel %vm1236_vm14, %v1233_v62, %v1849_v55 }
 0x204   : > { %v1249_v0 = vpack.c.bf16 %v1242_v34, %v1241_v1  ;;  %v1193_v3 = vsel %vm698_vm3, %v2320_v63, %v1854_v24  ;;  %v1192_v4 = vsel %vm698_vm3, %v2309_v46, %v1853_v61  ;;  %v1882_v63 = vpop.permute.xlu2 %1881 }
 0x205   : > { %v1200_v14 = vsel %vm716_vm5, %v1192_v4, %v1858_v9  ;;  %v1201_v13 = vsel %vm716_vm5, %v1193_v3, %v1859_v8  ;;  %v1884_v22 = vunpack.i.h.bf16 %v1882_v63  ;;  %v1883_v23 = vunpack.i.l.bf16 %v1882_v63  ;;  %v1381_v52 = vpop.f32.mrf.mxu2 }
 0x206   : > { %1359 = vmatmul.bf16.gmra.mxu3 %v1249_v0 }
 0x208   : > { %v1862_v6 = vpop.permute.xlu0 %1861 }
 0x209   : > { %v1864_v10 = vunpack.i.h.bf16 %v1862_v6  ;;  %v1863_v27 = vunpack.i.l.bf16 %v1862_v6  ;;  %v1867_v11 = vpop.permute.xlu1 %1866 }
 0x20a   : > { %v1869_v16 = vunpack.i.h.bf16 %v1867_v11  ;;  %v1868_v17 = vunpack.i.l.bf16 %v1867_v11 }
 0x20b   : > { %v1208_v18 = vsel %vm734_vm7, %v1200_v14, %v1863_v27  ;;  %v1209_v19 = vsel %vm734_vm7, %v1201_v13, %v1864_v10 }
 0x20c   : > { %v1216_v20 = vsel %vm752_vm9, %v1208_v18, %v1868_v17  ;;  %v1217_v46 = vsel %vm752_vm9, %v1209_v19, %v1869_v16  ;;  %v1897_v37 = vpop.permute.xlu2 %1896 }
 0x20d   : > { %v1225_v25 = vsel %vm1218_vm12, %v1216_v20, %v1873_v5  ;;  %v1226_v26 = vsel %vm1218_vm12, %v1217_v46, %v1874_v59  ;;  %v1899_v41 = vunpack.i.h.bf16 %v1897_v37  ;;  %v1898_v42 = vunpack.i.l.bf16 %v1897_v37 }
 0x210   : > { %v1877_v15 = vpop.permute.xlu0 %1876 }
 0x211   : > { %v1879_v7 = vunpack.i.h.bf16 %v1877_v15  ;;  %v1878_v21 = vunpack.i.l.bf16 %v1877_v15  ;;  %v1892_v35 = vpop.permute.xlu1 %1891 }
 0x212   : > { %v1894_v36 = vunpack.i.h.bf16 %v1892_v35  ;;  %v1893_v40 = vunpack.i.l.bf16 %v1892_v35 }
 0x213   : > { %v1234_v28 = vsel %vm1227_vm13, %v1225_v25, %v1878_v21  ;;  %v1235_v29 = vsel %vm1227_vm13, %v1226_v26, %v1879_v7 }
 0x214   : > { %v1243_v31 = vsel %vm1236_vm14, %v1234_v28, %v1883_v23  ;;  %v1244_v32 = vsel %vm1236_vm14, %v1235_v29, %v1884_v22 }
 0x215   : > { %v1251_v33 = vpack.c.bf16 %v1244_v32, %v1243_v31 }
 0x217   : > { %1364 = vmatmul.bf16.gmra.mxu3 %v1251_v33 }
 0x218   : > { %v1887_v38 = vpop.permute.xlu0 %1886 }
 0x219   : > { %v1889_v39 = vunpack.i.h.bf16 %v1887_v38  ;;  %v1888_v43 = vunpack.i.l.bf16 %v1887_v38 }
 0x21b   : > { %v1219_v44 = vsel %vm1218_vm12, %v2378_v47, %v1888_v43  ;;  %v1220_v45 = vsel %vm1218_vm12, %v2381_v48, %v1889_v39  ;;  %v1384_v47 = vpop.f32.mrf.mxu2 }
 0x21c   : > { %v1228_v12 = vsel %vm1227_vm13, %v1219_v44, %v1893_v40  ;;  %v1229_v58 = vsel %vm1227_vm13, %v1220_v45, %v1894_v36 }
 0x21d   : > { %v1237_v49 = vsel %vm1236_vm14, %v1228_v12, %v1898_v42  ;;  %v1238_v30 = vsel %vm1236_vm14, %v1229_v58, %v1899_v41 }
 0x21e   : > { %v1245_v50 = vpack.c.bf16 %v1238_v30, %v1237_v49 }
 0x220   : > { %1349 = vmatmul.bf16.vlgmr.msra.gmra.mxu1 %v1245_v50 }
 0x223   : > { %v1386_v62 = vpop.f32.mrf.mxu2 }
 0x22b   : > { %v1389_v2 = vpop.f32.mrf.mxu2 }
 0x233   : > { %v1391_v4 = vpop.f32.mrf.mxu2 }
 0x23b   : > { %v1394_v27 = vpop.f32.mrf.mxu2 }
 0x243   : > { %v1396_v59 = vpop.f32.mrf.mxu2 }
 0x273   : > { %v1355_v54 = vpop.f32.mrf.mxu3 }
 0x274   : > { %v1356_v48 = vadd.f32 %v1901_v53, %v1355_v54 }
 0x276   : > { %v1385_v55 = vadd.f32 %v1384_v47, %v1356_v48 }
 0x278   : > { %v1401_v56 = vmax.f32 %v1385_v55, 0.0 }
 0x27a   : > { %1409 = vst.msk [vmem:[%s2446_s24 + $0x10] sm:$0xff] %vm698_vm3, %v1401_v56 }
 0x27b   : > { %v1357_v57 = vpop.f32.mrf.mxu3 }
 0x27c   : > { %v1358_v60 = vadd.f32 %v1901_v53, %v1357_v57 }
 0x27e   : > { %v1387_v1 = vadd.f32 %v1386_v62, %v1358_v60 }
 0x280   : > { %v1402_v34 = vmax.f32 %v1387_v1, 0.0 }
 0x282   : > { %1410 = vst.msk [vmem:[%s2446_s24 + $0x18] sm:$0xff] %vm698_vm3, %v1402_v34 }
 0x289   : > { %v1360_v24 = vpop.f32.mrf.mxu3 }
 0x28a   : > { %v1361_v61 = vadd.f32 %v1901_v53, %v1360_v24 }
 0x28c   : > { %v1390_v0 = vadd.f32 %v1389_v2, %v1361_v61 }
 0x28e   : > { %v1403_v3 = vmax.f32 %v1390_v0, 0.0 }
 0x290   : > { %1411 = vst.msk [vmem:[%s2446_s24 + $0x20] sm:$0xff] %vm698_vm3, %v1403_v3 }
 0x291   : > { %v1362_v6 = vpop.f32.mrf.mxu3 }
 0x292   : > { %v1363_v8 = vadd.f32 %v1901_v53, %v1362_v6 }
 0x294   : > { %v1392_v9 = vadd.f32 %v1391_v4, %v1363_v8 }
 0x296   : > { %v1404_v10 = vmax.f32 %v1392_v9, 0.0 }
 0x298   : > { %1412 = vst.msk [vmem:[%s2446_s24 + $0x28] sm:$0xff] %vm698_vm3, %v1404_v10 }
 0x29a   : > { %v1365_v11 = vpop.f32.mrf.mxu3 }
 0x29b   : > { %v1366_v14 = vadd.f32 %v1901_v53, %v1365_v11 }
 0x29d   : > { %v1395_v13 = vadd.f32 %v1394_v27, %v1366_v14  ;;  %v1350_v16 = vpop.f32.mrf.mxu1 }
 0x29e   : > { %v1351_v17 = vadd.f32 %v1901_v53, %v1350_v16 }
 0x29f   : > { %v1405_v18 = vmax.f32 %v1395_v13, 0.0 }
 0x2a0   : > { %v1380_v19 = vadd.f32 %v1379_v51, %v1351_v17 }
 0x2a1   : > { %1413 = vst.msk [vmem:[%s2446_s24 + $0x30] sm:$0xff] %vm698_vm3, %v1405_v18 }
 0x2a2   : > { %v1399_v63 = vmax.f32 %v1380_v19, 0.0  ;;  %v1367_v20 = vpop.f32.mrf.mxu3 }
 0x2a3   : > { %v1368_v46 = vadd.f32 %v1901_v53, %v1367_v20 }
 0x2a4   : > { %1407 = vst.msk [vmem:[%s2446_s24] sm:$0xff] %vm698_vm3, %v1399_v63 }
 0x2a5   : > { %v1397_v5 = vadd.f32 %v1396_v59, %v1368_v46  ;;  %v1352_v15 = vpop.f32.mrf.mxu1 }
 0x2a6   : > { %v1353_v7 = vadd.f32 %v1901_v53, %v1352_v15 }
 0x2a7   : > { %v1406_v21 = vmax.f32 %v1397_v5, 0.0 }
 0x2a8   : > { %v1382_v22 = vadd.f32 %v1381_v52, %v1353_v7 }
 0x2a9   : > { %1414 = vst.msk [vmem:[%s2446_s24 + $0x38] sm:$0xff] %vm698_vm3, %v1406_v21 }
 0x2aa   : > { %v1400_v23 = vmax.f32 %v1382_v22, 0.0 }
 0x2ac   : > { %1408 = vst.msk [vmem:[%s2446_s24 + $0x8] sm:$0xff] %vm698_vm3, %v1400_v23 }
 0x2ad PF: > { %s15_s18 = sadd.s32 1, %s1908_s18  }
 0x2ae   : > { %p12_p4 = scmp.ge.s32.totalorder %s15_s18, 4  }
 0x2b0   :  { %14 = sbr.rel (!%p12_p4) target bundleno = 1 (0x1), region = 90 }

// kernel: unet_encoder_forward.3
= control target key start
LH: loop header
LB: loop body
LE: loop exit
PB: predicated region body
PF: predicated region fallthrough
CT: control target
= control target key end

     0   :  { %s5554_s18 = smov 0   ;;  %s8578_s0 = inlined_call_operand.vmem [shape: f32[2,16,16,4], index: 0, kind: input, shape index: {}]   ;;  %s8579_s1 = inlined_call_operand.vmem [shape: bf16[36,8], index: 1, kind: input, shape index: {}]   ;;  %s8580_s2 = inlined_call_operand.vmem [shape: f32[1,8], index: 2, kind: input, shape index: {}]   ;;  %s8581_s3 = inlined_call_operand.vmem [shape: bf16[72,8], index: 3, kind: input, shape index: {}]   ;;  %s8582_s4 = inlined_call_operand.vmem [shape: f32[1,8], index: 4, kind: input, shape index: {}]   ;;  %s8583_s5 = inlined_call_operand.vmem [shape: f32[2,16,16,8], index: 5, kind: output, shape index: {}]  }
   0x1 LB: > { %s4115_s19 = sadd.s32 4294967295, %s5509_s18   ;;  %p4119_p0 = scmp.ge.s32.totalorder %s5509_s18, 1  ;;  %s5509_s18 = sphi %s5554_s18, %s15_s18  }
   0x2   : > { %p187_p1 = scmp.lt.s32.totalorder %s5509_s18, 3 }
   0x4   : > { %p188_p2 = pnand %p4119_p0, %p187_p1 }
   0x6   : > { %191 = sbr.rel (%p188_p2) target bundleno = 1302 (0x516), region = 40 }
   0xb   : > { %vm258_vm0 = vcmask 31744   ;;  %vm261_vm1 = vcmask 25600   ;;  %v8584_v0 = vmov 0.0   ;;  %s5512_s20 = smov 4   ;;  %p215_p3 = scmp.lt.s32.totalorder %s4115_s19, 1  ;;  %vm1692_vm2 = vcmask 64512  }
   0xc   : > { %259 = vst.msk [vmem:[#allocation2] sm:$0xff] %vm258_vm0, %v8584_v0  ;;  %s5513_s25 = smov 8   ;;  %s5514_s26 = smov 12   ;;  %vm1725_vm3 = vcmask 97280   ;;  %vm1758_vm4 = vcmask 130048   ;;  %vm1791_vm5 = vcmask 162816  }
   0xd   : > { %260 = vst.msk [vmem:[#allocation2 + $0x8] sm:$0xff] %vm258_vm0, %v8584_v0  ;;  %s8897_s19 = smov (!%p215_p3, %s4115_s19), 1  ;;  %s5515_s27 = smov 16   ;;  %vm1824_vm6 = vcmask 195584   ;;  %vm1857_vm7 = vcmask 228352   ;;  %vm2012_vm8 = vcmask 1041408  }
   0xe   : > { %262 = vst.msk [vmem:[#allocation2 + $0x10] sm:$0x3] %vm261_vm1, %v8584_v0  ;;  %s4182_s21 = sshll.u32 %s8897_s19, 8  ;;  %s5516_s28 = smov 20   ;;  %vm1890_vm9 = vcmask 261120   ;;  %vm1963_vm10 = vcmask 293888  }
   0xf   : > { %263 = vst.msk [vmem:[#allocation2 + $0x18] sm:$0xff] %vm258_vm0, %v8584_v0  ;;  %s5673_s24 = scalar_lea.vmem %s8578_s0, %s4182_s21  ;;  %s5517_s29 = smov 24   ;;  %vm2139_vm11 = vcmask 58368   ;;  %vm3666_vm12 = vcmask 326656   ;;  %vm3903_vm13 = vcmask 1043456   ;;  %vm3699_vm14 = vcmask 392192  }
  0x10   : > { %264 = vst.msk [vmem:[#allocation2 + $0x20] sm:$0xff] %vm258_vm0, %v8584_v0  ;;  %v232_v4 = vld [vmem:[%s5673_s24 + $0x30] sm:$0xff]  ;;  %v233_v5 = vld [vmem:[%s5673_s24 + $0x38] sm:$0xff]  ;;  %v226_v8 = vld [vmem:[%s5673_s24] sm:$0xff]  ;;  %s5518_s30 = smov 28   ;;  %s5519_s6 = smov 32  }
  0x11   : > { %265 = vst.msk [vmem:[#allocation2 + $0x28] sm:$0x3] %vm261_vm1, %v8584_v0  ;;  %v228_v6 = vld [vmem:[%s5673_s24 + $0x10] sm:$0xff]  ;;  %v229_v7 = vld [vmem:[%s5673_s24 + $0x18] sm:$0xff]  ;;  %v227_v9 = vld [vmem:[%s5673_s24 + $0x8] sm:$0xff]  ;;  %s5520_s15 = smov 40   ;;  %s8478_s11 = scalar_lea.vmem %s8583_s5, %s4182_s21 }
  0x12   : > { %266 = vst.msk [vmem:[#allocation2 + $0x30] sm:$0xff] %vm258_vm0, %v8584_v0  ;;  %v234_v10 = vld [vmem:[%s5673_s24 + $0x40] sm:$0xff]  ;;  %v235_v11 = vld [vmem:[%s5673_s24 + $0x48] sm:$0xff]  ;;  %v236_v15 = vld [vmem:[%s5673_s24 + $0x50] sm:$0xff]  ;;  %s5521_s16 = smov 56   ;;  %s5522_s17 = smov 64  }
  0x13   : > { %267 = vst.msk [vmem:[#allocation2 + $0x38] sm:$0xff] %vm258_vm0, %v8584_v0  ;;  %v230_v12 = vld [vmem:[%s5673_s24 + $0x20] sm:$0xff]  ;;  %v231_v13 = vld [vmem:[%s5673_s24 + $0x28] sm:$0xff]  ;;  %v237_v17 = vld [vmem:[%s5673_s24 + $0x58] sm:$0xff]  ;;  %vm3732_vm15 = vcmask 457728  }
  0x14   : > { %v379_v1 = vld [vmem:[#allocation2 + $0x1] sm:$0xff]  ;;  %268 = vst.msk [vmem:[#allocation2 + $0x40] sm:$0x3] %vm261_vm1, %v8584_v0  ;;  %v240_v20 = vld [vmem:[%s5673_s24 + $0x70] sm:$0xff]  ;;  %v241_v22 = vld [vmem:[%s5673_s24 + $0x78] sm:$0xff] }
  0x15   : > { %v380_v2 = vld [vmem:[#allocation2 + $0x9] sm:$0xff]  ;;  %269 = vst.msk [vmem:[#allocation2 + $0x48] sm:$0xff] %vm258_vm0, %v8584_v0  ;;  %v238_v25 = vld [vmem:[%s5673_s24 + $0x60] sm:$0xff]  ;;  %v245_v42 = vld [vmem:[%s5673_s24 + $0x98] sm:$0xff] }
  0x16   : > { %v4219_v3 = vpack.i.bf16 %v380_v2, %v379_v1  ;;  %270 = vst.msk [vmem:[#allocation2 + $0x50] sm:$0xff] %vm258_vm0, %v8584_v0  ;;  %v239_v27 = vld [vmem:[%s5673_s24 + $0x68] sm:$0xff]  ;;  %v242_v30 = vld [vmem:[%s5673_s24 + $0x80] sm:$0xff]  ;;  %v244_v40 = vld [vmem:[%s5673_s24 + $0x90] sm:$0xff] }
  0x17   : > { %271 = vst.msk [vmem:[#allocation2 + $0x58] sm:$0x3] %vm261_vm1, %v8584_v0  ;;  %v243_v32 = vld [vmem:[%s5673_s24 + $0x88] sm:$0xff]  ;;  %v246_v35 = vld [vmem:[%s5673_s24 + $0xa0] sm:$0xff]  ;;  %v248_v44 = vld [vmem:[%s5673_s24 + $0xb0] sm:$0xff] }
  0x18   : > { %4220 = vrot.lane.b32.xlu0 %v4219_v3, %s5512_s20  ;;  %272 = vst.msk [vmem:[#allocation2 + $0x60] sm:$0xff] %vm258_vm0, %v8584_v0  ;;  %v247_v37 = vld [vmem:[%s5673_s24 + $0xa8] sm:$0xff]  ;;  %v249_v47 = vld [vmem:[%s5673_s24 + $0xb8] sm:$0xff]  ;;  %v252_v48 = vld [vmem:[%s5673_s24 + $0xd0] sm:$0xff] }
  0x19   : > { %273 = vst.msk [vmem:[#allocation2 + $0x68] sm:$0xff] %vm258_vm0, %v8584_v0  ;;  %v253_v51 = vld [vmem:[%s5673_s24 + $0xd8] sm:$0xff]  ;;  %v250_v53 = vld [vmem:[%s5673_s24 + $0xc0] sm:$0xff]  ;;  %v251_v56 = vld [vmem:[%s5673_s24 + $0xc8] sm:$0xff] }
  0x1a   : > { %274 = vst.msk [vmem:[#allocation2 + $0x70] sm:$0x3] %vm261_vm1, %v8584_v0  ;;  %v254_v58 = vld [vmem:[%s5673_s24 + $0xe0] sm:$0xff]  ;;  %v255_v59 = vld [vmem:[%s5673_s24 + $0xe8] sm:$0xff] }
  0x1b   : > { %275 = vst.msk [vmem:[#allocation2 + $0x78] sm:$0xff] %vm258_vm0, %v8584_v0 }
  0x1c   : > { %276 = vst.msk [vmem:[#allocation2 + $0x80] sm:$0xff] %vm258_vm0, %v8584_v0 }
  0x1d   : > { %277 = vst.msk [vmem:[#allocation2 + $0x88] sm:$0x3] %vm261_vm1, %v8584_v0 }
  0x1e   : > { %278 = vst.msk [vmem:[#allocation2 + $0x90] sm:$0xff] %vm258_vm0, %v8584_v0 }
  0x1f   : > { %279 = vst.msk [vmem:[#allocation2 + $0x98] sm:$0xff] %vm258_vm0, %v8584_v0 }
  0x20   : > { %280 = vst.msk [vmem:[#allocation2 + $0xa0] sm:$0x3] %vm261_vm1, %v8584_v0 }
  0x21   : > { %281 = vst.msk [vmem:[#allocation2 + $0xa8] sm:$0xff] %vm258_vm0, %v8584_v0 }
  0x22   : > { %282 = vst.msk [vmem:[#allocation2 + $0xb0] sm:$0xff] %vm258_vm0, %v8584_v0 }
  0x23   : > { %283 = vst.msk [vmem:[#allocation2 + $0xb8] sm:$0x3] %vm261_vm1, %v8584_v0 }
  0x24   : > { %284 = vst.msk [vmem:[#allocation2 + $0xc0] sm:$0xff] %vm258_vm0, %v8584_v0 }
  0x25   : > { %285 = vst.msk [vmem:[#allocation2 + $0xc8] sm:$0xff] %vm258_vm0, %v8584_v0 }
  0x26   : > { %286 = vst.msk [vmem:[#allocation2 + $0xd0] sm:$0x3] %vm261_vm1, %v8584_v0 }
  0x27   : > { %287 = vst.msk [vmem:[#allocation2 + $0xd8] sm:$0xff] %vm258_vm0, %v8584_v0 }
  0x28   : > { %288 = vst.msk [vmem:[#allocation2 + $0xe0] sm:$0xff] %vm258_vm0, %v8584_v0 }
  0x29   : > { %289 = vst.msk [vmem:[#allocation2 + $0xe8] sm:$0x3] %vm261_vm1, %v8584_v0 }
  0x2a   : > { %290 = vst.msk [vmem:[#allocation2 + $0xf0] sm:$0xff] %vm258_vm0, %v8584_v0 }
  0x2b   : > { %291 = vst.msk [vmem:[#allocation2 + $0xf8] sm:$0xff] %vm258_vm0, %v8584_v0 }
  0x2c   : > { %292 = vst.msk [vmem:[#allocation2 + $0x100] sm:$0x3] %vm261_vm1, %v8584_v0 }
  0x2d   : > { %293 = vst.msk [vmem:[#allocation2 + $0x108] sm:$0xff] %vm258_vm0, %v8584_v0 }
  0x2e   : > { %294 = vst.msk [vmem:[#allocation2 + $0x110] sm:$0xff] %vm258_vm0, %v8584_v0 }
  0x2f   : > { %295 = vst.msk [vmem:[#allocation2 + $0x118] sm:$0x3] %vm261_vm1, %v8584_v0 }
  0x30   : > { %296 = vst.msk [vmem:[#allocation2 + $0x120] sm:$0xff] %vm258_vm0, %v8584_v0 }
  0x31   : > { %297 = vst.msk [vmem:[#allocation2 + $0x128] sm:$0xff] %vm258_vm0, %v8584_v0 }
  0x32   : > { %298 = vst.msk [vmem:[#allocation2 + $0x130] sm:$0x3] %vm261_vm1, %v8584_v0 }
  0x33   : > { %299 = vst.msk [vmem:[#allocation2 + $0x138] sm:$0xff] %vm258_vm0, %v8584_v0 }
  0x34   : > { %300 = vst.msk [vmem:[#allocation2 + $0x140] sm:$0xff] %vm258_vm0, %v8584_v0 }
  0x35   : > { %301 = vst.msk [vmem:[#allocation2 + $0x148] sm:$0x3] %vm261_vm1, %v8584_v0 }
  0x36   : > { %302 = vst.msk [vmem:[#allocation2 + $0x150] sm:$0xff] %vm258_vm0, %v8584_v0 }
  0x37   : > { %303 = vst.msk [vmem:[#allocation2 + $0x158] sm:$0xff] %vm258_vm0, %v8584_v0 }
  0x38   : > { %304 = vst.msk [vmem:[#allocation2 + $0x160] sm:$0x3] %vm261_vm1, %v8584_v0 }
  0x39   : > { %305 = vst.msk [vmem:[#allocation2 + $0x168] sm:$0xff] %vm258_vm0, %v8584_v0 }
  0x3a   : > { %306 = vst.msk [vmem:[#allocation2 + $0x170] sm:$0xff] %vm258_vm0, %v8584_v0 }
  0x3b   : > { %307 = vst.msk [vmem:[#allocation2 + $0x178] sm:$0x3] %vm261_vm1, %v8584_v0 }
  0x3c   : > { %308 = vst.msk [vmem:[#allocation2 + $0x180] sm:$0xff] %vm258_vm0, %v8584_v0 }
  0x3d   : > { %309 = vst.msk [vmem:[#allocation2 + $0x188] sm:$0xff] %vm258_vm0, %v8584_v0 }
  0x3e   : > { %310 = vst.msk [vmem:[#allocation2 + $0x190] sm:$0x3] %vm261_vm1, %v8584_v0 }
  0x3f   : > { %311 = vst.msk [vmem:[#allocation2 + $0x198] sm:$0xff] %vm258_vm0, %v8584_v0 }
  0x40   : > { %312 = vst.msk [vmem:[#allocation2 + $0x1a0] sm:$0xff] %vm258_vm0, %v8584_v0 }
  0x41   : > { %313 = vst.msk [vmem:[#allocation2 + $0x1a8] sm:$0x3] %vm261_vm1, %v8584_v0  ;;  %vm3854_vm1 = vcmask 588800  }
  0x42   : > { %321 = vst.msk [vmem:[#allocation2 + $0x61] sm:$0xff] %vm258_vm0, %v232_v4 }
  0x43   : > { %322 = vst.msk [vmem:[#allocation2 + $0x69] sm:$0xff] %vm258_vm0, %v233_v5 }
  0x44   : > { %317 = vst.msk [vmem:[#allocation2 + $0x31] sm:$0xff] %vm258_vm0, %v228_v6 }
  0x45   : > { %318 = vst.msk [vmem:[#allocation2 + $0x39] sm:$0xff] %vm258_vm0, %v229_v7 }
  0x46   : > { %315 = vst.msk [vmem:[#allocation2 + $0x19] sm:$0xff] %vm258_vm0, %v226_v8 }
  0x47   : > { %316 = vst.msk [vmem:[#allocation2 + $0x21] sm:$0xff] %vm258_vm0, %v227_v9 }
  0x48   : > { %323 = vst.msk [vmem:[#allocation2 + $0x79] sm:$0xff] %vm258_vm0, %v234_v10 }
  0x49   : > { %v387_v14 = vld [vmem:[#allocation2 + $0x61] sm:$0xff]  ;;  %324 = vst.msk [vmem:[#allocation2 + $0x81] sm:$0xff] %vm258_vm0, %v235_v11 }
  0x4a   : > { %v388_v16 = vld [vmem:[#allocation2 + $0x69] sm:$0xff]  ;;  %319 = vst.msk [vmem:[#allocation2 + $0x49] sm:$0xff] %vm258_vm0, %v230_v12 }
  0x4b   : > { %v5706_v18 = vpack.i.bf16 %v388_v16, %v387_v14  ;;  %v383_v19 = vld [vmem:[#allocation2 + $0x31] sm:$0xff]  ;;  %320 = vst.msk [vmem:[#allocation2 + $0x51] sm:$0xff] %vm258_vm0, %v231_v13 }
  0x4c   : > { %v384_v21 = vld [vmem:[#allocation2 + $0x39] sm:$0xff]  ;;  %325 = vst.msk [vmem:[#allocation2 + $0x91] sm:$0xff] %vm258_vm0, %v236_v15 }
  0x4d   : > { %4240 = vrot.lane.b32.xlu2 %v5706_v18, %s5512_s20  ;;  %v5714_v23 = vpack.i.bf16 %v384_v21, %v383_v19  ;;  %v381_v24 = vld [vmem:[#allocation2 + $0x19] sm:$0xff]  ;;  %326 = vst.msk [vmem:[#allocation2 + $0x99] sm:$0xff] %vm258_vm0, %v237_v17  ;;  %v411_v19 = vld [vmem:[#allocation2 + $0x2] sm:$0xff] }
  0x4e   : > { %v382_v26 = vld [vmem:[#allocation2 + $0x21] sm:$0xff]  ;;  %329 = vst.msk [vmem:[#allocation2 + $0xc1] sm:$0xff] %vm258_vm0, %v240_v20  ;;  %v412_v20 = vld [vmem:[#allocation2 + $0xa] sm:$0xff] }
  0x4f   : > { %4230 = vrot.lane.b32.xlu1 %v5714_v23, %s5512_s20  ;;  %v5722_v28 = vpack.i.bf16 %v382_v26, %v381_v24  ;;  %v389_v29 = vld [vmem:[#allocation2 + $0x79] sm:$0xff]  ;;  %330 = vst.msk [vmem:[#allocation2 + $0xc9] sm:$0xff] %vm258_vm0, %v241_v22  ;;  %v414_v17 = vld [vmem:[#allocation2 + $0x22] sm:$0xff] }
  0x50   : > { %v390_v31 = vld [vmem:[#allocation2 + $0x81] sm:$0xff]  ;;  %327 = vst.msk [vmem:[#allocation2 + $0xa9] sm:$0xff] %vm258_vm0, %v238_v25  ;;  %v415_v22 = vld [vmem:[#allocation2 + $0x32] sm:$0xff]  ;;  %v4299_v25 = vpack.i.bf16 %v412_v20, %v411_v19 }
  0x51   : > { %4225 = vrot.lane.b32.xlu0 %v5722_v28, %s5512_s20  ;;  %v5730_v33 = vpack.i.bf16 %v390_v31, %v389_v29  ;;  %v385_v34 = vld [vmem:[#allocation2 + $0x49] sm:$0xff]  ;;  %328 = vst.msk [vmem:[#allocation2 + $0xb1] sm:$0xff] %vm258_vm0, %v239_v27  ;;  %v413_v16 = vld [vmem:[#allocation2 + $0x1a] sm:$0xff] }
  0x52   : > { %v386_v36 = vld [vmem:[#allocation2 + $0x51] sm:$0xff]  ;;  %331 = vst.msk [vmem:[#allocation2 + $0xd9] sm:$0xff] %vm258_vm0, %v242_v30  ;;  %v5805_v21 = vpack.i.bf16 %v414_v17, %v413_v16  ;;  %v416_v24 = vld [vmem:[#allocation2 + $0x3a] sm:$0xff]  ;;  %v419_v27 = vld [vmem:[#allocation2 + $0x62] sm:$0xff] }
  0x53   : > { %v5736_v38 = vpack.i.bf16 %v386_v36, %v385_v34  ;;  %v391_v39 = vld [vmem:[#allocation2 + $0x91] sm:$0xff]  ;;  %332 = vst.msk [vmem:[#allocation2 + $0xe1] sm:$0xff] %vm258_vm0, %v243_v32  ;;  %v5809_v26 = vpack.i.bf16 %v416_v24, %v415_v22  ;;  %v421_v34 = vld [vmem:[#allocation2 + $0x7a] sm:$0xff] }
  0x54   : > { %v392_v41 = vld [vmem:[#allocation2 + $0x99] sm:$0xff]  ;;  %335 = vst.msk [vmem:[#allocation2 + $0x109] sm:$0xff] %vm258_vm0, %v246_v35  ;;  %v420_v29 = vld [vmem:[#allocation2 + $0x6a] sm:$0xff]  ;;  %v422_v35 = vld [vmem:[#allocation2 + $0x82] sm:$0xff] }
  0x55   : > { %4245 = vrot.lane.b32.xlu2 %v5730_v33, %s5512_s20  ;;  %v5744_v43 = vpack.i.bf16 %v392_v41, %v391_v39  ;;  %336 = vst.msk [vmem:[#allocation2 + $0x111] sm:$0xff] %vm258_vm0, %v247_v37  ;;  %v395_v45 = vld [vmem:[#allocation2 + $0xc1] sm:$0xff]  ;;  %v417_v30 = vld [vmem:[#allocation2 + $0x4a] sm:$0xff]  ;;  %v418_v31 = vld [vmem:[#allocation2 + $0x52] sm:$0xff]  ;;  %v5814_v32 = vpack.i.bf16 %v420_v29, %v419_v27  ;;  %v5820_v37 = vpack.i.bf16 %v422_v35, %v421_v34 }
  0x56   : > { %v396_v46 = vld [vmem:[#allocation2 + $0xc9] sm:$0xff]  ;;  %333 = vst.msk [vmem:[#allocation2 + $0xf1] sm:$0xff] %vm258_vm0, %v244_v40  ;;  %v5816_v36 = vpack.i.bf16 %v418_v31, %v417_v30  ;;  %v423_v41 = vld [vmem:[#allocation2 + $0x92] sm:$0xff]  ;;  %v5882_v29 = vld [vmem:[#allocation2 + $0x60] sm:$0xff] }
  0x57   : > { %4235 = vrot.lane.b32.xlu1 %v5736_v38, %s5512_s20  ;;  %334 = vst.msk [vmem:[#allocation2 + $0xf9] sm:$0xff] %vm258_vm0, %v245_v42  ;;  %v393_v49 = vld [vmem:[#allocation2 + $0xa9] sm:$0xff]  ;;  %v5758_v52 = vpack.i.bf16 %v396_v46, %v395_v45  ;;  %v424_v42 = vld [vmem:[#allocation2 + $0x9a] sm:$0xff] }
  0x58   : > { %v394_v50 = vld [vmem:[#allocation2 + $0xb1] sm:$0xff]  ;;  %337 = vst.msk [vmem:[#allocation2 + $0x121] sm:$0xff] %vm258_vm0, %v248_v44  ;;  %v427_v45 = vld [vmem:[#allocation2 + $0xc2] sm:$0xff] }
  0x59   : > { %4250 = vrot.lane.b32.xlu0 %v5744_v43, %s5512_s20  ;;  %338 = vst.msk [vmem:[#allocation2 + $0x129] sm:$0xff] %vm258_vm0, %v249_v47  ;;  %v397_v54 = vld [vmem:[#allocation2 + $0xd9] sm:$0xff]  ;;  %v5764_v57 = vpack.i.bf16 %v394_v50, %v393_v49  ;;  %v425_v39 = vld [vmem:[#allocation2 + $0xaa] sm:$0xff]  ;;  %v5828_v47 = vpack.i.bf16 %v424_v42, %v423_v41 }
  0x5a   : > { %v398_v55 = vld [vmem:[#allocation2 + $0xe1] sm:$0xff]  ;;  %341 = vst.msk [vmem:[#allocation2 + $0x151] sm:$0xff] %vm258_vm0, %v252_v48  ;;  %v426_v40 = vld [vmem:[#allocation2 + $0xb2] sm:$0xff]  ;;  %v428_v46 = vld [vmem:[#allocation2 + $0xca] sm:$0xff] }
  0x5b   : > { %342 = vst.msk [vmem:[#allocation2 + $0x159] sm:$0xff] %vm258_vm0, %v253_v51  ;;  %v5772_v60 = vpack.i.bf16 %v398_v55, %v397_v54  ;;  %v401_v61 = vld [vmem:[#allocation2 + $0x109] sm:$0xff]  ;;  %v5826_v44 = vpack.i.bf16 %v426_v40, %v425_v39  ;;  %v5832_v48 = vpack.i.bf16 %v428_v46, %v427_v45  ;;  %v429_v51 = vld [vmem:[#allocation2 + $0xda] sm:$0xff] }
  0x5c   : > { %339 = vst.msk [vmem:[#allocation2 + $0x139] sm:$0xff] %vm258_vm0, %v250_v53  ;;  %v402_v62 = vld [vmem:[#allocation2 + $0x111] sm:$0xff]  ;;  %v430_v53 = vld [vmem:[#allocation2 + $0xe2] sm:$0xff] }
  0x5d   : > { %4260 = vrot.lane.b32.xlu2 %v5758_v52, %s5512_s20  ;;  %340 = vst.msk [vmem:[#allocation2 + $0x141] sm:$0xff] %vm258_vm0, %v251_v56  ;;  %v399_v63 = vld [vmem:[#allocation2 + $0xf1] sm:$0xff]  ;;  %v5781_v2 = vpack.i.bf16 %v402_v62, %v401_v61  ;;  %v5884_v30 = vld [vmem:[#allocation2 + $0x68] sm:$0xff]  ;;  %v5901_v40 = vld [vmem:[#allocation2 + $0x80] sm:$0xff] }
  0x5e   : > { %343 = vst.msk [vmem:[#allocation2 + $0x169] sm:$0xff] %vm258_vm0, %v254_v58  ;;  %v400_v1 = vld [vmem:[#allocation2 + $0xf9] sm:$0xff]  ;;  %v433_v55 = vld [vmem:[#allocation2 + $0x10a] sm:$0xff]  ;;  %v5840_v58 = vpack.i.bf16 %v430_v53, %v429_v51  ;;  %v5897_v35 = vpack.i.bf16 %v5884_v30, %v5882_v29 }
  0x5f   : > { %4255 = vrot.lane.b32.xlu1 %v5764_v57, %s5512_s20  ;;  %344 = vst.msk [vmem:[#allocation2 + $0x171] sm:$0xff] %vm258_vm0, %v255_v59  ;;  %v403_v3 = vld [vmem:[#allocation2 + $0x121] sm:$0xff]  ;;  %v5783_v5 = vpack.i.bf16 %v400_v1, %v399_v63  ;;  %v431_v49 = vld [vmem:[#allocation2 + $0xf2] sm:$0xff] }
  0x60   : > { %v404_v4 = vld [vmem:[#allocation2 + $0x129] sm:$0xff]  ;;  %v432_v50 = vld [vmem:[#allocation2 + $0xfa] sm:$0xff]  ;;  %v434_v56 = vld [vmem:[#allocation2 + $0x112] sm:$0xff] }
  0x61   : > { %4265 = vrot.lane.b32.xlu0 %v5772_v60, %s5512_s20  ;;  %v5787_v6 = vpack.i.bf16 %v404_v4, %v403_v3  ;;  %v407_v7 = vld [vmem:[#allocation2 + $0x151] sm:$0xff]  ;;  %v5838_v54 = vpack.i.bf16 %v432_v50, %v431_v49  ;;  %v5844_v59 = vpack.i.bf16 %v434_v56, %v433_v55  ;;  %v435_v63 = vld [vmem:[#allocation2 + $0x122] sm:$0xff] }
  0x62   : > { %v408_v8 = vld [vmem:[#allocation2 + $0x159] sm:$0xff]  ;;  %v436_v1 = vld [vmem:[#allocation2 + $0x12a] sm:$0xff] }
  0x63   : > { %v405_v9 = vld [vmem:[#allocation2 + $0x139] sm:$0xff]  ;;  %v5793_v11 = vpack.i.bf16 %v408_v8, %v407_v7  ;;  %v5852_v8 = vpack.i.bf16 %v436_v1, %v435_v63  ;;  %v5868_v19 = vld [vmem:[#allocation2 + $0x30] sm:$0xff]  ;;  %v5889_v31 = vld [vmem:[#allocation2 + $0x48] sm:$0xff] }
  0x64   : > { %v406_v10 = vld [vmem:[#allocation2 + $0x141] sm:$0xff]  ;;  %v439_v4 = vld [vmem:[#allocation2 + $0x152] sm:$0xff]  ;;  %8683 = vst [vmem:[#allocation6_spill] sm:$0xff] %v5868_v19 }
  0x65   : > { %4275 = vrot.lane.b32.xlu2 %v5781_v2, %s5512_s20  ;;  %v409_v12 = vld [vmem:[#allocation2 + $0x169] sm:$0xff]  ;;  %v5795_v14 = vpack.i.bf16 %v406_v10, %v405_v9  ;;  %v437_v61 = vld [vmem:[#allocation2 + $0x13a] sm:$0xff]  ;;  %8685 = vst [vmem:[#allocation8_spill] sm:$0xff] %v5889_v31 }
  0x66   : > { %v410_v13 = vld [vmem:[#allocation2 + $0x171] sm:$0xff]  ;;  %v438_v62 = vld [vmem:[#allocation2 + $0x142] sm:$0xff]  ;;  %v440_v7 = vld [vmem:[#allocation2 + $0x15a] sm:$0xff] }
  0x67   : > { %4270 = vrot.lane.b32.xlu1 %v5783_v5, %s5512_s20  ;;  %v5799_v15 = vpack.i.bf16 %v410_v13, %v409_v12  ;;  %v5850_v3 = vpack.i.bf16 %v438_v62, %v437_v61  ;;  %v5856_v9 = vpack.i.bf16 %v440_v7, %v439_v4  ;;  %v5858_v10 = vld [vmem:[#allocation2 + $0x18] sm:$0xff]  ;;  %v5860_v12 = vld [vmem:[#allocation2 + $0x20] sm:$0xff]  ;;  %v441_v13 = vld [vmem:[#allocation2 + $0x16a] sm:$0xff] }
  0x68   : > { %8681 = vst [vmem:[#allocation4_spill] sm:$0xff] %v5858_v10  ;;  %v442_v16 = vld [vmem:[#allocation2 + $0x172] sm:$0xff]  ;;  %v4379_v17 = vpack.i.bf16 %v5860_v12, %v5858_v10  ;;  %v5913_v45 = vld [vmem:[#allocation2 + $0xa8] sm:$0xff]  ;;  %v5931_v55 = vld [vmem:[#allocation2 + $0xc0] sm:$0xff] }
  0x69   : > { %4280 = vrot.lane.b32.xlu0 %v5787_v6, %s5512_s20  ;;  %8682 = vst [vmem:[#allocation5_spill] sm:$0xff] %v5860_v12  ;;  %v5870_v20 = vld [vmem:[#allocation2 + $0x38] sm:$0xff]  ;;  %v5872_v22 = vpack.i.bf16 %v442_v16, %v441_v13  ;;  %v256_v24 = vld [vmem:[%s5673_s24 + $0xf0] sm:$0xff]  ;;  %v5933_v56 = vld [vmem:[#allocation2 + $0xc8] sm:$0xff] }
  0x6a   : > { %8684 = vst [vmem:[#allocation7_spill] sm:$0xff] %v5870_v20  ;;  %v257_v27 = vld [vmem:[%s5673_s24 + $0xf8] sm:$0xff]  ;;  %v5891_v34 = vld [vmem:[#allocation2 + $0x50] sm:$0xff]  ;;  %v5943_v62 = vpack.i.bf16 %v5933_v56, %v5931_v55  ;;  %v5955_v13 = vld [vmem:[#allocation2 + $0xe0] sm:$0xff] }
  0x6b   : > { %345 = vst.msk [vmem:[#allocation2 + $0x181] sm:$0xff] %vm258_vm0, %v256_v24  ;;  %v5899_v39 = vld [vmem:[#allocation2 + $0x78] sm:$0xff]  ;;  %v5905_v41 = vpack.i.bf16 %v5891_v34, %v5889_v31  ;;  %v5915_v46 = vld [vmem:[#allocation2 + $0xb0] sm:$0xff] }
  0x6c   : > { %346 = vst.msk [vmem:[#allocation2 + $0x189] sm:$0xff] %vm258_vm0, %v257_v27  ;;  %v5911_v42 = vpack.i.bf16 %v5901_v40, %v5899_v39  ;;  %v5921_v50 = vld [vmem:[#allocation2 + $0x90] sm:$0xff]  ;;  %v5923_v51 = vld [vmem:[#allocation2 + $0x98] sm:$0xff]  ;;  %v5929_v53 = vpack.i.bf16 %v5915_v46, %v5913_v45 }
  0x6d   : > { %4290 = vrot.lane.b32.xlu2 %v5793_v11, %s5512_s20  ;;  %8686 = vst [vmem:[#allocation9_spill] sm:$0xff] %v5891_v34  ;;  %v5937_v61 = vpack.i.bf16 %v5923_v51, %v5921_v50  ;;  %v5945_v63 = vld [vmem:[#allocation2 + $0xf0] sm:$0xff]  ;;  %v5947_v1 = vld [vmem:[#allocation2 + $0xf8] sm:$0xff] }
  0x6e   : > { %8687 = vst [vmem:[#allocation10_spill] sm:$0xff] %v5913_v45  ;;  %v5953_v7 = vld [vmem:[#allocation2 + $0xd8] sm:$0xff]  ;;  %v5961_v16 = vpack.i.bf16 %v5947_v1, %v5945_v63  ;;  %v5965_v24 = vld [vmem:[#allocation2 + $0x110] sm:$0xff]  ;;  %v8696_v45 = vmov 0.0  }
  0x6f   : > { %4285 = vrot.lane.b32.xlu1 %v5795_v14, %s5512_s20  ;;  %8688 = vst [vmem:[#allocation11_spill] sm:$0xff] %v5915_v46  ;;  %v5969_v27 = vpack.i.bf16 %v5955_v13, %v5953_v7  ;;  %v466_v46 = vld [vmem:[#allocation2 + $0x128] sm:$0xff]  ;;  %v6003_v31 = vld [vmem:[#allocation2 + $0x150] sm:$0xff]  ;;  %v6005_v34 = vld [vmem:[#allocation2 + $0x158] sm:$0xff] }
  0x70   : > { %8689 = vst [vmem:[#allocation12_spill] sm:$0xff] %v5921_v50 }
  0x71   : > { %4295 = vrot.lane.b32.xlu0 %v5799_v15, %s5512_s20  ;;  %8690 = vst [vmem:[#allocation13_spill] sm:$0xff] %v5923_v51  ;;  %s5523_s20 = smov 48  }
  0x72   : > { %8691 = vst [vmem:[#allocation14_spill] sm:$0xff] %v5945_v63  ;;  %v5979_v63 = vld [vmem:[#allocation2 + $0x138] sm:$0xff] }
  0x73   : > { %8692 = vst [vmem:[#allocation15_spill] sm:$0xff] %v5947_v1  ;;  %v5981_v1 = vld [vmem:[#allocation2 + $0x140] sm:$0xff]  ;;  %v474_v10 = vld [vmem:[#allocation2 + $0x188] sm:$0xff] }
  0x74   : > { %8693 = vst [vmem:[#allocation16_spill] sm:$0xff] %v5953_v7  ;;  %v5999_v51 = vpack.i.bf16 %v5981_v1, %v5979_v63 }
  0x75   : > { %4305 = vrot.lane.b32.xlu2 %v5805_v21, %s5513_s25  ;;  %8694 = vst [vmem:[#allocation17_spill] sm:$0xff] %v5955_v13  ;;  %v465_v13 = vld [vmem:[#allocation2 + $0x120] sm:$0xff] }
  0x76   : > { %2137 = vst.msk [vmem:[#allocation3] sm:$0xff] %vm1692_vm2, %v8696_v45  ;;  %v6009_v12 = vpack.i.bf16 %v466_v46, %v465_v13  ;;  %v6031_v13 = vld [vmem:[#allocation2 + $0x168] sm:$0xff] }
  0x77   : > { %4300 = vrot.lane.b32.xlu1 %v4299_v25, %s5513_s25  ;;  %v5878_v25 = vpack.i.bf16 %v5870_v20, %v5868_v19  ;;  %8697 = vst [vmem:[#allocation19_spill] sm:$0xff] %v5979_v63  ;;  %v6019_v63 = vpack.i.bf16 %v6005_v34, %v6003_v31 }
  0x78   : > { %8698 = vst [vmem:[#allocation20_spill] sm:$0xff] %v5981_v1  ;;  %v473_v1 = vld [vmem:[#allocation2 + $0x180] sm:$0xff] }
  0x79   : > { %4310 = vrot.lane.b32.xlu0 %v5809_v26, %s5513_s25  ;;  %2138 = vst.msk [vmem:[#allocation3 + $0x8] sm:$0xff] %vm1692_vm2, %v8696_v45  ;;  %v6041_v20 = vpack.i.bf16 %v474_v10, %v473_v1 }
  0x7a   : > { %2141 = vst.msk [vmem:[#allocation3 + $0x18] sm:$0xff] %vm1692_vm2, %v8696_v45 }
  0x7b   : > { %2142 = vst.msk [vmem:[#allocation3 + $0x20] sm:$0xff] %vm1692_vm2, %v8696_v45 }
  0x7c   : > { %2144 = vst.msk [vmem:[#allocation3 + $0x30] sm:$0xff] %vm1692_vm2, %v8696_v45 }
  0x7d   : > { %4320 = vrot.lane.b32.xlu2 %v5814_v32, %s5513_s25  ;;  %8699 = vst [vmem:[#allocation21_spill] sm:$0xff] %v6003_v31  ;;  %v6033_v31 = vld [vmem:[#allocation2 + $0x170] sm:$0xff] }
  0x7e   : > { %8700 = vst [vmem:[#allocation22_spill] sm:$0xff] %v6005_v34 }
  0x7f   : > { %4315 = vrot.lane.b32.xlu1 %v5816_v36, %s5513_s25  ;;  %2145 = vst.msk [vmem:[#allocation3 + $0x38] sm:$0xff] %vm1692_vm2, %v8696_v45 }
  0x80   : > { %2147 = vst.msk [vmem:[#allocation3 + $0x48] sm:$0xff] %vm1692_vm2, %v8696_v45 }
  0x81   : > { %4325 = vrot.lane.b32.xlu0 %v5820_v37, %s5513_s25  ;;  %2148 = vst.msk [vmem:[#allocation3 + $0x50] sm:$0xff] %vm1692_vm2, %v8696_v45 }
  0x82   : > { %2150 = vst.msk [vmem:[#allocation3 + $0x60] sm:$0xff] %vm1692_vm2, %v8696_v45 }
  0x83   : > { %2151 = vst.msk [vmem:[#allocation3 + $0x68] sm:$0xff] %vm1692_vm2, %v8696_v45 }
  0x84   : > { %2153 = vst.msk [vmem:[#allocation3 + $0x78] sm:$0xff] %vm1692_vm2, %v8696_v45 }
  0x85   : > { %4335 = vrot.lane.b32.xlu2 %v5826_v44, %s5513_s25  ;;  %8701 = vst [vmem:[#allocation23_spill] sm:$0xff] %v6031_v13 }
  0x86   : > { %8702 = vst [vmem:[#allocation24_spill] sm:$0xff] %v6033_v31 }
  0x87   : > { %4330 = vrot.lane.b32.xlu1 %v5828_v47, %s5513_s25  ;;  %2154 = vst.msk [vmem:[#allocation3 + $0x80] sm:$0xff] %vm1692_vm2, %v8696_v45 }
  0x88   : > { %2156 = vst.msk [vmem:[#allocation3 + $0x90] sm:$0xff] %vm1692_vm2, %v8696_v45 }
  0x89   : > { %4340 = vrot.lane.b32.xlu0 %v5832_v48, %s5513_s25  ;;  %2157 = vst.msk [vmem:[#allocation3 + $0x98] sm:$0xff] %vm1692_vm2, %v8696_v45 }
  0x8a   : > { %v5995_v50 = vpop.permute.xlu0 %4220  ;;  %2159 = vst.msk [vmem:[#allocation3 + $0xa8] sm:$0xff] %vm1692_vm2, %v8696_v45 }
  0x8b   : > { %2160 = vst.msk [vmem:[#allocation3 + $0xb0] sm:$0xff] %vm1692_vm2, %v8696_v45 }
  0x8c   : > { %2162 = vst.msk [vmem:[#allocation3 + $0xc0] sm:$0xff] %vm1692_vm2, %v8696_v45 }
  0x8d   : > { %4350 = vrot.lane.b32.xlu2 %v5838_v54, %s5513_s25  ;;  %2163 = vst.msk [vmem:[#allocation3 + $0xc8] sm:$0xff] %vm1692_vm2, %v8696_v45 }
  0x8e   : > { %2165 = vst.msk [vmem:[#allocation3 + $0xd8] sm:$0xff] %vm1692_vm2, %v8696_v45 }
  0x8f   : > { %4345 = vrot.lane.b32.xlu1 %v5840_v58, %s5513_s25  ;;  %2166 = vst.msk [vmem:[#allocation3 + $0xe0] sm:$0xff] %vm1692_vm2, %v8696_v45 }
  0x90   : > { %2168 = vst.msk [vmem:[#allocation3 + $0xf0] sm:$0xff] %vm1692_vm2, %v8696_v45 }
  0x91   : > { %4355 = vrot.lane.b32.xlu0 %v5844_v59, %s5513_s25  ;;  %2169 = vst.msk [vmem:[#allocation3 + $0xf8] sm:$0xff] %vm1692_vm2, %v8696_v45 }
  0x92   : > { %2171 = vst.msk [vmem:[#allocation3 + $0x108] sm:$0xff] %vm1692_vm2, %v8696_v45 }
  0x93   : > { %2172 = vst.msk [vmem:[#allocation3 + $0x110] sm:$0xff] %vm1692_vm2, %v8696_v45 }
  0x94   : > { %2174 = vst.msk [vmem:[#allocation3 + $0x120] sm:$0xff] %vm1692_vm2, %v8696_v45 }
  0x95   : > { %4365 = vrot.lane.b32.xlu2 %v5850_v3, %s5513_s25  ;;  %2175 = vst.msk [vmem:[#allocation3 + $0x128] sm:$0xff] %vm1692_vm2, %v8696_v45 }
  0x96   : > { %2177 = vst.msk [vmem:[#allocation3 + $0x138] sm:$0xff] %vm1692_vm2, %v8696_v45 }
  0x97   : > { %4360 = vrot.lane.b32.xlu1 %v5852_v8, %s5513_s25  ;;  %2178 = vst.msk [vmem:[#allocation3 + $0x140] sm:$0xff] %vm1692_vm2, %v8696_v45 }
  0x98   : > { %2180 = vst.msk [vmem:[#allocation3 + $0x150] sm:$0xff] %vm1692_vm2, %v8696_v45 }
  0x99   : > { %4370 = vrot.lane.b32.xlu0 %v5856_v9, %s5513_s25  ;;  %2181 = vst.msk [vmem:[#allocation3 + $0x158] sm:$0xff] %vm1692_vm2, %v8696_v45 }
  0x9a   : > { %2183 = vst.msk [vmem:[#allocation3 + $0x168] sm:$0xff] %vm1692_vm2, %v8696_v45 }
  0x9b   : > { %2184 = vst.msk [vmem:[#allocation3 + $0x170] sm:$0xff] %vm1692_vm2, %v8696_v45 }
  0x9c   : > { %2186 = vst.msk [vmem:[#allocation3 + $0x180] sm:$0xff] %vm1692_vm2, %v8696_v45 }
  0x9d   : > { %4380 = vrot.lane.b32.xlu2 %v4379_v17, %s5514_s26  ;;  %v5963_v17 = vld [vmem:[#allocation2 + $0x108] sm:$0xff]  ;;  %2187 = vst.msk [vmem:[#allocation3 + $0x188] sm:$0xff] %vm1692_vm2, %v8696_v45 }
  0x9e   : > { %8695 = vst [vmem:[#allocation18_spill] sm:$0xff] %v5963_v17  ;;  %v5975_v0 = vpack.i.bf16 %v5965_v24, %v5963_v17  ;;  %v6051_v17 = vpack.i.bf16 %v6033_v31, %v6031_v13 }
  0x9f   : > { %4375 = vrot.lane.b32.xlu1 %v5872_v22, %s5513_s25  ;;  %2189 = vst.msk [vmem:[#allocation3 + $0x198] sm:$0xff] %vm1692_vm2, %v8696_v45 }
  0xa0   : > { %2190 = vst.msk [vmem:[#allocation3 + $0x1a0] sm:$0xff] %vm1692_vm2, %v8696_v45 }
  0xa1   : > { %4385 = vrot.lane.b32.xlu0 %v5878_v25, %s5514_s26 }
  0xa5   : > { %4395 = vrot.lane.b32.xlu2 %v5897_v35, %s5514_s26 }
  0xa7   : > { %4390 = vrot.lane.b32.xlu1 %v5905_v41, %s5514_s26  ;;  %v5919_v49 = vpop.permute.xlu2 %4240 }
  0xa9   : > { %4400 = vrot.lane.b32.xlu0 %v5911_v42, %s5514_s26 }
  0xad   : > { %4410 = vrot.lane.b32.xlu2 %v5929_v53, %s5514_s26 }
  0xaf   : > { %4405 = vrot.lane.b32.xlu1 %v5937_v61, %s5514_s26  ;;  %v5951_v4 = vpop.permute.xlu2 %4245 }
  0xb1   : > { %4415 = vrot.lane.b32.xlu0 %v5943_v62, %s5514_s26 }
  0xb5   : > { %4425 = vrot.lane.b32.xlu2 %v5961_v16, %s5514_s26 }
  0xb7   : > { %4420 = vrot.lane.b32.xlu1 %v5969_v27, %s5514_s26  ;;  %v5987_v7 = vpop.permute.xlu2 %4260 }
  0xb9   : > { %4430 = vrot.lane.b32.xlu0 %v5975_v0, %s5514_s26 }
  0xbd   : > { %4440 = vrot.lane.b32.xlu2 %v5999_v51, %s5514_s26 }
  0xbf   : > { %4435 = vrot.lane.b32.xlu1 %v6009_v12, %s5514_s26  ;;  %v6027_v46 = vpop.permute.xlu2 %4275 }
  0xc1   : > { %v6037_v34 = vpop.permute.xlu1 %4230  ;;  %4445 = vrot.lane.b32.xlu0 %v6019_v63, %s5514_s26 }
  0xc3   : > { %v6047_v19 = vpop.permute.xlu0 %4225 }
  0xc5   : > { %4455 = vrot.lane.b32.xlu2 %v6041_v20, %s5514_s26 }
  0xc7   : > { %4450 = vrot.lane.b32.xlu1 %v6051_v17, %s5514_s26  ;;  %v6065_v10 = vpop.permute.xlu2 %4290 }
  0xc9   : > { %v6071_v1 = vpop.permute.xlu1 %4235  ;;  %4460 = vrot.lane.b32.xlu0 %v5722_v28, %s5515_s27 }
  0xcb   : > { %v6079_v13 = vpop.permute.xlu0 %4250 }
  0xcd   : > { %4470 = vrot.lane.b32.xlu2 %v5736_v38, %s5515_s27 }
  0xcf   : > { %4465 = vrot.lane.b32.xlu1 %v5714_v23, %s5515_s27  ;;  %v6093_v28 = vpop.permute.xlu2 %4305 }
  0xd1   : > { %v6099_v31 = vpop.permute.xlu1 %4255  ;;  %4475 = vrot.lane.b32.xlu0 %v5706_v18, %s5515_s27 }
  0xd3   : > { %v6109_v23 = vpop.permute.xlu0 %4265 }
  0xd4   : > { %8703 = vst [vmem:[#allocation25_spill] sm:$0xff] %v6109_v23 }
  0xd5   : > { %4485 = vrot.lane.b32.xlu2 %v5744_v43, %s5515_s27 }
  0xd7   : > { %4480 = vrot.lane.b32.xlu1 %v5730_v33, %s5515_s27  ;;  %v6123_v18 = vpop.permute.xlu2 %4320 }
  0xd9   : > { %v6127_v38 = vpop.permute.xlu1 %4270  ;;  %4490 = vrot.lane.b32.xlu0 %v5764_v57, %s5515_s27 }
  0xdb   : > { %v6131_v43 = vpop.permute.xlu0 %4280 }
  0xdc   : > { %8704 = vst [vmem:[#allocation26_spill] sm:$0xff] %v6131_v43  ;;  %v506_v43 = vld [vmem:[#allocation2 + $0x189] sm:$0xff] }
  0xdd   : > { %4500 = vrot.lane.b32.xlu2 %v5772_v60, %s5515_s27 }
  0xdf   : > { %4495 = vrot.lane.b32.xlu1 %v5758_v52, %s5515_s27  ;;  %v6137_v23 = vpop.permute.xlu2 %4335  ;;  %v505_v52 = vld [vmem:[#allocation2 + $0x181] sm:$0xff] }
  0xe1   : > { %v6139_v33 = vpop.permute.xlu1 %4285  ;;  %4505 = vrot.lane.b32.xlu0 %v5783_v5, %s5515_s27  ;;  %v6159_v5 = vpack.i.bf16 %v506_v43, %v505_v52 }
  0xe2   : > { %8705 = vst [vmem:[#allocation27_spill] sm:$0xff] %v6139_v33 }
  0xe3   : > { %v6143_v45 = vpop.permute.xlu0 %4295 }
  0xe5   : > { %4515 = vrot.lane.b32.xlu2 %v5787_v6, %s5515_s27 }
  0xe7   : > { %4510 = vrot.lane.b32.xlu1 %v5781_v2, %s5515_s27  ;;  %v6149_v57 = vpop.permute.xlu2 %4350 }
  0xe9   : > { %v6151_v60 = vpop.permute.xlu1 %4300  ;;  %4520 = vrot.lane.b32.xlu0 %v5795_v14, %s5515_s27 }
  0xeb   : > { %v6155_v33 = vpop.permute.xlu0 %4310 }
  0xed   : > { %4530 = vrot.lane.b32.xlu2 %v5799_v15, %s5515_s27 }
  0xef   : > { %4525 = vrot.lane.b32.xlu1 %v5793_v11, %s5515_s27  ;;  %v6163_v2 = vpop.permute.xlu2 %4365 }
  0xf1   : > { %v6165_v6 = vpop.permute.xlu1 %4315  ;;  %4535 = vrot.lane.b32.xlu0 %v6159_v5, %s5515_s27 }
  0xf2   : > { %8706 = vst [vmem:[#allocation28_spill] sm:$0xff] %v6165_v6 }
  0xf3   : > { %v6169_v14 = vpop.permute.xlu0 %4325 }
  0xf5   : > { %4545 = vrot.lane.b32.xlu2 %v5809_v26, %s5516_s28 }
  0xf7   : > { %4540 = vrot.lane.b32.xlu1 %v5805_v21, %s5516_s28  ;;  %v6175_v15 = vpop.permute.xlu2 %4380 }
  0xf9   : > { %v6177_v43 = vpop.permute.xlu1 %4330  ;;  %4550 = vrot.lane.b32.xlu0 %v5816_v36, %s5516_s28 }
  0xfb   : > { %v6181_v11 = vpop.permute.xlu0 %4340 }
  0xfd   : > { %4560 = vrot.lane.b32.xlu2 %v5820_v37, %s5516_s28 }
  0xff   : > { %4555 = vrot.lane.b32.xlu1 %v5814_v32, %s5516_s28  ;;  %v6187_v52 = vpop.permute.xlu2 %4395 }
 0x100   : > { %8707 = vst [vmem:[#allocation29_spill] sm:$0xff] %v6187_v52 }
 0x101   : > { %v6189_v26 = vpop.permute.xlu1 %4345  ;;  %4565 = vrot.lane.b32.xlu0 %v5828_v47, %s5516_s28 }
 0x103   : > { %v6193_v21 = vpop.permute.xlu0 %4355 }
 0x105   : > { %4575 = vrot.lane.b32.xlu2 %v5832_v48, %s5516_s28 }
 0x107   : > { %4570 = vrot.lane.b32.xlu1 %v5826_v44, %s5516_s28  ;;  %v6199_v36 = vpop.permute.xlu2 %4410 }
 0x109   : > { %v6201_v37 = vpop.permute.xlu1 %4360  ;;  %4580 = vrot.lane.b32.xlu0 %v5840_v58, %s5516_s28 }
 0x10a   : > { %8708 = vst [vmem:[#allocation30_spill] sm:$0xff] %v6201_v37  ;;  %v538_v37 = vld [vmem:[#allocation2 + $0x18a] sm:$0xff] }
 0x10b   : > { %v6205_v32 = vpop.permute.xlu0 %4370 }
 0x10d   : > { %4590 = vrot.lane.b32.xlu2 %v5844_v59, %s5516_s28  ;;  %v537_v59 = vld [vmem:[#allocation2 + $0x182] sm:$0xff] }
 0x10f   : > { %4585 = vrot.lane.b32.xlu1 %v5838_v54, %s5516_s28  ;;  %v6211_v47 = vpop.permute.xlu2 %4425 }
 0x110   : > { %8709 = vst [vmem:[#allocation31_spill] sm:$0xff] %v6211_v47 }
 0x111   : > { %v6213_v48 = vpop.permute.xlu1 %4375  ;;  %4595 = vrot.lane.b32.xlu0 %v5852_v8, %s5516_s28  ;;  %v6231_v8 = vpack.i.bf16 %v538_v37, %v537_v59  ;;  %v571_v59 = vld [vmem:[#allocation2 + $0x1a0] sm:$0xff] }
 0x112   : > { %8710 = vst [vmem:[#allocation32_spill] sm:$0xff] %v6213_v48  ;;  %v593_v48 = vld [vmem:[#allocation2 + $0x129] sm:$0xff] }
 0x113   : > { %v6217_v44 = vpop.permute.xlu0 %4385 }
 0x114   : > { %8711 = vst [vmem:[#allocation33_spill] sm:$0xff] %v6217_v44 }
 0x115   : > { %4605 = vrot.lane.b32.xlu2 %v5856_v9, %s5516_s28 }
 0x117   : > { %4600 = vrot.lane.b32.xlu1 %v5850_v3, %s5516_s28  ;;  %v6223_v58 = vpop.permute.xlu2 %4440 }
 0x118   : > { %8712 = vst [vmem:[#allocation34_spill] sm:$0xff] %v6223_v58 }
 0x119   : > { %v6225_v54 = vpop.permute.xlu1 %4390  ;;  %4610 = vrot.lane.b32.xlu0 %v5872_v22, %s5516_s28 }
 0x11a   : > { %8713 = vst [vmem:[#allocation35_spill] sm:$0xff] %v6225_v54  ;;  %v581_v54 = vld [vmem:[#allocation2 + $0x99] sm:$0xff] }
 0x11b   : > { %v6229_v52 = vpop.permute.xlu0 %4400 }
 0x11d   : > { %4620 = vrot.lane.b32.xlu2 %v5878_v25, %s5517_s29 }
 0x11f   : > { %4615 = vrot.lane.b32.xlu1 %v6231_v8, %s5516_s28  ;;  %v6237_v3 = vpop.permute.xlu2 %4455 }
 0x120   : > { %8714 = vst [vmem:[#allocation36_spill] sm:$0xff] %v6237_v3  ;;  %v580_v3 = vld [vmem:[#allocation2 + $0x91] sm:$0xff] }
 0x121   : > { %v6239_v9 = vpop.permute.xlu1 %4405  ;;  %4625 = vrot.lane.b32.xlu0 %v5905_v41, %s5517_s29 }
 0x123   : > { %v6243_v58 = vpop.permute.xlu0 %4415 }
 0x124   : > { %8715 = vst [vmem:[#allocation37_spill] sm:$0xff] %v6243_v58 }
 0x125   : > { %4635 = vrot.lane.b32.xlu2 %v5911_v42, %s5517_s29 }
 0x127   : > { %4630 = vrot.lane.b32.xlu1 %v5897_v35, %s5517_s29  ;;  %v6249_v22 = vpop.permute.xlu2 %4470 }
 0x128   : > { %8716 = vst [vmem:[#allocation38_spill] sm:$0xff] %v6249_v22 }
 0x129   : > { %v6251_v25 = vpop.permute.xlu1 %4420  ;;  %4640 = vrot.lane.b32.xlu0 %v5937_v61, %s5517_s29 }
 0x12b   : > { %v6255_v37 = vpop.permute.xlu0 %4430 }
 0x12c   : > { %8717 = vst [vmem:[#allocation39_spill] sm:$0xff] %v6255_v37 }
 0x12d   : > { %4650 = vrot.lane.b32.xlu2 %v5943_v62, %s5517_s29 }
 0x12f   : > { %4645 = vrot.lane.b32.xlu1 %v5929_v53, %s5517_s29  ;;  %v6261_v41 = vpop.permute.xlu2 %4485 }
 0x131   : > { %v6263_v42 = vpop.permute.xlu1 %4435  ;;  %4655 = vrot.lane.b32.xlu0 %v5969_v27, %s5517_s29  ;;  %v570_v27 = vld [vmem:[#allocation2 + $0x198] sm:$0xff] }
 0x132   : > { %8718 = vst [vmem:[#allocation40_spill] sm:$0xff] %v6263_v42  ;;  %v4694_v6 = vpack.i.bf16 %v571_v59, %v570_v27  ;;  %v572_v42 = vld [vmem:[#allocation2 + $0x31] sm:$0xff]  ;;  %v578_v27 = vld [vmem:[#allocation2 + $0x79] sm:$0xff]  ;;  %v579_v59 = vld [vmem:[#allocation2 + $0x81] sm:$0xff] }
 0x133   : > { %v6267_v35 = vpop.permute.xlu0 %4445 }
 0x134   : > { %8719 = vst [vmem:[#allocation41_spill] sm:$0xff] %v6267_v35  ;;  %v577_v35 = vld [vmem:[#allocation2 + $0x69] sm:$0xff] }
 0x135   : > { %4665 = vrot.lane.b32.xlu2 %v5975_v0, %s5517_s29 }
 0x137   : > { %4660 = vrot.lane.b32.xlu1 %v5961_v16, %s5517_s29  ;;  %v6273_v61 = vpop.permute.xlu2 %4500 }
 0x139   : > { %v6275_v62 = vpop.permute.xlu1 %4450  ;;  %4670 = vrot.lane.b32.xlu0 %v6009_v12, %s5517_s29  ;;  %v573_v12 = vld [vmem:[#allocation2 + $0x39] sm:$0xff] }
 0x13b   : > { %v6279_v53 = vpop.permute.xlu0 %4460 }
 0x13c   : > { %8720 = vst [vmem:[#allocation42_spill] sm:$0xff] %v6279_v53  ;;  %v576_v53 = vld [vmem:[#allocation2 + $0x61] sm:$0xff] }
 0x13d   : > { %4680 = vrot.lane.b32.xlu2 %v6019_v63, %s5517_s29  ;;  %v4699_v63 = vpack.i.bf16 %v573_v12, %v572_v42  ;;  %v4714_v42 = vpack.i.bf16 %v579_v59, %v578_v27  ;;  %v582_v12 = vld [vmem:[#allocation2 + $0xa9] sm:$0xff]  ;;  %v589_v27 = vld [vmem:[#allocation2 + $0xf9] sm:$0xff] }
 0x13f   : > { %4675 = vrot.lane.b32.xlu1 %v5999_v51, %s5517_s29  ;;  %v6285_v0 = vpop.permute.xlu2 %4515 }
 0x140   : > { %8721 = vst [vmem:[#allocation43_spill] sm:$0xff] %v6285_v0  ;;  %v574_v0 = vld [vmem:[#allocation2 + $0x49] sm:$0xff] }
 0x141   : > { %v6287_v16 = vpop.permute.xlu1 %4465  ;;  %4685 = vrot.lane.b32.xlu0 %v6051_v17, %s5517_s29  ;;  %v4709_v17 = vpack.i.bf16 %v577_v35, %v576_v53  ;;  %v584_v53 = vld [vmem:[#allocation2 + $0xc1] sm:$0xff] }
 0x142   : > { %8722 = vst [vmem:[#allocation44_spill] sm:$0xff] %v6287_v16  ;;  %v575_v16 = vld [vmem:[#allocation2 + $0x51] sm:$0xff] }
 0x143   : > { %v6291_v37 = vpop.permute.xlu0 %4475 }
 0x144   : > { %8723 = vst [vmem:[#allocation45_spill] sm:$0xff] %v6291_v37 }
 0x145   : > { %4695 = vrot.lane.b32.xlu2 %v4694_v6, %s5517_s29  ;;  %v4704_v6 = vpack.i.bf16 %v575_v16, %v574_v0  ;;  %v4719_v0 = vpack.i.bf16 %v581_v54, %v580_v3 }
 0x147   : > { %4690 = vrot.lane.b32.xlu1 %v6041_v20, %s5517_s29  ;;  %v6296_v51 = vpop.permute.xlu2 %4530  ;;  %v583_v20 = vld [vmem:[#allocation2 + $0xb1] sm:$0xff] }
 0x148   : > { %v4724_v35 = vpack.i.bf16 %v583_v20, %v582_v12  ;;  %v590_v12 = vld [vmem:[#allocation2 + $0x109] sm:$0xff]  ;;  %v591_v20 = vld [vmem:[#allocation2 + $0x111] sm:$0xff] }
 0x149   : > { %v6298_v22 = vpop.permute.xlu1 %4480  ;;  %4700 = vrot.lane.b32.xlu0 %v4699_v63, %s5518_s30  ;;  %v585_v63 = vld [vmem:[#allocation2 + $0xc9] sm:$0xff]  ;;  %v4744_v3 = vpack.i.bf16 %v591_v20, %v590_v12  ;;  %v599_v20 = vld [vmem:[#allocation2 + $0x171] sm:$0xff] }
 0x14a   : > { %v4729_v16 = vpack.i.bf16 %v585_v63, %v584_v53  ;;  %v595_v53 = vld [vmem:[#allocation2 + $0x141] sm:$0xff]  ;;  %v598_v12 = vld [vmem:[#allocation2 + $0x169] sm:$0xff] }
 0x14b   : > { %v6301_v37 = vpop.permute.xlu0 %4490 }
 0x14c   : > { %8724 = vst [vmem:[#allocation46_spill] sm:$0xff] %v6301_v37 }
 0x14d   : > { %4710 = vrot.lane.b32.xlu2 %v4709_v17, %s5518_s30  ;;  %v588_v17 = vld [vmem:[#allocation2 + $0xf1] sm:$0xff] }
 0x14f   : > { %4705 = vrot.lane.b32.xlu1 %v4704_v6, %s5518_s30  ;;  %v6305_v58 = vpop.permute.xlu2 %4545  ;;  %v586_v6 = vld [vmem:[#allocation2 + $0xd9] sm:$0xff] }
 0x150   : > { %8725 = vst [vmem:[#allocation47_spill] sm:$0xff] %v6305_v58  ;;  %v587_v58 = vld [vmem:[#allocation2 + $0xe1] sm:$0xff] }
 0x151   : > { %v6307_v44 = vpop.permute.xlu1 %4495  ;;  %4715 = vrot.lane.b32.xlu0 %v4714_v42, %s5518_s30  ;;  %v4739_v42 = vpack.i.bf16 %v589_v27, %v588_v17  ;;  %v4734_v54 = vpack.i.bf16 %v587_v58, %v586_v6  ;;  %v596_v17 = vld [vmem:[#allocation2 + $0x151] sm:$0xff]  ;;  %v597_v27 = vld [vmem:[#allocation2 + $0x159] sm:$0xff] }
 0x152   : > { %8726 = vst [vmem:[#allocation48_spill] sm:$0xff] %v6307_v44  ;;  %v4759_v6 = vpack.i.bf16 %v597_v27, %v596_v17  ;;  %v604_v27 = vld [vmem:[#allocation2 + $0x32] sm:$0xff] }
 0x153   : > { %v6310_v37 = vpop.permute.xlu0 %4505 }
 0x154   : > { %8727 = vst [vmem:[#allocation49_spill] sm:$0xff] %v6310_v37 }
 0x155   : > { %4725 = vrot.lane.b32.xlu2 %v4724_v35, %s5518_s30  ;;  %v594_v35 = vld [vmem:[#allocation2 + $0x139] sm:$0xff] }
 0x157   : > { %4720 = vrot.lane.b32.xlu1 %v4719_v0, %s5518_s30  ;;  %v6314_v59 = vpop.permute.xlu2 %4560  ;;  %v592_v0 = vld [vmem:[#allocation2 + $0x121] sm:$0xff] }
 0x158   : > { %8728 = vst [vmem:[#allocation50_spill] sm:$0xff] %v6314_v59  ;;  %v4749_v58 = vpack.i.bf16 %v593_v48, %v592_v0  ;;  %v606_v0 = vld [vmem:[#allocation2 + $0x4a] sm:$0xff] }
 0x159   : > { %v6316_v44 = vpop.permute.xlu1 %4510  ;;  %4730 = vrot.lane.b32.xlu0 %v4729_v16, %s5518_s30  ;;  %v4754_v16 = vpack.i.bf16 %v595_v53, %v594_v35  ;;  %v603_v35 = vld [vmem:[#allocation2 + $0x1a1] sm:$0xff] }
 0x15a   : > { %8729 = vst [vmem:[#allocation51_spill] sm:$0xff] %v6316_v44 }
 0x15b   : > { %v6319_v37 = vpop.permute.xlu0 %4520 }
 0x15c   : > { %8730 = vst [vmem:[#allocation52_spill] sm:$0xff] %v6319_v37 }
 0x15d   : > { %4740 = vrot.lane.b32.xlu2 %v4739_v42, %s5518_s30 }
 0x15f   : > { %4735 = vrot.lane.b32.xlu1 %v4734_v54, %s5518_s30  ;;  %v6323_v63 = vpop.permute.xlu2 %4575 }
 0x160   : > { %8731 = vst [vmem:[#allocation53_spill] sm:$0xff] %v6323_v63  ;;  %v617_v63 = vld [vmem:[#allocation2 + $0xca] sm:$0xff] }
 0x161   : > { %v6325_v44 = vpop.permute.xlu1 %4525  ;;  %4745 = vrot.lane.b32.xlu0 %v4744_v3, %s5518_s30  ;;  %v602_v3 = vld [vmem:[#allocation2 + $0x199] sm:$0xff] }
 0x162   : > { %8732 = vst [vmem:[#allocation54_spill] sm:$0xff] %v6325_v44  ;;  %v4764_v44 = vpack.i.bf16 %v599_v20, %v598_v12  ;;  %v4774_v48 = vpack.i.bf16 %v603_v35, %v602_v3  ;;  %v612_v3 = vld [vmem:[#allocation2 + $0x92] sm:$0xff] }
 0x163   : > { %v6328_v37 = vpop.permute.xlu0 %4535 }
 0x164   : > { %8733 = vst [vmem:[#allocation55_spill] sm:$0xff] %v6328_v37 }
 0x165   : > { %4755 = vrot.lane.b32.xlu2 %v4754_v16, %s5518_s30  ;;  %v607_v16 = vld [vmem:[#allocation2 + $0x52] sm:$0xff] }
 0x167   : > { %4750 = vrot.lane.b32.xlu1 %v4749_v58, %s5518_s30  ;;  %v6332_v42 = vpop.permute.xlu2 %4590  ;;  %v605_v58 = vld [vmem:[#allocation2 + $0x3a] sm:$0xff] }
 0x168   : > { %8734 = vst [vmem:[#allocation56_spill] sm:$0xff] %v6332_v42  ;;  %v4779_v20 = vpack.i.bf16 %v605_v58, %v604_v27 }
 0x169   : > { %v6334_v54 = vpop.permute.xlu1 %4540  ;;  %4760 = vrot.lane.b32.xlu0 %v4759_v6, %s5518_s30  ;;  %v4784_v6 = vpack.i.bf16 %v607_v16, %v606_v0  ;;  %v614_v0 = vld [vmem:[#allocation2 + $0xaa] sm:$0xff]  ;;  %v615_v16 = vld [vmem:[#allocation2 + $0xb2] sm:$0xff] }
 0x16a   : > { %8735 = vst [vmem:[#allocation57_spill] sm:$0xff] %v6334_v54  ;;  %v608_v54 = vld [vmem:[#allocation2 + $0x62] sm:$0xff] }
 0x16b   : > { %v6337_v53 = vpop.permute.xlu0 %4550 }
 0x16c   : > { %8736 = vst [vmem:[#allocation58_spill] sm:$0xff] %v6337_v53  ;;  %v609_v53 = vld [vmem:[#allocation2 + $0x6a] sm:$0xff] }
 0x16d   : > { %4770 = vrot.lane.b32.xlu2 %v6159_v5, %s5518_s30  ;;  %v4789_v5 = vpack.i.bf16 %v609_v53, %v608_v54  ;;  %v4804_v54 = vpack.i.bf16 %v615_v16, %v614_v0  ;;  %v618_v53 = vld [vmem:[#allocation2 + $0xda] sm:$0xff]  ;;  %v625_v0 = vld [vmem:[#allocation2 + $0x12a] sm:$0xff] }
 0x16f   : > { %4765 = vrot.lane.b32.xlu1 %v4764_v44, %s5518_s30  ;;  %v6342_v17 = vpop.permute.xlu2 %4605  ;;  %v613_v44 = vld [vmem:[#allocation2 + $0x9a] sm:$0xff] }
 0x170   : > { %8737 = vst [vmem:[#allocation59_spill] sm:$0xff] %v6342_v17  ;;  %v610_v17 = vld [vmem:[#allocation2 + $0x7a] sm:$0xff] }
 0x171   : > { %v6344_v42 = vpop.permute.xlu1 %4555  ;;  %4775 = vrot.lane.b32.xlu0 %v4774_v48, %s5518_s30  ;;  %v4799_v48 = vpack.i.bf16 %v613_v44, %v612_v3  ;;  %v620_v3 = vld [vmem:[#allocation2 + $0xf2] sm:$0xff]  ;;  %v621_v44 = vld [vmem:[#allocation2 + $0xfa] sm:$0xff] }
 0x172   : > { %8738 = vst [vmem:[#allocation60_spill] sm:$0xff] %v6344_v42  ;;  %v611_v42 = vld [vmem:[#allocation2 + $0x82] sm:$0xff] }
 0x173   : > { %v6347_v12 = vpop.permute.xlu0 %4565  ;;  %v4794_v58 = vpack.i.bf16 %v611_v42, %v610_v17  ;;  %v4819_v17 = vpack.i.bf16 %v621_v44, %v620_v3  ;;  %v631_v3 = vld [vmem:[#allocation2 + $0x172] sm:$0xff] }
 0x175   : > { %4785 = vrot.lane.b32.xlu2 %v4784_v6, %s5519_s6  ;;  %v619_v6 = vld [vmem:[#allocation2 + $0xe2] sm:$0xff] }
 0x177   : > { %4780 = vrot.lane.b32.xlu1 %v4779_v20, %s5519_s6  ;;  %v6351_v35 = vpop.permute.xlu2 %4620 }
 0x178   : > { %8739 = vst [vmem:[#allocation61_spill] sm:$0xff] %v6351_v35  ;;  %v616_v35 = vld [vmem:[#allocation2 + $0xc2] sm:$0xff] }
 0x179   : > { %v6353_v37 = vpop.permute.xlu1 %4570  ;;  %4790 = vrot.lane.b32.xlu0 %v4789_v5, %s5519_s6  ;;  %v4814_v5 = vpack.i.bf16 %v619_v6, %v618_v53  ;;  %v4809_v42 = vpack.i.bf16 %v617_v63, %v616_v35  ;;  %v626_v53 = vld [vmem:[#allocation2 + $0x13a] sm:$0xff]  ;;  %v627_v6 = vld [vmem:[#allocation2 + $0x142] sm:$0xff] }
 0x17a   : > { %8740 = vst [vmem:[#allocation62_spill] sm:$0xff] %v6353_v37  ;;  %v4834_v35 = vpack.i.bf16 %v627_v6, %v626_v53  ;;  %v4223_v53 = vunpack.i.h.bf16 %v5995_v50 }
 0x17b   : > { %v6356_v27 = vpop.permute.xlu0 %4580 }
 0x17d   : > { %4800 = vrot.lane.b32.xlu2 %v4799_v48, %s5519_s6  ;;  %v624_v48 = vld [vmem:[#allocation2 + $0x122] sm:$0xff] }
 0x17f   : > { %4795 = vrot.lane.b32.xlu1 %v4794_v58, %s5519_s6  ;;  %v6360_v20 = vpop.permute.xlu2 %4635  ;;  %v622_v58 = vld [vmem:[#allocation2 + $0x10a] sm:$0xff] }
 0x180   : > { %8741 = vst [vmem:[#allocation63_spill] sm:$0xff] %v6360_v20  ;;  %v623_v20 = vld [vmem:[#allocation2 + $0x112] sm:$0xff] }
 0x181   : > { %v6362_v37 = vpop.permute.xlu1 %4585  ;;  %4805 = vrot.lane.b32.xlu0 %v4804_v54, %s5519_s6  ;;  %v4829_v54 = vpack.i.bf16 %v625_v0, %v624_v48  ;;  %v4824_v63 = vpack.i.bf16 %v623_v20, %v622_v58  ;;  %v634_v58 = vld [vmem:[#allocation2 + $0x19a] sm:$0xff] }
 0x182   : > { %8742 = vst [vmem:[#allocation64_spill] sm:$0xff] %v6362_v37 }
 0x183   : > { %v6365_v47 = vpop.permute.xlu0 %4595 }
 0x184   : > { %8743 = vst [vmem:[#allocation65_spill] sm:$0xff] %v6365_v47 }
 0x185   : > { %4815 = vrot.lane.b32.xlu2 %v4814_v5, %s5519_s6  ;;  %v630_v5 = vld [vmem:[#allocation2 + $0x16a] sm:$0xff] }
 0x187   : > { %4810 = vrot.lane.b32.xlu1 %v4809_v42, %s5519_s6  ;;  %v6369_v16 = vpop.permute.xlu2 %4650  ;;  %v628_v42 = vld [vmem:[#allocation2 + $0x152] sm:$0xff] }
 0x188   : > { %8744 = vst [vmem:[#allocation66_spill] sm:$0xff] %v6369_v16  ;;  %v629_v16 = vld [vmem:[#allocation2 + $0x15a] sm:$0xff] }
 0x189   : > { %v6371_v37 = vpop.permute.xlu1 %4600  ;;  %4820 = vrot.lane.b32.xlu0 %v4819_v17, %s5519_s6  ;;  %v4844_v17 = vpack.i.bf16 %v631_v3, %v630_v5  ;;  %v4839_v0 = vpack.i.bf16 %v629_v16, %v628_v42  ;;  %v348_v16 = vld [vmem:[#allocation2 + $0x8] sm:$0xff]  ;;  %v4222_v5 = vunpack.i.l.bf16 %v5995_v50  ;;  %v4248_v3 = vunpack.i.h.bf16 %v5951_v4 }
 0x18a   : > { %8745 = vst [vmem:[#allocation67_spill] sm:$0xff] %v6371_v37  ;;  %v4247_v42 = vunpack.i.l.bf16 %v5951_v4  ;;  %v6407_v50 = vsel %vm258_vm0, %v348_v16, %v4223_v53  ;;  %v4293_v16 = vunpack.i.h.bf16 %v6065_v10 }
 0x18b   : > { %v6374_v47 = vpop.permute.xlu0 %4610 }
 0x18d   : > { %4830 = vrot.lane.b32.xlu2 %v4829_v54, %s5519_s6  ;;  %v635_v54 = vld [vmem:[#allocation2 + $0x1a2] sm:$0xff] }
 0x18f   : > { %4825 = vrot.lane.b32.xlu1 %v4824_v63, %s5519_s6  ;;  %v6378_v44 = vpop.permute.xlu2 %4665  ;;  %v4243_v63 = vunpack.i.h.bf16 %v5919_v49 }
 0x190   : > { %8746 = vst [vmem:[#allocation68_spill] sm:$0xff] %v6378_v44  ;;  %v4262_v44 = vunpack.i.l.bf16 %v5987_v7 }
 0x191   : > { %v6380_v37 = vpop.permute.xlu1 %4615  ;;  %4835 = vrot.lane.b32.xlu0 %v4834_v35, %s5519_s6  ;;  %v4242_v35 = vunpack.i.l.bf16 %v5919_v49  ;;  %v4232_v49 = vunpack.i.l.bf16 %v6037_v34 }
 0x192   : > { %8747 = vst [vmem:[#allocation69_spill] sm:$0xff] %v6380_v37  ;;  %v4233_v37 = vunpack.i.h.bf16 %v6037_v34  ;;  %v6425_v34 = vsel %vm258_vm0, %v5899_v39, %v4247_v42 }
 0x193   : > { %v6383_v48 = vpop.permute.xlu0 %4625  ;;  %v1668_v4 = vsel %vm258_vm0, %v5882_v29, %v4242_v35  ;;  %v8757_v35 = vld [vmem:[#allocation7_spill] sm:$0xff] }
 0x194   : > { %8748 = vst [vmem:[#allocation70_spill] sm:$0xff] %v6383_v48  ;;  %v4277_v48 = vunpack.i.l.bf16 %v6027_v46 }
 0x195   : > { %4845 = vrot.lane.b32.xlu2 %v4844_v17, %s5519_s6  ;;  %v4263_v17 = vunpack.i.h.bf16 %v5987_v7  ;;  %v4227_v7 = vunpack.i.l.bf16 %v6047_v19 }
 0x197   : > { %4840 = vrot.lane.b32.xlu1 %v4839_v0, %s5519_s6  ;;  %v6387_v20 = vpop.permute.xlu2 %4680  ;;  %v347_v0 = vld [vmem:[#allocation2] sm:$0xff]  ;;  %v6429_v29 = vsel %vm258_vm0, %v5933_v56, %v4263_v17  ;;  %v4237_v17 = vunpack.i.l.bf16 %v6071_v1 }
 0x198   : > { %8749 = vst [vmem:[#allocation71_spill] sm:$0xff] %v6387_v20  ;;  %v6413_v59 = vsel %vm258_vm0, %v347_v0, %v4222_v5  ;;  %v8758_v5 = vld [vmem:[#allocation4_spill] sm:$0xff]  ;;  %v4253_v0 = vunpack.i.h.bf16 %v6079_v13 }
 0x199   : > { %v6390_v6 = vpop.permute.xlu1 %4630  ;;  %4850 = vrot.lane.b32.xlu0 %v6231_v8, %s5519_s6  ;;  %v4278_v8 = vunpack.i.h.bf16 %v6027_v46  ;;  %v1669_v46 = vsel %vm258_vm0, %v5884_v30, %v4243_v63  ;;  %v8756_v63 = vld [vmem:[#allocation6_spill] sm:$0xff] }
 0x19a   : > { %8750 = vst [vmem:[#allocation72_spill] sm:$0xff] %v6390_v6  ;;  %v4854_v6 = vpack.i.bf16 %v635_v54, %v634_v58  ;;  %v4228_v58 = vunpack.i.h.bf16 %v6047_v19  ;;  %v6421_v54 = vsel %vm258_vm0, %v5901_v40, %v4248_v3  ;;  %v6436_v19 = vsel %vm258_vm0, %v5931_v55, %v4262_v44  ;;  %v8754_v40 = vld [vmem:[#allocation18_spill] sm:$0xff]  ;;  %v8759_v3 = vld [vmem:[#allocation5_spill] sm:$0xff] }
 0x19b   : > { %v6400_v20 = vpop.permute.xlu0 %4640  ;;  %v6440_v30 = vsel %vm258_vm0, %v5965_v24, %v4278_v8  ;;  %v6444_v39 = vsel %vm258_vm0, %v8754_v40, %v4277_v48  ;;  %v6448_v56 = vsel %vm258_vm0, %v8756_v63, %v4232_v49  ;;  %v4292_v55 = vunpack.i.l.bf16 %v6065_v10 }
 0x19c   : > { %8751 = vst [vmem:[#allocation73_spill] sm:$0xff] %v6400_v20  ;;  %v4238_v44 = vunpack.i.h.bf16 %v6071_v1  ;;  %v1662_v48 = vsel %vm258_vm0, %v8758_v5, %v4227_v7  ;;  %v1663_v42 = vsel %vm258_vm0, %v8759_v3, %v4228_v58  ;;  %v4258_v8 = vunpack.i.h.bf16 %v6099_v31  ;;  %v8761_v7 = vld [vmem:[#allocation25_spill] sm:$0xff]  ;;  %v8762_v5 = vld [vmem:[#allocation22_spill] sm:$0xff] }
 0x19d   : > { %8753 = vst [vmem:[#allocation75_spill] sm:$0xff] %v6440_v30  ;;  %v4308_v10 = vunpack.i.h.bf16 %v6093_v28  ;;  %v4307_v49 = vunpack.i.l.bf16 %v6093_v28  ;;  %v4257_v63 = vunpack.i.l.bf16 %v6099_v31  ;;  %v4267_v58 = vunpack.i.l.bf16 %v8761_v7 }
 0x19e   : > { %8755 = vst [vmem:[#allocation18_spill] sm:$0xff] %v6444_v39  ;;  %v4323_v1 = vunpack.i.h.bf16 %v6123_v18  ;;  %v6477_v3 = vsel %vm258_vm0, %v8762_v5, %v4293_v16  ;;  %v8764_v39 = vld [vmem:[#allocation9_spill] sm:$0xff]  ;;  %v4322_v31 = vunpack.i.l.bf16 %v6123_v18  ;;  %v4273_v16 = vunpack.i.h.bf16 %v6127_v38 }
 0x19f   : > { %4855 = vrot.lane.b32.xlu1 %v4854_v6, %s5519_s6  ;;  %v6432_v53 = vpop.permute.xlu2 %4695  ;;  %v6452_v6 = vsel %vm258_vm0, %v8757_v35, %v4233_v37  ;;  %v4252_v37 = vunpack.i.l.bf16 %v6079_v13  ;;  %v4268_v35 = vunpack.i.h.bf16 %v8761_v7  ;;  %v8763_v13 = vld [vmem:[#allocation21_spill] sm:$0xff]  ;;  %v6485_v28 = vsel %vm258_vm0, %v8764_v39, %v4238_v44  ;;  %v8770_v39 = vld [vmem:[#allocation11_spill] sm:$0xff] }
 0x1a0   : > { %8752 = vst [vmem:[#allocation74_spill] sm:$0xff] %v6432_v53  ;;  %v6481_v53 = vsel %vm258_vm0, %v8763_v13, %v4292_v55  ;;  %v8768_v7 = vld [vmem:[#allocation13_spill] sm:$0xff]  ;;  %v4272_v5 = vunpack.i.l.bf16 %v6127_v38  ;;  %v8769_v55 = vld [vmem:[#allocation12_spill] sm:$0xff]  ;;  %v1675_v44 = vsel %vm258_vm0, %v8770_v39, %v4258_v8  ;;  %v6505_v18 = vsel %vm1692_vm2, %v1662_v48, %v4307_v49  ;;  %v8777_v39 = vld [vmem:[#allocation14_spill] sm:$0xff] }
 0x1a1   : > { %v6457_v24 = vpop.permute.xlu1 %4645  ;;  %8765 = vst [vmem:[#allocation7_spill] sm:$0xff] %v6485_v28  ;;  %v6494_v20 = vsel %vm258_vm0, %v8768_v7, %v4253_v0  ;;  %v6500_v13 = vsel %vm258_vm0, %v8769_v55, %v4252_v37  ;;  %v8773_v0 = vld [vmem:[#allocation10_spill] sm:$0xff]  ;;  %v8774_v38 = vld [vmem:[#allocation17_spill] sm:$0xff]  ;;  %v8775_v37 = vld [vmem:[#allocation16_spill] sm:$0xff]  ;;  %v6525_v48 = vsel %vm1692_vm2, %v1669_v46, %v4323_v1  ;;  %v4328_v8 = vunpack.i.h.bf16 %v6169_v14 }
 0x1a2   : > { %v6514_v7 = vsel %vm258_vm0, %v8773_v0, %v4257_v63  ;;  %v6518_v28 = vsel %vm258_vm0, %v8774_v38, %v4268_v35  ;;  %v6522_v55 = vsel %vm258_vm0, %v8775_v37, %v4267_v58  ;;  %v8776_v63 = vld [vmem:[#allocation15_spill] sm:$0xff]  ;;  %v6540_v58 = vsel %vm258_vm0, %v8777_v39, %v4272_v5 }
 0x1a3   : > { %v6469_v40 = vpop.permute.xlu0 %4655  ;;  %v6536_v35 = vsel %vm258_vm0, %v8776_v63, %v4273_v16  ;;  %8778 = vst [vmem:[#allocation22_spill] sm:$0xff] %v6540_v58  ;;  %v4408_v46 = vunpack.i.h.bf16 %v6239_v9  ;;  %v4338_v1 = vunpack.i.h.bf16 %v6137_v23  ;;  %v4487_v0 = vunpack.i.l.bf16 %v6261_v41  ;;  %v8780_v16 = vld [vmem:[#allocation27_spill] sm:$0xff] }
 0x1a4   : > { %8760 = vst [vmem:[#allocation6_spill] sm:$0xff] %v6469_v40  ;;  %v8766_v40 = vld [vmem:[#allocation8_spill] sm:$0xff]  ;;  %v4288_v37 = vunpack.i.h.bf16 %v8780_v16  ;;  %v4568_v5 = vunpack.i.h.bf16 %v6347_v12  ;;  %v4567_v39 = vunpack.i.l.bf16 %v6347_v12 }
 0x1a5   : > { %v6490_v30 = vsel %vm258_vm0, %v8766_v40, %v4237_v17  ;;  %v6508_v17 = vsel %vm1692_vm2, %v1663_v42, %v4308_v10  ;;  %v6528_v42 = vsel %vm1692_vm2, %v1668_v4, %v4322_v31  ;;  %v4327_v10 = vunpack.i.l.bf16 %v6169_v14 }
 0x1a6   : > { %8767 = vst [vmem:[#allocation4_spill] sm:$0xff] %v6490_v30  ;;  %v4407_v4 = vunpack.i.l.bf16 %v6239_v9  ;;  %v4488_v14 = vunpack.i.h.bf16 %v6261_v41  ;;  %v1704_v9 = vsel %vm1692_vm2, %v6421_v54, %v4328_v8  ;;  %v4648_v30 = vunpack.i.h.bf16 %v6457_v24 }
 0x1a7   : > { %8771 = vst [vmem:[#allocation5_spill] sm:$0xff] %v6508_v17  ;;  %v6510_v40 = vpop.permute.xlu2 %4710  ;;  %v1703_v31 = vsel %vm1692_vm2, %v6425_v34, %v4327_v10  ;;  %v4647_v41 = vunpack.i.l.bf16 %v6457_v24  ;;  %v1737_v63 = vsel %vm1725_vm3, %v1704_v9, %v4408_v46  ;;  %v4342_v17 = vunpack.i.l.bf16 %v6181_v11 }
 0x1a8   : > { %8772 = vst [vmem:[#allocation25_spill] sm:$0xff] %v6510_v40  ;;  %v1736_v58 = vsel %vm1725_vm3, %v1703_v31, %v4407_v4  ;;  %v1770_v12 = vsel %vm1758_vm4, %v1737_v63, %v4488_v14  ;;  %v4422_v14 = vunpack.i.l.bf16 %v6251_v25  ;;  %v6581_v63 = vsel %vm1692_vm2, %v1675_v44, %v4338_v1 }
 0x1a9   : > { %v6532_v49 = vpop.permute.xlu1 %4660  ;;  %v1769_v40 = vsel %vm1758_vm4, %v1736_v58, %v4487_v0  ;;  %v1803_v8 = vsel %vm1791_vm5, %v1770_v12, %v4568_v5  ;;  %v4423_v58 = vunpack.i.h.bf16 %v6251_v25  ;;  %v4502_v5 = vunpack.i.l.bf16 %v6273_v61 }
 0x1aa   : > { %v1802_v34 = vsel %vm1791_vm5, %v1769_v40, %v4567_v39  ;;  %v1836_v46 = vsel %vm1824_vm6, %v1803_v8, %v4648_v30  ;;  %v4503_v30 = vunpack.i.h.bf16 %v6273_v61  ;;  %v4297_v9 = vunpack.i.l.bf16 %v6143_v45 }
 0x1ab   : > { %v6548_v38 = vpop.permute.xlu0 %4670  ;;  %v1835_v4 = vsel %vm1824_vm6, %v1802_v34, %v4647_v41  ;;  %v4353_v25 = vunpack.i.h.bf16 %v6149_v57  ;;  %v4583_v41 = vunpack.i.h.bf16 %v6356_v27  ;;  %v4582_v12 = vunpack.i.l.bf16 %v6356_v27 }
 0x1ac   : > { %8779 = vst [vmem:[#allocation21_spill] sm:$0xff] %v6548_v38  ;;  %v4343_v38 = vunpack.i.h.bf16 %v6181_v11  ;;  %v4298_v11 = vunpack.i.h.bf16 %v6143_v45  ;;  %v1709_v1 = vsel %vm1692_vm2, %v6436_v19, %v4342_v17  ;;  %v4662_v61 = vunpack.i.l.bf16 %v6532_v49 }
 0x1ad   : > { %v4303_v34 = vunpack.i.h.bf16 %v6151_v60  ;;  %v4302_v45 = vunpack.i.l.bf16 %v6151_v60  ;;  %v1742_v8 = vsel %vm1725_vm3, %v1709_v1, %v4422_v14  ;;  %v4313_v27 = vunpack.i.h.bf16 %v6155_v33 }
 0x1ae   : > { %v1710_v44 = vsel %vm1692_vm2, %v6429_v29, %v4343_v38  ;;  %v1775_v29 = vsel %vm1758_vm4, %v1742_v8, %v4502_v5  ;;  %v4368_v60 = vunpack.i.h.bf16 %v6163_v2  ;;  %v4367_v14 = vunpack.i.l.bf16 %v6163_v2  ;;  %v8781_v5 = vld [vmem:[#allocation20_spill] sm:$0xff] }
 0x1af   : > { %v4726_v54 = vpop.permute.xlu2 %4725  ;;  %v1808_v38 = vsel %vm1791_vm5, %v1775_v29, %v4582_v12  ;;  %v8782_v1 = vunpack.i.l.bf16 %v6137_v23  ;;  %v8786_v23 = vld [vmem:[#allocation23_spill] sm:$0xff] }
 0x1b0   : > { %v4728_v10 = vunpack.i.h.bf16 %v4726_v54  ;;  %v4727_v24 = vunpack.i.l.bf16 %v4726_v54  ;;  %v4663_v54 = vunpack.i.h.bf16 %v6532_v49  ;;  %v6638_v29 = vsel %vm258_vm0, %v8786_v23, %v4297_v9 }
 0x1b1   : > { %v6570_v31 = vpop.permute.xlu1 %4675  ;;  %v4483_v23 = vunpack.i.h.bf16 %v6298_v22 }
 0x1b2   : > { %v6575_v0 = vsel %vm1857_vm7, %v1835_v4, %v4727_v24  ;;  %v6578_v40 = vsel %vm1857_vm7, %v1836_v46, %v4728_v10  ;;  %v1743_v10 = vsel %vm1725_vm3, %v1710_v44, %v4423_v58  ;;  %v4312_v24 = vunpack.i.l.bf16 %v6155_v33 }
 0x1b3   : > { %v6586_v39 = vpop.permute.xlu0 %4685  ;;  %v1776_v19 = vsel %vm1758_vm4, %v1743_v10, %v4503_v30  ;;  %v1841_v58 = vsel %vm1824_vm6, %v1808_v38, %v4662_v61  ;;  %v1687_v30 = vsel %vm258_vm0, %v8781_v5, %v4288_v37  ;;  %v8783_v61 = vunpack.i.l.bf16 %v8780_v16  ;;  %v8785_v10 = vld [vmem:[#allocation24_spill] sm:$0xff] }
 0x1b4   : > { %v1809_v49 = vsel %vm1791_vm5, %v1776_v19, %v4583_v41  ;;  %v6620_v41 = vsel %vm1692_vm2, %v6514_v7, %v8782_v1  ;;  %v6634_v37 = vsel %vm258_vm0, %v8785_v10, %v4298_v11  ;;  %v6642_v7 = vsel %vm1692_vm2, %v6536_v35, %v4353_v25 }
 0x1b5   : > { %v1842_v44 = vsel %vm1824_vm6, %v1809_v49, %v4663_v54  ;;  %v8784_v54 = vld [vmem:[#allocation19_spill] sm:$0xff]  ;;  %v6648_v16 = vsel %vm1692_vm2, %v6407_v50, %v4303_v34  ;;  %v6656_v11 = vsel %vm1692_vm2, %v6452_v6, %v4313_v27  ;;  %v6660_v9 = vsel %vm1692_vm2, %v6448_v56, %v4312_v24  ;;  %v1943_v56 = vld [vmem:[%s8579_s1 + $0x10] sm:$0x3] }
 0x1b6   : > { %v1686_v8 = vsel %vm258_vm0, %v8784_v54, %v8783_v61  ;;  %v6663_v35 = vsel %vm1692_vm2, %v1687_v30, %v4368_v60  ;;  %v4383_v50 = vunpack.i.h.bf16 %v6175_v15  ;;  %v4373_v34 = vunpack.i.h.bf16 %v6205_v32 }
 0x1b7   : > { %v4741_v17 = vpop.permute.xlu2 %4740  ;;  %v6666_v25 = vsel %vm1692_vm2, %v1686_v8, %v4367_v14  ;;  %v4382_v6 = vunpack.i.l.bf16 %v6175_v15  ;;  %v4348_v27 = vunpack.i.h.bf16 %v6189_v26  ;;  %v4347_v24 = vunpack.i.l.bf16 %v6189_v26 }
 0x1b8   : > { %v4743_v4 = vunpack.i.h.bf16 %v4741_v17  ;;  %v4742_v46 = vunpack.i.l.bf16 %v4741_v17  ;;  %v6652_v17 = vsel %vm1692_vm2, %v6413_v59, %v4302_v45  ;;  %v4333_v59 = vunpack.i.h.bf16 %v6177_v43 }
 0x1b9   : > { %v6612_v33 = vpop.permute.xlu1 %4690  ;;  %v4332_v45 = vunpack.i.l.bf16 %v6177_v43  ;;  %v4372_v49 = vunpack.i.l.bf16 %v6205_v32  ;;  %v1722_v30 = vsel %vm1692_vm2, %v6477_v3, %v4373_v34  ;;  %v4403_v1 = vunpack.i.h.bf16 %v6229_v52 }
 0x1ba   : > { %v6623_v12 = vsel %vm1857_vm7, %v1841_v58, %v4742_v46  ;;  %v6626_v2 = vsel %vm1857_vm7, %v1842_v44, %v4743_v4  ;;  %v1957_v46 = vunpack.c.l.b16 %v1943_v56  ;;  %v4453_v58 = vunpack.i.h.bf16 %v6275_v62 }
 0x1bb   : > { %v6644_v19 = vpop.permute.xlu0 %4700  ;;  %v4452_v44 = vunpack.i.l.bf16 %v6275_v62  ;;  %v4402_v54 = vunpack.i.l.bf16 %v6229_v52  ;;  %v4533_v8 = vunpack.i.h.bf16 %v6296_v51  ;;  %v4532_v10 = vunpack.i.l.bf16 %v6296_v51  ;;  %v8787_v51 = vld [vmem:[#allocation50_spill] sm:$0xff] }
 0x1bc   : > { %v1960_v32 = vpack.c.b16 %v1957_v46, %v1957_v46  ;;  %v1721_v62 = vsel %vm1692_vm2, %v6481_v53, %v4372_v49  ;;  %v4482_v56 = vunpack.i.l.bf16 %v6298_v22  ;;  %v1755_v46 = vsel %vm1725_vm3, %v1722_v30, %v4453_v58  ;;  %v4185_v30 = vld [vmem:[%s8579_s1 + $0x8] sm:$0xff] }
 0x1bd   : > { %v1754_v14 = vsel %vm1725_vm3, %v1721_v62, %v4452_v44  ;;  %v4613_v52 = vunpack.i.h.bf16 %v6374_v47  ;;  %v4612_v5 = vunpack.i.l.bf16 %v6374_v47  ;;  %v4563_v60 = vunpack.i.h.bf16 %v8787_v51 }
 0x1be   : > { %v2014_v34 = vsel %vm2012_vm8, %v1960_v32, 0  ;;  %v4562_v53 = vunpack.i.l.bf16 %v8787_v51  ;;  %v4693_v49 = vunpack.i.h.bf16 %v6612_v33  ;;  %v4692_v22 = vunpack.i.l.bf16 %v6612_v33  ;;  %v8788_v51 = vld [vmem:[#allocation73_spill] sm:$0xff] }
 0x1bf   : > { %v6680_v4 = vpop.permute.xlu2 %4755  ;;  %2021 = vmatpush.bf16.msra.mxu0 %v2014_v34  ;;  %4190 = vmatpush.bf16.msra.mxu3 %v2014_v34  ;;  %v1735_v32 = vsel %vm1725_vm3, %v6525_v48, %v4403_v1  ;;  %v1734_v58 = vsel %vm1725_vm3, %v6528_v42, %v4402_v54  ;;  %v1787_v44 = vsel %vm1758_vm4, %v1754_v14, %v4532_v10  ;;  %v4643_v33 = vunpack.i.h.bf16 %v8788_v51 }
 0x1c0   : > { %v1788_v47 = vsel %vm1758_vm4, %v1755_v46, %v4533_v8  ;;  %v1767_v62 = vsel %vm1758_vm4, %v1734_v58, %v4482_v56  ;;  %v1768_v34 = vsel %vm1758_vm4, %v1735_v32, %v4483_v23  ;;  %v4642_v38 = vunpack.i.l.bf16 %v8788_v51 }
 0x1c1   : > { %v6690_v61 = vpop.permute.xlu1 %4705  ;;  %v1820_v1 = vsel %vm1791_vm5, %v1787_v44, %v4612_v5  ;;  %v1821_v42 = vsel %vm1791_vm5, %v1788_v47, %v4613_v52  ;;  %v1800_v8 = vsel %vm1791_vm5, %v1767_v62, %v4562_v53  ;;  %v1801_v10 = vsel %vm1791_vm5, %v1768_v34, %v4563_v60  ;;  %v4184_v52 = vld [vmem:[%s8579_s1] sm:$0xff]  ;;  %v8792_v62 = vld [vmem:[#allocation18_spill] sm:$0xff] }
 0x1c2   : > { %v1853_v56 = vsel %vm1824_vm6, %v1820_v1, %v4692_v22  ;;  %v1854_v23 = vsel %vm1824_vm6, %v1821_v42, %v4693_v49  ;;  %v6741_v60 = vsel %vm1725_vm3, %v6648_v16, %v4383_v50  ;;  %v6747_v53 = vsel %vm1725_vm3, %v6652_v17, %v4382_v6  ;;  %v8796_v34 = vld [vmem:[#allocation32_spill] sm:$0xff]  ;;  %v8797_v1 = vld [vmem:[#allocation33_spill] sm:$0xff] }
 0x1c3   : > { %v6699_v3 = vpop.permute.xlu0 %4715  ;;  %2022 = vmatpush.bf16.msra.mxu0 %v4185_v30  ;;  %4191 = vmatpush.bf16.msra.mxu3 %v4185_v30  ;;  %v1833_v49 = vsel %vm1824_vm6, %v1800_v8, %v4642_v38  ;;  %v1834_v22 = vsel %vm1824_vm6, %v1801_v10, %v4643_v33  ;;  %v1705_v16 = vsel %vm1692_vm2, %v6500_v13, %v4332_v45  ;;  %v8789_v45 = vunpack.i.h.bf16 %v6193_v21  ;;  %v8790_v38 = vld [vmem:[#allocation75_spill] sm:$0xff] }
 0x1c4   : > { %v1706_v50 = vsel %vm1692_vm2, %v6494_v20, %v4333_v59  ;;  %v1711_v6 = vsel %vm1692_vm2, %v6522_v55, %v4347_v24  ;;  %v1712_v13 = vsel %vm1692_vm2, %v6518_v28, %v4348_v27  ;;  %v8791_v43 = vunpack.i.l.bf16 %v6193_v21  ;;  %v8795_v27 = vld [vmem:[#allocation31_spill] sm:$0xff] }
 0x1c5   : > { %v6776_v30 = vsel %vm1692_vm2, %v8790_v38, %v8789_v45  ;;  %v8793_v59 = vunpack.i.l.bf16 %v6199_v36  ;;  %v8794_v26 = vunpack.i.h.bf16 %v6199_v36  ;;  %v4427_v24 = vunpack.i.l.bf16 %v8795_v27  ;;  %v8798_v8 = vld [vmem:[#allocation35_spill] sm:$0xff]  ;;  %v8802_v38 = vld [vmem:[#allocation41_spill] sm:$0xff] }
 0x1c6   : > { %v6782_v20 = vsel %vm1692_vm2, %v8792_v62, %v8791_v43  ;;  %v4378_v33 = vunpack.i.h.bf16 %v8796_v34  ;;  %v4377_v21 = vunpack.i.l.bf16 %v8796_v34  ;;  %v4387_v42 = vunpack.i.l.bf16 %v8797_v1 }
 0x1c7   : > { %v4771_v48 = vpop.permute.xlu2 %4770  ;;  %2023 = vmatpush.bf16.msra.mxu0 %v4184_v52  ;;  %4192 = vmatpush.bf16.msra.mxu3 %v4184_v52  ;;  %v6787_v55 = vsel %vm1725_vm3, %v1705_v16, %v8793_v59  ;;  %v6792_v28 = vsel %vm1725_vm3, %v1706_v50, %v8794_v26  ;;  %v4393_v10 = vunpack.i.h.bf16 %v8798_v8  ;;  %v4392_v36 = vunpack.i.l.bf16 %v8798_v8 }
 0x1c8   : > { %v4773_v14 = vunpack.i.h.bf16 %v4771_v48  ;;  %v4772_v54 = vunpack.i.l.bf16 %v4771_v48  ;;  %v4428_v48 = vunpack.i.h.bf16 %v8795_v27  ;;  %v6812_v50 = vsel %vm1725_vm3, %v1711_v6, %v4427_v24  ;;  %v8803_v24 = vld [vmem:[#allocation5_spill] sm:$0xff] }
 0x1c9   : > { %v4721_v46 = vpop.permute.xlu1 %4720  ;;  %v4448_v43 = vunpack.i.h.bf16 %v8802_v38  ;;  %v4447_v62 = vunpack.i.l.bf16 %v8802_v38  ;;  %v1723_v59 = vsel %vm1692_vm2, %v6638_v29, %v4377_v21  ;;  %v1724_v26 = vsel %vm1692_vm2, %v6634_v37, %v4378_v33 }
 0x1ca   : > { %v4723_v32 = vunpack.i.h.bf16 %v4721_v46  ;;  %v4722_v58 = vunpack.i.l.bf16 %v4721_v46  ;;  %v6729_v51 = vsel %vm1857_vm7, %v1853_v56, %v4772_v54  ;;  %v6732_v5 = vsel %vm1857_vm7, %v1854_v23, %v4773_v14  ;;  %v8799_v56 = vld [vmem:[#allocation36_spill] sm:$0xff] }
 0x1cb   : > { %v6751_v44 = vpop.permute.xlu0 %4730  ;;  %v4388_v54 = vunpack.i.h.bf16 %v8797_v1  ;;  %v4457_v23 = vunpack.i.l.bf16 %v8799_v56  ;;  %v4458_v46 = vunpack.i.h.bf16 %v8799_v56  ;;  %v6822_v27 = vsel %vm1725_vm3, %v1712_v13, %v4428_v48  ;;  %v8806_v56 = vld [vmem:[#allocation53_spill] sm:$0xff] }
 0x1cc   : > { %v1866_v15 = vsel %vm1857_vm7, %v1833_v49, %v4722_v58  ;;  %v1867_v17 = vsel %vm1857_vm7, %v1834_v22, %v4723_v32  ;;  %v8800_v32 = vld [vmem:[#allocation37_spill] sm:$0xff]  ;;  %v8801_v49 = vld [vmem:[#allocation38_spill] sm:$0xff]  ;;  %v6826_v34 = vsel %vm1725_vm3, %v6505_v18, %v4387_v42  ;;  %v1730_v8 = vsel %vm1725_vm3, %v6660_v9, %v4392_v36 }
 0x1cd   : > { %v4418_v58 = vunpack.i.h.bf16 %v8800_v32  ;;  %v4417_v52 = vunpack.i.l.bf16 %v8800_v32  ;;  %v4472_v22 = vunpack.i.l.bf16 %v8801_v49  ;;  %v4473_v45 = vunpack.i.h.bf16 %v8801_v49  ;;  %v8804_v42 = vld [vmem:[#allocation42_spill] sm:$0xff] }
 0x1ce   : > { %v6832_v1 = vsel %vm1725_vm3, %v8803_v24, %v4388_v54  ;;  %v1731_v29 = vsel %vm1725_vm3, %v6656_v11, %v4393_v10  ;;  %v1756_v37 = vsel %vm1725_vm3, %v1723_v59, %v4457_v23  ;;  %v1757_v13 = vsel %vm1725_vm3, %v1724_v26, %v4458_v46  ;;  %v8807_v32 = vld [vmem:[#allocation54_spill] sm:$0xff] }
 0x1cf   : > { %v6799_v14 = vpop.permute.xlu2 %4785  ;;  %v1741_v18 = vsel %vm1725_vm3, %v6581_v63, %v4418_v58  ;;  %v1740_v33 = vsel %vm1725_vm3, %v6620_v41, %v4417_v52  ;;  %v6845_v21 = vsel %vm1758_vm4, %v1730_v8, %v4472_v22  ;;  %v6848_v48 = vsel %vm1758_vm4, %v1731_v29, %v4473_v45  ;;  %v8805_v63 = vld [vmem:[#allocation48_spill] sm:$0xff] }
 0x1d0   : > { %v1753_v9 = vsel %vm1725_vm3, %v6663_v35, %v4448_v43  ;;  %v1752_v11 = vsel %vm1725_vm3, %v6666_v25, %v4447_v62  ;;  %v4463_v54 = vunpack.i.h.bf16 %v8804_v42  ;;  %v4462_v10 = vunpack.i.l.bf16 %v8804_v42  ;;  %v8808_v25 = vld [vmem:[#allocation55_spill] sm:$0xff] }
 0x1d1   : > { %v6809_v16 = vpop.permute.xlu1 %4735  ;;  %v4498_v36 = vunpack.i.h.bf16 %v8805_v63  ;;  %v4497_v41 = vunpack.i.l.bf16 %v8805_v63  ;;  %v4578_v23 = vunpack.i.h.bf16 %v8806_v56  ;;  %v4528_v58 = vunpack.i.h.bf16 %v8807_v32  ;;  %v8809_v62 = vld [vmem:[#allocation59_spill] sm:$0xff] }
 0x1d2   : > { %v4577_v52 = vunpack.i.l.bf16 %v8806_v56  ;;  %v4527_v22 = vunpack.i.l.bf16 %v8807_v32  ;;  %v4538_v45 = vunpack.i.h.bf16 %v8808_v25  ;;  %v4537_v38 = vunpack.i.l.bf16 %v8808_v25  ;;  %v8810_v56 = vld [vmem:[#allocation69_spill] sm:$0xff] }
 0x1d3   : > { %v6828_v6 = vpop.permute.xlu0 %4745  ;;  %v4608_v59 = vunpack.i.h.bf16 %v8809_v62  ;;  %v4607_v26 = vunpack.i.l.bf16 %v8809_v62  ;;  %v1773_v29 = vsel %vm1758_vm4, %v1740_v33, %v4497_v41  ;;  %v1774_v63 = vsel %vm1758_vm4, %v1741_v18, %v4498_v36 }
 0x1d4   : > { %v1806_v47 = vsel %vm1791_vm5, %v1773_v29, %v4577_v52  ;;  %v1807_v62 = vsel %vm1791_vm5, %v1774_v63, %v4578_v23  ;;  %v1786_v33 = vsel %vm1758_vm4, %v1753_v9, %v4528_v58  ;;  %v4738_v18 = vunpack.i.h.bf16 %v6809_v16 }
 0x1d5   : > { %v4737_v36 = vunpack.i.l.bf16 %v6809_v16  ;;  %v1789_v41 = vsel %vm1758_vm4, %v1756_v37, %v4537_v38  ;;  %v1790_v25 = vsel %vm1758_vm4, %v1757_v13, %v4538_v45  ;;  %v1819_v23 = vsel %vm1791_vm5, %v1786_v33, %v4608_v59  ;;  %v8812_v13 = vld [vmem:[#allocation74_spill] sm:$0xff] }
 0x1d6   : > { %v4618_v29 = vunpack.i.h.bf16 %v8810_v56  ;;  %v4687_v9 = vunpack.i.l.bf16 %v6586_v39  ;;  %v4698_v45 = vunpack.i.h.bf16 %v8812_v13 }
 0x1d7   : > { %v4801_v46 = vpop.permute.xlu2 %4800 }
 0x1d8   : > { %v4803_v49 = vunpack.i.h.bf16 %v4801_v46  ;;  %v4802_v35 = vunpack.i.l.bf16 %v4801_v46  ;;  %v4617_v46 = vunpack.i.l.bf16 %v8810_v56 }
 0x1d9   : > { %v6864_v43 = vpop.permute.xlu1 %4750 }
 0x1da   : > { %v6869_v24 = vsel %vm1890_vm9, %v1866_v15, %v4802_v35  ;;  %v6872_v8 = vsel %vm1890_vm9, %v1867_v17, %v4803_v49  ;;  %v8811_v15 = vld [vmem:[#allocation6_spill] sm:$0xff]  ;;  %v1785_v49 = vsel %vm1758_vm4, %v1752_v11, %v4527_v22  ;;  %v1822_v63 = vsel %vm1791_vm5, %v1789_v41, %v4617_v46 }
 0x1db   : > { %v6877_v32 = vpop.permute.xlu0 %4760  ;;  %v4658_v35 = vunpack.i.h.bf16 %v8811_v15  ;;  %v4657_v17 = vunpack.i.l.bf16 %v8811_v15  ;;  %v1818_v52 = vsel %vm1791_vm5, %v1785_v49, %v4607_v26  ;;  %v4688_v11 = vunpack.i.h.bf16 %v6586_v39 }
 0x1dc   : > { %v4697_v26 = vunpack.i.l.bf16 %v8812_v13 }
 0x1dd   : > { %v1839_v22 = vsel %vm1824_vm6, %v1806_v47, %v4657_v17  ;;  %v1840_v16 = vsel %vm1824_vm6, %v1807_v62, %v4658_v35  ;;  %v1823_v62 = vsel %vm1791_vm5, %v1790_v25, %v4618_v29  ;;  %v1851_v35 = vsel %vm1824_vm6, %v1818_v52, %v4687_v9  ;;  %v8814_v29 = vld [vmem:[#allocation61_spill] sm:$0xff] }
 0x1de   : > { %v1872_v56 = vsel %vm1857_vm7, %v1839_v22, %v4737_v36  ;;  %v1873_v46 = vsel %vm1857_vm7, %v1840_v16, %v4738_v18  ;;  %v1852_v17 = vsel %vm1824_vm6, %v1819_v23, %v4688_v11  ;;  %v8813_v16 = vld [vmem:[#allocation57_spill] sm:$0xff]  ;;  %v1855_v52 = vsel %vm1824_vm6, %v1822_v63, %v4697_v26 }
 0x1df   : > { %v4816_v58 = vpop.permute.xlu2 %4815  ;;  %v4542_v25 = vunpack.i.l.bf16 %v8813_v16  ;;  %v1856_v23 = vsel %vm1824_vm6, %v1823_v62, %v4698_v45  ;;  %v4623_v11 = vunpack.i.h.bf16 %v8814_v29  ;;  %v4622_v9 = vunpack.i.l.bf16 %v8814_v29  ;;  %v8816_v45 = vld [vmem:[#allocation40_spill] sm:$0xff] }
 0x1e0   : > { %v4818_v37 = vunpack.i.h.bf16 %v4816_v58  ;;  %v4817_v38 = vunpack.i.l.bf16 %v4816_v58  ;;  %v4702_v63 = vunpack.i.l.bf16 %v6644_v19  ;;  %v4437_v62 = vunpack.i.l.bf16 %v8816_v45 }
 0x1e1   : > { %v4766_v59 = vpop.permute.xlu1 %4765 }
 0x1e2   : > { %v4768_v15 = vunpack.i.h.bf16 %v4766_v59  ;;  %v4767_v49 = vunpack.i.l.bf16 %v4766_v59  ;;  %v6904_v39 = vsel %vm1890_vm9, %v1872_v56, %v4817_v38  ;;  %v6907_v47 = vsel %vm1890_vm9, %v1873_v46, %v4818_v37  ;;  %v8815_v59 = vld [vmem:[#allocation39_spill] sm:$0xff] }
 0x1e3   : > { %v4776_v33 = vpop.permute.xlu0 %4775  ;;  %v4543_v37 = vunpack.i.h.bf16 %v8813_v16 }
 0x1e4   : > { %v6915_v18 = vsel %vm1857_vm7, %v1851_v35, %v4767_v49  ;;  %v6918_v41 = vsel %vm1857_vm7, %v1852_v17, %v4768_v15  ;;  %v4778_v58 = vunpack.i.h.bf16 %v4776_v33  ;;  %v4777_v22 = vunpack.i.l.bf16 %v4776_v33  ;;  %v8817_v33 = vld [vmem:[#allocation43_spill] sm:$0xff] }
 0x1e5   : > { %v4703_v15 = vunpack.i.h.bf16 %v6644_v19  ;;  %v4438_v49 = vunpack.i.h.bf16 %v8816_v45  ;;  %v1760_v35 = vsel %vm1758_vm4, %v6741_v60, %v4463_v54  ;;  %v1759_v17 = vsel %vm1758_vm4, %v6747_v53, %v4462_v10  ;;  %v8818_v54 = vld [vmem:[#allocation44_spill] sm:$0xff] }
 0x1e6   : > { %v6927_v38 = vsel %vm1857_vm7, %v1855_v52, %v4777_v22  ;;  %v6930_v13 = vsel %vm1857_vm7, %v1856_v23, %v4778_v58  ;;  %v4518_v58 = vunpack.i.h.bf16 %v8817_v33  ;;  %v4517_v19 = vunpack.i.l.bf16 %v8817_v33 }
 0x1e7   : > { %v6936_v26 = vpop.permute.xlu2 %4830  ;;  %v1792_v22 = vsel %vm1791_vm5, %v1759_v17, %v4542_v25  ;;  %v1793_v16 = vsel %vm1791_vm5, %v1760_v35, %v4543_v37  ;;  %v4468_v42 = vunpack.i.h.bf16 %v8818_v54  ;;  %v4467_v36 = vunpack.i.l.bf16 %v8818_v54  ;;  %v8819_v25 = vld [vmem:[#allocation46_spill] sm:$0xff]  ;;  %v8820_v35 = vld [vmem:[#allocation47_spill] sm:$0xff] }
 0x1e8   : > { %v1825_v23 = vsel %vm1824_vm6, %v1792_v22, %v4622_v9  ;;  %v1826_v29 = vsel %vm1824_vm6, %v1793_v16, %v4623_v11  ;;  %v4493_v17 = vunpack.i.h.bf16 %v8819_v25  ;;  %v4492_v11 = vunpack.i.l.bf16 %v8819_v25 }
 0x1e9   : > { %v4781_v52 = vpop.permute.xlu1 %4780  ;;  %v1858_v10 = vsel %vm1857_vm7, %v1825_v23, %v4702_v63  ;;  %v1859_v33 = vsel %vm1857_vm7, %v1826_v29, %v4703_v15  ;;  %v4548_v22 = vunpack.i.h.bf16 %v8820_v35  ;;  %v4547_v16 = vunpack.i.l.bf16 %v8820_v35  ;;  %v8821_v63 = vld [vmem:[#allocation49_spill] sm:$0xff] }
 0x1ea   : > { %v4783_v45 = vunpack.i.h.bf16 %v4781_v52  ;;  %v4782_v60 = vunpack.i.l.bf16 %v4781_v52  ;;  %v1748_v54 = vsel %vm1725_vm3, %v6782_v20, %v4437_v62  ;;  %v1749_v15 = vsel %vm1725_vm3, %v6776_v30, %v4438_v49 }
 0x1eb   : > { %v6956_v53 = vpop.permute.xlu0 %4790  ;;  %v4508_v23 = vunpack.i.h.bf16 %v8821_v63  ;;  %v4507_v29 = vunpack.i.l.bf16 %v8821_v63  ;;  %v1761_v30 = vsel %vm1758_vm4, %v6826_v34, %v4467_v36  ;;  %v1762_v49 = vsel %vm1758_vm4, %v6832_v1, %v4468_v42  ;;  %v8825_v63 = vld [vmem:[#allocation66_spill] sm:$0xff] }
 0x1ec   : > { %v1891_v37 = vsel %vm1890_vm9, %v1858_v10, %v4782_v60  ;;  %v1892_v9 = vsel %vm1890_vm9, %v1859_v33, %v4783_v45  ;;  %v6973_v45 = vsel %vm1758_vm4, %v1748_v54, %v4517_v19  ;;  %v6976_v60 = vsel %vm1758_vm4, %v1749_v15, %v4518_v58  ;;  %v8822_v10 = vld [vmem:[#allocation62_spill] sm:$0xff] }
 0x1ed   : > { %v1923_v52 = vpack.c.bf16 %v1892_v9, %v1891_v37  ;;  %v4573_v33 = vunpack.i.h.bf16 %v8822_v10  ;;  %v4572_v25 = vunpack.i.l.bf16 %v8822_v10  ;;  %v1771_v19 = vsel %vm1758_vm4, %v6787_v55, %v4492_v11 }
 0x1ee   : > { %v1772_v58 = vsel %vm1758_vm4, %v6792_v28, %v4493_v17  ;;  %v1794_v9 = vsel %vm1791_vm5, %v1761_v30, %v4547_v16  ;;  %v1795_v35 = vsel %vm1791_vm5, %v1762_v49, %v4548_v22  ;;  %v1777_v34 = vsel %vm1758_vm4, %v6812_v50, %v4507_v29  ;;  %v8823_v28 = vld [vmem:[#allocation58_spill] sm:$0xff]  ;;  %v8826_v49 = vld [vmem:[#allocation64_spill] sm:$0xff] }
 0x1ef   : > { %4132 = vmatmul.msk.bf16.vlgmr.msra.gmra.mxu0 %vm1963_vm10, %v1923_v52  ;;  %v4846_v20 = vpop.permute.xlu2 %4845  ;;  %v1778_v1 = vsel %vm1758_vm4, %v6822_v27, %v4508_v23  ;;  %v4553_v42 = vunpack.i.h.bf16 %v8823_v28  ;;  %v1804_v17 = vsel %vm1791_vm5, %v1771_v19, %v4572_v25  ;;  %v1805_v11 = vsel %vm1791_vm5, %v1772_v58, %v4573_v33  ;;  %v8824_v16 = vld [vmem:[#allocation70_spill] sm:$0xff] }
 0x1f0   : > { %v4848_v62 = vunpack.i.h.bf16 %v4846_v20  ;;  %v4847_v37 = vunpack.i.l.bf16 %v4846_v20  ;;  %v4628_v27 = vunpack.i.h.bf16 %v8824_v16  ;;  %v4627_v54 = vunpack.i.l.bf16 %v8824_v16 }
 0x1f1   : > { %v6991_v52 = vpop.permute.xlu1 %4795  ;;  %v4653_v23 = vunpack.i.h.bf16 %v8825_v63  ;;  %v4708_v29 = vunpack.i.h.bf16 %v6690_v61  ;;  %v4707_v10 = vunpack.i.l.bf16 %v6690_v61  ;;  %v4788_v33 = vunpack.i.h.bf16 %v6799_v14 }
 0x1f2   : > { %v6999_v36 = vsel %vm1890_vm9, %v6915_v18, %v4847_v37  ;;  %v7003_v55 = vsel %vm1890_vm9, %v6918_v41, %v4848_v62  ;;  %v4652_v41 = vunpack.i.l.bf16 %v8825_v63  ;;  %v4787_v25 = vunpack.i.l.bf16 %v6799_v14  ;;  %v8827_v14 = vld [vmem:[#allocation65_spill] sm:$0xff] }
 0x1f3   : > { %v4806_v22 = vpop.permute.xlu0 %4805  ;;  %v4588_v62 = vunpack.i.h.bf16 %v8826_v49  ;;  %v4733_v37 = vunpack.i.h.bf16 %v6751_v44  ;;  %v4732_v19 = vunpack.i.l.bf16 %v6751_v44  ;;  %v4587_v58 = vunpack.i.l.bf16 %v8826_v49 }
 0x1f4   : > { %v4808_v18 = vunpack.i.h.bf16 %v4806_v22  ;;  %v4807_v15 = vunpack.i.l.bf16 %v4806_v22  ;;  %v4598_v22 = vunpack.i.h.bf16 %v8827_v14  ;;  %v1828_v16 = vsel %vm1824_vm6, %v1795_v35, %v4628_v27 }
 0x1f5   : > { %v1861_v44 = vsel %vm1857_vm7, %v1828_v16, %v4708_v29  ;;  %v4597_v46 = vunpack.i.l.bf16 %v8827_v14  ;;  %v4748_v16 = vunpack.i.h.bf16 %v6828_v6 }
 0x1f6   : > { %v7020_v20 = vsel %vm1890_vm9, %v6575_v0, %v4807_v15  ;;  %v7024_v30 = vsel %vm1890_vm9, %v6578_v40, %v4808_v18  ;;  %v1827_v0 = vsel %vm1824_vm6, %v1794_v9, %v4627_v54  ;;  %v1837_v40 = vsel %vm1824_vm6, %v1804_v17, %v4652_v41  ;;  %v8828_v9 = vld [vmem:[#allocation68_spill] sm:$0xff] }
 0x1f7   : > { %v1838_v18 = vsel %vm1824_vm6, %v1805_v11, %v4653_v23  ;;  %v1860_v63 = vsel %vm1857_vm7, %v1827_v0, %v4707_v10  ;;  %v1894_v49 = vsel %vm1890_vm9, %v1861_v44, %v4788_v33  ;;  %v4667_v54 = vunpack.i.l.bf16 %v8828_v9 }
 0x1f8   : > { %v1893_v61 = vsel %vm1890_vm9, %v1860_v63, %v4787_v25  ;;  %v1870_v17 = vsel %vm1857_vm7, %v1837_v40, %v4732_v19  ;;  %v1871_v11 = vsel %vm1857_vm7, %v1838_v18, %v4733_v37  ;;  %v4552_v10 = vunpack.i.l.bf16 %v8823_v28  ;;  %v8829_v18 = vld [vmem:[#allocation72_spill] sm:$0xff] }
 0x1f9   : > { %v4811_v15 = vpop.permute.xlu1 %4810  ;;  %v4668_v33 = vunpack.i.h.bf16 %v8828_v9  ;;  %v1924_v25 = vpack.c.bf16 %v1894_v49, %v1893_v61  ;;  %v1810_v19 = vsel %vm1791_vm5, %v1777_v34, %v4587_v58  ;;  %v4678_v37 = vunpack.i.h.bf16 %v6570_v31 }
 0x1fa   : > { %v4813_v50 = vunpack.i.h.bf16 %v4811_v15  ;;  %v4812_v56 = vunpack.i.l.bf16 %v4811_v15  ;;  %v4747_v61 = vunpack.i.l.bf16 %v6828_v6  ;;  %v1811_v58 = vsel %vm1791_vm5, %v1778_v1, %v4588_v62  ;;  %v8830_v1 = vld [vmem:[#allocation25_spill] sm:$0xff] }
 0x1fb   : > { %v4821_v35 = vpop.permute.xlu0 %4820  ;;  %v1843_v40 = vsel %vm1824_vm6, %v1810_v19, %v4667_v54  ;;  %v4633_v15 = vunpack.i.h.bf16 %v8829_v18  ;;  %v4758_v6 = vunpack.i.h.bf16 %v6680_v4  ;;  %v4757_v63 = vunpack.i.l.bf16 %v6680_v4 }
 0x1fc   : > { %v4823_v27 = vunpack.i.h.bf16 %v4821_v35  ;;  %v4822_v23 = vunpack.i.l.bf16 %v4821_v35  ;;  %v7046_v41 = vsel %vm1890_vm9, %v1870_v17, %v4812_v56  ;;  %v7049_v29 = vsel %vm1890_vm9, %v1871_v11, %v4813_v50 }
 0x1fd   : > { %v1929_v14 = vpack.c.bf16 %v7049_v29, %v7046_v41  ;;  %v4677_v50 = vunpack.i.l.bf16 %v6570_v31  ;;  %v1844_v31 = vsel %vm1824_vm6, %v1811_v58, %v4668_v33  ;;  %v4632_v49 = vunpack.i.l.bf16 %v8829_v18  ;;  %v8831_v58 = vld [vmem:[#allocation51_spill] sm:$0xff]  ;;  %v8833_v18 = vld [vmem:[#allocation22_spill] sm:$0xff] }
 0x1fe   : > { %v7059_v0 = vsel %vm1890_vm9, %v6623_v12, %v4822_v23  ;;  %v7063_v56 = vsel %vm1890_vm9, %v6626_v2, %v4823_v27  ;;  %v1814_v12 = vsel %vm1791_vm5, %v6973_v45, %v4597_v46  ;;  %v1815_v2 = vsel %vm1791_vm5, %v6976_v60, %v4598_v22 }
 0x1ff   : > { %4133 = vmatmul.msk.bf16.gmra.mxu0 %vm1963_vm10, %v1924_v25  ;;  %v1931_v34 = vpack.c.bf16 %v7063_v56, %v7059_v0  ;;  %v4713_v62 = vunpack.i.h.bf16 %v8830_v1  ;;  %v1847_v45 = vsel %vm1824_vm6, %v1814_v12, %v4677_v50  ;;  %v1848_v60 = vsel %vm1824_vm6, %v1815_v2, %v4678_v37 }
 0x200   : > { %v1876_v54 = vsel %vm1857_vm7, %v1843_v40, %v4747_v61  ;;  %v1877_v35 = vsel %vm1857_vm7, %v1844_v31, %v4748_v16  ;;  %v4712_v23 = vunpack.i.l.bf16 %v8830_v1  ;;  %v1880_v25 = vsel %vm1857_vm7, %v1847_v45, %v4757_v63  ;;  %v8834_v63 = vld [vmem:[#allocation28_spill] sm:$0xff] }
 0x201   : > { %v4826_v44 = vpop.permute.xlu1 %4825  ;;  %v1881_v19 = vsel %vm1857_vm7, %v1848_v60, %v4758_v6  ;;  %v4793_v37 = vunpack.i.h.bf16 %v6956_v53  ;;  %v4792_v50 = vunpack.i.l.bf16 %v6956_v53  ;;  %v4512_v12 = vunpack.i.l.bf16 %v8831_v58 }
 0x202   : > { %v4828_v9 = vunpack.i.h.bf16 %v4826_v44  ;;  %v4827_v46 = vunpack.i.l.bf16 %v4826_v44  ;;  %v1796_v2 = vsel %vm1791_vm5, %v6845_v21, %v4552_v10  ;;  %v1797_v40 = vsel %vm1791_vm5, %v6848_v48, %v4553_v42 }
 0x203   : > { %v4836_v22 = vpop.permute.xlu0 %4835  ;;  %v8832_v31 = vunpack.i.l.bf16 %v6149_v57  ;;  %v4318_v44 = vunpack.i.h.bf16 %v8834_v63  ;;  %v1829_v1 = vsel %vm1824_vm6, %v1796_v2, %v4632_v49  ;;  %v1830_v21 = vsel %vm1824_vm6, %v1797_v40, %v4633_v15  ;;  %v8835_v57 = vld [vmem:[#allocation29_spill] sm:$0xff] }
 0x204   : > { %v4838_v17 = vunpack.i.h.bf16 %v4836_v22  ;;  %v4837_v11 = vunpack.i.l.bf16 %v4836_v22  ;;  %v1909_v4 = vsel %vm1890_vm9, %v1876_v54, %v4827_v46  ;;  %v1910_v27 = vsel %vm1890_vm9, %v1877_v35, %v4828_v9 }
 0x205   : > { %v1932_v33 = vpack.c.bf16 %v1910_v27, %v1909_v4  ;;  %v1713_v6 = vsel %vm1692_vm2, %v8833_v18, %v8832_v31  ;;  %v4317_v28 = vunpack.i.l.bf16 %v8834_v63  ;;  %v4513_v48 = vunpack.i.h.bf16 %v8831_v58  ;;  %v8839_v27 = vld [vmem:[#allocation21_spill] sm:$0xff] }
 0x206   : > { %v7095_v61 = vsel %vm1890_vm9, %v1880_v25, %v4837_v11  ;;  %v7098_v16 = vsel %vm1890_vm9, %v1881_v19, %v4838_v17  ;;  %v1862_v10 = vsel %vm1857_vm7, %v1829_v1, %v4712_v23  ;;  %v1863_v9 = vsel %vm1857_vm7, %v1830_v21, %v4713_v62  ;;  %v8838_v17 = vld [vmem:[#allocation56_spill] sm:$0xff] }
 0x207   : > { %4141 = vmatmul.msk.bf16.vlgmr.msra.gmra.mxu3 %vm1963_vm10, %v1932_v33  ;;  %v1934_v53 = vpack.c.bf16 %v7098_v16, %v7095_v61  ;;  %v4398_v46 = vunpack.i.h.bf16 %v8835_v57  ;;  %v8836_v45 = vunpack.i.l.bf16 %v8815_v59  ;;  %v1895_v49 = vsel %vm1890_vm9, %v1862_v10, %v4792_v50  ;;  %v8849_v16 = vld [vmem:[#allocation67_spill] sm:$0xff] }
 0x208   : > { %v1896_v15 = vsel %vm1890_vm9, %v1863_v9, %v4793_v37  ;;  %v8837_v22 = vunpack.i.h.bf16 %v8815_v59  ;;  %v4593_v11 = vunpack.i.h.bf16 %v8838_v17  ;;  %v4592_v62 = vunpack.i.l.bf16 %v8838_v17 }
 0x209   : > { %v7119_v42 = vpop.permute.xlu1 %4840  ;;  %v1746_v60 = vsel %vm1725_vm3, %v1713_v6, %v8836_v45  ;;  %v4673_v23 = vunpack.i.h.bf16 %v8839_v27  ;;  %v4672_v33 = vunpack.i.l.bf16 %v8839_v27  ;;  %v4753_v59 = vunpack.i.h.bf16 %v6864_v43 }
 0x20a   : > { %v1747_v54 = vsel %vm1725_vm3, %v6642_v7, %v8837_v22  ;;  %v1779_v35 = vsel %vm1758_vm4, %v1746_v60, %v4512_v12  ;;  %v4752_v50 = vunpack.i.l.bf16 %v6864_v43  ;;  %v1925_v7 = vpack.c.bf16 %v1896_v15, %v1895_v49 }
 0x20b   : > { %v4851_v4 = vpop.permute.xlu0 %4850  ;;  %v1780_v37 = vsel %vm1758_vm4, %v1747_v54, %v4513_v48  ;;  %v4833_v58 = vunpack.i.h.bf16 %v6936_v26  ;;  %v4832_v12 = vunpack.i.l.bf16 %v6936_v26  ;;  %v4397_v31 = vunpack.i.l.bf16 %v8835_v57  ;;  %v8840_v26 = vld [vmem:[#allocation4_spill] sm:$0xff]  ;;  %v8842_v48 = vld [vmem:[#allocation45_spill] sm:$0xff] }
 0x20c   : > { %v4853_v25 = vunpack.i.h.bf16 %v4851_v4  ;;  %v4852_v19 = vunpack.i.l.bf16 %v4851_v4  ;;  %v1812_v18 = vsel %vm1791_vm5, %v1779_v35, %v4592_v62  ;;  %v1813_v6 = vsel %vm1791_vm5, %v1780_v37, %v4593_v11  ;;  %v8843_v35 = vld [vmem:[#allocation60_spill] sm:$0xff]  ;;  %v8844_v62 = vld [vmem:[#allocation63_spill] sm:$0xff] }
 0x20d   : > { %v1699_v63 = vsel %vm1692_vm2, %v8840_v26, %v4317_v28  ;;  %v1846_v21 = vsel %vm1824_vm6, %v1813_v6, %v4673_v23  ;;  %v4478_v10 = vunpack.i.h.bf16 %v8842_v48  ;;  %v4477_v9 = vunpack.i.l.bf16 %v8842_v48 }
 0x20e   : > { %v7145_v2 = vsel %vm1890_vm9, %v6729_v51, %v4852_v19  ;;  %v7149_v40 = vsel %vm1890_vm9, %v6732_v5, %v4853_v25  ;;  %v8841_v51 = vld [vmem:[#allocation7_spill] sm:$0xff]  ;;  %v1845_v5 = vsel %vm1824_vm6, %v1812_v18, %v4672_v33  ;;  %v1879_v60 = vsel %vm1857_vm7, %v1846_v21, %v4753_v59 }
 0x20f   : > { %4134 = vmatmul.msk.bf16.gmra.mxu0 %vm1963_vm10, %v1925_v7  ;;  %v1937_v43 = vpack.c.bf16 %v7149_v40, %v7145_v2  ;;  %v1700_v1 = vsel %vm1692_vm2, %v8841_v51, %v4318_v44  ;;  %v1878_v45 = vsel %vm1857_vm7, %v1845_v5, %v4752_v50  ;;  %v1912_v22 = vsel %vm1890_vm9, %v1879_v60, %v4833_v58  ;;  %v8846_v5 = vld [vmem:[#allocation30_spill] sm:$0xff] }
 0x210   : > { %v1911_v28 = vsel %vm1890_vm9, %v1878_v45, %v4832_v12  ;;  %v1733_v44 = vsel %vm1725_vm3, %v1700_v1, %v4398_v46  ;;  %v1732_v54 = vsel %vm1725_vm3, %v1699_v63, %v4397_v31  ;;  %v4558_v17 = vunpack.i.h.bf16 %v8843_v35  ;;  %v8848_v45 = vld [vmem:[#allocation52_spill] sm:$0xff] }
 0x211   : > { %v4856_v57 = vpop.permute.xlu1 %4855  ;;  %v4557_v11 = vunpack.i.l.bf16 %v8843_v35  ;;  %v4638_v4 = vunpack.i.h.bf16 %v8844_v62  ;;  %v4637_v27 = vunpack.i.l.bf16 %v8844_v62  ;;  %v4718_v46 = vunpack.i.h.bf16 %v6699_v3 }
 0x212   : > { %v4858_v49 = vunpack.i.h.bf16 %v4856_v57  ;;  %v4857_v15 = vunpack.i.l.bf16 %v4856_v57  ;;  %v4717_v25 = vunpack.i.l.bf16 %v6699_v3  ;;  %v1933_v19 = vpack.c.bf16 %v1912_v22, %v1911_v28  ;;  %v5502_v22 = vld [vmem:[#allocation2 + $0x120] sm:$0xff] }
 0x213   : > { %v1766_v59 = vsel %vm1758_vm4, %v1733_v44, %v4478_v10  ;;  %v1765_v50 = vsel %vm1758_vm4, %v1732_v54, %v4477_v9  ;;  %v4798_v7 = vunpack.i.h.bf16 %v6991_v52  ;;  %v4363_v21 = vunpack.i.h.bf16 %v8846_v5  ;;  %v8847_v10 = vld [vmem:[#allocation34_spill] sm:$0xff] }
 0x214   : > { %v7177_v23 = vsel %vm1890_vm9, %v6927_v38, %v4857_v15  ;;  %v7181_v33 = vsel %vm1890_vm9, %v6930_v13, %v4858_v49  ;;  %v4797_v38 = vunpack.i.l.bf16 %v6991_v52  ;;  %v1798_v58 = vsel %vm1791_vm5, %v1765_v50, %v4557_v11  ;;  %v8845_v52 = vld [vmem:[#allocation26_spill] sm:$0xff]  ;;  %v5501_v15 = vld [vmem:[#allocation2 + $0x128] sm:$0xff] }
 0x215   : > { %v1938_v37 = vpack.c.bf16 %v7181_v33, %v7177_v23  ;;  %v1799_v13 = vsel %vm1791_vm5, %v1766_v59, %v4558_v17  ;;  %v1831_v3 = vsel %vm1824_vm6, %v1798_v58, %v4637_v27  ;;  %v4283_v51 = vunpack.i.h.bf16 %v8845_v52  ;;  %v8850_v17 = vld [vmem:[#allocation71_spill] sm:$0xff] }
 0x216   : > { %v1832_v12 = vsel %vm1824_vm6, %v1799_v13, %v4638_v4  ;;  %v1864_v31 = vsel %vm1857_vm7, %v1831_v3, %v4717_v25  ;;  %v4282_v1 = vunpack.i.l.bf16 %v8845_v52  ;;  %v4362_v48 = vunpack.i.l.bf16 %v8846_v5 }
 0x217   : > { %4142 = vmatmul.msk.bf16.gmra.mxu3 %vm1963_vm10, %v1933_v19  ;;  %v1865_v18 = vsel %vm1857_vm7, %v1832_v12, %v4718_v46  ;;  %v1897_v6 = vsel %vm1890_vm9, %v1864_v31, %v4797_v38  ;;  %v4443_v9 = vunpack.i.h.bf16 %v8847_v10  ;;  %v4442_v57 = vunpack.i.l.bf16 %v8847_v10 }
 0x218   : > { %v1898_v26 = vsel %vm1890_vm9, %v1865_v18, %v4798_v7  ;;  %v4523_v60 = vunpack.i.h.bf16 %v8848_v45  ;;  %v4522_v49 = vunpack.i.l.bf16 %v8848_v45  ;;  %v1685_v28 = vsel %vm258_vm0, %v5501_v15, %v4283_v51 }
 0x219   : > { %v1926_v63 = vpack.c.bf16 %v1898_v26, %v1897_v6  ;;  %v1684_v61 = vsel %vm258_vm0, %v5502_v22, %v4282_v1  ;;  %v4602_v44 = vunpack.i.l.bf16 %v8849_v16  ;;  %v1718_v35 = vsel %vm1692_vm2, %v1685_v28, %v4363_v21 }
 0x21a   : > { %v1717_v54 = vsel %vm1692_vm2, %v1684_v61, %v4362_v48  ;;  %v4683_v11 = vunpack.i.h.bf16 %v8850_v17  ;;  %v4682_v62 = vunpack.i.l.bf16 %v8850_v17  ;;  %v1751_v27 = vsel %vm1725_vm3, %v1718_v35, %v4443_v9 }
 0x21b   : > { %v1750_v4 = vsel %vm1725_vm3, %v1717_v54, %v4442_v57  ;;  %v4763_v46 = vunpack.i.h.bf16 %v6877_v32  ;;  %v4762_v25 = vunpack.i.l.bf16 %v6877_v32  ;;  %v1784_v59 = vsel %vm1758_vm4, %v1751_v27, %v4523_v60 }
 0x21c   : > { %v1783_v19 = vsel %vm1758_vm4, %v1750_v4, %v4522_v49  ;;  %v4843_v50 = vunpack.i.h.bf16 %v7119_v42  ;;  %v4842_v7 = vunpack.i.l.bf16 %v7119_v42  ;;  %v8851_v13 = vpack.c.bf16 %v6872_v8, %v6869_v24 }
 0x21d   : > { %v1816_v38 = vsel %vm1791_vm5, %v1783_v19, %v4602_v44  ;;  %v8852_v24 = vpack.c.bf16 %v7024_v30, %v7020_v20  ;;  %v8853_v8 = vpack.c.bf16 %v7003_v55, %v6999_v36  ;;  %v8854_v26 = vmov 0.0  }
 0x21e   : > { %v1849_v3 = vsel %vm1824_vm6, %v1816_v38, %v4682_v62  ;;  %2143 = vst.msk [vmem:[#allocation3 + $0x28] sm:$0x3] %vm2139_vm11, %v8854_v26  ;;  %v8855_v36 = vpack.c.bf16 %v6907_v47, %v6904_v39  ;;  %v7303_v39 = vld [vmem:[%s8580_s2] ss:$0 sm:$0xff]  ;;  %vm3765_vm0 = vcmask 523264  }
 0x21f   : > { %4135 = vmatmul.msk.bf16.gmra.mxu0 %vm1963_vm10, %v1926_v63  ;;  %v1882_v12 = vsel %vm1857_vm7, %v1849_v3, %v4762_v25  ;;  %2140 = vst.msk [vmem:[#allocation3 + $0x10] sm:$0x3] %vm2139_vm11, %v8854_v26 }
 0x220   : > { %v1915_v18 = vsel %vm1890_vm9, %v1882_v12, %v4842_v7  ;;  %2146 = vst.msk [vmem:[#allocation3 + $0x40] sm:$0x3] %vm2139_vm11, %v8854_v26 }
 0x221   : > { %2149 = vst.msk [vmem:[#allocation3 + $0x58] sm:$0x3] %vm2139_vm11, %v8854_v26 }
 0x222   : > { %2152 = vst.msk [vmem:[#allocation3 + $0x70] sm:$0x3] %vm2139_vm11, %v8854_v26 }
 0x223   : > { %2155 = vst.msk [vmem:[#allocation3 + $0x88] sm:$0x3] %vm2139_vm11, %v8854_v26 }
 0x224   : > { %2158 = vst.msk [vmem:[#allocation3 + $0xa0] sm:$0x3] %vm2139_vm11, %v8854_v26 }
 0x225   : > { %2161 = vst.msk [vmem:[#allocation3 + $0xb8] sm:$0x3] %vm2139_vm11, %v8854_v26 }
 0x226   : > { %2164 = vst.msk [vmem:[#allocation3 + $0xd0] sm:$0x3] %vm2139_vm11, %v8854_v26  ;;  %v2258_v2 = vld [vmem:[#allocation3 + $0x9] sm:$0xff] }
 0x227   : > { %4143 = vmatmul.msk.bf16.gmra.mxu3 %vm1963_vm10, %v1934_v53  ;;  %v4603_v53 = vunpack.i.h.bf16 %v8849_v16  ;;  %2167 = vst.msk [vmem:[#allocation3 + $0xe8] sm:$0x3] %vm2139_vm11, %v8854_v26 }
 0x228   : > { %2170 = vst.msk [vmem:[#allocation3 + $0x100] sm:$0x3] %vm2139_vm11, %v8854_v26 }
 0x229   : > { %v1817_v58 = vsel %vm1791_vm5, %v1784_v59, %v4603_v53  ;;  %2173 = vst.msk [vmem:[#allocation3 + $0x118] sm:$0x3] %vm2139_vm11, %v8854_v26 }
 0x22a   : > { %v1850_v32 = vsel %vm1824_vm6, %v1817_v58, %v4683_v11  ;;  %2176 = vst.msk [vmem:[#allocation3 + $0x130] sm:$0x3] %vm2139_vm11, %v8854_v26 }
 0x22b   : > { %v1883_v31 = vsel %vm1857_vm7, %v1850_v32, %v4763_v46  ;;  %2179 = vst.msk [vmem:[#allocation3 + $0x148] sm:$0x3] %vm2139_vm11, %v8854_v26 }
 0x22c   : > { %v1916_v42 = vsel %vm1890_vm9, %v1883_v31, %v4843_v50  ;;  %2182 = vst.msk [vmem:[#allocation3 + $0x160] sm:$0x3] %vm2139_vm11, %v8854_v26 }
 0x22d   : > { %v1935_v6 = vpack.c.bf16 %v1916_v42, %v1915_v18  ;;  %2185 = vst.msk [vmem:[#allocation3 + $0x178] sm:$0x3] %vm2139_vm11, %v8854_v26 }
 0x22e   : > { %2188 = vst.msk [vmem:[#allocation3 + $0x190] sm:$0x3] %vm2139_vm11, %v8854_v26 }
 0x22f   : > { %4136 = vmatmul.msk.bf16.gmra.mxu0 %vm1963_vm10, %v8851_v13  ;;  %2191 = vst.msk [vmem:[#allocation3 + $0x1a8] sm:$0x3] %vm2139_vm11, %v8854_v26 }
 0x237   : > { %4144 = vmatmul.msk.bf16.gmra.mxu3 %vm1963_vm10, %v1935_v6 }
 0x23f   : > { %4137 = vmatmul.msk.bf16.gmra.mxu0 %vm1963_vm10, %v8852_v24 }
 0x247   : > { %4145 = vmatmul.msk.bf16.gmra.mxu3 %vm1963_vm10, %v8853_v8 }
 0x24f   : > { %4138 = vmatmul.msk.bf16.gmra.mxu0 %vm1963_vm10, %v1929_v14  ;;  %v2257_v14 = vld [vmem:[#allocation3 + $0x1] sm:$0xff] }
 0x250   : > { %v4859_v40 = vpack.i.bf16 %v2258_v2, %v2257_v14 }
 0x252   : > { %4860 = vrot.lane.b32.xlu2 %v4859_v40, %s5513_s25 }
 0x257   : > { %4146 = vmatmul.msk.bf16.gmra.mxu3 %vm1963_vm10, %v1937_v43 }
 0x25f   : > { %4139 = vmatmul.msk.bf16.gmra.mxu0 %vm1963_vm10, %v8855_v36 }
 0x267   : > { %4147 = vmatmul.msk.bf16.gmra.mxu3 %vm1963_vm10, %v1938_v37 }
 0x26c   : > { %v2025_v47 = vpop.f32.mrf.mxu0 }
 0x26d   : > { %v2026_v55 = vadd.f32 %v7303_v39, %v2025_v47 }
 0x26f   : > { %v2105_v20 = vmax.f32 %v2026_v55, 0.0  ;;  %4140 = vmatmul.msk.bf16.gmra.mxu0 %vm1963_vm10, %v1931_v34 }
 0x271   : > { %2193 = vst.msk [vmem:[#allocation3 + $0x19] sm:$0xff] %vm1692_vm2, %v2105_v20 }
 0x274   : > { %v2027_v30 = vpop.f32.mrf.mxu0 }
 0x275   : > { %v2028_v41 = vadd.f32 %v7303_v39, %v2027_v30 }
 0x277   : > { %v2106_v29 = vmax.f32 %v2028_v41, 0.0 }
 0x278   : > { %v2259_v0 = vld [vmem:[#allocation3 + $0x19] sm:$0xff] }
 0x279   : > { %2194 = vst.msk [vmem:[#allocation3 + $0x21] sm:$0xff] %vm1692_vm2, %v2106_v29 }
 0x27c   : > { %v2030_v43 = vpop.f32.mrf.mxu0 }
 0x27d   : > { %v2031_v23 = vadd.f32 %v7303_v39, %v2030_v43 }
 0x27f   : > { %v2107_v33 = vmax.f32 %v2031_v23, 0.0 }
 0x280   : > { %v2260_v56 = vld [vmem:[#allocation3 + $0x21] sm:$0xff] }
 0x281   : > { %2195 = vst.msk [vmem:[#allocation3 + $0x31] sm:$0xff] %vm1692_vm2, %v2107_v33  ;;  %v7318_v34 = vpack.i.bf16 %v2260_v56, %v2259_v0 }
 0x283   : > { %4865 = vrot.lane.b32.xlu0 %v7318_v34, %s5513_s25 }
 0x284   : > { %v2032_v37 = vpop.f32.mrf.mxu0 }
 0x285   : > { %v2033_v63 = vadd.f32 %v7303_v39, %v2032_v37 }
 0x287   : > { %v2108_v52 = vmax.f32 %v2033_v63, 0.0 }
 0x288   : > { %v2261_v9 = vld [vmem:[#allocation3 + $0x31] sm:$0xff] }
 0x289   : > { %2196 = vst.msk [vmem:[#allocation3 + $0x39] sm:$0xff] %vm1692_vm2, %v2108_v52 }
 0x28a   : > { %v2070_v51 = vpop.f32.mrf.mxu3 }
 0x28b   : > { %v2071_v1 = vadd.f32 %v7303_v39, %v2070_v51 }
 0x28c   : > { %v2035_v5 = vpop.f32.mrf.mxu0 }
 0x28d   : > { %v2123_v21 = vmax.f32 %v2071_v1, 0.0  ;;  %v2036_v48 = vadd.f32 %v7303_v39, %v2035_v5 }
 0x28f   : > { %2211 = vst.msk [vmem:[#allocation3 + $0xf1] sm:$0xff] %vm1692_vm2, %v2123_v21  ;;  %v2109_v10 = vmax.f32 %v2036_v48, 0.0 }
 0x290   : > { %v2262_v57 = vld [vmem:[#allocation3 + $0x39] sm:$0xff] }
 0x291   : > { %2197 = vst.msk [vmem:[#allocation3 + $0x49] sm:$0xff] %vm1692_vm2, %v2109_v10  ;;  %v7328_v45 = vpack.i.bf16 %v2262_v57, %v2261_v9 }
 0x292   : > { %v2072_v60 = vpop.f32.mrf.mxu3 }
 0x293   : > { %v2073_v49 = vadd.f32 %v7303_v39, %v2072_v60  ;;  %4870 = vrot.lane.b32.xlu1 %v7328_v45, %s5513_s25 }
 0x294   : > { %v2037_v15 = vpop.f32.mrf.mxu0 }
 0x295   : > { %v2124_v28 = vmax.f32 %v2073_v49, 0.0  ;;  %v2038_v22 = vadd.f32 %v7303_v39, %v2037_v15 }
 0x296   : > { %v2277_v55 = vld [vmem:[#allocation3 + $0xf1] sm:$0xff] }
 0x297   : > { %2212 = vst.msk [vmem:[#allocation3 + $0xf9] sm:$0xff] %vm1692_vm2, %v2124_v28  ;;  %v2110_v61 = vmax.f32 %v2038_v22, 0.0 }
 0x298   : > { %v2263_v11 = vld [vmem:[#allocation3 + $0x49] sm:$0xff] }
 0x299   : > { %2198 = vst.msk [vmem:[#allocation3 + $0x51] sm:$0xff] %vm1692_vm2, %v2110_v61 }
 0x29a   : > { %v2075_v16 = vpop.f32.mrf.mxu3 }
 0x29b   : > { %v2076_v53 = vadd.f32 %v7303_v39, %v2075_v16 }
 0x29c   : > { %v2040_v44 = vpop.f32.mrf.mxu0 }
 0x29d   : > { %v2125_v54 = vmax.f32 %v2076_v53, 0.0  ;;  %v2041_v35 = vadd.f32 %v7303_v39, %v2040_v44 }
 0x29e   : > { %v2278_v36 = vld [vmem:[#allocation3 + $0xf9] sm:$0xff] }
 0x29f   : > { %2213 = vst.msk [vmem:[#allocation3 + $0x109] sm:$0xff] %vm1692_vm2, %v2125_v54  ;;  %v2111_v17 = vmax.f32 %v2041_v35, 0.0  ;;  %v7360_v20 = vpack.i.bf16 %v2278_v36, %v2277_v55  ;;  %v2292_v36 = vld [vmem:[#allocation3 + $0x22] sm:$0xff]  ;;  %v2290_v55 = vld [vmem:[#allocation3 + $0xa] sm:$0xff] }
 0x2a0   : > { %v2264_v62 = vld [vmem:[#allocation3 + $0x51] sm:$0xff] }
 0x2a1   : > { %2199 = vst.msk [vmem:[#allocation3 + $0x61] sm:$0xff] %vm1692_vm2, %v2111_v17  ;;  %v7340_v4 = vpack.i.bf16 %v2264_v62, %v2263_v11 }
 0x2a2   : > { %v2077_v27 = vpop.f32.mrf.mxu3 }
 0x2a3   : > { %v2078_v46 = vadd.f32 %v7303_v39, %v2077_v27  ;;  %4875 = vrot.lane.b32.xlu2 %v7340_v4, %s5513_s25 }
 0x2a4   : > { %v2042_v25 = vpop.f32.mrf.mxu0 }
 0x2a5   : > { %v2126_v19 = vmax.f32 %v2078_v46, 0.0  ;;  %v2043_v59 = vadd.f32 %v7303_v39, %v2042_v25 }
 0x2a6   : > { %v2279_v10 = vld [vmem:[#allocation3 + $0x109] sm:$0xff] }
 0x2a7   : > { %2214 = vst.msk [vmem:[#allocation3 + $0x111] sm:$0xff] %vm1692_vm2, %v2126_v19  ;;  %v2112_v50 = vmax.f32 %v2043_v59, 0.0 }
 0x2a8   : > { %v2265_v12 = vld [vmem:[#allocation3 + $0x61] sm:$0xff] }
 0x2a9   : > { %2200 = vst.msk [vmem:[#allocation3 + $0x69] sm:$0xff] %vm1692_vm2, %v2112_v50 }
 0x2aa   : > { %v2080_v7 = vpop.f32.mrf.mxu3 }
 0x2ab   : > { %v2081_v38 = vadd.f32 %v7303_v39, %v2080_v7 }
 0x2ac   : > { %v2045_v58 = vpop.f32.mrf.mxu0 }
 0x2ad   : > { %v2127_v13 = vmax.f32 %v2081_v38, 0.0  ;;  %v2046_v3 = vadd.f32 %v7303_v39, %v2045_v58 }
 0x2ae   : > { %v2280_v21 = vld [vmem:[#allocation3 + $0x111] sm:$0xff] }
 0x2af   : > { %2215 = vst.msk [vmem:[#allocation3 + $0x121] sm:$0xff] %vm1692_vm2, %v2127_v13  ;;  %v2113_v32 = vmax.f32 %v2046_v3, 0.0  ;;  %v7380_v9 = vpack.i.bf16 %v2280_v21, %v2279_v10  ;;  %v2296_v21 = vld [vmem:[#allocation3 + $0x52] sm:$0xff] }
 0x2b0   : > { %v2266_v31 = vld [vmem:[#allocation3 + $0x69] sm:$0xff] }
 0x2b1   : > { %2201 = vst.msk [vmem:[#allocation3 + $0x79] sm:$0xff] %vm1692_vm2, %v2113_v32  ;;  %v7352_v18 = vpack.i.bf16 %v2266_v31, %v2265_v12 }
 0x2b2   : > { %v2082_v42 = vpop.f32.mrf.mxu3 }
 0x2b3   : > { %v2083_v6 = vadd.f32 %v7303_v39, %v2082_v42  ;;  %4880 = vrot.lane.b32.xlu0 %v7352_v18, %s5513_s25 }
 0x2b4   : > { %v2047_v24 = vpop.f32.mrf.mxu0 }
 0x2b5   : > { %v2128_v8 = vmax.f32 %v2083_v6, 0.0  ;;  %v2048_v26 = vadd.f32 %v7303_v39, %v2047_v24 }
 0x2b6   : > { %v2281_v40 = vld [vmem:[#allocation3 + $0x121] sm:$0xff] }
 0x2b7   : > { %2216 = vst.msk [vmem:[#allocation3 + $0x129] sm:$0xff] %vm1692_vm2, %v2128_v8  ;;  %v2114_v47 = vmax.f32 %v2048_v26, 0.0  ;;  %v2291_v8 = vld [vmem:[#allocation3 + $0x1a] sm:$0xff] }
 0x2b8   : > { %v2267_v0 = vld [vmem:[#allocation3 + $0x79] sm:$0xff] }
 0x2b9   : > { %2202 = vst.msk [vmem:[#allocation3 + $0x81] sm:$0xff] %vm1692_vm2, %v2114_v47  ;;  %v2289_v47 = vld [vmem:[#allocation3 + $0x2] sm:$0xff] }
 0x2ba   : > { %v2085_v30 = vpop.f32.mrf.mxu3 }
 0x2bb   : > { %v2086_v41 = vadd.f32 %v7303_v39, %v2085_v30  ;;  %4890 = vrot.lane.b32.xlu0 %v7360_v20, %s5513_s25 }
 0x2bc   : > { %v2050_v29 = vpop.f32.mrf.mxu0 }
 0x2bd   : > { %v2129_v14 = vmax.f32 %v2086_v41, 0.0  ;;  %v2051_v2 = vadd.f32 %v7303_v39, %v2050_v29 }
 0x2be   : > { %v2282_v43 = vld [vmem:[#allocation3 + $0x129] sm:$0xff] }
 0x2bf   : > { %2217 = vst.msk [vmem:[#allocation3 + $0x139] sm:$0xff] %vm1692_vm2, %v2129_v14  ;;  %v2115_v23 = vmax.f32 %v2051_v2, 0.0  ;;  %v7367_v33 = vpack.i.bf16 %v2282_v43, %v2281_v40  ;;  %v7415_v14 = vpack.i.bf16 %v2292_v36, %v2291_v8  ;;  %v4929_v2 = vpack.i.bf16 %v2290_v55, %v2289_v47  ;;  %v2310_v8 = vld [vmem:[#allocation3 + $0xfa] sm:$0xff]  ;;  %v2314_v36 = vld [vmem:[#allocation3 + $0x12a] sm:$0xff] }
 0x2c0   : > { %v2268_v56 = vld [vmem:[#allocation3 + $0x81] sm:$0xff] }
 0x2c1   : > { %2203 = vst.msk [vmem:[#allocation3 + $0x91] sm:$0xff] %vm1692_vm2, %v2115_v23  ;;  %4900 = vrot.lane.b32.xlu2 %v7367_v33, %s5513_s25  ;;  %v7372_v37 = vpack.i.bf16 %v2268_v56, %v2267_v0  ;;  %v2297_v0 = vld [vmem:[#allocation3 + $0x62] sm:$0xff]  ;;  %v2298_v56 = vld [vmem:[#allocation3 + $0x6a] sm:$0xff] }
 0x2c2   : > { %v2087_v63 = vpop.f32.mrf.mxu3 }
 0x2c3   : > { %v2088_v52 = vadd.f32 %v7303_v39, %v2087_v63  ;;  %4885 = vrot.lane.b32.xlu1 %v7372_v37, %s5513_s25 }
 0x2c4   : > { %v2052_v51 = vpop.f32.mrf.mxu0 }
 0x2c5   : > { %v2130_v1 = vmax.f32 %v2088_v52, 0.0  ;;  %v2053_v5 = vadd.f32 %v7303_v39, %v2052_v51  ;;  %v2295_v51 = vld [vmem:[#allocation3 + $0x4a] sm:$0xff] }
 0x2c6   : > { %v2283_v22 = vld [vmem:[#allocation3 + $0x139] sm:$0xff] }
 0x2c7   : > { %2218 = vst.msk [vmem:[#allocation3 + $0x141] sm:$0xff] %vm1692_vm2, %v2130_v1  ;;  %v2116_v48 = vmax.f32 %v2053_v5, 0.0 }
 0x2c8   : > { %v2269_v44 = vld [vmem:[#allocation3 + $0x91] sm:$0xff] }
 0x2c9   : > { %2204 = vst.msk [vmem:[#allocation3 + $0x99] sm:$0xff] %vm1692_vm2, %v2116_v48 }
 0x2ca   : > { %v2090_v57 = vpop.f32.mrf.mxu3 }
 0x2cb   : > { %v2091_v60 = vadd.f32 %v7303_v39, %v2090_v57  ;;  %4895 = vrot.lane.b32.xlu1 %v7380_v9, %s5513_s25  ;;  %v7426_v57 = vpack.i.bf16 %v2298_v56, %v2297_v0 }
 0x2cc   : > { %v2055_v49 = vpop.f32.mrf.mxu0 }
 0x2cd   : > { %v2131_v15 = vmax.f32 %v2091_v60, 0.0  ;;  %v2056_v28 = vadd.f32 %v7303_v39, %v2055_v49  ;;  %v7433_v60 = vpack.i.bf16 %v2296_v21, %v2295_v51 }
 0x2ce   : > { %v2284_v61 = vld [vmem:[#allocation3 + $0x141] sm:$0xff] }
 0x2cf   : > { %2219 = vst.msk [vmem:[#allocation3 + $0x151] sm:$0xff] %vm1692_vm2, %v2131_v15  ;;  %v2117_v16 = vmax.f32 %v2056_v28, 0.0  ;;  %v7387_v53 = vpack.i.bf16 %v2284_v61, %v2283_v22  ;;  %v2293_v22 = vld [vmem:[#allocation3 + $0x32] sm:$0xff]  ;;  %v2294_v61 = vld [vmem:[#allocation3 + $0x3a] sm:$0xff] }
 0x2d0   : > { %v2270_v54 = vld [vmem:[#allocation3 + $0x99] sm:$0xff]  ;;  %8856 = vst [vmem:[#allocation9_spill] sm:$0xff] %v7433_v60 }
 0x2d1   : > { %2205 = vst.msk [vmem:[#allocation3 + $0xa9] sm:$0xff] %vm1692_vm2, %v2117_v16  ;;  %4905 = vrot.lane.b32.xlu0 %v7387_v53, %s5513_s25  ;;  %v7392_v35 = vpack.i.bf16 %v2270_v54, %v2269_v44 }
 0x2d2   : > { %v2092_v17 = vpop.f32.mrf.mxu3 }
 0x2d3   : > { %v2093_v11 = vadd.f32 %v7303_v39, %v2092_v17  ;;  %4915 = vrot.lane.b32.xlu2 %v7392_v35, %s5513_s25 }
 0x2d4   : > { %v2057_v62 = vpop.f32.mrf.mxu0 }
 0x2d5   : > { %v2132_v27 = vmax.f32 %v2093_v11, 0.0  ;;  %v2058_v46 = vadd.f32 %v7303_v39, %v2057_v62  ;;  %v2301_v11 = vld [vmem:[#allocation3 + $0x92] sm:$0xff]  ;;  %v2302_v62 = vld [vmem:[#allocation3 + $0x9a] sm:$0xff] }
 0x2d6   : > { %v2285_v58 = vld [vmem:[#allocation3 + $0x151] sm:$0xff] }
 0x2d7   : > { %2220 = vst.msk [vmem:[#allocation3 + $0x159] sm:$0xff] %vm1692_vm2, %v2132_v27  ;;  %v2118_v25 = vmax.f32 %v2058_v46, 0.0  ;;  %v7440_v46 = vpack.i.bf16 %v2294_v61, %v2293_v22 }
 0x2d8   : > { %v2271_v12 = vld [vmem:[#allocation3 + $0xa9] sm:$0xff] }
 0x2d9   : > { %2206 = vst.msk [vmem:[#allocation3 + $0xb1] sm:$0xff] %vm1692_vm2, %v2118_v25 }
 0x2da   : > { %v2095_v19 = vpop.f32.mrf.mxu3 }
 0x2db   : > { %v2096_v59 = vadd.f32 %v7303_v39, %v2095_v19  ;;  %v7449_v19 = vpack.i.bf16 %v2302_v62, %v2301_v11  ;;  %v7514_v62 = vld [vmem:[#allocation3 + $0x90] sm:$0xff] }
 0x2dc   : > { %v2060_v50 = vpop.f32.mrf.mxu0 }
 0x2dd   : > { %v2133_v7 = vmax.f32 %v2096_v59, 0.0  ;;  %v2061_v38 = vadd.f32 %v7303_v39, %v2060_v50  ;;  %8857 = vst [vmem:[#allocation8_spill] sm:$0xff] %v7449_v19  ;;  %v2300_v59 = vld [vmem:[#allocation3 + $0x82] sm:$0xff] }
 0x2de   : > { %v2286_v13 = vld [vmem:[#allocation3 + $0x159] sm:$0xff] }
 0x2df   : > { %2221 = vst.msk [vmem:[#allocation3 + $0x169] sm:$0xff] %vm1692_vm2, %v2133_v7  ;;  %v2119_v3 = vmax.f32 %v2061_v38, 0.0  ;;  %v7403_v32 = vpack.i.bf16 %v2286_v13, %v2285_v58  ;;  %v2317_v22 = vld [vmem:[#allocation3 + $0x152] sm:$0xff]  ;;  %v2318_v61 = vld [vmem:[#allocation3 + $0x15a] sm:$0xff] }
 0x2e0   : > { %v2272_v31 = vld [vmem:[#allocation3 + $0xb1] sm:$0xff] }
 0x2e1   : > { %2207 = vst.msk [vmem:[#allocation3 + $0xc1] sm:$0xff] %vm1692_vm2, %v2119_v3  ;;  %4910 = vrot.lane.b32.xlu1 %v7403_v32, %s5513_s25  ;;  %v7408_v42 = vpack.i.bf16 %v2272_v31, %v2271_v12  ;;  %v2303_v50 = vld [vmem:[#allocation3 + $0xaa] sm:$0xff]  ;;  %v2304_v7 = vld [vmem:[#allocation3 + $0xb2] sm:$0xff] }
 0x2e2   : > { %v2097_v6 = vpop.f32.mrf.mxu3  ;;  %v7455_v58 = vpack.i.bf16 %v2304_v7, %v2303_v50  ;;  %v2309_v31 = vld [vmem:[#allocation3 + $0xf2] sm:$0xff]  ;;  %v7528_v7 = vld [vmem:[#allocation3 + $0xa8] sm:$0xff] }
 0x2e3   : > { %v2098_v24 = vadd.f32 %v7303_v39, %v2097_v6  ;;  %4925 = vrot.lane.b32.xlu0 %v7408_v42, %s5513_s25  ;;  %v7467_v55 = vpack.i.bf16 %v2310_v8, %v2309_v31  ;;  %v7526_v50 = vld [vmem:[#allocation3 + $0x30] sm:$0xff] }
 0x2e4   : > { %v2062_v26 = vpop.f32.mrf.mxu0 }
 0x2e5   : > { %v2134_v30 = vmax.f32 %v2098_v24, 0.0  ;;  %v2063_v41 = vadd.f32 %v7303_v39, %v2062_v26  ;;  %v2313_v26 = vld [vmem:[#allocation3 + $0x122] sm:$0xff]  ;;  %8860 = vst [vmem:[#allocation11_spill] sm:$0xff] %v7467_v55 }
 0x2e6   : > { %v2287_v1 = vld [vmem:[#allocation3 + $0x169] sm:$0xff] }
 0x2e7   : > { %2222 = vst.msk [vmem:[#allocation3 + $0x171] sm:$0xff] %vm1692_vm2, %v2134_v30  ;;  %v2120_v29 = vmax.f32 %v2063_v41, 0.0  ;;  %v7473_v30 = vpack.i.bf16 %v2314_v36, %v2313_v26  ;;  %v2311_v41 = vld [vmem:[#allocation3 + $0x10a] sm:$0xff]  ;;  %v7548_v26 = vld [vmem:[#allocation3 + $0xf8] sm:$0xff]  ;;  %v7550_v36 = vld [vmem:[#allocation3 + $0x80] sm:$0xff] }
 0x2e8   : > { %v2273_v17 = vld [vmem:[#allocation3 + $0xc1] sm:$0xff] }
 0x2e9   : > { %2208 = vst.msk [vmem:[#allocation3 + $0xc9] sm:$0xff] %vm1692_vm2, %v2120_v29  ;;  %4935 = vrot.lane.b32.xlu1 %v7415_v14, %s5515_s27  ;;  %v2312_v29 = vld [vmem:[#allocation3 + $0x112] sm:$0xff] }
 0x2ea   : > { %v2100_v40 = vpop.f32.mrf.mxu3  ;;  %8861 = vst [vmem:[#allocation10_spill] sm:$0xff] %v7473_v30  ;;  %v7477_v0 = vpack.i.bf16 %v2312_v29, %v2311_v41  ;;  %v7552_v41 = vld [vmem:[#allocation3 + $0x128] sm:$0xff]  ;;  %v7554_v29 = vld [vmem:[#allocation3 + $0xf0] sm:$0xff] }
 0x2eb   : > { %v2101_v43 = vadd.f32 %v7303_v39, %v2100_v40  ;;  %4930 = vrot.lane.b32.xlu0 %v4929_v2, %s5515_s27  ;;  %v2315_v2 = vld [vmem:[#allocation3 + $0x13a] sm:$0xff]  ;;  %v2316_v40 = vld [vmem:[#allocation3 + $0x142] sm:$0xff] }
 0x2ec   : > { %v2065_v23 = vpop.f32.mrf.mxu0  ;;  %8862 = vst [vmem:[#allocation17_spill] sm:$0xff] %v7477_v0  ;;  %v7479_v56 = vpack.i.bf16 %v2316_v40, %v2315_v2  ;;  %v7556_v2 = vld [vmem:[#allocation3 + $0x78] sm:$0xff] }
 0x2ed   : > { %v2135_v63 = vmax.f32 %v2101_v43, 0.0  ;;  %v2066_v52 = vadd.f32 %v7303_v39, %v2065_v23  ;;  %v5039_v40 = vpack.i.bf16 %v7550_v36, %v7556_v2 }
 0x2ee   : > { %v2288_v5 = vld [vmem:[#allocation3 + $0x171] sm:$0xff]  ;;  %8863 = vst [vmem:[#allocation16_spill] sm:$0xff] %v7479_v56 }
 0x2ef   : > { %2223 = vst.msk [vmem:[#allocation3 + $0x181] sm:$0xff] %vm1692_vm2, %v2135_v63  ;;  %v2121_v48 = vmax.f32 %v2066_v52, 0.0  ;;  %v7424_v10 = vpack.i.bf16 %v2288_v5, %v2287_v1  ;;  %v2319_v43 = vld [vmem:[#allocation3 + $0x16a] sm:$0xff]  ;;  %v2320_v23 = vld [vmem:[#allocation3 + $0x172] sm:$0xff]  ;;  %v7486_v52 = vld [vmem:[#allocation3 + $0x20] sm:$0xff] }
 0x2f0   : > { %v2274_v16 = vld [vmem:[#allocation3 + $0xc9] sm:$0xff]  ;;  %v5014_v63 = vpack.i.bf16 %v2320_v23, %v2319_v43  ;;  %v7488_v1 = vld [vmem:[#allocation3 + $0x18] sm:$0xff]  ;;  %v7562_v43 = vpack.i.bf16 %v7548_v26, %v7554_v29  ;;  %v7564_v23 = vld [vmem:[#allocation3 + $0x120] sm:$0xff] }
 0x2f1   : > { %2209 = vst.msk [vmem:[#allocation3 + $0xd9] sm:$0xff] %vm1692_vm2, %v2121_v48  ;;  %4920 = vrot.lane.b32.xlu2 %v7424_v10, %s5513_s25  ;;  %4950 = vrot.lane.b32.xlu1 %v7426_v57, %s5515_s27  ;;  %v7442_v25 = vpack.i.bf16 %v2274_v16, %v2273_v17  ;;  %v2305_v6 = vld [vmem:[#allocation3 + $0xc2] sm:$0xff]  ;;  %v2306_v24 = vld [vmem:[#allocation3 + $0xca] sm:$0xff]  ;;  %v7510_v17 = vpack.i.bf16 %v2318_v61, %v2317_v22  ;;  %v7582_v61 = vld [vmem:[#allocation3 + $0x138] sm:$0xff] }
 0x2f2   : > { %v2102_v49 = vpop.f32.mrf.mxu3  ;;  %v7465_v47 = vpack.i.bf16 %v2306_v24, %v2305_v6  ;;  %v7490_v5 = vld [vmem:[#allocation3 + $0x50] sm:$0xff]  ;;  %v7504_v16 = vld [vmem:[#allocation3 + $0x68] sm:$0xff]  ;;  %v7540_v24 = vpop.permute.xlu2 %4860  ;;  %8866 = vst [vmem:[#allocation27_spill] sm:$0xff] %v7562_v43  ;;  %v7580_v22 = vld [vmem:[#allocation3 + $0xc0] sm:$0xff] }
 0x2f3   : > { %v2103_v15 = vadd.f32 %v7303_v39, %v2102_v49  ;;  %4945 = vrot.lane.b32.xlu0 %v7433_v60, %s5515_s27  ;;  %v5019_v49 = vpack.i.bf16 %v7486_v52, %v7488_v1  ;;  %8864 = vst [vmem:[#allocation15_spill] sm:$0xff] %v7510_v17 }
 0x2f4   : > { %v2067_v28 = vpop.f32.mrf.mxu0  ;;  %8859 = vst [vmem:[#allocation12_spill] sm:$0xff] %v7465_v47 }
 0x2f5   : > { %v2136_v44 = vmax.f32 %v2103_v15, 0.0  ;;  %v2068_v54 = vadd.f32 %v7303_v39, %v2067_v28  ;;  %v2299_v39 = vld [vmem:[#allocation3 + $0x7a] sm:$0xff]  ;;  %v7496_v15 = vld [vmem:[#allocation3 + $0x48] sm:$0xff]  ;;  %8868 = vst [vmem:[#allocation19_spill] sm:$0xff] %v7582_v61 }
 0x2f6   : > { %v7453_v38 = vpack.i.bf16 %v2300_v59, %v2299_v39  ;;  %v5029_v28 = vpack.i.bf16 %v7490_v5, %v7496_v15  ;;  %v7522_v39 = vld [vmem:[#allocation3 + $0x38] sm:$0xff]  ;;  %v7524_v59 = vld [vmem:[#allocation3 + $0xb0] sm:$0xff] }
 0x2f7   : > { %2224 = vst.msk [vmem:[#allocation3 + $0x189] sm:$0xff] %vm1692_vm2, %v2136_v44  ;;  %v2122_v27 = vmax.f32 %v2068_v54, 0.0  ;;  %v7506_v44 = vld [vmem:[#allocation3 + $0x60] sm:$0xff]  ;;  %v7508_v54 = vld [vmem:[#allocation3 + $0x98] sm:$0xff]  ;;  %v5049_v31 = vpack.i.bf16 %v7524_v59, %v7528_v7 }
 0x2f8   : > { %v2275_v21 = vld [vmem:[#allocation3 + $0xd9] sm:$0xff]  ;;  %v5034_v11 = vpack.i.bf16 %v7504_v16, %v7506_v44 }
 0x2f9   : > { %2210 = vst.msk [vmem:[#allocation3 + $0xe1] sm:$0xff] %vm1692_vm2, %v2122_v27  ;;  %4940 = vrot.lane.b32.xlu2 %v7440_v46, %s5515_s27  ;;  %4965 = vrot.lane.b32.xlu1 %v7442_v25, %s5513_s25  ;;  %v5044_v27 = vpack.i.bf16 %v7508_v54, %v7514_v62  ;;  %v7538_v6 = vld [vmem:[#allocation3 + $0xd8] sm:$0xff] }
 0x2fb   : > { %4960 = vrot.lane.b32.xlu0 %v7449_v19, %s5515_s27 }
 0x300   : > { %v2307_v13 = vld [vmem:[#allocation3 + $0xda] sm:$0xff]  ;;  %v2308_v3 = vld [vmem:[#allocation3 + $0xe2] sm:$0xff] }
 0x301   : > { %4955 = vrot.lane.b32.xlu2 %v7453_v38, %s5515_s27  ;;  %4970 = vrot.lane.b32.xlu1 %v7455_v58, %s5515_s27  ;;  %v7461_v12 = vpack.i.bf16 %v2308_v3, %v2307_v13  ;;  %v2276_v51 = vld [vmem:[#allocation3 + $0xe1] sm:$0xff]  ;;  %v7534_v3 = vpack.i.bf16 %v7522_v39, %v7526_v50 }
 0x302   : > { %v7492_v48 = vpack.i.bf16 %v2276_v51, %v2275_v21  ;;  %v7530_v13 = vld [vmem:[#allocation3 + $0xe0] sm:$0xff]  ;;  %v7571_v51 = vpop.permute.xlu0 %4865  ;;  %v7573_v21 = vpop.permute.xlu2 %4875 }
 0x303   : > { %8858 = vst [vmem:[#allocation13_spill] sm:$0xff] %v7461_v12  ;;  %4995 = vrot.lane.b32.xlu0 %v7461_v12, %s5515_s27  ;;  %v5059_v8 = vpack.i.bf16 %v7530_v13, %v7538_v6  ;;  %v7606_v12 = vld [vmem:[#allocation3 + $0x108] sm:$0xff] }
 0x304   : > { %8865 = vst [vmem:[#allocation14_spill] sm:$0xff] %v7534_v3 }
 0x309   : > { %4980 = vrot.lane.b32.xlu2 %v7465_v47, %s5515_s27  ;;  %4975 = vrot.lane.b32.xlu1 %v7467_v55, %s5515_s27  ;;  %v4867_v47 = vunpack.i.l.bf16 %v7571_v51 }
 0x30b   : > { %5000 = vrot.lane.b32.xlu0 %v7473_v30, %s5515_s27  ;;  %v7604_v30 = vld [vmem:[#allocation3 + $0x110] sm:$0xff] }
 0x311   : > { %4985 = vrot.lane.b32.xlu2 %v7477_v0, %s5515_s27  ;;  %5005 = vrot.lane.b32.xlu1 %v7479_v56, %s5515_s27  ;;  %v2351_v56 = vld [vmem:[#allocation3 + $0x180] sm:$0xff] }
 0x313   : > { %5015 = vrot.lane.b32.xlu0 %v5014_v63, %s5515_s27  ;;  %v5074_v63 = vpack.i.bf16 %v7552_v41, %v7564_v23 }
 0x319   : > { %4990 = vrot.lane.b32.xlu2 %v7492_v48, %s5513_s25  ;;  %5020 = vrot.lane.b32.xlu1 %v5019_v49, %s5517_s29  ;;  %v7576_v49 = vld [vmem:[#allocation3 + $0xc8] sm:$0xff] }
 0x31b   : > { %5030 = vrot.lane.b32.xlu0 %v5029_v28, %s5517_s29  ;;  %v7578_v28 = vld [vmem:[#allocation3 + $0x140] sm:$0xff] }
 0x31c   : > { %8867 = vst [vmem:[#allocation20_spill] sm:$0xff] %v7578_v28 }
 0x321   : > { %5010 = vrot.lane.b32.xlu2 %v7510_v17, %s5515_s27  ;;  %5035 = vrot.lane.b32.xlu1 %v5034_v11, %s5517_s29  ;;  %v7584_v11 = vld [vmem:[#allocation3 + $0x170] sm:$0xff]  ;;  %v2352_v17 = vld [vmem:[#allocation3 + $0x188] sm:$0xff] }
 0x322   : > { %8869 = vst [vmem:[#allocation24_spill] sm:$0xff] %v7584_v11 }
 0x323   : > { %5045 = vrot.lane.b32.xlu0 %v5044_v27, %s5517_s29  ;;  %v5054_v27 = vpack.i.bf16 %v7576_v49, %v7580_v22 }
 0x329   : > { %5025 = vrot.lane.b32.xlu2 %v7534_v3, %s5517_s29  ;;  %5050 = vrot.lane.b32.xlu1 %v5049_v31, %s5517_s29  ;;  %v7590_v31 = vpack.i.bf16 %v7578_v28, %v7582_v61  ;;  %v7599_v3 = vpop.permute.xlu2 %4900 }
 0x32b   : > { %5060 = vrot.lane.b32.xlu0 %v5059_v8, %s5517_s29  ;;  %8870 = vst [vmem:[#allocation23_spill] sm:$0xff] %v7590_v31  ;;  %v7592_v8 = vld [vmem:[#allocation3 + $0x168] sm:$0xff] }
 0x32c   : > { %8871 = vst [vmem:[#allocation50_spill] sm:$0xff] %v7592_v8 }
 0x331   : > { %5040 = vrot.lane.b32.xlu2 %v5039_v40, %s5517_s29  ;;  %5065 = vrot.lane.b32.xlu1 %v7562_v43, %s5517_s29  ;;  %v4871_v40 = vpop.permute.xlu1 %4870  ;;  %v7601_v43 = vpop.permute.xlu0 %4880 }
 0x332   : > { %v7615_v19 = vpop.permute.xlu2 %4915  ;;  %v4872_v61 = vunpack.i.l.bf16 %v4871_v40 }
 0x333   : > { %5075 = vrot.lane.b32.xlu0 %v5074_v63, %s5517_s29  ;;  %v5089_v63 = vpack.i.bf16 %v7584_v11, %v7592_v8  ;;  %v7623_v11 = vld [vmem:[#allocation3 + $0x150] sm:$0xff] }
 0x339   : > { %5055 = vrot.lane.b32.xlu2 %v5054_v27, %s5517_s29  ;;  %5080 = vrot.lane.b32.xlu1 %v7590_v31, %s5517_s29  ;;  %v7610_v27 = vpack.i.bf16 %v7604_v30, %v7606_v12  ;;  %v5094_v31 = vpack.i.bf16 %v2352_v17, %v2351_v56  ;;  %v4886_v0 = vpop.permute.xlu1 %4885  ;;  %v7621_v8 = vpop.permute.xlu0 %4890 }
 0x33a   : > { %v4888_v60 = vunpack.i.h.bf16 %v4886_v0 }
 0x33b   : > { %5090 = vrot.lane.b32.xlu0 %v5089_v63, %s5517_s29  ;;  %8872 = vst [vmem:[#allocation73_spill] sm:$0xff] %v7610_v27  ;;  %v7619_v63 = vld [vmem:[#allocation3 + $0x158] sm:$0xff] }
 0x33c   : > { %v5084_v56 = vpack.i.bf16 %v7619_v63, %v7623_v11 }
 0x341   : > { %5070 = vrot.lane.b32.xlu2 %v7610_v27, %s5517_s29  ;;  %5095 = vrot.lane.b32.xlu1 %v5094_v31, %s5517_s29  ;;  %v7630_v17 = vpop.permute.xlu1 %4895  ;;  %v4873_v27 = vunpack.i.h.bf16 %v4871_v40 }
 0x343   : > { %5105 = vrot.lane.b32.xlu0 %v7328_v45, %s5519_s6  ;;  %v7636_v45 = vpop.permute.xlu0 %4905  ;;  %v3543_v40 = vsel %vm1692_vm2, %v7522_v39, %v4873_v27  ;;  %v4863_v39 = vunpack.i.h.bf16 %v7540_v24 }
 0x349   : > { %5085 = vrot.lane.b32.xlu2 %v5084_v56, %s5517_s29  ;;  %5110 = vrot.lane.b32.xlu1 %v7340_v4, %s5519_s6 }
 0x34b   : > { %v7632_v31 = vpop.permute.xlu2 %4920  ;;  %5120 = vrot.lane.b32.xlu0 %v7372_v37, %s5519_s6  ;;  %v3542_v37 = vsel %vm1692_vm2, %v7526_v50, %v4872_v61 }
 0x34c   : > { %8873 = vst [vmem:[#allocation75_spill] sm:$0xff] %v7632_v31 }
 0x351   : > { %5100 = vrot.lane.b32.xlu2 %v7318_v34, %s5519_s6  ;;  %5125 = vrot.lane.b32.xlu1 %v7392_v35, %s5519_s6 }
 0x353   : > { %5135 = vrot.lane.b32.xlu0 %v7442_v25, %s5519_s6  ;;  %v4941_v4 = vpop.permute.xlu2 %4940  ;;  %v7644_v56 = vpop.permute.xlu1 %4910  ;;  %v4868_v25 = vunpack.i.h.bf16 %v7571_v51 }
 0x354   : > { %v4943_v28 = vunpack.i.h.bf16 %v4941_v4  ;;  %v4942_v55 = vunpack.i.l.bf16 %v4941_v4  ;;  %v4887_v4 = vunpack.i.l.bf16 %v4886_v0  ;;  %v2225_v0 = vld [vmem:[#allocation3] sm:$0xff] }
 0x355   : > { %v7650_v31 = vpop.permute.xlu0 %4925 }
 0x356   : > { %v7653_v34 = vsel %vm1758_vm4, %v3542_v37, %v4942_v55  ;;  %v7656_v35 = vsel %vm1758_vm4, %v3543_v40, %v4943_v28  ;;  %v4862_v55 = vunpack.i.l.bf16 %v7540_v24  ;;  %v2226_v40 = vld [vmem:[#allocation3 + $0x8] sm:$0xff]  ;;  %v3549_v24 = vsel %vm1692_vm2, %v7550_v36, %v4888_v60 }
 0x357   : > { %8874 = vst [vmem:[#allocation18_spill] sm:$0xff] %v7653_v34  ;;  %v3539_v60 = vsel %vm1692_vm2, %v2226_v40, %v4863_v39  ;;  %v4877_v39 = vunpack.i.l.bf16 %v7573_v21 }
 0x358   : > { %8875 = vst [vmem:[#allocation31_spill] sm:$0xff] %v7656_v35  ;;  %v3538_v36 = vsel %vm1692_vm2, %v2225_v0, %v4862_v55 }
 0x359   : > { %5115 = vrot.lane.b32.xlu2 %v7352_v18, %s5519_s6  ;;  %5140 = vrot.lane.b32.xlu1 %v7492_v48, %s5519_s6  ;;  %v3540_v18 = vsel %vm1692_vm2, %v7488_v1, %v4867_v47  ;;  %v3541_v48 = vsel %vm1692_vm2, %v7486_v52, %v4868_v25  ;;  %v4882_v25 = vunpack.i.l.bf16 %v7601_v43 }
 0x35b   : > { %5150 = vrot.lane.b32.xlu0 %v7380_v9, %s5519_s6  ;;  %v4956_v50 = vpop.permute.xlu2 %4955  ;;  %v4936_v28 = vpop.permute.xlu1 %4935  ;;  %v3548_v9 = vsel %vm1692_vm2, %v7556_v2, %v4887_v4  ;;  %v4883_v2 = vunpack.i.h.bf16 %v7601_v43 }
 0x35c   : > { %v4958_v61 = vunpack.i.h.bf16 %v4956_v50  ;;  %v4957_v27 = vunpack.i.l.bf16 %v4956_v50  ;;  %v4938_v51 = vunpack.i.h.bf16 %v4936_v28  ;;  %v4937_v37 = vunpack.i.l.bf16 %v4936_v28 }
 0x35d   : > { %v4931_v35 = vpop.permute.xlu0 %4930 }
 0x35e   : > { %v7677_v34 = vsel %vm1758_vm4, %v3548_v9, %v4957_v27  ;;  %v7680_v50 = vsel %vm1758_vm4, %v3549_v24, %v4958_v61  ;;  %v7683_v28 = vsel %vm1758_vm4, %v3541_v48, %v4938_v51  ;;  %v7686_v47 = vsel %vm1758_vm4, %v3540_v18, %v4937_v37 }
 0x35f   : > { %v4933_v52 = vunpack.i.h.bf16 %v4931_v35  ;;  %v4932_v1 = vunpack.i.l.bf16 %v4931_v35  ;;  %v4878_v35 = vunpack.i.h.bf16 %v7573_v21  ;;  %v3546_v37 = vsel %vm1692_vm2, %v7506_v44, %v4882_v25 }
 0x360   : > { %v4898_v24 = vunpack.i.h.bf16 %v7630_v17  ;;  %v4897_v9 = vunpack.i.l.bf16 %v7630_v17 }
 0x361   : > { %v7693_v4 = vsel %vm1758_vm4, %v3539_v60, %v4933_v52  ;;  %v7696_v61 = vsel %vm1758_vm4, %v3538_v36, %v4932_v1  ;;  %5130 = vrot.lane.b32.xlu2 %v7408_v42, %s5519_s6  ;;  %5155 = vrot.lane.b32.xlu1 %v7367_v33, %s5519_s6  ;;  %v3547_v42 = vsel %vm1692_vm2, %v7504_v16, %v4883_v2 }
 0x362   : > { %v3545_v48 = vsel %vm1692_vm2, %v7490_v5, %v4878_v35  ;;  %v4917_v5 = vunpack.i.l.bf16 %v7615_v19 }
 0x363   : > { %5165 = vrot.lane.b32.xlu0 %v7403_v32, %s5519_s6  ;;  %v4981_v43 = vpop.permute.xlu2 %4980  ;;  %v4951_v55 = vpop.permute.xlu1 %4950  ;;  %v3544_v32 = vsel %vm1692_vm2, %v7496_v15, %v4877_v39  ;;  %v4918_v15 = vunpack.i.h.bf16 %v7615_v19 }
 0x364   : > { %v4953_v27 = vunpack.i.h.bf16 %v4951_v55  ;;  %v4952_v51 = vunpack.i.l.bf16 %v4951_v55  ;;  %v4983_v25 = vunpack.i.h.bf16 %v4981_v43  ;;  %v4982_v35 = vunpack.i.l.bf16 %v4981_v43 }
 0x365   : > { %v4946_v0 = vpop.permute.xlu0 %4945  ;;  %v3551_v43 = vsel %vm1692_vm2, %v7508_v54, %v4918_v15 }
 0x366   : > { %v7711_v33 = vsel %vm1758_vm4, %v3547_v42, %v4953_v27  ;;  %v7714_v40 = vsel %vm1758_vm4, %v3546_v37, %v4952_v51  ;;  %v4948_v21 = vunpack.i.h.bf16 %v4946_v0  ;;  %v4947_v18 = vunpack.i.l.bf16 %v4946_v0 }
 0x367   : > { %v3550_v42 = vsel %vm1692_vm2, %v7514_v62, %v4917_v5  ;;  %v4928_v0 = vunpack.i.h.bf16 %v7650_v31 }
 0x368   : > { %v7721_v44 = vsel %vm1758_vm4, %v3544_v32, %v4947_v18  ;;  %v7724_v16 = vsel %vm1758_vm4, %v3545_v48, %v4948_v21 }
 0x369   : > { %5145 = vrot.lane.b32.xlu2 %v7360_v20, %s5519_s6  ;;  %5170 = vrot.lane.b32.xlu1 %v7424_v10, %s5519_s6  ;;  %v3561_v20 = vsel %vm1692_vm2, %v7604_v30, %v4898_v24  ;;  %v3560_v10 = vsel %vm1692_vm2, %v7606_v12, %v4897_v9  ;;  %v2384_v24 = vld [vmem:[#allocation3 + $0x189] sm:$0xff]  ;;  %v3553_v9 = vsel %vm1692_vm2, %v7524_v59, %v4928_v0 }
 0x36b   : > { %5180 = vrot.lane.b32.xlu0 %v7415_v14, %s5520_s15  ;;  %v4986_v52 = vpop.permute.xlu2 %4985  ;;  %v4966_v1 = vpop.permute.xlu1 %4965 }
 0x36c   : > { %v4988_v60 = vunpack.i.h.bf16 %v4986_v52  ;;  %v4987_v36 = vunpack.i.l.bf16 %v4986_v52  ;;  %v4968_v2 = vunpack.i.h.bf16 %v4966_v1  ;;  %v4967_v17 = vunpack.i.l.bf16 %v4966_v1 }
 0x36d   : > { %v4961_v39 = vpop.permute.xlu0 %4960 }
 0x36e   : > { %v7741_v19 = vsel %vm1758_vm4, %v3560_v10, %v4987_v36  ;;  %v7744_v14 = vsel %vm1758_vm4, %v3561_v20, %v4988_v60  ;;  %v3555_v55 = vsel %vm1692_vm2, %v7576_v49, %v4968_v2  ;;  %v3554_v27 = vsel %vm1692_vm2, %v7580_v22, %v4967_v17  ;;  %v2383_v60 = vld [vmem:[#allocation3 + $0x181] sm:$0xff] }
 0x36f   : > { %v4963_v51 = vunpack.i.h.bf16 %v4961_v39  ;;  %v4962_v30 = vunpack.i.l.bf16 %v4961_v39  ;;  %v7751_v37 = vsel %vm1758_vm4, %v3554_v27, %v4982_v35  ;;  %v7754_v12 = vsel %vm1758_vm4, %v3555_v55, %v4983_v25 }
 0x370   : > { %v4927_v49 = vunpack.i.l.bf16 %v7650_v31  ;;  %v7788_v59 = vpack.i.bf16 %v2384_v24, %v2383_v60  ;;  %v4892_v17 = vunpack.i.l.bf16 %v7621_v8  ;;  %v4912_v20 = vunpack.i.l.bf16 %v7644_v56  ;;  %v8877_v24 = vld [vmem:[#allocation12_spill] sm:$0xff] }
 0x371   : > { %v7763_v22 = vsel %vm1758_vm4, %v3550_v42, %v4962_v30  ;;  %v7766_v21 = vsel %vm1758_vm4, %v3551_v43, %v4963_v51  ;;  %5160 = vrot.lane.b32.xlu2 %v7387_v53, %s5519_s6  ;;  %5185 = vrot.lane.b32.xlu1 %v7440_v46, %s5520_s15  ;;  %v4903_v25 = vunpack.i.h.bf16 %v7599_v3 }
 0x372   : > { %v3552_v15 = vsel %vm1692_vm2, %v7528_v7, %v4927_v49  ;;  %v4893_v7 = vunpack.i.h.bf16 %v7621_v8  ;;  %v4902_v8 = vunpack.i.l.bf16 %v7599_v3  ;;  %v3558_v43 = vsel %vm1692_vm2, %v7554_v29, %v4892_v17  ;;  %v8881_v17 = vld [vmem:[#allocation19_spill] sm:$0xff] }
 0x373   : > { %5195 = vrot.lane.b32.xlu0 %v7426_v57, %s5520_s15  ;;  %v4991_v54 = vpop.permute.xlu2 %4990  ;;  %v4971_v62 = vpop.permute.xlu1 %4970  ;;  %v3566_v3 = vsel %vm1692_vm2, %v7623_v11, %v4912_v20 }
 0x374   : > { %v4993_v18 = vunpack.i.h.bf16 %v4991_v54  ;;  %v4992_v32 = vunpack.i.l.bf16 %v4991_v54  ;;  %v4973_v31 = vunpack.i.h.bf16 %v4971_v62  ;;  %v4972_v48 = vunpack.i.l.bf16 %v4971_v62 }
 0x375   : > { %v4996_v53 = vpop.permute.xlu0 %4995  ;;  %v3559_v30 = vsel %vm1692_vm2, %v7548_v26, %v4893_v7  ;;  %v3562_v11 = vsel %vm1692_vm2, %v7564_v23, %v4902_v8  ;;  %v4908_v62 = vunpack.i.h.bf16 %v7636_v45 }
 0x376   : > { %v3557_v5 = vsel %vm1692_vm2, %v7530_v13, %v4993_v18  ;;  %v3556_v57 = vsel %vm1692_vm2, %v7538_v6, %v4992_v32  ;;  %v7783_v52 = vsel %vm1758_vm4, %v3553_v9, %v4973_v31  ;;  %v7786_v1 = vsel %vm1758_vm4, %v3552_v15, %v4972_v48  ;;  %v8876_v48 = vld [vmem:[#allocation9_spill] sm:$0xff]  ;;  %v8879_v15 = vld [vmem:[#allocation11_spill] sm:$0xff] }
 0x377   : > { %v4998_v36 = vunpack.i.h.bf16 %v4996_v53  ;;  %v4997_v2 = vunpack.i.l.bf16 %v4996_v53  ;;  %v4913_v13 = vunpack.i.h.bf16 %v7644_v56  ;;  %v4907_v18 = vunpack.i.l.bf16 %v7636_v45 }
 0x379   : > { %v7795_v6 = vsel %vm1758_vm4, %v3556_v57, %v4997_v2  ;;  %v7798_v10 = vsel %vm1758_vm4, %v3557_v5, %v4998_v36  ;;  %5175 = vrot.lane.b32.xlu2 %v7788_v59, %s5519_s6  ;;  %5200 = vrot.lane.b32.xlu1 %v7453_v38, %s5520_s15  ;;  %v3567_v38 = vsel %vm1692_vm2, %v7619_v63, %v4913_v13  ;;  %v8880_v2 = vld [vmem:[#allocation20_spill] sm:$0xff] }
 0x37a   : > { %v3563_v63 = vsel %vm1692_vm2, %v7552_v41, %v4903_v25  ;;  %v8878_v41 = vld [vmem:[#allocation75_spill] sm:$0xff]  ;;  %v3565_v7 = vsel %vm1692_vm2, %v8880_v2, %v4908_v62  ;;  %v3564_v13 = vsel %vm1692_vm2, %v8881_v17, %v4907_v18  ;;  %v8889_v2 = vld [vmem:[#allocation13_spill] sm:$0xff] }
 0x37b   : > { %5210 = vrot.lane.b32.xlu0 %v7455_v58, %s5520_s15  ;;  %v5011_v56 = vpop.permute.xlu2 %5010  ;;  %v4976_v35 = vpop.permute.xlu1 %4975  ;;  %v4923_v9 = vunpack.i.h.bf16 %v8878_v41  ;;  %v4922_v23 = vunpack.i.l.bf16 %v8878_v41 }
 0x37c   : > { %v5013_v39 = vunpack.i.h.bf16 %v5011_v56  ;;  %v5012_v55 = vunpack.i.l.bf16 %v5011_v56  ;;  %v4978_v27 = vunpack.i.h.bf16 %v4976_v35  ;;  %v4977_v51 = vunpack.i.l.bf16 %v4976_v35 }
 0x37d   : > { %v5001_v42 = vpop.permute.xlu0 %5000 }
 0x37e   : > { %v7817_v58 = vsel %vm1758_vm4, %v3566_v3, %v5012_v55  ;;  %v7820_v0 = vsel %vm1758_vm4, %v3567_v38, %v5013_v39  ;;  %v7823_v49 = vsel %vm1758_vm4, %v3559_v30, %v4978_v27  ;;  %v7826_v26 = vsel %vm1758_vm4, %v3558_v43, %v4977_v51  ;;  %v8882_v27 = vld [vmem:[#allocation24_spill] sm:$0xff]  ;;  %v8883_v30 = vld [vmem:[#allocation50_spill] sm:$0xff]  ;;  %v8885_v3 = vld [vmem:[#allocation17_spill] sm:$0xff] }
 0x37f   : > { %v5003_v29 = vunpack.i.h.bf16 %v5001_v42  ;;  %v5002_v54 = vunpack.i.l.bf16 %v5001_v42  ;;  %v3569_v51 = vsel %vm1692_vm2, %v8882_v27, %v4923_v9  ;;  %v3568_v43 = vsel %vm1692_vm2, %v8883_v30, %v4922_v23  ;;  %v8884_v38 = vld [vmem:[#allocation8_spill] sm:$0xff] }
 0x380   : > { %v8886_v42 = vld [vmem:[#allocation16_spill] sm:$0xff] }
 0x381   : > { %v7835_v32 = vsel %vm1758_vm4, %v3562_v11, %v5002_v54  ;;  %v7838_v31 = vsel %vm1758_vm4, %v3563_v63, %v5003_v29  ;;  %5190 = vrot.lane.b32.xlu2 %v8876_v48, %s5520_s15  ;;  %5215 = vrot.lane.b32.xlu1 %v8877_v24, %s5520_s15 }
 0x383   : > { %5225 = vrot.lane.b32.xlu0 %v8879_v15, %s5520_s15  ;;  %v5026_v45 = vpop.permute.xlu2 %5025  ;;  %v5006_v53 = vpop.permute.xlu1 %5005 }
 0x384   : > { %v5028_v5 = vunpack.i.h.bf16 %v5026_v45  ;;  %v5027_v57 = vunpack.i.l.bf16 %v5026_v45  ;;  %v5008_v60 = vunpack.i.h.bf16 %v5006_v53  ;;  %v5007_v36 = vunpack.i.l.bf16 %v5006_v53  ;;  %v2467_v45 = vld [vmem:[#allocation3 + $0xf9] sm:$0xff] }
 0x385   : > { %v5016_v20 = vpop.permute.xlu0 %5015 }
 0x386   : > { %v7854_v25 = vsel %vm1824_vm6, %v7686_v47, %v5027_v57  ;;  %v7858_v8 = vsel %vm1824_vm6, %v7683_v28, %v5028_v5  ;;  %v7861_v56 = vsel %vm1758_vm4, %v3565_v7, %v5008_v60  ;;  %v7864_v35 = vsel %vm1758_vm4, %v3564_v13, %v5007_v36  ;;  %v2466_v57 = vld [vmem:[#allocation3 + $0xf1] sm:$0xff]  ;;  %v8887_v60 = vld [vmem:[#allocation18_spill] sm:$0xff]  ;;  %v8888_v36 = vld [vmem:[#allocation31_spill] sm:$0xff] }
 0x387   : > { %v5018_v39 = vunpack.i.h.bf16 %v5016_v20  ;;  %v5017_v55 = vunpack.i.l.bf16 %v5016_v20 }
 0x389   : > { %v7871_v47 = vsel %vm1758_vm4, %v3568_v43, %v5017_v55  ;;  %v7874_v28 = vsel %vm1758_vm4, %v3569_v51, %v5018_v39  ;;  %5205 = vrot.lane.b32.xlu2 %v8884_v38, %s5520_s15  ;;  %5230 = vrot.lane.b32.xlu1 %v8885_v3, %s5520_s15 }
 0x38b   : > { %5240 = vrot.lane.b32.xlu0 %v8886_v42, %s5520_s15  ;;  %v5041_v29 = vpop.permute.xlu2 %5040  ;;  %v5021_v54 = vpop.permute.xlu1 %5020  ;;  %v2451_v42 = vld [vmem:[#allocation3 + $0x39] sm:$0xff] }
 0x38c   : > { %v5043_v63 = vunpack.i.h.bf16 %v5041_v29  ;;  %v5042_v11 = vunpack.i.l.bf16 %v5041_v29  ;;  %v5023_v62 = vunpack.i.h.bf16 %v5021_v54  ;;  %v5022_v18 = vunpack.i.l.bf16 %v5021_v54 }
 0x38d   : > { %v5031_v48 = vpop.permute.xlu0 %5030 }
 0x38e   : > { %v7884_v24 = vsel %vm1824_vm6, %v7714_v40, %v5042_v11  ;;  %v7888_v41 = vsel %vm1824_vm6, %v7711_v33, %v5043_v63  ;;  %v7892_v9 = vsel %vm1824_vm6, %v7693_v4, %v5023_v62  ;;  %v7896_v23 = vsel %vm1824_vm6, %v7696_v61, %v5022_v18  ;;  %v8890_v4 = vld [vmem:[#allocation15_spill] sm:$0xff]  ;;  %v2450_v63 = vld [vmem:[#allocation3 + $0x31] sm:$0xff]  ;;  %v8891_v11 = vld [vmem:[#allocation10_spill] sm:$0xff] }
 0x38f   : > { %v5033_v53 = vunpack.i.h.bf16 %v5031_v48  ;;  %v5032_v5 = vunpack.i.l.bf16 %v5031_v48  ;;  %v5254_v61 = vpack.i.bf16 %v2467_v45, %v2466_v57 }
 0x391   : > { %v7900_v40 = vsel %vm1824_vm6, %v8887_v60, %v5032_v5  ;;  %v7904_v33 = vsel %vm1824_vm6, %v8888_v36, %v5033_v53  ;;  %5220 = vrot.lane.b32.xlu2 %v8889_v2, %s5520_s15  ;;  %5245 = vrot.lane.b32.xlu1 %v8890_v4, %s5520_s15  ;;  %v2469_v60 = vld [vmem:[#allocation3 + $0x111] sm:$0xff]  ;;  %v2468_v4 = vld [vmem:[#allocation3 + $0x109] sm:$0xff] }
 0x393   : > { %5255 = vrot.lane.b32.xlu0 %v5254_v61, %s5521_s16  ;;  %v5056_v7 = vpop.permute.xlu2 %5055  ;;  %v5036_v17 = vpop.permute.xlu1 %5035 }
 0x394   : > { %v5058_v13 = vunpack.i.h.bf16 %v5056_v7  ;;  %v5057_v20 = vunpack.i.l.bf16 %v5056_v7  ;;  %v5038_v39 = vunpack.i.h.bf16 %v5036_v17  ;;  %v5037_v55 = vunpack.i.l.bf16 %v5036_v17 }
 0x395   : > { %v5046_v27 = vpop.permute.xlu0 %5045 }
 0x396   : > { %v7913_v51 = vsel %vm1824_vm6, %v7786_v1, %v5057_v20  ;;  %v7917_v30 = vsel %vm1824_vm6, %v7783_v52, %v5058_v13  ;;  %v7921_v43 = vsel %vm1824_vm6, %v7724_v16, %v5038_v39  ;;  %v7925_v38 = vsel %vm1824_vm6, %v7721_v44, %v5037_v55 }
 0x397   : > { %v5048_v29 = vunpack.i.h.bf16 %v5046_v27  ;;  %v5047_v54 = vunpack.i.l.bf16 %v5046_v27  ;;  %v5269_v44 = vpack.i.bf16 %v2451_v42, %v2450_v63  ;;  %v2453_v42 = vld [vmem:[#allocation3 + $0x51] sm:$0xff]  ;;  %v2452_v63 = vld [vmem:[#allocation3 + $0x49] sm:$0xff] }
 0x399   : > { %v7929_v1 = vsel %vm1824_vm6, %v7677_v34, %v5047_v54  ;;  %v7933_v52 = vsel %vm1824_vm6, %v7680_v50, %v5048_v29  ;;  %5235 = vrot.lane.b32.xlu2 %v8891_v11, %s5520_s15  ;;  %5260 = vrot.lane.b32.xlu1 %v8879_v15, %s5522_s17  ;;  %v8893_v11 = vld [vmem:[#allocation14_spill] sm:$0xff] }
 0x39b   : > { %5270 = vrot.lane.b32.xlu0 %v5269_v44, %s5521_s16  ;;  %v5071_v16 = vpop.permute.xlu2 %5070  ;;  %v5051_v62 = vpop.permute.xlu1 %5050 }
 0x39c   : > { %v5073_v18 = vunpack.i.h.bf16 %v5071_v16  ;;  %v5072_v48 = vunpack.i.l.bf16 %v5071_v16  ;;  %v5053_v34 = vunpack.i.h.bf16 %v5051_v62  ;;  %v5052_v45 = vunpack.i.l.bf16 %v5051_v62 }
 0x39d   : > { %v5061_v53 = vpop.permute.xlu0 %5060 }
 0x39e   : > { %v7942_v50 = vsel %vm1824_vm6, %v7826_v26, %v5072_v48  ;;  %v7946_v5 = vsel %vm1824_vm6, %v7823_v49, %v5073_v18  ;;  %v7950_v15 = vsel %vm1824_vm6, %v7766_v21, %v5053_v34  ;;  %v7954_v57 = vsel %vm1824_vm6, %v7763_v22, %v5052_v45  ;;  %v8892_v21 = vld [vmem:[#allocation27_spill] sm:$0xff]  ;;  %v2485_v34 = vld [vmem:[#allocation3 + $0x52] sm:$0xff] }
 0x39f   : > { %v5063_v36 = vunpack.i.h.bf16 %v5061_v53  ;;  %v5062_v2 = vunpack.i.l.bf16 %v5061_v53  ;;  %v5284_v22 = vpack.i.bf16 %v2469_v60, %v2468_v4  ;;  %v2484_v48 = vld [vmem:[#allocation3 + $0x4a] sm:$0xff] }
 0x3a1   : > { %v7958_v26 = vsel %vm1824_vm6, %v7751_v37, %v5062_v2  ;;  %v7962_v49 = vsel %vm1824_vm6, %v7754_v12, %v5063_v36  ;;  %5250 = vrot.lane.b32.xlu2 %v8892_v21, %s5523_s20  ;;  %5275 = vrot.lane.b32.xlu1 %v7440_v46, %s5522_s17  ;;  %v2471_v36 = vld [vmem:[#allocation3 + $0x129] sm:$0xff]  ;;  %v5304_v21 = vpack.i.bf16 %v2485_v34, %v2484_v48 }
 0x3a3   : > { %5285 = vrot.lane.b32.xlu0 %v5284_v22, %s5521_s16  ;;  %v5086_v61 = vpop.permute.xlu2 %5085  ;;  %v5066_v7 = vpop.permute.xlu1 %5065  ;;  %v2470_v22 = vld [vmem:[#allocation3 + $0x121] sm:$0xff] }
 0x3a4   : > { %v5088_v17 = vunpack.i.h.bf16 %v5086_v61  ;;  %v5087_v13 = vunpack.i.l.bf16 %v5086_v61  ;;  %v5068_v37 = vunpack.i.h.bf16 %v5066_v7  ;;  %v5067_v20 = vunpack.i.l.bf16 %v5066_v7 }
 0x3a5   : > { %v5076_v39 = vpop.permute.xlu0 %5075 }
 0x3a6   : > { %v7971_v12 = vsel %vm1824_vm6, %v7864_v35, %v5087_v13  ;;  %v7975_v55 = vsel %vm1824_vm6, %v7861_v56, %v5088_v17  ;;  %v7979_v46 = vsel %vm1824_vm6, %v7798_v10, %v5068_v37  ;;  %v7983_v27 = vsel %vm1824_vm6, %v7795_v6, %v5067_v20 }
 0x3a7   : > { %v5078_v29 = vunpack.i.h.bf16 %v5076_v39  ;;  %v5077_v54 = vunpack.i.l.bf16 %v5076_v39  ;;  %v5299_v6 = vpack.i.bf16 %v2453_v42, %v2452_v63  ;;  %v2502_v39 = vld [vmem:[#allocation3 + $0x122] sm:$0xff]  ;;  %v2503_v42 = vld [vmem:[#allocation3 + $0x12a] sm:$0xff] }
 0x3a9   : > { %v7987_v35 = vsel %vm1824_vm6, %v7741_v19, %v5077_v54  ;;  %v7991_v56 = vsel %vm1824_vm6, %v7744_v14, %v5078_v29  ;;  %5265 = vrot.lane.b32.xlu2 %v8893_v11, %s5523_s20  ;;  %5290 = vrot.lane.b32.xlu1 %v8885_v3, %s5522_s17 }
 0x3ab   : > { %5300 = vrot.lane.b32.xlu0 %v5299_v6, %s5521_s16  ;;  %v5101_v10 = vpop.permute.xlu2 %5100  ;;  %v5081_v44 = vpop.permute.xlu1 %5080  ;;  %v2420_v6 = vld [vmem:[#allocation3 + $0x48] sm:$0xff] }
 0x3ac   : > { %v5103_v16 = vunpack.i.h.bf16 %v5101_v10  ;;  %v5102_v62 = vunpack.i.l.bf16 %v5101_v10  ;;  %v5083_v18 = vunpack.i.h.bf16 %v5081_v44  ;;  %v5082_v19 = vunpack.i.l.bf16 %v5081_v44  ;;  %v2455_v10 = vld [vmem:[#allocation3 + $0x69] sm:$0xff] }
 0x3ad   : > { %v5091_v45 = vpop.permute.xlu0 %5090 }
 0x3ae   : > { %v8000_v14 = vsel %vm1890_vm9, %v7896_v23, %v5102_v62  ;;  %v8004_v53 = vsel %vm1890_vm9, %v7892_v9, %v5103_v16  ;;  %v8008_v3 = vsel %vm1824_vm6, %v7838_v31, %v5083_v18  ;;  %v8012_v60 = vsel %vm1824_vm6, %v7835_v32, %v5082_v19  ;;  %v8894_v31 = vld [vmem:[#allocation73_spill] sm:$0xff] }
 0x3af   : > { %v5093_v2 = vunpack.i.h.bf16 %v5091_v45  ;;  %v5092_v4 = vunpack.i.l.bf16 %v5091_v45  ;;  %v5314_v32 = vpack.i.bf16 %v2471_v36, %v2470_v22  ;;  %v5319_v18 = vpack.i.bf16 %v2503_v42, %v2502_v39 }
 0x3b1   : > { %v8016_v23 = vsel %vm1824_vm6, %v7817_v58, %v5092_v4  ;;  %v8020_v9 = vsel %vm1824_vm6, %v7820_v0, %v5093_v2  ;;  %5280 = vrot.lane.b32.xlu2 %v8894_v31, %s5523_s20  ;;  %5305 = vrot.lane.b32.xlu1 %v5304_v21, %s5522_s17  ;;  %v2421_v58 = vld [vmem:[#allocation3 + $0x50] sm:$0xff]  ;;  %v2439_v4 = vld [vmem:[#allocation3 + $0x128] sm:$0xff] }
 0x3b2   : > { %v5294_v62 = vpack.i.bf16 %v2421_v58, %v2420_v6  ;;  %v2487_v21 = vld [vmem:[#allocation3 + $0x6a] sm:$0xff] }
 0x3b3   : > { %5315 = vrot.lane.b32.xlu0 %v5314_v32, %s5521_s16  ;;  %v5116_v61 = vpop.permute.xlu2 %5115  ;;  %v5096_v7 = vpop.permute.xlu1 %5095 }
 0x3b4   : > { %v5118_v17 = vunpack.i.h.bf16 %v5116_v61  ;;  %v5117_v13 = vunpack.i.l.bf16 %v5116_v61  ;;  %v5098_v37 = vunpack.i.h.bf16 %v5096_v7  ;;  %v5097_v20 = vunpack.i.l.bf16 %v5096_v7  ;;  %v2438_v7 = vld [vmem:[#allocation3 + $0x120] sm:$0xff] }
 0x3b5   : > { %v5106_v29 = vpop.permute.xlu0 %5105 }
 0x3b6   : > { %v8028_v0 = vsel %vm1890_vm9, %v7925_v38, %v5117_v13  ;;  %v8032_v54 = vsel %vm1890_vm9, %v7921_v43, %v5118_v17  ;;  %v8036_v63 = vsel %vm1824_vm6, %v7874_v28, %v5098_v37  ;;  %v8040_v11 = vsel %vm1824_vm6, %v7871_v47, %v5097_v20  ;;  %v2454_v38 = vld [vmem:[#allocation3 + $0x61] sm:$0xff] }
 0x3b7   : > { %v5108_v44 = vunpack.i.h.bf16 %v5106_v29  ;;  %v5107_v16 = vunpack.i.l.bf16 %v5106_v29  ;;  %v5329_v47 = vpack.i.bf16 %v2455_v10, %v2454_v38  ;;  %v2473_v17 = vld [vmem:[#allocation3 + $0x141] sm:$0xff]  ;;  %v5309_v20 = vpack.i.bf16 %v2439_v4, %v2438_v7 }
 0x3b9   : > { %v8044_v19 = vsel %vm1890_vm9, %v7854_v25, %v5107_v16  ;;  %v8048_v43 = vsel %vm1890_vm9, %v7858_v8, %v5108_v44  ;;  %5295 = vrot.lane.b32.xlu2 %v5294_v62, %s5523_s20  ;;  %5320 = vrot.lane.b32.xlu1 %v5319_v18, %s5522_s17  ;;  %v2486_v25 = vld [vmem:[#allocation3 + $0x62] sm:$0xff] }
 0x3ba   : > { %v5334_v58 = vpack.i.bf16 %v2487_v21, %v2486_v25  ;;  %v2423_v16 = vld [vmem:[#allocation3 + $0x68] sm:$0xff] }
 0x3bb   : > { %5330 = vrot.lane.b32.xlu0 %v5329_v47, %s5521_s16  ;;  %v5131_v28 = vpop.permute.xlu2 %5130  ;;  %v5111_v48 = vpop.permute.xlu1 %5110  ;;  %v2505_v62 = vld [vmem:[#allocation3 + $0x142] sm:$0xff] }
 0x3bc   : > { %v5133_v34 = vunpack.i.h.bf16 %v5131_v28  ;;  %v5132_v45 = vunpack.i.l.bf16 %v5131_v28  ;;  %v5113_v36 = vunpack.i.h.bf16 %v5111_v48  ;;  %v5112_v2 = vunpack.i.l.bf16 %v5111_v48  ;;  %v2422_v48 = vld [vmem:[#allocation3 + $0x60] sm:$0xff] }
 0x3bd   : > { %v5121_v22 = vpop.permute.xlu0 %5120 }
 0x3be   : > { %v8055_v8 = vsel %vm1890_vm9, %v7954_v57, %v5132_v45  ;;  %v8059_v31 = vsel %vm1890_vm9, %v7950_v15, %v5133_v34  ;;  %v8063_v32 = vsel %vm1890_vm9, %v7900_v40, %v5112_v2  ;;  %v8067_v61 = vsel %vm1890_vm9, %v7904_v33, %v5113_v36  ;;  %v2472_v57 = vld [vmem:[#allocation3 + $0x139] sm:$0xff]  ;;  %v2457_v34 = vld [vmem:[#allocation3 + $0x81] sm:$0xff] }
 0x3bf   : > { %v5123_v13 = vunpack.i.h.bf16 %v5121_v22  ;;  %v5122_v37 = vunpack.i.l.bf16 %v5121_v22  ;;  %v5344_v40 = vpack.i.bf16 %v2473_v17, %v2472_v57  ;;  %v5324_v2 = vpack.i.bf16 %v2423_v16, %v2422_v48  ;;  %v2488_v17 = vld [vmem:[#allocation3 + $0x7a] sm:$0xff] }
 0x3c0   : > { %v2507_v48 = vld [vmem:[#allocation3 + $0x15a] sm:$0xff] }
 0x3c1   : > { %v8071_v39 = vsel %vm1890_vm9, %v7884_v24, %v5122_v37  ;;  %v8075_v15 = vsel %vm1890_vm9, %v7888_v41, %v5123_v13  ;;  %5310 = vrot.lane.b32.xlu2 %v5309_v20, %s5523_s20  ;;  %5335 = vrot.lane.b32.xlu1 %v5334_v58, %s5522_s17  ;;  %v2504_v24 = vld [vmem:[#allocation3 + $0x13a] sm:$0xff]  ;;  %v2489_v13 = vld [vmem:[#allocation3 + $0x82] sm:$0xff] }
 0x3c2   : > { %v5349_v4 = vpack.i.bf16 %v2505_v62, %v2504_v24  ;;  %v2475_v20 = vld [vmem:[#allocation3 + $0x159] sm:$0xff] }
 0x3c3   : > { %5345 = vrot.lane.b32.xlu0 %v5344_v40, %s5521_s16  ;;  %v5146_v33 = vpop.permute.xlu2 %5145  ;;  %v5126_v42 = vpop.permute.xlu1 %5125  ;;  %v5364_v40 = vpack.i.bf16 %v2489_v13, %v2488_v17 }
 0x3c4   : > { %v5148_v29 = vunpack.i.h.bf16 %v5146_v33  ;;  %v5147_v6 = vunpack.i.l.bf16 %v5146_v33  ;;  %v5128_v10 = vunpack.i.h.bf16 %v5126_v42  ;;  %v5127_v44 = vunpack.i.l.bf16 %v5126_v42  ;;  %v2474_v33 = vld [vmem:[#allocation3 + $0x151] sm:$0xff] }
 0x3c5   : > { %v5136_v18 = vpop.permute.xlu0 %5135 }
 0x3c6   : > { %v8082_v41 = vsel %vm1890_vm9, %v7983_v27, %v5147_v6  ;;  %v8086_v38 = vsel %vm1890_vm9, %v7979_v46, %v5148_v29  ;;  %v8090_v47 = vsel %vm1890_vm9, %v7929_v1, %v5127_v44  ;;  %v8094_v28 = vsel %vm1890_vm9, %v7933_v52, %v5128_v10  ;;  %v2456_v27 = vld [vmem:[#allocation3 + $0x79] sm:$0xff] }
 0x3c7   : > { %v5138_v45 = vunpack.i.h.bf16 %v5136_v18  ;;  %v5137_v36 = vunpack.i.l.bf16 %v5136_v18  ;;  %v5359_v1 = vpack.i.bf16 %v2457_v34, %v2456_v27  ;;  %v2506_v18 = vld [vmem:[#allocation3 + $0x152] sm:$0xff] }
 0x3c8   : > { %v2459_v27 = vld [vmem:[#allocation3 + $0x99] sm:$0xff] }
 0x3c9   : > { %v8098_v25 = vsel %vm1890_vm9, %v7913_v51, %v5137_v36  ;;  %v8102_v46 = vsel %vm1890_vm9, %v7917_v30, %v5138_v45  ;;  %5325 = vrot.lane.b32.xlu2 %v5324_v2, %s5523_s20  ;;  %5350 = vrot.lane.b32.xlu1 %v5349_v4, %s5522_s17  ;;  %v2424_v4 = vld [vmem:[#allocation3 + $0x78] sm:$0xff] }
 0x3cb   : > { %5360 = vrot.lane.b32.xlu0 %v5359_v1, %s5521_s16  ;;  %v5161_v52 = vpop.permute.xlu2 %5160  ;;  %v8107_v21 = vpop.permute.xlu1 %5140 }
 0x3cc   : > { %v5163_v22 = vunpack.i.h.bf16 %v5161_v52  ;;  %v5162_v7 = vunpack.i.l.bf16 %v5161_v52 }
 0x3cd   : > { %v5151_v51 = vpop.permute.xlu0 %5150 }
 0x3ce   : > { %v8111_v37 = vsel %vm1890_vm9, %v8012_v60, %v5162_v7  ;;  %v8115_v30 = vsel %vm1890_vm9, %v8008_v3, %v5163_v22  ;;  %v5153_v58 = vunpack.i.h.bf16 %v5151_v51  ;;  %v5152_v57 = vunpack.i.l.bf16 %v5151_v51  ;;  %v8895_v60 = vld [vmem:[#allocation23_spill] sm:$0xff]  ;;  %v3822_v51 = vld [vmem:[%s8581_s3 + $0x20] sm:$0xf] }
 0x3cf   : > { %v5374_v3 = vpack.i.bf16 %v2475_v20, %v2474_v33  ;;  %v5379_v7 = vpack.i.bf16 %v2507_v48, %v2506_v18  ;;  %v2491_v33 = vld [vmem:[#allocation3 + $0x9a] sm:$0xff] }
 0x3d0   : > { %v8119_v42 = vsel %vm1890_vm9, %v7942_v50, %v5152_v57  ;;  %v8123_v29 = vsel %vm1890_vm9, %v7946_v5, %v5153_v58  ;;  %v2425_v50 = vld [vmem:[#allocation3 + $0x80] sm:$0xff] }
 0x3d1   : > { %5340 = vrot.lane.b32.xlu2 %v8895_v60, %s5523_s20  ;;  %5365 = vrot.lane.b32.xlu1 %v5364_v40, %s5522_s17  ;;  %v5354_v22 = vpack.i.bf16 %v2425_v50, %v2424_v4  ;;  %v2490_v40 = vld [vmem:[#allocation3 + $0x92] sm:$0xff] }
 0x3d2   : > { %v5394_v18 = vpack.i.bf16 %v2491_v33, %v2490_v40  ;;  %v2460_v40 = vld [vmem:[#allocation3 + $0xa9] sm:$0xff] }
 0x3d3   : > { %5375 = vrot.lane.b32.xlu0 %v5374_v3, %s5521_s16  ;;  %v5176_v6 = vpop.permute.xlu2 %5175  ;;  %v5156_v10 = vpop.permute.xlu1 %5155  ;;  %v3844_v3 = vunpack.c.l.b16 %v3822_v51  ;;  %v2461_v51 = vld [vmem:[#allocation3 + $0xb1] sm:$0xff] }
 0x3d4   : > { %v5178_v44 = vunpack.i.h.bf16 %v5176_v6  ;;  %v5177_v16 = vunpack.i.l.bf16 %v5176_v6  ;;  %v5158_v24 = vunpack.i.h.bf16 %v5156_v10  ;;  %v5157_v62 = vunpack.i.l.bf16 %v5156_v10 }
 0x3d5   : > { %v5166_v34 = vpop.permute.xlu0 %5165  ;;  %v3849_v48 = vpack.c.b16 %v3844_v3, %v3844_v3  ;;  %v5419_v33 = vpack.i.bf16 %v2461_v51, %v2460_v40  ;;  %v4187_v3 = vld [vmem:[%s8581_s3 + $0x8] sm:$0xff] }
 0x3d6   : > { %v8131_v5 = vsel %vm1890_vm9, %v8040_v11, %v5177_v16  ;;  %v8135_v45 = vsel %vm1890_vm9, %v8036_v63, %v5178_v44  ;;  %v8139_v36 = vsel %vm1890_vm9, %v7987_v35, %v5157_v62  ;;  %v8143_v2 = vsel %vm1890_vm9, %v7991_v56, %v5158_v24  ;;  %v2458_v11 = vld [vmem:[#allocation3 + $0x91] sm:$0xff] }
 0x3d7   : > { %v5168_v1 = vunpack.i.h.bf16 %v5166_v34  ;;  %v5167_v52 = vunpack.i.l.bf16 %v5166_v34  ;;  %v5389_v35 = vpack.i.bf16 %v2459_v27, %v2458_v11  ;;  %v2442_v24 = vld [vmem:[#allocation3 + $0x150] sm:$0xff]  ;;  %v3905_v34 = vsel %vm3903_vm13, %v3849_v48, 0 }
 0x3d8   : > { %v2477_v62 = vld [vmem:[#allocation3 + $0x171] sm:$0xff]  ;;  %4193 = vmatpush.bf16.msra.mxu2 %v3905_v34  ;;  %3910 = vmatpush.bf16.msra.mxu1 %v3905_v34 }
 0x3d9   : > { %v8147_v17 = vsel %vm1890_vm9, %v7971_v12, %v5167_v52  ;;  %v8151_v63 = vsel %vm1890_vm9, %v7975_v55, %v5168_v1  ;;  %5355 = vrot.lane.b32.xlu2 %v5354_v22, %s5523_s20  ;;  %5380 = vrot.lane.b32.xlu1 %v5379_v7, %s5522_s17  ;;  %v2443_v55 = vld [vmem:[#allocation3 + $0x158] sm:$0xff]  ;;  %v2508_v22 = vld [vmem:[#allocation3 + $0x16a] sm:$0xff] }
 0x3da   : > { %v5369_v50 = vpack.i.bf16 %v2443_v55, %v2442_v24  ;;  %v2427_v52 = vld [vmem:[#allocation3 + $0x98] sm:$0xff]  ;;  %v4188_v55 = vld [vmem:[%s8581_s3 + $0x10] sm:$0xff] }
 0x3db   : > { %5390 = vrot.lane.b32.xlu0 %v5389_v35, %s5521_s16  ;;  %v5191_v56 = vpop.permute.xlu2 %5190  ;;  %v5171_v13 = vpop.permute.xlu1 %5170  ;;  %v2509_v7 = vld [vmem:[#allocation3 + $0x172] sm:$0xff] }
 0x3dc   : > { %v5193_v12 = vunpack.i.h.bf16 %v5191_v56  ;;  %v5192_v20 = vunpack.i.l.bf16 %v5191_v56  ;;  %v5173_v58 = vunpack.i.h.bf16 %v5171_v13  ;;  %v5172_v57 = vunpack.i.l.bf16 %v5171_v13  ;;  %v2426_v13 = vld [vmem:[#allocation3 + $0x90] sm:$0xff] }
 0x3dd   : > { %v8159_v60 = vpop.permute.xlu0 %5180  ;;  %v2493_v48 = vld [vmem:[#allocation3 + $0xb2] sm:$0xff] }
 0x3de   : > { %v8163_v6 = vsel %vm3666_vm12, %v8063_v32, %v5192_v20  ;;  %v8167_v10 = vsel %vm3666_vm12, %v8067_v61, %v5193_v12  ;;  %v8171_v44 = vsel %vm1890_vm9, %v8016_v23, %v5172_v57  ;;  %v8175_v16 = vsel %vm1890_vm9, %v8020_v9, %v5173_v58  ;;  %v2476_v32 = vld [vmem:[#allocation3 + $0x169] sm:$0xff] }
 0x3df   : > { %v5404_v61 = vpack.i.bf16 %v2477_v62, %v2476_v32  ;;  %v4189_v23 = vld [vmem:[%s8581_s3 + $0x18] sm:$0xff]  ;;  %v5384_v58 = vpack.i.bf16 %v2427_v52, %v2426_v13  ;;  %v8193_v57 = vpack.i.bf16 %v2509_v7, %v2508_v22  ;;  %v4186_v7 = vld [vmem:[%s8581_s3] sm:$0xff] }
 0x3e0   : > { %4194 = vmatpush.bf16.msra.mxu2 %v4189_v23  ;;  %3911 = vmatpush.bf16.msra.mxu1 %v4189_v23  ;;  %v2444_v23 = vld [vmem:[#allocation3 + $0x168] sm:$0xff] }
 0x3e1   : > { %5370 = vrot.lane.b32.xlu2 %v5369_v50, %s5523_s20  ;;  %5395 = vrot.lane.b32.xlu1 %v5394_v18, %s5522_s17  ;;  %v2445_v50 = vld [vmem:[#allocation3 + $0x170] sm:$0xff] }
 0x3e2   : > { %v2492_v18 = vld [vmem:[#allocation3 + $0xaa] sm:$0xff]  ;;  %v5399_v52 = vpack.i.bf16 %v2445_v50, %v2444_v23 }
 0x3e3   : > { %5405 = vrot.lane.b32.xlu0 %v5404_v61, %s5521_s16  ;;  %v5206_v9 = vpop.permute.xlu2 %5205  ;;  %v8183_v4 = vpop.permute.xlu1 %5185  ;;  %v5424_v22 = vpack.i.bf16 %v2493_v48, %v2492_v18  ;;  %v2416_v23 = vld [vmem:[#allocation3 + $0x18a] sm:$0xff] }
 0x3e4   : > { %v5208_v27 = vunpack.i.h.bf16 %v5206_v9  ;;  %v5207_v1 = vunpack.i.l.bf16 %v5206_v9  ;;  %4195 = vmatpush.bf16.msra.mxu2 %v4188_v55  ;;  %3912 = vmatpush.bf16.msra.mxu1 %v4188_v55  ;;  %v2447_v9 = vld [vmem:[#allocation3 + $0x188] sm:$0xff] }
 0x3e5   : > { %v5196_v11 = vpop.permute.xlu0 %5195 }
 0x3e6   : > { %v8187_v35 = vsel %vm3666_vm12, %v8090_v47, %v5207_v1  ;;  %v8191_v56 = vsel %vm3666_vm12, %v8094_v28, %v5208_v27  ;;  %v5198_v12 = vunpack.i.h.bf16 %v5196_v11  ;;  %v5197_v20 = vunpack.i.l.bf16 %v5196_v11  ;;  %v2446_v11 = vld [vmem:[#allocation3 + $0x180] sm:$0xff] }
 0x3e7   : > { %v5434_v13 = vpack.i.bf16 %v2447_v9, %v2446_v11  ;;  %v2449_v11 = vld [vmem:[#allocation3 + $0x1a0] sm:$0xff] }
 0x3e8   : > { %v8200_v47 = vsel %vm3666_vm12, %v8028_v0, %v5197_v20  ;;  %v8204_v28 = vsel %vm3666_vm12, %v8032_v54, %v5198_v12  ;;  %4196 = vmatpush.bf16.msra.mxu2 %v4187_v3  ;;  %3913 = vmatpush.bf16.msra.mxu1 %v4187_v3  ;;  %v2431_v3 = vld [vmem:[#allocation3 + $0xc8] sm:$0xff] }
 0x3e9   : > { %5385 = vrot.lane.b32.xlu2 %v5384_v58, %s5523_s20  ;;  %5410 = vrot.lane.b32.xlu1 %v8193_v57, %s5522_s17 }
 0x3eb   : > { %5420 = vrot.lane.b32.xlu0 %v5419_v33, %s5521_s16  ;;  %v8213_v24 = vpop.permute.xlu2 %5220  ;;  %v5201_v0 = vpop.permute.xlu1 %5200  ;;  %v2428_v33 = vld [vmem:[#allocation3 + $0xa8] sm:$0xff] }
 0x3ec   : > { %v5203_v62 = vunpack.i.h.bf16 %v5201_v0  ;;  %v5202_v54 = vunpack.i.l.bf16 %v5201_v0  ;;  %4197 = vmatpush.bf16.msra.mxu2 %v4186_v7  ;;  %3914 = vmatpush.bf16.msra.mxu1 %v4186_v7  ;;  %v2448_v7 = vld [vmem:[#allocation3 + $0x198] sm:$0xff] }
 0x3ed   : > { %v5211_v32 = vpop.permute.xlu0 %5210 }
 0x3ee   : > { %v8217_v61 = vsel %vm3666_vm12, %v8071_v39, %v5202_v54  ;;  %v8221_v34 = vsel %vm3666_vm12, %v8075_v15, %v5203_v62  ;;  %v5213_v27 = vunpack.i.h.bf16 %v5211_v32  ;;  %v5212_v1 = vunpack.i.l.bf16 %v5211_v32  ;;  %v2430_v62 = vld [vmem:[#allocation3 + $0xc0] sm:$0xff] }
 0x3ef   : > { %v5449_v54 = vpack.i.bf16 %v2431_v3, %v2430_v62  ;;  %v2462_v32 = vld [vmem:[#allocation3 + $0xc1] sm:$0xff]  ;;  %v5142_v3 = vunpack.i.l.bf16 %v8107_v21  ;;  %v5143_v62 = vunpack.i.h.bf16 %v8107_v21 }
 0x3f0   : > { %v8228_v39 = vsel %vm3666_vm12, %v8055_v8, %v5212_v1  ;;  %v8232_v15 = vsel %vm3666_vm12, %v8059_v31, %v5213_v27  ;;  %v2429_v8 = vld [vmem:[#allocation3 + $0xb0] sm:$0xff] }
 0x3f1   : > { %5400 = vrot.lane.b32.xlu2 %v5399_v52, %s5523_s20  ;;  %5425 = vrot.lane.b32.xlu1 %v5424_v22, %s5522_s17  ;;  %v5414_v0 = vpack.i.bf16 %v2429_v8, %v2428_v33  ;;  %v2513_v8 = vld [vmem:[#allocation3 + $0x1a2] sm:$0xff]  ;;  %v3651_v21 = vsel %vm1890_vm9, %v7962_v49, %v5143_v62 }
 0x3f3   : > { %5435 = vrot.lane.b32.xlu0 %v5434_v13, %s5523_s20  ;;  %v8237_v51 = vpop.permute.xlu2 %5235  ;;  %v5216_v12 = vpop.permute.xlu1 %5215 }
 0x3f4   : > { %v5218_v20 = vunpack.i.h.bf16 %v5216_v12  ;;  %v5217_v58 = vunpack.i.l.bf16 %v5216_v12 }
 0x3f5   : > { %v8239_v55 = vpop.permute.xlu0 %5225 }
 0x3f6   : > { %v8243_v31 = vsel %vm3666_vm12, %v8098_v25, %v5217_v58  ;;  %v8247_v40 = vsel %vm3666_vm12, %v8102_v46, %v5218_v20  ;;  %v2463_v25 = vld [vmem:[#allocation3 + $0xc9] sm:$0xff]  ;;  %v2512_v58 = vld [vmem:[#allocation3 + $0x19a] sm:$0xff] }
 0x3f7   : > { %v2415_v46 = vld [vmem:[#allocation3 + $0x182] sm:$0xff]  ;;  %v5454_v1 = vpack.i.bf16 %v2463_v25, %v2462_v32  ;;  %v5479_v25 = vpack.i.bf16 %v2513_v8, %v2512_v58 }
 0x3f8   : > { %v5464_v22 = vpack.i.bf16 %v2416_v23, %v2415_v46 }
 0x3f9   : > { %5415 = vrot.lane.b32.xlu2 %v5414_v0, %s5523_s20  ;;  %5440 = vrot.lane.b32.xlu1 %v7788_v59, %s5521_s16 }
 0x3fb   : > { %5450 = vrot.lane.b32.xlu0 %v5449_v54, %s5523_s20  ;;  %v5251_v50 = vpop.permute.xlu2 %5250  ;;  %v8253_v18 = vpop.permute.xlu1 %5230  ;;  %v5222_v54 = vunpack.i.l.bf16 %v8213_v24 }
 0x3fc   : > { %v5253_v32 = vunpack.i.h.bf16 %v5251_v50  ;;  %v5252_v46 = vunpack.i.l.bf16 %v5251_v50 }
 0x3fd   : > { %v5241_v48 = vpop.permute.xlu0 %5240 }
 0x3fe   : > { %v5243_v9 = vunpack.i.h.bf16 %v5241_v48  ;;  %v5242_v27 = vunpack.i.l.bf16 %v5241_v48  ;;  %v5223_v48 = vunpack.i.h.bf16 %v8213_v24 }
 0x400   : > { %v8257_v52 = vsel %vm3666_vm12, %v8111_v37, %v5242_v27  ;;  %v8261_v59 = vsel %vm3666_vm12, %v8115_v30, %v5243_v9  ;;  %v5469_v30 = vpack.i.bf16 %v2449_v11, %v2448_v7  ;;  %v2494_v27 = vld [vmem:[#allocation3 + $0xc2] sm:$0xff] }
 0x401   : > { %5430 = vrot.lane.b32.xlu2 %v8193_v57, %s5520_s15  ;;  %5455 = vrot.lane.b32.xlu1 %v5454_v1, %s5521_s16  ;;  %v2495_v1 = vld [vmem:[#allocation3 + $0xca] sm:$0xff]  ;;  %v2433_v11 = vld [vmem:[#allocation3 + $0xe0] sm:$0xff] }
 0x402   : > { %v5459_v8 = vpack.i.bf16 %v2495_v1, %v2494_v27  ;;  %v2481_v27 = vld [vmem:[#allocation3 + $0x1a1] sm:$0xff] }
 0x403   : > { %5465 = vrot.lane.b32.xlu0 %v5464_v22, %s5520_s15  ;;  %v8267_v13 = vpop.permute.xlu2 %5265  ;;  %v5246_v12 = vpop.permute.xlu1 %5245 }
 0x404   : > { %v5248_v20 = vunpack.i.h.bf16 %v5246_v12  ;;  %v5247_v37 = vunpack.i.l.bf16 %v5246_v12 }
 0x405   : > { %v5256_v33 = vpop.permute.xlu0 %5255 }
 0x406   : > { %v8272_v57 = vsel %vm3666_vm12, %v8147_v17, %v5247_v37  ;;  %v8276_v0 = vsel %vm3666_vm12, %v8151_v63, %v5248_v20  ;;  %v3650_v17 = vsel %vm1890_vm9, %v7958_v26, %v5142_v3  ;;  %v5258_v23 = vunpack.i.h.bf16 %v5256_v33  ;;  %v2497_v3 = vld [vmem:[#allocation3 + $0xe2] sm:$0xff] }
 0x407   : > { %v5257_v63 = vunpack.i.l.bf16 %v5256_v33  ;;  %v3683_v9 = vsel %vm3666_vm12, %v3650_v17, %v5222_v54  ;;  %v2432_v33 = vld [vmem:[#allocation3 + $0xd8] sm:$0xff]  ;;  %v5268_v17 = vunpack.i.h.bf16 %v8267_v13 }
 0x408   : > { %v3716_v12 = vsel %vm3699_vm14, %v3683_v9, %v5252_v46  ;;  %v5484_v62 = vpack.i.bf16 %v2433_v11, %v2432_v33  ;;  %v5182_v46 = vunpack.i.l.bf16 %v8159_v60 }
 0x409   : > { %5445 = vrot.lane.b32.xlu2 %v5464_v22, %s5522_s17  ;;  %5470 = vrot.lane.b32.xlu1 %v5469_v30, %s5523_s20  ;;  %v3684_v22 = vsel %vm3666_vm12, %v3651_v21, %v5223_v48  ;;  %v3749_v37 = vsel %vm3732_vm15, %v3716_v12, %v5257_v63  ;;  %v2496_v30 = vld [vmem:[#allocation3 + $0xda] sm:$0xff]  ;;  %v5183_v48 = vunpack.i.h.bf16 %v8159_v60  ;;  %v5267_v63 = vunpack.i.l.bf16 %v8267_v13 }
 0x40a   : > { %v3717_v49 = vsel %vm3699_vm14, %v3684_v22, %v5253_v32  ;;  %v3667_v22 = vsel %vm3666_vm12, %v8000_v14, %v5182_v46  ;;  %v5228_v14 = vunpack.i.h.bf16 %v8239_v55 }
 0x40b   : > { %5480 = vrot.lane.b32.xlu0 %v5479_v25, %s5522_s17  ;;  %v8289_v24 = vpop.permute.xlu2 %5280  ;;  %v5261_v50 = vpop.permute.xlu1 %5260  ;;  %v3750_v58 = vsel %vm3732_vm15, %v3717_v49, %v5258_v23  ;;  %v5494_v23 = vpack.i.bf16 %v2497_v3, %v2496_v30  ;;  %v3668_v13 = vsel %vm3666_vm12, %v8004_v53, %v5183_v48  ;;  %v3700_v11 = vsel %vm3699_vm14, %v3667_v22, %v5267_v63 }
 0x40c   : > { %v5263_v7 = vunpack.i.h.bf16 %v5261_v50  ;;  %v5262_v26 = vunpack.i.l.bf16 %v5261_v50  ;;  %v2480_v50 = vld [vmem:[#allocation3 + $0x199] sm:$0xff]  ;;  %v3701_v12 = vsel %vm3699_vm14, %v3668_v13, %v5268_v17  ;;  %v5227_v53 = vunpack.i.l.bf16 %v8239_v55 }
 0x40d   : > { %v5271_v20 = vpop.permute.xlu0 %5270  ;;  %v5283_v3 = vunpack.i.h.bf16 %v8289_v24  ;;  %v3686_v17 = vsel %vm3666_vm12, %v8086_v38, %v5228_v14  ;;  %v5188_v38 = vunpack.i.h.bf16 %v8183_v4 }
 0x40e   : > { %v3782_v54 = vsel %vm3765_vm0, %v3749_v37, %v5262_v26  ;;  %v3783_v25 = vsel %vm3765_vm0, %v3750_v58, %v5263_v7  ;;  %v5273_v21 = vunpack.i.h.bf16 %v5271_v20  ;;  %v5272_v9 = vunpack.i.l.bf16 %v5271_v20 }
 0x40f   : > { %v3806_v32 = vpack.c.bf16 %v3783_v25, %v3782_v54  ;;  %v5474_v20 = vpack.i.bf16 %v2481_v27, %v2480_v50 }
 0x410   : > { %v3733_v37 = vsel %vm3732_vm15, %v3700_v11, %v5272_v9  ;;  %v3734_v58 = vsel %vm3732_vm15, %v3701_v12, %v5273_v21 }
 0x411   : > { %5460 = vrot.lane.b32.xlu2 %v5459_v8, %s5522_s17  ;;  %5485 = vrot.lane.b32.xlu1 %v5484_v62, %s5523_s20  ;;  %v5282_v62 = vunpack.i.l.bf16 %v8289_v24  ;;  %v3719_v24 = vsel %vm3699_vm14, %v3686_v17, %v5283_v3 }
 0x412   : > { %4172 = vmatmul.msk.bf16.vlgmr.msra.gmra.mxu2 %vm3854_vm1, %v3806_v32  ;;  %v3685_v32 = vsel %vm3666_vm12, %v8082_v41, %v5227_v53 }
 0x413   : > { %5495 = vrot.lane.b32.xlu0 %v5494_v23, %s5522_s17  ;;  %v5296_v1 = vpop.permute.xlu2 %5295  ;;  %v5276_v60 = vpop.permute.xlu1 %5275  ;;  %v2465_v23 = vld [vmem:[#allocation3 + $0xe1] sm:$0xff]  ;;  %v3718_v21 = vsel %vm3699_vm14, %v3685_v32, %v5282_v62 }
 0x414   : > { %v5278_v7 = vunpack.i.h.bf16 %v5276_v60  ;;  %v5277_v26 = vunpack.i.l.bf16 %v5276_v60  ;;  %v2464_v60 = vld [vmem:[#allocation3 + $0xd9] sm:$0xff]  ;;  %v5298_v11 = vunpack.i.h.bf16 %v5296_v1  ;;  %v5297_v12 = vunpack.i.l.bf16 %v5296_v1 }
 0x415   : > { %v5286_v49 = vpop.permute.xlu0 %5285  ;;  %v5489_v22 = vpack.i.bf16 %v2465_v23, %v2464_v60 }
 0x416   : > { %v3766_v8 = vsel %vm3765_vm0, %v3733_v37, %v5277_v26  ;;  %v3767_v33 = vsel %vm3765_vm0, %v3734_v58, %v5278_v7  ;;  %v5288_v54 = vunpack.i.h.bf16 %v5286_v49  ;;  %v5287_v25 = vunpack.i.l.bf16 %v5286_v49 }
 0x417   : > { %v3798_v30 = vpack.c.bf16 %v3767_v33, %v3766_v8  ;;  %v5187_v7 = vunpack.i.l.bf16 %v8183_v4  ;;  %v3670_v33 = vsel %vm3666_vm12, %v8048_v43, %v5188_v38 }
 0x418   : > { %v3751_v50 = vsel %vm3732_vm15, %v3718_v21, %v5287_v25  ;;  %v3752_v27 = vsel %vm3732_vm15, %v3719_v24, %v5288_v54  ;;  %v3703_v1 = vsel %vm3699_vm14, %v3670_v33, %v5298_v11 }
 0x419   : > { %5475 = vrot.lane.b32.xlu2 %v5474_v20, %s5521_s16  ;;  %4164 = vmatmul.msk.bf16.vlgmr.msra.gmra.mxu1 %vm3854_vm1, %v3798_v30  ;;  %v3669_v8 = vsel %vm3666_vm12, %v8044_v19, %v5187_v7  ;;  %v5233_v19 = vunpack.i.h.bf16 %v8253_v18 }
 0x41a   : > { %v3702_v4 = vsel %vm3699_vm14, %v3669_v8, %v5297_v12 }
 0x41b   : > { %v5311_v48 = vpop.permute.xlu2 %5310  ;;  %v5291_v46 = vpop.permute.xlu1 %5290 }
 0x41c   : > { %v5293_v55 = vunpack.i.h.bf16 %v5291_v46  ;;  %v5292_v63 = vunpack.i.l.bf16 %v5291_v46  ;;  %v5232_v46 = vunpack.i.l.bf16 %v8253_v18  ;;  %v5313_v32 = vunpack.i.h.bf16 %v5311_v48 }
 0x41d   : > { %v5301_v9 = vpop.permute.xlu0 %5300  ;;  %v5312_v17 = vunpack.i.l.bf16 %v5311_v48 }
 0x41e   : > { %v3784_v13 = vsel %vm3765_vm0, %v3751_v50, %v5292_v63  ;;  %v3785_v41 = vsel %vm3765_vm0, %v3752_v27, %v5293_v55  ;;  %v5303_v49 = vunpack.i.h.bf16 %v5301_v9  ;;  %v5302_v20 = vunpack.i.l.bf16 %v5301_v9 }
 0x41f   : > { %v3807_v26 = vpack.c.bf16 %v3785_v41, %v3784_v13  ;;  %v3687_v24 = vsel %vm3666_vm12, %v8119_v42, %v5232_v46  ;;  %v3688_v9 = vsel %vm3666_vm12, %v8123_v29, %v5233_v19 }
 0x420   : > { %v3735_v3 = vsel %vm3732_vm15, %v3702_v4, %v5302_v20  ;;  %v3736_v62 = vsel %vm3732_vm15, %v3703_v1, %v5303_v49  ;;  %v3720_v60 = vsel %vm3699_vm14, %v3687_v24, %v5312_v17  ;;  %v3721_v18 = vsel %vm3699_vm14, %v3688_v9, %v5313_v32 }
 0x421   : > { %5490 = vrot.lane.b32.xlu2 %v5489_v22, %s5521_s16 }
 0x422   : > { %4173 = vmatmul.msk.bf16.gmra.mxu2 %vm3854_vm1, %v3807_v26 }
 0x423   : > { %v5326_v37 = vpop.permute.xlu2 %5325  ;;  %v5306_v58 = vpop.permute.xlu1 %5305 }
 0x424   : > { %v5308_v14 = vunpack.i.h.bf16 %v5306_v58  ;;  %v5307_v53 = vunpack.i.l.bf16 %v5306_v58  ;;  %v5328_v42 = vunpack.i.h.bf16 %v5326_v37  ;;  %v5327_v26 = vunpack.i.l.bf16 %v5326_v37 }
 0x425   : > { %v5316_v30 = vpop.permute.xlu0 %5315 }
 0x426   : > { %v3768_v54 = vsel %vm3765_vm0, %v3735_v3, %v5307_v53  ;;  %v3769_v25 = vsel %vm3765_vm0, %v3736_v62, %v5308_v14  ;;  %v5318_v55 = vunpack.i.h.bf16 %v5316_v30  ;;  %v5317_v63 = vunpack.i.l.bf16 %v5316_v30 }
 0x427   : > { %v3799_v43 = vpack.c.bf16 %v3769_v25, %v3768_v54  ;;  %v3704_v8 = vsel %vm3699_vm14, %v8163_v6, %v5327_v26  ;;  %v3705_v33 = vsel %vm3699_vm14, %v8167_v10, %v5328_v42  ;;  %v5238_v30 = vunpack.i.h.bf16 %v8237_v51 }
 0x428   : > { %v3753_v48 = vsel %vm3732_vm15, %v3720_v60, %v5317_v63  ;;  %v3754_v13 = vsel %vm3732_vm15, %v3721_v18, %v5318_v55  ;;  %v5237_v3 = vunpack.i.l.bf16 %v8237_v51 }
 0x429   : > { %4165 = vmatmul.msk.bf16.gmra.mxu1 %vm3854_vm1, %v3799_v43  ;;  %v3690_v32 = vsel %vm3666_vm12, %v8143_v2, %v5238_v30 }
 0x42a   : > { %v3689_v43 = vsel %vm3666_vm12, %v8139_v36, %v5237_v3 }
 0x42b   : > { %v5341_v23 = vpop.permute.xlu2 %5340  ;;  %v5321_v21 = vpop.permute.xlu1 %5320 }
 0x42c   : > { %v5323_v50 = vunpack.i.h.bf16 %v5321_v21  ;;  %v5322_v27 = vunpack.i.l.bf16 %v5321_v21  ;;  %v5343_v54 = vunpack.i.h.bf16 %v5341_v23  ;;  %v5342_v25 = vunpack.i.l.bf16 %v5341_v23 }
 0x42d   : > { %v5331_v22 = vpop.permute.xlu0 %5330 }
 0x42e   : > { %v3786_v41 = vsel %vm3765_vm0, %v3753_v48, %v5322_v27  ;;  %v3787_v38 = vsel %vm3765_vm0, %v3754_v13, %v5323_v50  ;;  %v5333_v11 = vunpack.i.h.bf16 %v5331_v22  ;;  %v5332_v29 = vunpack.i.l.bf16 %v5331_v22 }
 0x42f   : > { %v3808_v7 = vpack.c.bf16 %v3787_v38, %v3786_v41  ;;  %v3722_v63 = vsel %vm3699_vm14, %v3689_v43, %v5342_v25  ;;  %v3723_v51 = vsel %vm3699_vm14, %v3690_v32, %v5343_v54 }
 0x430   : > { %v3737_v53 = vsel %vm3732_vm15, %v3704_v8, %v5332_v29  ;;  %v3738_v4 = vsel %vm3732_vm15, %v3705_v33, %v5333_v11 }
 0x432   : > { %4174 = vmatmul.msk.bf16.gmra.mxu2 %vm3854_vm1, %v3808_v7 }
 0x433   : > { %v5356_v12 = vpop.permute.xlu2 %5355  ;;  %v5336_v49 = vpop.permute.xlu1 %5335 }
 0x434   : > { %v5338_v20 = vunpack.i.h.bf16 %v5336_v49  ;;  %v5337_v58 = vunpack.i.l.bf16 %v5336_v49  ;;  %v5358_v36 = vunpack.i.h.bf16 %v5356_v12  ;;  %v5357_v60 = vunpack.i.l.bf16 %v5356_v12 }
 0x435   : > { %v5346_v14 = vpop.permute.xlu0 %5345 }
 0x436   : > { %v3770_v37 = vsel %vm3765_vm0, %v3737_v53, %v5337_v58  ;;  %v3771_v1 = vsel %vm3765_vm0, %v3738_v4, %v5338_v20  ;;  %v5348_v6 = vunpack.i.h.bf16 %v5346_v14  ;;  %v5347_v19 = vunpack.i.l.bf16 %v5346_v14 }
 0x437   : > { %v3800_v62 = vpack.c.bf16 %v3771_v1, %v3770_v37  ;;  %v3706_v38 = vsel %vm3699_vm14, %v8200_v47, %v5357_v60  ;;  %v3707_v7 = vsel %vm3699_vm14, %v8204_v28, %v5358_v36 }
 0x438   : > { %v3755_v23 = vsel %vm3732_vm15, %v3722_v63, %v5347_v19  ;;  %v3756_v24 = vsel %vm3732_vm15, %v3723_v51, %v5348_v6 }
 0x439   : > { %4166 = vmatmul.msk.bf16.gmra.mxu1 %vm3854_vm1, %v3800_v62 }
 0x43b   : > { %v5371_v10 = vpop.permute.xlu2 %5370  ;;  %v5351_v46 = vpop.permute.xlu1 %5350 }
 0x43c   : > { %v5353_v17 = vunpack.i.h.bf16 %v5351_v46  ;;  %v5352_v55 = vunpack.i.l.bf16 %v5351_v46  ;;  %v5373_v20 = vunpack.i.h.bf16 %v5371_v10  ;;  %v5372_v58 = vunpack.i.l.bf16 %v5371_v10 }
 0x43d   : > { %v5361_v21 = vpop.permute.xlu0 %5360 }
 0x43e   : > { %v3788_v9 = vsel %vm3765_vm0, %v3755_v23, %v5352_v55  ;;  %v3789_v50 = vsel %vm3765_vm0, %v3756_v24, %v5353_v17  ;;  %v5363_v18 = vunpack.i.h.bf16 %v5361_v21  ;;  %v5362_v2 = vunpack.i.l.bf16 %v5361_v21 }
 0x43f   : > { %v3809_v27 = vpack.c.bf16 %v3789_v50, %v3788_v9  ;;  %v3724_v4 = vsel %vm3699_vm14, %v8257_v52, %v5372_v58  ;;  %v3725_v37 = vsel %vm3699_vm14, %v8261_v59, %v5373_v20 }
 0x440   : > { %v3739_v26 = vsel %vm3732_vm15, %v3706_v38, %v5362_v2  ;;  %v3740_v11 = vsel %vm3732_vm15, %v3707_v7, %v5363_v18 }
 0x442   : > { %4175 = vmatmul.msk.bf16.gmra.mxu2 %vm3854_vm1, %v3809_v27 }
 0x443   : > { %v5386_v22 = vpop.permute.xlu2 %5385  ;;  %v5366_v48 = vpop.permute.xlu1 %5365 }
 0x444   : > { %v5368_v13 = vunpack.i.h.bf16 %v5366_v48  ;;  %v5367_v41 = vunpack.i.l.bf16 %v5366_v48  ;;  %v5388_v6 = vunpack.i.h.bf16 %v5386_v22  ;;  %v5387_v19 = vunpack.i.l.bf16 %v5386_v22 }
 0x445   : > { %v5376_v42 = vpop.permute.xlu0 %5375 }
 0x446   : > { %v3772_v29 = vsel %vm3765_vm0, %v3739_v26, %v5367_v41  ;;  %v3773_v12 = vsel %vm3765_vm0, %v3740_v11, %v5368_v13  ;;  %v5378_v8 = vunpack.i.h.bf16 %v5376_v42  ;;  %v5377_v33 = vunpack.i.l.bf16 %v5376_v42 }
 0x447   : > { %v3801_v49 = vpack.c.bf16 %v3773_v12, %v3772_v29  ;;  %v3708_v17 = vsel %vm3699_vm14, %v8217_v61, %v5387_v19  ;;  %v3709_v55 = vsel %vm3699_vm14, %v8221_v34, %v5388_v6 }
 0x448   : > { %v3757_v30 = vsel %vm3732_vm15, %v3724_v4, %v5377_v33  ;;  %v3758_v3 = vsel %vm3732_vm15, %v3725_v37, %v5378_v8 }
 0x449   : > { %4167 = vmatmul.msk.bf16.gmra.mxu1 %vm3854_vm1, %v3801_v49 }
 0x44b   : > { %v5401_v47 = vpop.permute.xlu2 %5400  ;;  %v5381_v14 = vpop.permute.xlu1 %5380 }
 0x44c   : > { %v5383_v53 = vunpack.i.h.bf16 %v5381_v14  ;;  %v5382_v28 = vunpack.i.l.bf16 %v5381_v14  ;;  %v5403_v50 = vunpack.i.h.bf16 %v5401_v47  ;;  %v5402_v27 = vunpack.i.l.bf16 %v5401_v47 }
 0x44d   : > { %v5391_v1 = vpop.permute.xlu0 %5390 }
 0x44e   : > { %v3790_v62 = vsel %vm3765_vm0, %v3757_v30, %v5382_v28  ;;  %v3791_v54 = vsel %vm3765_vm0, %v3758_v3, %v5383_v53  ;;  %v5393_v10 = vunpack.i.h.bf16 %v5391_v1  ;;  %v5392_v46 = vunpack.i.l.bf16 %v5391_v1 }
 0x44f   : > { %v3810_v25 = vpack.c.bf16 %v3791_v54, %v3790_v62  ;;  %v3726_v22 = vsel %vm3699_vm14, %v8272_v57, %v5402_v27  ;;  %v3727_v48 = vsel %vm3699_vm14, %v8276_v0, %v5403_v50 }
 0x450   : > { %v3741_v51 = vsel %vm3732_vm15, %v3708_v17, %v5392_v46  ;;  %v3742_v21 = vsel %vm3732_vm15, %v3709_v55, %v5393_v10 }
 0x452   : > { %4176 = vmatmul.msk.bf16.gmra.mxu2 %vm3854_vm1, %v3810_v25 }
 0x453   : > { %v5416_v52 = vpop.permute.xlu2 %5415  ;;  %v5396_v43 = vpop.permute.xlu1 %5395 }
 0x454   : > { %v5398_v32 = vunpack.i.h.bf16 %v5396_v43  ;;  %v5397_v59 = vunpack.i.l.bf16 %v5396_v43  ;;  %v5418_v26 = vunpack.i.h.bf16 %v5416_v52  ;;  %v5417_v11 = vunpack.i.l.bf16 %v5416_v52 }
 0x455   : > { %v5406_v63 = vpop.permute.xlu0 %5405 }
 0x456   : > { %v3774_v23 = vsel %vm3765_vm0, %v3741_v51, %v5397_v59  ;;  %v3775_v24 = vsel %vm3765_vm0, %v3742_v21, %v5398_v32  ;;  %v5408_v36 = vunpack.i.h.bf16 %v5406_v63  ;;  %v5407_v60 = vunpack.i.l.bf16 %v5406_v63 }
 0x457   : > { %v3802_v9 = vpack.c.bf16 %v3775_v24, %v3774_v23  ;;  %v3710_v0 = vsel %vm3699_vm14, %v8187_v35, %v5417_v11  ;;  %v3711_v20 = vsel %vm3699_vm14, %v8191_v56, %v5418_v26 }
 0x458   : > { %v3759_v41 = vsel %vm3732_vm15, %v3726_v22, %v5407_v60  ;;  %v3760_v38 = vsel %vm3732_vm15, %v3727_v48, %v5408_v36 }
 0x459   : > { %4168 = vmatmul.msk.bf16.gmra.mxu1 %vm3854_vm1, %v3802_v9 }
 0x45b   : > { %v5431_v61 = vpop.permute.xlu2 %5430  ;;  %v5411_v18 = vpop.permute.xlu1 %5410 }
 0x45c   : > { %v5413_v2 = vunpack.i.h.bf16 %v5411_v18  ;;  %v5412_v34 = vunpack.i.l.bf16 %v5411_v18  ;;  %v5433_v1 = vunpack.i.h.bf16 %v5431_v61  ;;  %v5432_v30 = vunpack.i.l.bf16 %v5431_v61 }
 0x45d   : > { %v5421_v13 = vpop.permute.xlu0 %5420 }
 0x45e   : > { %v3792_v7 = vsel %vm3765_vm0, %v3759_v41, %v5412_v34  ;;  %v3793_v42 = vsel %vm3765_vm0, %v3760_v38, %v5413_v2  ;;  %v5423_v12 = vunpack.i.h.bf16 %v5421_v13  ;;  %v5422_v49 = vunpack.i.l.bf16 %v5421_v13 }
 0x45f   : > { %v3811_v29 = vpack.c.bf16 %v3793_v42, %v3792_v7  ;;  %v3695_v62 = vsel %vm3666_vm12, %v8171_v44, %v5432_v30  ;;  %v3696_v54 = vsel %vm3666_vm12, %v8175_v16, %v5433_v1 }
 0x460   : > { %v3743_v47 = vsel %vm3732_vm15, %v3710_v0, %v5422_v49  ;;  %v3744_v14 = vsel %vm3732_vm15, %v3711_v20, %v5423_v12 }
 0x462   : > { %4177 = vmatmul.msk.bf16.gmra.mxu2 %vm3854_vm1, %v3811_v29 }
 0x463   : > { %v5426_v57 = vpop.permute.xlu1 %5425  ;;  %v5446_v58 = vpop.permute.xlu2 %5445 }
 0x464   : > { %v5428_v8 = vunpack.i.h.bf16 %v5426_v57  ;;  %v5427_v33 = vunpack.i.l.bf16 %v5426_v57  ;;  %v5448_v19 = vunpack.i.h.bf16 %v5446_v58  ;;  %v5447_v10 = vunpack.i.l.bf16 %v5446_v58 }
 0x465   : > { %v5436_v53 = vpop.permute.xlu0 %5435 }
 0x466   : > { %v3776_v28 = vsel %vm3765_vm0, %v3743_v47, %v5427_v33  ;;  %v3777_v4 = vsel %vm3765_vm0, %v3744_v14, %v5428_v8  ;;  %v5438_v3 = vunpack.i.h.bf16 %v5436_v53  ;;  %v5437_v35 = vunpack.i.l.bf16 %v5436_v53 }
 0x467   : > { %v3803_v37 = vpack.c.bf16 %v3777_v4, %v3776_v28 }
 0x468   : > { %v3728_v46 = vsel %vm3699_vm14, %v3695_v62, %v5437_v35  ;;  %v3729_v52 = vsel %vm3699_vm14, %v3696_v54, %v5438_v3 }
 0x469   : > { %4169 = vmatmul.msk.bf16.gmra.mxu1 %vm3854_vm1, %v3803_v37 }
 0x46b   : > { %v5441_v56 = vpop.permute.xlu1 %5440  ;;  %v5461_v32 = vpop.permute.xlu2 %5460 }
 0x46c   : > { %v5443_v25 = vunpack.i.h.bf16 %v5441_v56  ;;  %v5442_v6 = vunpack.i.l.bf16 %v5441_v56  ;;  %v5463_v9 = vunpack.i.h.bf16 %v5461_v32  ;;  %v5462_v50 = vunpack.i.l.bf16 %v5461_v32 }
 0x46d   : > { %v5451_v43 = vpop.permute.xlu0 %5450 }
 0x46e   : > { %v3761_v59 = vsel %vm3732_vm15, %v3728_v46, %v5442_v6  ;;  %v3762_v17 = vsel %vm3732_vm15, %v3729_v52, %v5443_v25  ;;  %v5453_v16 = vunpack.i.h.bf16 %v5451_v43  ;;  %v5452_v51 = vunpack.i.l.bf16 %v5451_v43 }
 0x46f   : > { %v3794_v55 = vsel %vm3765_vm0, %v3761_v59, %v5447_v10  ;;  %v3795_v44 = vsel %vm3765_vm0, %v3762_v17, %v5448_v19 }
 0x470   : > { %v3812_v63 = vpack.c.bf16 %v3795_v44, %v3794_v55  ;;  %v3712_v27 = vsel %vm3699_vm14, %v8228_v39, %v5452_v51  ;;  %v3713_v36 = vsel %vm3699_vm14, %v8232_v15, %v5453_v16 }
 0x472   : > { %4178 = vmatmul.msk.bf16.gmra.mxu2 %vm3854_vm1, %v3812_v63 }
 0x473   : > { %v5456_v21 = vpop.permute.xlu1 %5455  ;;  %v5476_v22 = vpop.permute.xlu2 %5475 }
 0x474   : > { %v5458_v23 = vunpack.i.h.bf16 %v5456_v21  ;;  %v5457_v24 = vunpack.i.l.bf16 %v5456_v21  ;;  %v5478_v38 = vunpack.i.h.bf16 %v5476_v22  ;;  %v5477_v39 = vunpack.i.l.bf16 %v5476_v22 }
 0x475   : > { %v5466_v60 = vpop.permute.xlu0 %5465 }
 0x476   : > { %v3745_v61 = vsel %vm3732_vm15, %v3712_v27, %v5457_v24  ;;  %v3746_v18 = vsel %vm3732_vm15, %v3713_v36, %v5458_v23  ;;  %v5468_v13 = vunpack.i.h.bf16 %v5466_v60  ;;  %v5467_v41 = vunpack.i.l.bf16 %v5466_v60 }
 0x477   : > { %v3778_v2 = vsel %vm3765_vm0, %v3745_v61, %v5462_v50  ;;  %v3779_v34 = vsel %vm3765_vm0, %v3746_v18, %v5463_v9 }
 0x478   : > { %v3804_v48 = vpack.c.bf16 %v3779_v34, %v3778_v2  ;;  %v3697_v26 = vsel %vm3666_vm12, %v8131_v5, %v5467_v41  ;;  %v3698_v11 = vsel %vm3666_vm12, %v8135_v45, %v5468_v13 }
 0x47a   : > { %4170 = vmatmul.msk.bf16.gmra.mxu1 %vm3854_vm1, %v3804_v48 }
 0x47b   : > { %v5471_v7 = vpop.permute.xlu1 %5470  ;;  %v5491_v5 = vpop.permute.xlu2 %5490 }
 0x47c   : > { %v5473_v42 = vunpack.i.h.bf16 %v5471_v7  ;;  %v5472_v15 = vunpack.i.l.bf16 %v5471_v7  ;;  %v5493_v28 = vunpack.i.h.bf16 %v5491_v5  ;;  %v5492_v4 = vunpack.i.l.bf16 %v5491_v5 }
 0x47d   : > { %v5481_v29 = vpop.permute.xlu0 %5480 }
 0x47e   : > { %v3730_v12 = vsel %vm3699_vm14, %v3697_v26, %v5472_v15  ;;  %v3731_v49 = vsel %vm3699_vm14, %v3698_v11, %v5473_v42  ;;  %v5483_v57 = vunpack.i.h.bf16 %v5481_v29  ;;  %v5482_v0 = vunpack.i.l.bf16 %v5481_v29 }
 0x47f   : > { %v3763_v20 = vsel %vm3732_vm15, %v3730_v12, %v5477_v39  ;;  %v3764_v58 = vsel %vm3732_vm15, %v3731_v49, %v5478_v38 }
 0x480   : > { %v3796_v8 = vsel %vm3765_vm0, %v3763_v20, %v5482_v0  ;;  %v3797_v33 = vsel %vm3765_vm0, %v3764_v58, %v5483_v57 }
 0x481   : > { %v3813_v47 = vpack.c.bf16 %v3797_v33, %v3796_v8 }
 0x483   : > { %v5486_v14 = vpop.permute.xlu1 %5485  ;;  %4179 = vmatmul.msk.bf16.gmra.mxu2 %vm3854_vm1, %v3813_v47 }
 0x484   : > { %v5488_v45 = vunpack.i.h.bf16 %v5486_v14  ;;  %v5487_v53 = vunpack.i.l.bf16 %v5486_v14 }
 0x485   : > { %v5496_v37 = vpop.permute.xlu0 %5495 }
 0x486   : > { %v3714_v1 = vsel %vm3699_vm14, %v8243_v31, %v5487_v53  ;;  %v3715_v30 = vsel %vm3699_vm14, %v8247_v40, %v5488_v45  ;;  %v5498_v3 = vunpack.i.h.bf16 %v5496_v37  ;;  %v5497_v35 = vunpack.i.l.bf16 %v5496_v37  ;;  %v8470_v31 = vld [vmem:[%s8582_s4] ss:$0 sm:$0xff] }
 0x487   : > { %v3747_v56 = vsel %vm3732_vm15, %v3714_v1, %v5492_v4  ;;  %v3748_v62 = vsel %vm3732_vm15, %v3715_v30, %v5493_v28 }
 0x488   : > { %v3780_v54 = vsel %vm3765_vm0, %v3747_v56, %v5497_v35  ;;  %v3781_v25 = vsel %vm3765_vm0, %v3748_v62, %v5498_v3 }
 0x489   : > { %v3805_v6 = vpack.c.bf16 %v3781_v25, %v3780_v54 }
 0x48b   : > { %4171 = vmatmul.msk.bf16.gmra.mxu1 %vm3854_vm1, %v3805_v6 }
 0x495   : > { %v3956_v19 = vpop.f32.mrf.mxu2 }
 0x496   : > { %v3957_v40 = vadd.f32 %v8470_v31, %v3956_v19  ;;  %v3916_v10 = vpop.f32.mrf.mxu1 }
 0x497   : > { %v3917_v52 = vadd.f32 %v8470_v31, %v3916_v10 }
 0x498   : > { %v4012_v46 = vmax.f32 %v3957_v40, 0.0 }
 0x499   : > { %v3996_v43 = vmax.f32 %v3917_v52, 0.0 }
 0x49a   : > { %4044 = vst.msk [vmem:[%s8478_s11 + $0x80] sm:$0xff] %vm1692_vm2, %v4012_v46 }
 0x49b   : > { %4028 = vst.msk [vmem:[%s8478_s11] sm:$0xff] %vm1692_vm2, %v3996_v43 }
 0x49d   : > { %v3958_v32 = vpop.f32.mrf.mxu2 }
 0x49e   : > { %v3959_v59 = vadd.f32 %v8470_v31, %v3958_v32  ;;  %v3918_v17 = vpop.f32.mrf.mxu1 }
 0x49f   : > { %v3919_v44 = vadd.f32 %v8470_v31, %v3918_v17 }
 0x4a0   : > { %v4013_v55 = vmax.f32 %v3959_v59, 0.0 }
 0x4a1   : > { %v3997_v63 = vmax.f32 %v3919_v44, 0.0 }
 0x4a2   : > { %4045 = vst.msk [vmem:[%s8478_s11 + $0x88] sm:$0xff] %vm1692_vm2, %v4013_v55 }
 0x4a3   : > { %4029 = vst.msk [vmem:[%s8478_s11 + $0x8] sm:$0xff] %vm1692_vm2, %v3997_v63 }
 0x4a5   : > { %v3961_v16 = vpop.f32.mrf.mxu2 }
 0x4a6   : > { %v3962_v51 = vadd.f32 %v8470_v31, %v3961_v16  ;;  %v3921_v21 = vpop.f32.mrf.mxu1 }
 0x4a7   : > { %v3922_v24 = vadd.f32 %v8470_v31, %v3921_v21 }
 0x4a8   : > { %v4014_v23 = vmax.f32 %v3962_v51, 0.0 }
 0x4a9   : > { %v3998_v9 = vmax.f32 %v3922_v24, 0.0 }
 0x4aa   : > { %4046 = vst.msk [vmem:[%s8478_s11 + $0x90] sm:$0xff] %vm1692_vm2, %v4014_v23 }
 0x4ab   : > { %4030 = vst.msk [vmem:[%s8478_s11 + $0x10] sm:$0xff] %vm1692_vm2, %v3998_v9 }
 0x4ad   : > { %v3963_v50 = vpop.f32.mrf.mxu2 }
 0x4ae   : > { %v3964_v27 = vadd.f32 %v8470_v31, %v3963_v50  ;;  %v3923_v36 = vpop.f32.mrf.mxu1 }
 0x4af   : > { %v3924_v61 = vadd.f32 %v8470_v31, %v3923_v36 }
 0x4b0   : > { %v4015_v60 = vmax.f32 %v3964_v27, 0.0 }
 0x4b1   : > { %v3999_v18 = vmax.f32 %v3924_v61, 0.0 }
 0x4b2   : > { %4047 = vst.msk [vmem:[%s8478_s11 + $0x98] sm:$0xff] %vm1692_vm2, %v4015_v60 }
 0x4b3   : > { %4031 = vst.msk [vmem:[%s8478_s11 + $0x18] sm:$0xff] %vm1692_vm2, %v3999_v18 }
 0x4b5   : > { %v3966_v2 = vpop.f32.mrf.mxu2 }
 0x4b6   : > { %v3967_v34 = vadd.f32 %v8470_v31, %v3966_v2  ;;  %v3926_v22 = vpop.f32.mrf.mxu1 }
 0x4b7   : > { %v3927_v13 = vadd.f32 %v8470_v31, %v3926_v22 }
 0x4b8   : > { %v4016_v48 = vmax.f32 %v3967_v34, 0.0 }
 0x4b9   : > { %v4000_v41 = vmax.f32 %v3927_v13, 0.0 }
 0x4ba   : > { %4048 = vst.msk [vmem:[%s8478_s11 + $0xa0] sm:$0xff] %vm1692_vm2, %v4016_v48 }
 0x4bb   : > { %4032 = vst.msk [vmem:[%s8478_s11 + $0x20] sm:$0xff] %vm1692_vm2, %v4000_v41 }
 0x4bd   : > { %v3968_v38 = vpop.f32.mrf.mxu2 }
 0x4be   : > { %v3969_v39 = vadd.f32 %v8470_v31, %v3968_v38  ;;  %v3928_v7 = vpop.f32.mrf.mxu1 }
 0x4bf   : > { %v3929_v15 = vadd.f32 %v8470_v31, %v3928_v7 }
 0x4c0   : > { %v4017_v42 = vmax.f32 %v3969_v39, 0.0 }
 0x4c1   : > { %v4001_v26 = vmax.f32 %v3929_v15, 0.0 }
 0x4c2   : > { %4049 = vst.msk [vmem:[%s8478_s11 + $0xa8] sm:$0xff] %vm1692_vm2, %v4017_v42 }
 0x4c3   : > { %4033 = vst.msk [vmem:[%s8478_s11 + $0x28] sm:$0xff] %vm1692_vm2, %v4001_v26 }
 0x4c5   : > { %v3971_v11 = vpop.f32.mrf.mxu2 }
 0x4c6   : > { %v3972_v29 = vadd.f32 %v8470_v31, %v3971_v11  ;;  %v3931_v12 = vpop.f32.mrf.mxu1 }
 0x4c7   : > { %v3932_v57 = vadd.f32 %v8470_v31, %v3931_v12 }
 0x4c8   : > { %v4018_v49 = vmax.f32 %v3972_v29, 0.0 }
 0x4c9   : > { %v4002_v0 = vmax.f32 %v3932_v57, 0.0 }
 0x4ca   : > { %4050 = vst.msk [vmem:[%s8478_s11 + $0xb0] sm:$0xff] %vm1692_vm2, %v4018_v49 }
 0x4cb   : > { %4034 = vst.msk [vmem:[%s8478_s11 + $0x30] sm:$0xff] %vm1692_vm2, %v4002_v0 }
 0x4cd   : > { %v3973_v20 = vpop.f32.mrf.mxu2 }
 0x4ce   : > { %v3974_v58 = vadd.f32 %v8470_v31, %v3973_v20  ;;  %v3933_v8 = vpop.f32.mrf.mxu1 }
 0x4cf   : > { %v3934_v47 = vadd.f32 %v8470_v31, %v3933_v8 }
 0x4d0   : > { %v4019_v33 = vmax.f32 %v3974_v58, 0.0 }
 0x4d1   : > { %v4003_v5 = vmax.f32 %v3934_v47, 0.0 }
 0x4d2   : > { %4051 = vst.msk [vmem:[%s8478_s11 + $0xb8] sm:$0xff] %vm1692_vm2, %v4019_v33 }
 0x4d3   : > { %4035 = vst.msk [vmem:[%s8478_s11 + $0x38] sm:$0xff] %vm1692_vm2, %v4003_v5 }
 0x4d5   : > { %v3976_v14 = vpop.f32.mrf.mxu2 }
 0x4d6   : > { %v3977_v45 = vadd.f32 %v8470_v31, %v3976_v14  ;;  %v3936_v53 = vpop.f32.mrf.mxu1 }
 0x4d7   : > { %v3937_v4 = vadd.f32 %v8470_v31, %v3936_v53 }
 0x4d8   : > { %v4020_v28 = vmax.f32 %v3977_v45, 0.0 }
 0x4d9   : > { %v4004_v37 = vmax.f32 %v3937_v4, 0.0 }
 0x4da   : > { %4052 = vst.msk [vmem:[%s8478_s11 + $0xc0] sm:$0xff] %vm1692_vm2, %v4020_v28 }
 0x4db   : > { %4036 = vst.msk [vmem:[%s8478_s11 + $0x40] sm:$0xff] %vm1692_vm2, %v4004_v37 }
 0x4dd   : > { %v3978_v1 = vpop.f32.mrf.mxu2 }
 0x4de   : > { %v3979_v30 = vadd.f32 %v8470_v31, %v3978_v1  ;;  %v3938_v3 = vpop.f32.mrf.mxu1 }
 0x4df   : > { %v3939_v56 = vadd.f32 %v8470_v31, %v3938_v3 }
 0x4e0   : > { %v4021_v35 = vmax.f32 %v3979_v30, 0.0 }
 0x4e1   : > { %v4005_v62 = vmax.f32 %v3939_v56, 0.0 }
 0x4e2   : > { %4053 = vst.msk [vmem:[%s8478_s11 + $0xc8] sm:$0xff] %vm1692_vm2, %v4021_v35 }
 0x4e3   : > { %4037 = vst.msk [vmem:[%s8478_s11 + $0x48] sm:$0xff] %vm1692_vm2, %v4005_v62 }
 0x4e5   : > { %v3981_v54 = vpop.f32.mrf.mxu2 }
 0x4e6   : > { %v3982_v25 = vadd.f32 %v8470_v31, %v3981_v54  ;;  %v3941_v6 = vpop.f32.mrf.mxu1 }
 0x4e7   : > { %v3942_v40 = vadd.f32 %v8470_v31, %v3941_v6 }
 0x4e8   : > { %v4022_v19 = vmax.f32 %v3982_v25, 0.0 }
 0x4e9   : > { %v4006_v10 = vmax.f32 %v3942_v40, 0.0 }
 0x4ea   : > { %4054 = vst.msk [vmem:[%s8478_s11 + $0xd0] sm:$0xff] %vm1692_vm2, %v4022_v19 }
 0x4eb   : > { %4038 = vst.msk [vmem:[%s8478_s11 + $0x50] sm:$0xff] %vm1692_vm2, %v4006_v10 }
 0x4ed   : > { %v3983_v46 = vpop.f32.mrf.mxu2 }
 0x4ee   : > { %v3984_v52 = vadd.f32 %v8470_v31, %v3983_v46  ;;  %v3943_v43 = vpop.f32.mrf.mxu1 }
 0x4ef   : > { %v3944_v59 = vadd.f32 %v8470_v31, %v3943_v43 }
 0x4f0   : > { %v4023_v32 = vmax.f32 %v3984_v52, 0.0 }
 0x4f1   : > { %v4007_v17 = vmax.f32 %v3944_v59, 0.0 }
 0x4f2   : > { %4055 = vst.msk [vmem:[%s8478_s11 + $0xd8] sm:$0xff] %vm1692_vm2, %v4023_v32 }
 0x4f3   : > { %4039 = vst.msk [vmem:[%s8478_s11 + $0x58] sm:$0xff] %vm1692_vm2, %v4007_v17 }
 0x4f5   : > { %v3986_v55 = vpop.f32.mrf.mxu2 }
 0x4f6   : > { %v3987_v44 = vadd.f32 %v8470_v31, %v3986_v55 }
 0x4f7   : > { %v3946_v63 = vpop.f32.mrf.mxu1 }
 0x4f8   : > { %v4024_v16 = vmax.f32 %v3987_v44, 0.0  ;;  %v3947_v51 = vadd.f32 %v8470_v31, %v3946_v63 }
 0x4fa   : > { %4056 = vst.msk [vmem:[%s8478_s11 + $0xe0] sm:$0xff] %vm1692_vm2, %v4024_v16  ;;  %v4008_v21 = vmax.f32 %v3947_v51, 0.0 }
 0x4fc   : > { %4040 = vst.msk [vmem:[%s8478_s11 + $0x60] sm:$0xff] %vm1692_vm2, %v4008_v21 }
 0x4fd   : > { %v3988_v23 = vpop.f32.mrf.mxu2 }
 0x4fe   : > { %v3989_v24 = vadd.f32 %v8470_v31, %v3988_v23 }
 0x4ff   : > { %v3948_v9 = vpop.f32.mrf.mxu1 }
 0x500   : > { %v4025_v50 = vmax.f32 %v3989_v24, 0.0  ;;  %v3949_v27 = vadd.f32 %v8470_v31, %v3948_v9 }
 0x502   : > { %4057 = vst.msk [vmem:[%s8478_s11 + $0xe8] sm:$0xff] %vm1692_vm2, %v4025_v50  ;;  %v4009_v36 = vmax.f32 %v3949_v27, 0.0 }
 0x504   : > { %4041 = vst.msk [vmem:[%s8478_s11 + $0x68] sm:$0xff] %vm1692_vm2, %v4009_v36 }
 0x506   : > { %v3991_v60 = vpop.f32.mrf.mxu2 }
 0x507   : > { %v3992_v61 = vadd.f32 %v8470_v31, %v3991_v60 }
 0x508   : > { %v3951_v18 = vpop.f32.mrf.mxu1 }
 0x509   : > { %v4026_v2 = vmax.f32 %v3992_v61, 0.0  ;;  %v3952_v34 = vadd.f32 %v8470_v31, %v3951_v18 }
 0x50b   : > { %4058 = vst.msk [vmem:[%s8478_s11 + $0xf0] sm:$0xff] %vm1692_vm2, %v4026_v2  ;;  %v4010_v22 = vmax.f32 %v3952_v34, 0.0 }
 0x50d   : > { %4042 = vst.msk [vmem:[%s8478_s11 + $0x70] sm:$0xff] %vm1692_vm2, %v4010_v22 }
 0x50e   : > { %v3993_v48 = vpop.f32.mrf.mxu2 }
 0x50f   : > { %v3994_v13 = vadd.f32 %v8470_v31, %v3993_v48 }
 0x510   : > { %v3953_v41 = vpop.f32.mrf.mxu1 }
 0x511   : > { %v4027_v38 = vmax.f32 %v3994_v13, 0.0  ;;  %v3954_v39 = vadd.f32 %v8470_v31, %v3953_v41 }
 0x513   : > { %4059 = vst.msk [vmem:[%s8478_s11 + $0xf8] sm:$0xff] %vm1692_vm2, %v4027_v38  ;;  %v4011_v7 = vmax.f32 %v3954_v39, 0.0 }
 0x515   : > { %4043 = vst.msk [vmem:[%s8478_s11 + $0x78] sm:$0xff] %vm1692_vm2, %v4011_v7 }
 0x516 PF: > { %s15_s18 = sadd.s32 1, %s5509_s18  }
 0x517   : > { %p12_p4 = scmp.ge.s32.totalorder %s15_s18, 4  }
 0x519   :  { %14 = sbr.rel (!%p12_p4) target bundleno = 1 (0x1), region = 74 }

</bundles_post_ra>
